<compile_context>
chip_gen: v7x
topology: tpu7x:2x2x1
jax: 0.10.0
libtpu: 0.0.40
codegen_flags: <defaults>
</compile_context>

<pallas_src>
import functools
import math

import jax
import jax.numpy as jnp
from jax import lax
from jax.experimental import pallas as pl
from jax.experimental.pallas import tpu as pltpu

# ----------------------- scaled-down config (original in comments) ----------
MAX_H = MAX_W = 32          # 512
PATCH = 16                  # 16 (ViT-B/16)
VIS_DIM = 64                # 768
VIS_HEADS = 4               # 12
VIS_LAYERS = 10             # 12 (must cover max(extract_layers))
EXTRACT_LAYERS = (0, 3, 6, 9)
COND_LAYER = 0
REDUCE_DIM = 32             # 64
N_HEADS = 4                 # 4 (decoder blocks)
FF_DIM = 64                 # 2048 (nn.TransformerEncoderLayer default)
TEXT_DIM = 32               # 512
TEXT_HEADS = 2              # 8
TEXT_LAYERS = 2             # 12
TEXT_LEN = 8                # 77
VOCAB = 64                  # 49408
EMB_DIM = 48                # 512 (CLIP joint embedding -> film input)
LN_EPS = 1e-5

IMG_MEAN = jnp.array([0.48145466, 0.4578275, 0.40821073], jnp.float32)
IMG_STD = jnp.array([0.26862954, 0.26130258, 0.27577711], jnp.float32)

_VMEM = pl.BlockSpec(memory_space=pltpu.MemorySpace.VMEM)
_VMEM_LIMIT = 32 * 1024 * 1024


# ---------------------------- in-kernel helpers -------------------------------
def _ln(x, g, b, eps=LN_EPS):
    """Row-wise LayerNorm, f32 statistics."""
    mu = jnp.mean(x, axis=-1, keepdims=True)
    var = jnp.mean(jnp.square(x - mu), axis=-1, keepdims=True)
    return (x - mu) * lax.rsqrt(var + eps) * g + b


def _attn_bias(batch, seq, causal):
    """Additive attention bias over all rows (b, l)-ordered.

    Block-diagonal per batch (cross-batch entries -> -1e30) and optionally
    causal.  Built ONCE per kernel invocation (hoisted out of the head loop).
    Returns None when no masking is needed.
    """
    if batch == 1 and not causal:
        return None
    rows = batch * seq
    r = lax.broadcasted_iota(jnp.int32, (rows, rows), 0)
    c = lax.broadcasted_iota(jnp.int32, (rows, rows), 1)
    ok = None
    for b in range(batch):          # batch is tiny + static; comparisons only (no vector div)
        blk = ((r >= b * seq) & (r < (b + 1) * seq)
               & (c >= b * seq) & (c < (b + 1) * seq))
        ok = blk if ok is None else (ok | blk)
    if causal:
        ok = ok & (c <= r)          # within a batch block this is exactly the causal mask
    return jnp.where(ok, 0.0, -1e30).astype(jnp.float32)


def _mha_2d(qkv, d, n_heads, bias):
    """Multi-head attention on a VMEM-resident qkv value.

    qkv: (rows, 3*d) f32 with rows ordered (batch, seq).  All batches handled
    jointly by `bias` (block-diagonal), so every dot is a plain 2-D MXU matmul
    (no per-batch row slices, no reshapes/transposes).  Returns (rows, d).
    # TODO(synk): for production seq, replace the full score matrix with a
    # flash-style KV-tiled loop and a head-major batched layout.
    """
    hd = d // n_heads
    scale = float(hd) ** -0.5
    ctx = []
    for h in range(n_heads):
        q = qkv[:, h * hd:(h + 1) * hd] * scale
        k = qkv[:, d + h * hd:d + (h + 1) * hd]
        v = qkv[:, 2 * d + h * hd:2 * d + (h + 1) * hd]
        s = lax.dot_general(q, k, (((1,), (1,)), ((), ())),
                            preferred_element_type=jnp.float32)          # (rows, rows)
        if bias is not None:
            s = s + bias
        m = jnp.max(s, axis=-1, keepdims=True)
        p = jnp.exp(s - m)
        p = p * pl.reciprocal(jnp.sum(p, axis=-1, keepdims=True), approx=True)
        ctx.append(jnp.dot(p, v, preferred_element_type=jnp.float32))
    return jnp.concatenate(ctx, axis=-1)                                  # (rows, d)


# -------------------- fused CLIP transformer tower (1 call) -------------------
def _clip_tower_kernel(slots_ref, x0_ref, preg, preb,
                       ln1g, ln1b, w_in, b_in, w_out, b_out,
                       ln2g, ln2b, w_fc, b_fc, w_pr, b_pr,
                       postg, postb,
                       out_ref, carry, *, batch, seq, n_heads, causal,
                       extract_layers, apply_pre, apply_post):
    del slots_ref  # only consumed by the output index_map
    layer = pl.program_id(0)

    @pl.when(layer == 0)
    def _():
        x0 = x0_ref[...]
        if apply_pre:                                   # ln_pre fused (visual tower)
            x0 = _ln(x0, preg[...], preb[...])
        carry[...] = x0

    x = carry[...]                                      # (rows, D) f32, VMEM resident
    d = x.shape[-1]
    bias = _attn_bias(batch, seq, causal)               # hoisted: built once per layer

    # ln_1 -> fused QKV projection (bf16 MXU, f32 acc) -> attention -> out_proj + residual
    xn = _ln(x, ln1g[0], ln1b[0])
    qkv = jnp.dot(xn.astype(jnp.bfloat16), w_in[0],
                  preferred_element_type=jnp.float32) + b_in[0]
    ctx = _mha_2d(qkv, d, n_heads, bias)
    x = x + jnp.dot(ctx.astype(jnp.bfloat16), w_out[0],
                    preferred_element_type=jnp.float32) + b_out[0]

    # ln_2 -> MLP (QuickGELU, f32) + residual
    xn = _ln(x, ln2g[0], ln2b[0])
    h = jnp.dot(xn.astype(jnp.bfloat16), w_fc[0],
                preferred_element_type=jnp.float32) + b_fc[0]
    h = h * jax.nn.sigmoid(1.702 * h)
    x = x + jnp.dot(h.astype(jnp.bfloat16), w_pr[0],
                    preferred_element_type=jnp.float32) + b_pr[0]

    carry[...] = x

    # only write the activations that are actually consumed downstream
    is_extract = (layer == extract_layers[0])
    for l in extract_layers[1:]:
        is_extract = is_extract | (layer == l)

    @pl.when(is_extract)
    def _():
        y = x
        if apply_post:                                  # ln_final fused (text tower)
            y = _ln(y, postg[...], postb[...])
        out_ref[0] = y


def clip_tower(x0, layers, n_heads, causal, extract_layers,
               pre_ln=None, post_ln=None):
    """x0: (B, L, D) f32 batch-major.  Returns (len(extract_layers), B, L, D)."""
    b, l, d = x0.shape
    n_layers = layers["w_in"].shape[0]
    rows = b * l
    n_out = len(extract_layers)
    x2 = x0.reshape(rows, d)

    # layer -> output slot (scalar-prefetch table consumed by the out index_map)
    slot_tbl = [max(sum(1 for e in extract_layers if e <= i) - 1, 0)
                for i in range(n_layers)]
    slots = jnp.array(slot_tbl, jnp.int32)

    def v2(p):
        return p.reshape(1, -1)

    def v3(p):                                          # (n, dim) -> (n, 1, dim)
        return p[:, None, :]

    ident = (jnp.ones((1, d), jnp.float32), jnp.zeros((1, d), jnp.float32))
    preg, preb = (v2(pre_ln[0]), v2(pre_ln[1])) if pre_ln is not None else ident
    postg, postb = (v2(post_ln[0]), v2(post_ln[1])) if post_ln is not None else ident

    args = (x2, preg, preb,
            v3(layers["ln1_g"]), v3(layers["ln1_b"]),
            layers["w_in"], v3(layers["b_in"]),
            layers["w_out"], v3(layers["b_out"]),
            v3(layers["ln2_g"]), v3(layers["ln2_b"]),
            layers["w_fc"], v3(layers["b_fc"]),
            layers["w_pr"], v3(layers["b_pr"]),
            postg, postb)

    def spec_for(a):
        if a.ndim == 3:   # per-layer stacked param: layer i's slice is prefetched
            return pl.BlockSpec((1, a.shape[1], a.shape[2]), lambda i, s_: (i, 0, 0))
        return pl.BlockSpec(a.shape, lambda i, s_: (0, 0))   # constant (resident) block

    grid_spec = pltpu.PrefetchScalarGridSpec(
        num_scalar_prefetch=1,
        grid=(n_layers,),
        in_specs=[spec_for(a) for a in args],
        out_specs=pl.BlockSpec((1, rows, d), lambda i, s_: (s_[i], 0, 0)),
        scratch_shapes=[pltpu.VMEM((rows, d), jnp.float32)],
    )

    # TODO(synk): at production dims (768/3072, 1025 tokens) add row tiling over M
    # and a leading parallel batch axis (v7x 2 TCs); keep vmem_limit_bytes tuned.
    out = pl.pallas_call(
        functools.partial(_clip_tower_kernel, batch=b, seq=l, n_heads=n_heads,
                          causal=causal, extract_layers=tuple(extract_layers),
                          apply_pre=pre_ln is not None,
                          apply_post=post_ln is not None),
        grid_spec=grid_spec,
        out_shape=jax.ShapeDtypeStruct((n_out, rows, d), jnp.float32),
        compiler_params=pltpu.CompilerParams(
            dimension_semantics=("arbitrary",),
            vmem_limit_bytes=_VMEM_LIMIT),
    )(slots, *args)
    return out.reshape(n_out, b, l, d)


# ------------------- fused decoder (reduce+FiLM+block) x3 (1 call) ------------
def _decoder_kernel(act_ref, red_w, red_b, tfeat, film_w, film_b,
                    w_in, b_in, w_out, b_out, ln1g, ln1b,
                    w1, b1, w2, b2, ln2g, ln2b,
                    out_ref, carry, *, batch, seq, n_heads, cond_layer):
    step = pl.program_id(0)

    @pl.when(step == 0)
    def _():
        carry[...] = jnp.zeros_like(carry)

    act = act_ref[0]                                      # (rows, VIS_DIM)
    # a = reduce(activation) (+ previous block output)
    a = (jnp.dot(act.astype(jnp.bfloat16), red_w[0],
                 preferred_element_type=jnp.float32) + red_b[0] + carry[...])
    r = a.shape[-1]
    carry[...] = a

    # FiLM: projection fused in-kernel; (batch, R) -> (rows, R) via a tiny
    # one-hot select matmul (no broadcast_to + concat materialization).
    @pl.when(step == cond_layer)
    def _():
        film = jnp.dot(tfeat[...], film_w[...],
                       preferred_element_type=jnp.float32) + film_b[...]   # (batch, 2R)
        mul, add = film[:, :r], film[:, r:]
        row = lax.broadcasted_iota(jnp.int32, (batch * seq, batch), 0)
        col = lax.broadcasted_iota(jnp.int32, (batch * seq, batch), 1)
        sel = ((row >= col * seq) & (row < (col + 1) * seq)).astype(jnp.float32)
        carry[...] = (a * jnp.dot(sel, mul, preferred_element_type=jnp.float32)
                      + jnp.dot(sel, add, preferred_element_type=jnp.float32))

    a = carry[...]
    bias = _attn_bias(batch, seq, causal=False)

    # nn.TransformerEncoderLayer (post-norm, ReLU, inference -> no dropout)
    qkv = jnp.dot(a.astype(jnp.bfloat16), w_in[0],
                  preferred_element_type=jnp.float32) + b_in[0]
    ctx = _mha_2d(qkv, r, n_heads, bias)
    attn = jnp.dot(ctx.astype(jnp.bfloat16), w_out[0],
                   preferred_element_type=jnp.float32) + b_out[0]
    x = _ln(a + attn, ln1g[0], ln1b[0])
    h = jnp.maximum(jnp.dot(x.astype(jnp.bfloat16), w1[0],
                            preferred_element_type=jnp.float32) + b1[0], 0.0)
    x = _ln(x + jnp.dot(h.astype(jnp.bfloat16), w2[0],
                        preferred_element_type=jnp.float32) + b2[0],
            ln2g[0], ln2b[0])
    carry[...] = x

    @pl.when(step == pl.num_programs(0) - 1)
    def _():
        out_ref[...] = x                                  # constant block -> one writeback


def decoder_stack(acts_rev, text_feature, film_w, film_b,
                  red_w, red_b, dec, batch, seq):
    """acts_rev: (n_steps, B*L, VIS_DIM).  Returns final decoder activation (B*L, R)."""
    n_steps, rows, _ = acts_rev.shape
    r = red_w.shape[-1]

    def v3(p):
        return p[:, None, :]

    args = (acts_rev, red_w, v3(red_b),
            text_feature, film_w, film_b.reshape(1, -1),
            dec["w_in"], v3(dec["b_in"]), dec["w_out"], v3(dec["b_out"]),
            v3(dec["ln1_g"]), v3(dec["ln1_b"]),
            dec["w1"], v3(dec["b1"]), dec["w2"], v3(dec["b2"]),
            v3(dec["ln2_g"]), v3(dec["ln2_b"]))

    def spec_for(a):
        if a.ndim == 3:
            return pl.BlockSpec((1, a.shape[1], a.shape[2]), lambda i: (i, 0, 0))
        return pl.BlockSpec(a.shape, lambda i: (0, 0))

    # TODO(synk): production: pad REDUCE_DIM outputs to 128 lanes for unmasked stores.
    return pl.pallas_call(
        functools.partial(_decoder_kernel, batch=batch, seq=seq,
                          n_heads=N_HEADS, cond_layer=COND_LAYER),
        grid=(n_steps,),
        out_shape=jax.ShapeDtypeStruct((rows, r), jnp.float32),
        in_specs=[spec_for(a) for a in args],
        out_specs=pl.BlockSpec((rows, r), lambda i: (0, 0)),
        scratch_shapes=[pltpu.VMEM((rows, r), jnp.float32)],
        compiler_params=pltpu.CompilerParams(
            dimension_semantics=("arbitrary",),
            vmem_limit_bytes=_VMEM_LIMIT),
    )(*args)


# ------------------------ generic small kernels (glue ops) --------------------
def _mm_kernel(x_ref, w_ref, b_ref, o_ref, *, activation):
    y = jnp.dot(x_ref[...], w_ref[...], preferred_element_type=jnp.float32) + b_ref[...]
    if activation == "relu":
        y = jnp.maximum(y, 0.0)
    elif activation == "sigmoid":
        y = jax.nn.sigmoid(y)
    o_ref[...] = y


def matmul(x, w, b=None, activation="none"):
    """y = act(x @ w + b). x:(M,K) w:(K,N) b:(N,)."""
    m, _ = x.shape
    n = w.shape[1]
    if b is None:
        b = jnp.zeros((n,), jnp.float32)
    return pl.pallas_call(
        functools.partial(_mm_kernel, activation=activation),
        out_shape=jax.ShapeDtypeStruct((m, n), jnp.float32),
        in_specs=[_VMEM, _VMEM, _VMEM],
        out_specs=_VMEM,
    )(x, w, b.reshape(1, n))


def _mm2_kernel(x_ref, w1_ref, b1_ref, w2_ref, b2_ref, o_ref):
    """relu(relu(x @ w1 + b1) @ w2 + b2) with a VMEM-resident intermediate."""
    y = jnp.maximum(jnp.dot(x_ref[...], w1_ref[...],
                            preferred_element_type=jnp.float32) + b1_ref[...], 0.0)
    o_ref[...] = jnp.maximum(jnp.dot(y, w2_ref[...],
                                     preferred_element_type=jnp.float32) + b2_ref[...], 0.0)


def _resize_kernel(x_ref, rh_ref, rwt_ref, o_ref, *, apply_sigmoid):
    """Per (b,c) slab: RH @ x @ RW^T, sigmoid optionally fused; all in one call."""
    for i in range(x_ref.shape[0]):                       # tiny static loop over B*C
        y = jnp.dot(rh_ref[...], x_ref[i], preferred_element_type=jnp.float32)
        y = jnp.dot(y, rwt_ref[...], preferred_element_type=jnp.float32)
        if apply_sigmoid:
            y = jax.nn.sigmoid(y)
        o_ref[i] = y


# ----------------------------- model pieces ----------------------------------
def _bilinear_matrix(out_size, in_size):
    """F.interpolate(mode='bilinear', align_corners=True) as an (out,in) matrix."""
    if out_size == 1:
        return jnp.zeros((1, in_size), jnp.float32).at[0, 0].set(1.0)
    coords = jnp.arange(out_size, dtype=jnp.float32) * (in_size - 1) / (out_size - 1)
    lo = jnp.clip(jnp.floor(coords).astype(jnp.int32), 0, in_size - 1)
    hi = jnp.clip(lo + 1, 0, in_size - 1)
    frac = coords - lo.astype(jnp.float32)
    return ((1.0 - frac)[:, None] * jax.nn.one_hot(lo, in_size, dtype=jnp.float32)
            + frac[:, None] * jax.nn.one_hot(hi, in_size, dtype=jnp.float32))


def resize_bilinear(x, out_h, out_w, apply_sigmoid=False):
    """Bilinear align_corners=True resize of NCHW, ONE kernel (no HBM intermediates)."""
    b, c, h, w = x.shape
    rh = _bilinear_matrix(out_h, h)                        # (out_h, h)
    rwt = _bilinear_matrix(out_w, w).T                     # (w, out_w)
    y = pl.pallas_call(
        functools.partial(_resize_kernel, apply_sigmoid=apply_sigmoid),
        out_shape=jax.ShapeDtypeStruct((b * c, out_h, out_w), jnp.float32),
        in_specs=[_VMEM, _VMEM, _VMEM],
        out_specs=_VMEM,
    )(x.reshape(b * c, h, w), rh, rwt)
    return y.reshape(b, c, out_h, out_w)


def trans_conv_head(x, tp):
    """Conv2d(3x3,pad=1)+ReLU -> ConvT(4,4)+ReLU (fused in one call) -> ConvT(4,4).

    NOTE: ConvTranspose2d weights are assumed flattened with columns ordered
    (cout, kh, kw); consistent with init_params (assert layout when loading
    real PyTorch weights).
    """
    bs, r, s, _ = x.shape
    k = 4
    xpad = jnp.pad(x, ((0, 0), (0, 0), (1, 1), (1, 1)))
    cols = jnp.stack([xpad[:, :, di:di + s, dj:dj + s]
                      for di in range(3) for dj in range(3)], axis=2)    # (bs, R, 9, s, s)
    cols = cols.transpose(0, 3, 4, 1, 2).reshape(bs * s * s, r * 9)      # im2col (JAX glue)

    c1 = tp["t1_w"].shape[1] // (k * k)
    b1 = jnp.repeat(tp["t1_b"], k * k)
    # conv3x3+ReLU and ConvT1+ReLU share one kernel (their row spaces coincide).
    y = pl.pallas_call(
        _mm2_kernel,
        out_shape=jax.ShapeDtypeStruct((bs * s * s, tp["t1_w"].shape[1]), jnp.float32),
        in_specs=[_VMEM] * 5,
        out_specs=_VMEM,
    )(cols, tp["conv_w"], tp["conv_b"].reshape(1, -1), tp["t1_w"], b1.reshape(1, -1))
    y = y.reshape(bs, s, s, c1, k, k).transpose(0, 3, 1, 4, 2, 5)        # pixel shuffle (glue)
    y = y.reshape(bs, c1, s * k, s * k)

    h2 = s * k
    xf = y.transpose(0, 2, 3, 1).reshape(bs * h2 * h2, c1)
    b2 = jnp.repeat(tp["t2_b"], k * k)
    z = matmul(xf, tp["t2_w"], b2)
    z = z.reshape(bs, h2, h2, 1, k, k).transpose(0, 3, 1, 4, 2, 5)
    return z.reshape(bs, 1, h2 * k, h2 * k)


def visual_forward(img, vp):
    """img: (bs, 3, MAX_H, MAX_W), UNNORMALIZED -> extract-layer activations."""
    bs = img.shape[0]
    gh, gw = MAX_H // PATCH, MAX_W // PATCH
    patches = img.reshape(bs, 3, gh, PATCH, gw, PATCH).transpose(0, 2, 4, 1, 3, 5)
    patches = patches.reshape(bs * gh * gw, 3 * PATCH * PATCH)

    # Fold (x - mean) / std channel normalization into the patch-embed weights.
    inv_std = 1.0 / IMG_STD
    scale_rows = jnp.repeat(inv_std, PATCH * PATCH)                     # (3*P*P,)
    shift_rows = jnp.repeat(IMG_MEAN * inv_std, PATCH * PATCH)
    w_fold = vp["conv1_w"] * scale_rows[:, None]
    b_fold = -(shift_rows[None, :] @ vp["conv1_w"])[0]                  # (VIS_DIM,)
    x = matmul(patches, w_fold, b_fold)                                 # conv1 16x16/s16
    x = x.reshape(bs, gh * gw, VIS_DIM)

    cls = jnp.broadcast_to(vp["class_emb"][None, None, :], (bs, 1, VIS_DIM))
    x = jnp.concatenate([cls, x], axis=1) + vp["pos_emb"][None]         # (bs, L, D)
    # TODO(synk): bicubic positional-embedding rescale (rescaled_pos_emb) not
    # implemented; pos_emb is sized for this token count so the direct add matches.
    return clip_tower(x, vp["layers"], VIS_HEADS, causal=False,
                      extract_layers=EXTRACT_LAYERS,
                      pre_ln=(vp["ln_pre_g"], vp["ln_pre_b"]))


def encode_text(tokens, tp):
    """CLIP text encoder: causal transformer, take features at argmax token, project."""
    bs = tokens.shape[0]
    x = tp["tok_emb"][tokens] + tp["pos_emb"][None]       # (bs, Lt, Dt)
    acts = clip_tower(x, tp["layers"], TEXT_HEADS, causal=True,
                      extract_layers=(TEXT_LAYERS - 1,),   # only last layer written
                      post_ln=(tp["lnf_g"], tp["lnf_b"]))  # ln_final fused
    xf = acts[0]                                           # (bs, Lt, Dt)
    eot = jnp.argmax(tokens, axis=-1)
    feats = xf[jnp.arange(bs), eot]
    return matmul(feats, tp["proj"])                       # text_projection (no bias)


def clipseg_forward(params, image, text):
    b, c, h, w = image.shape
    bs = text.shape[0]
    img = resize_bilinear(image, MAX_H, MAX_W)            # F.interpolate(align_corners=True)
    if bs > 1:
        img = jnp.tile(img, (bs, 1, 1, 1))                # image.repeat(bs, 1, 1, 1)
    # channel normalization is folded into the patch-embed weights (visual_forward)

    text_feature = encode_text(text, params["text"])      # (bs, EMB_DIM)
    acts = visual_forward(img, params["visual"])          # (n_extract, bs, L, D)

    # activation1 = acts[0] is unused (mirrors reference)
    activation2 = acts[1:][::-1]                          # reversed extract[1:]
    l = acts.shape[2]
    acts_rev = activation2.reshape(len(EXTRACT_LAYERS) - 1, bs * l, VIS_DIM)

    film_w = jnp.concatenate([params["film_mul_w"], params["film_add_w"]], axis=1)
    film_b = jnp.concatenate([params["film_mul_b"], params["film_add_b"]], axis=0)

    a_final = decoder_stack(acts_rev, text_feature, film_w, film_b,
                            params["red_w"], params["red_b"], params["dec"], bs, l)

    a3 = a_final.reshape(bs, l, REDUCE_DIM)[:, 1:, :]     # drop CLS token
    a3 = a3.transpose(0, 2, 1)                            # (bs, R, L-1)
    size = int(math.isqrt(l - 1))
    fmap = a3.reshape(bs, REDUCE_DIM, size, size)
    out = trans_conv_head(fmap, params["trans"])          # (bs, 1, 32, 32)
    masks = resize_bilinear(out, h, w, apply_sigmoid=True)  # interpolate + sigmoid fused
    return masks


# ----------------------------- parameter init --------------------------------
class _KeyGen:
    def __init__(self, key):
        self._key = key

    def __call__(self):
        self._key, sub = jax.random.split(self._key)
        return sub


def init_params(key):
    kg = _KeyGen(key)

    def nrm(shape, scale=0.02, dtype=jnp.float32):
        return (scale * jax.random.normal(kg(), shape, dtype=jnp.float32)).astype(dtype)

    def ones(shape):
        return jnp.ones(shape, jnp.float32)

    def zeros(shape):
        return jnp.zeros(shape, jnp.float32)

    def clip_layers(n, d):
        return {
            "ln1_g": ones((n, d)), "ln1_b": zeros((n, d)),
            "w_in": nrm((n, d, 3 * d), dtype=jnp.bfloat16), "b_in": zeros((n, 3 * d)),
            "w_out": nrm((n, d, d), dtype=jnp.bfloat16), "b_out": zeros((n, d)),
            "ln2_g": ones((n, d)), "ln2_b": zeros((n, d)),
            "w_fc": nrm((n, d, 4 * d), dtype=jnp.bfloat16), "b_fc": zeros((n, 4 * d)),
            "w_pr": nrm((n, 4 * d, d), dtype=jnp.bfloat16), "b_pr": zeros((n, d)),
        }

    n_tokens = (MAX_H // PATCH) * (MAX_W // PATCH) + 1
    visual = {
        "conv1_w": nrm((3 * PATCH * PATCH, VIS_DIM)),
        "class_emb": nrm((VIS_DIM,)),
        "pos_emb": nrm((n_tokens, VIS_DIM)),
        "ln_pre_g": ones((VIS_DIM,)), "ln_pre_b": zeros((VIS_DIM,)),
        "layers": clip_layers(VIS_LAYERS, VIS_DIM),
    }
    text = {
        "tok_emb": nrm((VOCAB, TEXT_DIM)),
        "pos_emb": nrm((TEXT_LEN, TEXT_DIM)),
        "layers": clip_layers(TEXT_LAYERS, TEXT_DIM),
        "lnf_g": ones((TEXT_DIM,)), "lnf_b": zeros((TEXT_DIM,)),
        "proj": nrm((TEXT_DIM, EMB_DIM)),
    }

    n_dec = len(EXTRACT_LAYERS) - 1
    dec = {
        "w_in": nrm((n_dec, REDUCE_DIM, 3 * REDUCE_DIM), dtype=jnp.bfloat16),
        "b_in": zeros((n_dec, 3 * REDUCE_DIM)),
        "w_out": nrm((n_dec, REDUCE_DIM, REDUCE_DIM), dtype=jnp.bfloat16),
        "b_out": zeros((n_dec, REDUCE_DIM)),
        "ln1_g": ones((n_dec, REDUCE_DIM)), "ln1_b": zeros((n_dec, REDUCE_DIM)),
        "w1": nrm((n_dec, REDUCE_DIM, FF_DIM), dtype=jnp.bfloat16),
        "b1": zeros((n_dec, FF_DIM)),
        "w2": nrm((n_dec, FF_DIM, REDUCE_DIM), dtype=jnp.bfloat16),
        "b2": zeros((n_dec, REDUCE_DIM)),
        "ln2_g": ones((n_dec, REDUCE_DIM)), "ln2_b": zeros((n_dec, REDUCE_DIM)),
    }

    return {
        "visual": visual,
        "text": text,
        "film_mul_w": nrm((EMB_DIM, REDUCE_DIM)), "film_mul_b": zeros((REDUCE_DIM,)),
        "film_add_w": nrm((EMB_DIM, REDUCE_DIM)), "film_add_b": zeros((REDUCE_DIM,)),
        "red_w": nrm((n_dec, VIS_DIM, REDUCE_DIM), dtype=jnp.bfloat16),
        "red_b": zeros((n_dec, REDUCE_DIM)),
        "dec": dec,
        "trans": {
            # conv_w columns: cout; rows: (cin, 3x3).  t*_w columns: (cout, kh, kw).
            "conv_w": nrm((REDUCE_DIM * 9, REDUCE_DIM)), "conv_b": zeros((REDUCE_DIM,)),
            "t1_w": nrm((REDUCE_DIM, (REDUCE_DIM // 2) * 16)),
            "t1_b": zeros((REDUCE_DIM // 2,)),
            "t2_w": nrm((REDUCE_DIM // 2, 16)), "t2_b": zeros((1,)),
        },
    }


# ----------------------------------- main -------------------------------------
if __name__ == "__main__":
    key = jax.random.PRNGKey(0)
    k_param, k_img, k_txt = jax.random.split(key, 3)

    params = init_params(k_param)
    image = jax.random.uniform(k_img, (1, 3, 16, 16), dtype=jnp.float32)        # NCHW
    text = jax.random.randint(k_txt, (2, TEXT_LEN), 1, VOCAB, dtype=jnp.int32)  # token ids

    masks = jax.jit(clipseg_forward)(params, image, text)
    masks = jax.block_until_ready(masks)

    assert masks.shape == (2, 1, 16, 16), masks.shape
    assert bool(jnp.all(jnp.isfinite(masks)))
    assert bool(jnp.all((masks >= 0.0) & (masks <= 1.0)))
    print("KERNEL_OK")
</pallas_src>

<mosaic_0001>
module attributes {stable_mosaic.version = 11 : i64} {
  func.func @_resize_kernel(%arg0: memref<3x16x16xf32, #tpu.memory_space<vmem>>, %arg1: memref<32x16xf32, #tpu.memory_space<vmem>>, %arg2: memref<16x32xf32, #tpu.memory_space<vmem>>, %arg3: memref<3x32x32xf32, #tpu.memory_space<vmem>>) attributes {dimension_semantics = [], scalar_prefetch = 0 : i64, scratch_operands = 0 : i64, tpu.core_type = #tpu.core_type<tc>} {
    %c0 = arith.constant 0 : index
    %c0_0 = arith.constant 0 : index
    %0 = vector.load %arg1[%c0, %c0_0] : memref<32x16xf32, #tpu.memory_space<vmem>>, vector<32x16xf32>
    %c0_1 = arith.constant 0 : index
    %c0_2 = arith.constant 0 : index
    %c0_3 = arith.constant 0 : index
    %1 = vector.load %arg0[%c0_1, %c0_2, %c0_3] : memref<3x16x16xf32, #tpu.memory_space<vmem>>, vector<1x16x16xf32>
    %2 = vector.shape_cast %1 : vector<1x16x16xf32> to vector<16x16xf32>
    %cst = arith.constant dense<0.000000e+00> : vector<32x16xf32>
    %3 = tpu.matmul %0, %2, %cst {dimension_numbers = #tpu.dot_dimension_numbers<[1], [0], [0], [1], [0, 0, 1, 1], [], []>} : vector<32x16xf32>, vector<16x16xf32>, vector<32x16xf32> -> vector<32x16xf32>
    %c0_4 = arith.constant 0 : index
    %c0_5 = arith.constant 0 : index
    %4 = vector.load %arg2[%c0_4, %c0_5] : memref<16x32xf32, #tpu.memory_space<vmem>>, vector<16x32xf32>
    %cst_6 = arith.constant dense<0.000000e+00> : vector<32x32xf32>
    %5 = tpu.matmul %3, %4, %cst_6 {dimension_numbers = #tpu.dot_dimension_numbers<[1], [0], [0], [1], [0, 0, 1, 1], [], []>} : vector<32x16xf32>, vector<16x32xf32>, vector<32x32xf32> -> vector<32x32xf32>
    %c0_7 = arith.constant 0 : index
    %c0_8 = arith.constant 0 : index
    %c0_9 = arith.constant 0 : index
    %6 = vector.load %arg3[%c0_7, %c0_8, %c0_9] : memref<3x32x32xf32, #tpu.memory_space<vmem>>, vector<1x32x32xf32>
    %7 = vector.shape_cast %6 : vector<1x32x32xf32> to vector<32x32xf32>
    %8 = vector.shape_cast %5 : vector<32x32xf32> to vector<1x32x32xf32>
    tpu.vector_store %arg3[%c0_7, %c0_8, %c0_9], %8 {strides = array<i32>} : memref<3x32x32xf32, #tpu.memory_space<vmem>>, vector<1x32x32xf32>,
    %c0_10 = arith.constant 0 : index
    %c0_11 = arith.constant 0 : index
    %9 = vector.load %arg1[%c0_10, %c0_11] : memref<32x16xf32, #tpu.memory_space<vmem>>, vector<32x16xf32>
    %c1 = arith.constant 1 : index
    %c0_12 = arith.constant 0 : index
    %c0_13 = arith.constant 0 : index
    %10 = vector.load %arg0[%c1, %c0_12, %c0_13] : memref<3x16x16xf32, #tpu.memory_space<vmem>>, vector<1x16x16xf32>
    %11 = vector.shape_cast %10 : vector<1x16x16xf32> to vector<16x16xf32>
    %cst_14 = arith.constant dense<0.000000e+00> : vector<32x16xf32>
    %12 = tpu.matmul %9, %11, %cst_14 {dimension_numbers = #tpu.dot_dimension_numbers<[1], [0], [0], [1], [0, 0, 1, 1], [], []>} : vector<32x16xf32>, vector<16x16xf32>, vector<32x16xf32> -> vector<32x16xf32>
    %c0_15 = arith.constant 0 : index
    %c0_16 = arith.constant 0 : index
    %13 = vector.load %arg2[%c0_15, %c0_16] : memref<16x32xf32, #tpu.memory_space<vmem>>, vector<16x32xf32>
    %cst_17 = arith.constant dense<0.000000e+00> : vector<32x32xf32>
    %14 = tpu.matmul %12, %13, %cst_17 {dimension_numbers = #tpu.dot_dimension_numbers<[1], [0], [0], [1], [0, 0, 1, 1], [], []>} : vector<32x16xf32>, vector<16x32xf32>, vector<32x32xf32> -> vector<32x32xf32>
    %c1_18 = arith.constant 1 : index
    %c0_19 = arith.constant 0 : index
    %c0_20 = arith.constant 0 : index
    %15 = vector.load %arg3[%c1_18, %c0_19, %c0_20] : memref<3x32x32xf32, #tpu.memory_space<vmem>>, vector<1x32x32xf32>
    %16 = vector.shape_cast %15 : vector<1x32x32xf32> to vector<32x32xf32>
    %17 = vector.shape_cast %14 : vector<32x32xf32> to vector<1x32x32xf32>
    tpu.vector_store %arg3[%c1_18, %c0_19, %c0_20], %17 {strides = array<i32>} : memref<3x32x32xf32, #tpu.memory_space<vmem>>, vector<1x32x32xf32>,
    %c0_21 = arith.constant 0 : index
    %c0_22 = arith.constant 0 : index
    %18 = vector.load %arg1[%c0_21, %c0_22] : memref<32x16xf32, #tpu.memory_space<vmem>>, vector<32x16xf32>
    %c2 = arith.constant 2 : index
    %c0_23 = arith.constant 0 : index
    %c0_24 = arith.constant 0 : index
    %19 = vector.load %arg0[%c2, %c0_23, %c0_24] : memref<3x16x16xf32, #tpu.memory_space<vmem>>, vector<1x16x16xf32>
    %20 = vector.shape_cast %19 : vector<1x16x16xf32> to vector<16x16xf32>
    %cst_25 = arith.constant dense<0.000000e+00> : vector<32x16xf32>
    %21 = tpu.matmul %18, %20, %cst_25 {dimension_numbers = #tpu.dot_dimension_numbers<[1], [0], [0], [1], [0, 0, 1, 1], [], []>} : vector<32x16xf32>, vector<16x16xf32>, vector<32x16xf32> -> vector<32x16xf32>
    %c0_26 = arith.constant 0 : index
    %c0_27 = arith.constant 0 : index
    %22 = vector.load %arg2[%c0_26, %c0_27] : memref<16x32xf32, #tpu.memory_space<vmem>>, vector<16x32xf32>
    %cst_28 = arith.constant dense<0.000000e+00> : vector<32x32xf32>
    %23 = tpu.matmul %21, %22, %cst_28 {dimension_numbers = #tpu.dot_dimension_numbers<[1], [0], [0], [1], [0, 0, 1, 1], [], []>} : vector<32x16xf32>, vector<16x32xf32>, vector<32x32xf32> -> vector<32x32xf32>
    %c2_29 = arith.constant 2 : index
    %c0_30 = arith.constant 0 : index
    %c0_31 = arith.constant 0 : index
    %24 = vector.load %arg3[%c2_29, %c0_30, %c0_31] : memref<3x32x32xf32, #tpu.memory_space<vmem>>, vector<1x32x32xf32>
    %25 = vector.shape_cast %24 : vector<1x32x32xf32> to vector<32x32xf32>
    %26 = vector.shape_cast %23 : vector<32x32xf32> to vector<1x32x32xf32>
    tpu.vector_store %arg3[%c2_29, %c0_30, %c0_31], %26 {strides = array<i32>} : memref<3x32x32xf32, #tpu.memory_space<vmem>>, vector<1x32x32xf32>,
    return
  }
}

module attributes {stable_mosaic.version = 11 : i64} {
  func.func @_mm_kernel(%arg0: memref<8x768xf32, #tpu.memory_space<vmem>>, %arg1: memref<768x64xf32, #tpu.memory_space<vmem>>, %arg2: memref<1x64xf32, #tpu.memory_space<vmem>>, %arg3: memref<8x64xf32, #tpu.memory_space<vmem>>) attributes {dimension_semantics = [], scalar_prefetch = 0 : i64, scratch_operands = 0 : i64, tpu.core_type = #tpu.core_type<tc>} {
    %c0 = arith.constant 0 : index
    %c0_0 = arith.constant 0 : index
    %0 = vector.load %arg0[%c0, %c0_0] : memref<8x768xf32, #tpu.memory_space<vmem>>, vector<8x768xf32>
    %c0_1 = arith.constant 0 : index
    %c0_2 = arith.constant 0 : index
    %1 = vector.load %arg1[%c0_1, %c0_2] : memref<768x64xf32, #tpu.memory_space<vmem>>, vector<768x64xf32>
    %cst = arith.constant dense<0.000000e+00> : vector<8x64xf32>
    %2 = tpu.matmul %0, %1, %cst {dimension_numbers = #tpu.dot_dimension_numbers<[1], [0], [0], [1], [0, 0, 1, 1], [], []>} : vector<8x768xf32>, vector<768x64xf32>, vector<8x64xf32> -> vector<8x64xf32>
    %c0_3 = arith.constant 0 : index
    %c0_4 = arith.constant 0 : index
    %3 = vector.load %arg2[%c0_3, %c0_4] : memref<1x64xf32, #tpu.memory_space<vmem>>, vector<1x64xf32>
    %4 = vector.broadcast %3 : vector<1x64xf32> to vector<8x64xf32>
    %5 = arith.addf %2, %4 : vector<8x64xf32>
    %c0_5 = arith.constant 0 : index
    %c0_6 = arith.constant 0 : index
    %6 = vector.load %arg3[%c0_5, %c0_6] : memref<8x64xf32, #tpu.memory_space<vmem>>, vector<8x64xf32>
    tpu.vector_store %arg3[%c0_5, %c0_6], %5 {strides = array<i32>} : memref<8x64xf32, #tpu.memory_space<vmem>>, vector<8x64xf32>,
    return
  }
}

module attributes {stable_mosaic.version = 11 : i64} {
  func.func @_clip_tower_kernel(%arg0: i32, %arg1: memref<10xi32, #tpu.memory_space<smem>>, %arg2: memref<10x64xf32, #tpu.memory_space<vmem>>, %arg3: memref<1x64xf32, #tpu.memory_space<vmem>>, %arg4: memref<1x64xf32, #tpu.memory_space<vmem>>, %arg5: memref<1x1x64xf32, #tpu.memory_space<vmem>>, %arg6: memref<1x1x64xf32, #tpu.memory_space<vmem>>, %arg7: memref<1x64x192xbf16, #tpu.memory_space<vmem>>, %arg8: memref<1x1x192xf32, #tpu.memory_space<vmem>>, %arg9: memref<1x64x64xbf16, #tpu.memory_space<vmem>>, %arg10: memref<1x1x64xf32, #tpu.memory_space<vmem>>, %arg11: memref<1x1x64xf32, #tpu.memory_space<vmem>>, %arg12: memref<1x1x64xf32, #tpu.memory_space<vmem>>, %arg13: memref<1x64x256xbf16, #tpu.memory_space<vmem>>, %arg14: memref<1x1x256xf32, #tpu.memory_space<vmem>>, %arg15: memref<1x256x64xbf16, #tpu.memory_space<vmem>>, %arg16: memref<1x1x64xf32, #tpu.memory_space<vmem>>, %arg17: memref<1x64xf32, #tpu.memory_space<vmem>>, %arg18: memref<1x64xf32, #tpu.memory_space<vmem>>, %arg19: memref<1x10x64xf32, #tpu.memory_space<vmem>>, %arg20: memref<10x64xf32, #tpu.memory_space<vmem>>) attributes {dimension_semantics = [#tpu.dimension_semantics<arbitrary>], iteration_bounds = array<i64: 10>, scalar_prefetch = 1 : i64, scratch_operands = 1 : i64, tpu.core_type = #tpu.core_type<tc>, window_params = [{pipeline_mode = #tpu.pipeline_mode<synchronous>, transform_indices = @transform_0, window_bounds = array<i64: 10, 64>}, {pipeline_mode = #tpu.pipeline_mode<synchronous>, transform_indices = @transform_1, window_bounds = array<i64: 1, 64>}, {pipeline_mode = #tpu.pipeline_mode<synchronous>, transform_indices = @transform_2, window_bounds = array<i64: 1, 64>}, {transform_indices = @transform_3, window_bounds = array<i64: 1, 1, 64>}, {transform_indices = @transform_4, window_bounds = array<i64: 1, 1, 64>}, {transform_indices = @transform_5, window_bounds = array<i64: 1, 64, 192>}, {transform_indices = @transform_6, window_bounds = array<i64: 1, 1, 192>}, {transform_indices = @transform_7, window_bounds = array<i64: 1, 64, 64>}, {transform_indices = @transform_8, window_bounds = array<i64: 1, 1, 64>}, {transform_indices = @transform_9, window_bounds = array<i64: 1, 1, 64>}, {transform_indices = @transform_10, window_bounds = array<i64: 1, 1, 64>}, {transform_indices = @transform_11, window_bounds = array<i64: 1, 64, 256>}, {transform_indices = @transform_12, window_bounds = array<i64: 1, 1, 256>}, {transform_indices = @transform_13, window_bounds = array<i64: 1, 256, 64>}, {transform_indices = @transform_14, window_bounds = array<i64: 1, 1, 64>}, {pipeline_mode = #tpu.pipeline_mode<synchronous>, transform_indices = @transform_15, window_bounds = array<i64: 1, 64>}, {pipeline_mode = #tpu.pipeline_mode<synchronous>, transform_indices = @transform_16, window_bounds = array<i64: 1, 64>}, {transform_indices = @transform_17, window_bounds = array<i64: 1, 10, 64>}]} {
    %c0_i32 = arith.constant 0 : i32
    %0 = arith.cmpi eq, %arg0, %c0_i32 : i32
    %1 = arith.extui %0 : i1 to i32
    %c0_i32_0 = arith.constant 0 : i32
    %2 = arith.cmpi ne, %1, %c0_i32_0 : i32
    scf.if %2 {
      %c0_85 = arith.constant 0 : index
      %c0_86 = arith.constant 0 : index
      %209 = vector.load %arg2[%c0_85, %c0_86] : memref<10x64xf32, #tpu.memory_space<vmem>>, vector<10x64xf32>
      %c0_87 = arith.constant 0 : index
      %c0_88 = arith.constant 0 : index
      %210 = vector.load %arg3[%c0_87, %c0_88] : memref<1x64xf32, #tpu.memory_space<vmem>>, vector<1x64xf32>
      %c0_89 = arith.constant 0 : index
      %c0_90 = arith.constant 0 : index
      %211 = vector.load %arg4[%c0_89, %c0_90] : memref<1x64xf32, #tpu.memory_space<vmem>>, vector<1x64xf32>
      %cst_91 = arith.constant dense<0.000000e+00> : vector<10xf32>
      %212 = vector.multi_reduction <add>, %209, %cst_91 [1] : vector<10x64xf32> to vector<10xf32>
      %213 = vector.shape_cast %212 : vector<10xf32> to vector<10x1xf32>
      %cst_92 = arith.constant 6.400000e+01 : f32
      %214 = vector.broadcast %cst_92 : f32 to vector<10x1xf32>
      %215 = arith.divf %213, %214 : vector<10x1xf32>
      %216 = vector.broadcast %215 : vector<10x1xf32> to vector<10x64xf32>
      %217 = arith.subf %209, %216 : vector<10x64xf32>
      %218 = arith.mulf %217, %217 : vector<10x64xf32>
      %cst_93 = arith.constant dense<0.000000e+00> : vector<10xf32>
      %219 = vector.multi_reduction <add>, %218, %cst_93 [1] : vector<10x64xf32> to vector<10xf32>
      %220 = vector.shape_cast %219 : vector<10xf32> to vector<10x1xf32>
      %cst_94 = arith.constant 6.400000e+01 : f32
      %221 = vector.broadcast %cst_94 : f32 to vector<10x1xf32>
      %222 = arith.divf %220, %221 : vector<10x1xf32>
      %223 = vector.broadcast %215 : vector<10x1xf32> to vector<10x64xf32>
      %224 = arith.subf %209, %223 : vector<10x64xf32>
      %cst_95 = arith.constant 9.99999974E-6 : f32
      %225 = vector.broadcast %cst_95 : f32 to vector<10x1xf32>
      %226 = arith.addf %222, %225 : vector<10x1xf32>
      %227 = math.rsqrt %226 : vector<10x1xf32>
      %228 = vector.broadcast %227 : vector<10x1xf32> to vector<10x64xf32>
      %229 = arith.mulf %224, %228 : vector<10x64xf32>
      %230 = vector.broadcast %210 : vector<1x64xf32> to vector<10x64xf32>
      %231 = arith.mulf %229, %230 : vector<10x64xf32>
      %232 = vector.broadcast %211 : vector<1x64xf32> to vector<10x64xf32>
      %233 = arith.addf %231, %232 : vector<10x64xf32>
      %c0_96 = arith.constant 0 : index
      %c0_97 = arith.constant 0 : index
      %234 = vector.load %arg20[%c0_96, %c0_97] : memref<10x64xf32, #tpu.memory_space<vmem>>, vector<10x64xf32>
      tpu.vector_store %arg20[%c0_96, %c0_97], %233 {strides = array<i32>} : memref<10x64xf32, #tpu.memory_space<vmem>>, vector<10x64xf32>,
    } else {
    }
    %c0 = arith.constant 0 : index
    %c0_1 = arith.constant 0 : index
    %3 = vector.load %arg20[%c0, %c0_1] : memref<10x64xf32, #tpu.memory_space<vmem>>, vector<10x64xf32>
    %4 = tpu.iota {dimensions = array<i32: 0>} : vector<10x10xi32>
    %5 = tpu.iota {dimensions = array<i32: 1>} : vector<10x10xi32>
    %c0_i32_2 = arith.constant 0 : i32
    %6 = vector.broadcast %c0_i32_2 : i32 to vector<10x10xi32>
    %7 = arith.cmpi sge, %4, %6 : vector<10x10xi32>
    %c5_i32 = arith.constant 5 : i32
    %8 = vector.broadcast %c5_i32 : i32 to vector<10x10xi32>
    %9 = arith.cmpi slt, %4, %8 : vector<10x10xi32>
    %10 = arith.andi %7, %9 : vector<10x10xi1>
    %c0_i32_3 = arith.constant 0 : i32
    %11 = vector.broadcast %c0_i32_3 : i32 to vector<10x10xi32>
    %12 = arith.cmpi sge, %5, %11 : vector<10x10xi32>
    %13 = arith.andi %10, %12 : vector<10x10xi1>
    %c5_i32_4 = arith.constant 5 : i32
    %14 = vector.broadcast %c5_i32_4 : i32 to vector<10x10xi32>
    %15 = arith.cmpi slt, %5, %14 : vector<10x10xi32>
    %16 = arith.andi %13, %15 : vector<10x10xi1>
    %c5_i32_5 = arith.constant 5 : i32
    %17 = vector.broadcast %c5_i32_5 : i32 to vector<10x10xi32>
    %18 = arith.cmpi sge, %4, %17 : vector<10x10xi32>
    %c10_i32 = arith.constant 10 : i32
    %19 = vector.broadcast %c10_i32 : i32 to vector<10x10xi32>
    %20 = arith.cmpi slt, %4, %19 : vector<10x10xi32>
    %21 = arith.andi %18, %20 : vector<10x10xi1>
    %c5_i32_6 = arith.constant 5 : i32
    %22 = vector.broadcast %c5_i32_6 : i32 to vector<10x10xi32>
    %23 = arith.cmpi sge, %5, %22 : vector<10x10xi32>
    %24 = arith.andi %21, %23 : vector<10x10xi1>
    %c10_i32_7 = arith.constant 10 : i32
    %25 = vector.broadcast %c10_i32_7 : i32 to vector<10x10xi32>
    %26 = arith.cmpi slt, %5, %25 : vector<10x10xi32>
    %27 = arith.andi %24, %26 : vector<10x10xi1>
    %28 = arith.ori %16, %27 : vector<10x10xi1>
    %cst = arith.constant 0.000000e+00 : f32
    %cst_8 = arith.constant -1.000000e+30 : f32
    %29 = vector.broadcast %cst : f32 to vector<10x10xf32>
    %30 = vector.broadcast %cst_8 : f32 to vector<10x10xf32>
    %31 = arith.select %28, %29, %30 : vector<10x10xi1>, vector<10x10xf32>
    %c0_9 = arith.constant 0 : index
    %c0_10 = arith.constant 0 : index
    %c0_11 = arith.constant 0 : index
    %32 = vector.load %arg5[%c0_9, %c0_10, %c0_11] : memref<1x1x64xf32, #tpu.memory_space<vmem>>, vector<1x1x64xf32>
    %33 = vector.shape_cast %32 : vector<1x1x64xf32> to vector<1x64xf32>
    %c0_12 = arith.constant 0 : index
    %c0_13 = arith.constant 0 : index
    %c0_14 = arith.constant 0 : index
    %34 = vector.load %arg6[%c0_12, %c0_13, %c0_14] : memref<1x1x64xf32, #tpu.memory_space<vmem>>, vector<1x1x64xf32>
    %35 = vector.shape_cast %34 : vector<1x1x64xf32> to vector<1x64xf32>
    %cst_15 = arith.constant dense<0.000000e+00> : vector<10xf32>
    %36 = vector.multi_reduction <add>, %3, %cst_15 [1] : vector<10x64xf32> to vector<10xf32>
    %37 = vector.shape_cast %36 : vector<10xf32> to vector<10x1xf32>
    %cst_16 = arith.constant 6.400000e+01 : f32
    %38 = vector.broadcast %cst_16 : f32 to vector<10x1xf32>
    %39 = arith.divf %37, %38 : vector<10x1xf32>
    %40 = vector.broadcast %39 : vector<10x1xf32> to vector<10x64xf32>
    %41 = arith.subf %3, %40 : vector<10x64xf32>
    %42 = arith.mulf %41, %41 : vector<10x64xf32>
    %cst_17 = arith.constant dense<0.000000e+00> : vector<10xf32>
    %43 = vector.multi_reduction <add>, %42, %cst_17 [1] : vector<10x64xf32> to vector<10xf32>
    %44 = vector.shape_cast %43 : vector<10xf32> to vector<10x1xf32>
    %cst_18 = arith.constant 6.400000e+01 : f32
    %45 = vector.broadcast %cst_18 : f32 to vector<10x1xf32>
    %46 = arith.divf %44, %45 : vector<10x1xf32>
    %47 = vector.broadcast %39 : vector<10x1xf32> to vector<10x64xf32>
    %48 = arith.subf %3, %47 : vector<10x64xf32>
    %cst_19 = arith.constant 9.99999974E-6 : f32
    %49 = vector.broadcast %cst_19 : f32 to vector<10x1xf32>
    %50 = arith.addf %46, %49 : vector<10x1xf32>
    %51 = math.rsqrt %50 : vector<10x1xf32>
    %52 = vector.broadcast %51 : vector<10x1xf32> to vector<10x64xf32>
    %53 = arith.mulf %48, %52 : vector<10x64xf32>
    %54 = vector.broadcast %33 : vector<1x64xf32> to vector<10x64xf32>
    %55 = arith.mulf %53, %54 : vector<10x64xf32>
    %56 = vector.broadcast %35 : vector<1x64xf32> to vector<10x64xf32>
    %57 = arith.addf %55, %56 : vector<10x64xf32>
    %58 = arith.truncf %57 : vector<10x64xf32> to vector<10x64xbf16>
    %c0_20 = arith.constant 0 : index
    %c0_21 = arith.constant 0 : index
    %c0_22 = arith.constant 0 : index
    %59 = vector.load %arg7[%c0_20, %c0_21, %c0_22] : memref<1x64x192xbf16, #tpu.memory_space<vmem>>, vector<1x64x192xbf16>
    %60 = vector.shape_cast %59 : vector<1x64x192xbf16> to vector<64x192xbf16>
    %cst_23 = arith.constant dense<0.000000e+00> : vector<10x192xf32>
    %61 = tpu.matmul %58, %60, %cst_23 {dimension_numbers = #tpu.dot_dimension_numbers<[1], [0], [0], [1], [0, 0, 1, 1], [], []>} : vector<10x64xbf16>, vector<64x192xbf16>, vector<10x192xf32> -> vector<10x192xf32>
    %c0_24 = arith.constant 0 : index
    %c0_25 = arith.constant 0 : index
    %c0_26 = arith.constant 0 : index
    %62 = vector.load %arg8[%c0_24, %c0_25, %c0_26] : memref<1x1x192xf32, #tpu.memory_space<vmem>>, vector<1x1x192xf32>
    %63 = vector.shape_cast %62 : vector<1x1x192xf32> to vector<1x192xf32>
    %64 = vector.broadcast %63 : vector<1x192xf32> to vector<10x192xf32>
    %65 = arith.addf %61, %64 : vector<10x192xf32>
    %66 = vector.extract_strided_slice %65 {offsets = [0, 0], sizes = [10, 16], strides = [1, 1]} : vector<10x192xf32> to vector<10x16xf32>
    %cst_27 = arith.constant 2.500000e-01 : f32
    %67 = vector.broadcast %cst_27 : f32 to vector<10x16xf32>
    %68 = arith.mulf %66, %67 : vector<10x16xf32>
    %69 = vector.extract_strided_slice %65 {offsets = [0, 64], sizes = [10, 16], strides = [1, 1]} : vector<10x192xf32> to vector<10x16xf32>
    %70 = vector.extract_strided_slice %65 {offsets = [0, 128], sizes = [10, 16], strides = [1, 1]} : vector<10x192xf32> to vector<10x16xf32>
    %cst_28 = arith.constant dense<0.000000e+00> : vector<10x10xf32>
    %71 = tpu.matmul %68, %69, %cst_28 {dimension_numbers = #tpu.dot_dimension_numbers<[1], [1], [0], [0], [0, 0, 1, 0], [], []>} : vector<10x16xf32>, vector<10x16xf32>, vector<10x10xf32> -> vector<10x10xf32>
    %72 = arith.addf %71, %31 : vector<10x10xf32>
    %cst_29 = arith.constant dense<0xFF800000> : vector<10xf32>
    %73 = vector.multi_reduction <maximumf>, %72, %cst_29 [1] : vector<10x10xf32> to vector<10xf32>
    %74 = vector.shape_cast %73 : vector<10xf32> to vector<10x1xf32>
    %75 = vector.broadcast %74 : vector<10x1xf32> to vector<10x10xf32>
    %76 = arith.subf %72, %75 : vector<10x10xf32>
    %77 = math.exp %76 : vector<10x10xf32>
    %cst_30 = arith.constant dense<0.000000e+00> : vector<10xf32>
    %78 = vector.multi_reduction <add>, %77, %cst_30 [1] : vector<10x10xf32> to vector<10xf32>
    %79 = vector.shape_cast %78 : vector<10xf32> to vector<10x1xf32>
    %80 = tpu.reciprocal %79 {approx = true} : vector<10x1xf32> -> vector<10x1xf32>
    %81 = vector.broadcast %80 : vector<10x1xf32> to vector<10x10xf32>
    %82 = arith.mulf %77, %81 : vector<10x10xf32>
    %cst_31 = arith.constant dense<0.000000e+00> : vector<10x16xf32>
    %83 = tpu.matmul %82, %70, %cst_31 {dimension_numbers = #tpu.dot_dimension_numbers<[1], [0], [0], [1], [0, 0, 1, 1], [], []>} : vector<10x10xf32>, vector<10x16xf32>, vector<10x16xf32> -> vector<10x16xf32>
    %84 = vector.extract_strided_slice %65 {offsets = [0, 16], sizes = [10, 16], strides = [1, 1]} : vector<10x192xf32> to vector<10x16xf32>
    %cst_32 = arith.constant 2.500000e-01 : f32
    %85 = vector.broadcast %cst_32 : f32 to vector<10x16xf32>
    %86 = arith.mulf %84, %85 : vector<10x16xf32>
    %87 = vector.extract_strided_slice %65 {offsets = [0, 80], sizes = [10, 16], strides = [1, 1]} : vector<10x192xf32> to vector<10x16xf32>
    %88 = vector.extract_strided_slice %65 {offsets = [0, 144], sizes = [10, 16], strides = [1, 1]} : vector<10x192xf32> to vector<10x16xf32>
    %cst_33 = arith.constant dense<0.000000e+00> : vector<10x10xf32>
    %89 = tpu.matmul %86, %87, %cst_33 {dimension_numbers = #tpu.dot_dimension_numbers<[1], [1], [0], [0], [0, 0, 1, 0], [], []>} : vector<10x16xf32>, vector<10x16xf32>, vector<10x10xf32> -> vector<10x10xf32>
    %90 = arith.addf %89, %31 : vector<10x10xf32>
    %cst_34 = arith.constant dense<0xFF800000> : vector<10xf32>
    %91 = vector.multi_reduction <maximumf>, %90, %cst_34 [1] : vector<10x10xf32> to vector<10xf32>
    %92 = vector.shape_cast %91 : vector<10xf32> to vector<10x1xf32>
    %93 = vector.broadcast %92 : vector<10x1xf32> to vector<10x10xf32>
    %94 = arith.subf %90, %93 : vector<10x10xf32>
    %95 = math.exp %94 : vector<10x10xf32>
    %cst_35 = arith.constant dense<0.000000e+00> : vector<10xf32>
    %96 = vector.multi_reduction <add>, %95, %cst_35 [1] : vector<10x10xf32> to vector<10xf32>
    %97 = vector.shape_cast %96 : vector<10xf32> to vector<10x1xf32>
    %98 = tpu.reciprocal %97 {approx = true} : vector<10x1xf32> -> vector<10x1xf32>
    %99 = vector.broadcast %98 : vector<10x1xf32> to vector<10x10xf32>
    %100 = arith.mulf %95, %99 : vector<10x10xf32>
    %cst_36 = arith.constant dense<0.000000e+00> : vector<10x16xf32>
    %101 = tpu.matmul %100, %88, %cst_36 {dimension_numbers = #tpu.dot_dimension_numbers<[1], [0], [0], [1], [0, 0, 1, 1], [], []>} : vector<10x10xf32>, vector<10x16xf32>, vector<10x16xf32> -> vector<10x16xf32>
    %102 = vector.extract_strided_slice %65 {offsets = [0, 32], sizes = [10, 16], strides = [1, 1]} : vector<10x192xf32> to vector<10x16xf32>
    %cst_37 = arith.constant 2.500000e-01 : f32
    %103 = vector.broadcast %cst_37 : f32 to vector<10x16xf32>
    %104 = arith.mulf %102, %103 : vector<10x16xf32>
    %105 = vector.extract_strided_slice %65 {offsets = [0, 96], sizes = [10, 16], strides = [1, 1]} : vector<10x192xf32> to vector<10x16xf32>
    %106 = vector.extract_strided_slice %65 {offsets = [0, 160], sizes = [10, 16], strides = [1, 1]} : vector<10x192xf32> to vector<10x16xf32>
    %cst_38 = arith.constant dense<0.000000e+00> : vector<10x10xf32>
    %107 = tpu.matmul %104, %105, %cst_38 {dimension_numbers = #tpu.dot_dimension_numbers<[1], [1], [0], [0], [0, 0, 1, 0], [], []>} : vector<10x16xf32>, vector<10x16xf32>, vector<10x10xf32> -> vector<10x10xf32>
    %108 = arith.addf %107, %31 : vector<10x10xf32>
    %cst_39 = arith.constant dense<0xFF800000> : vector<10xf32>
    %109 = vector.multi_reduction <maximumf>, %108, %cst_39 [1] : vector<10x10xf32> to vector<10xf32>
    %110 = vector.shape_cast %109 : vector<10xf32> to vector<10x1xf32>
    %111 = vector.broadcast %110 : vector<10x1xf32> to vector<10x10xf32>
    %112 = arith.subf %108, %111 : vector<10x10xf32>
    %113 = math.exp %112 : vector<10x10xf32>
    %cst_40 = arith.constant dense<0.000000e+00> : vector<10xf32>
    %114 = vector.multi_reduction <add>, %113, %cst_40 [1] : vector<10x10xf32> to vector<10xf32>
    %115 = vector.shape_cast %114 : vector<10xf32> to vector<10x1xf32>
    %116 = tpu.reciprocal %115 {approx = true} : vector<10x1xf32> -> vector<10x1xf32>
    %117 = vector.broadcast %116 : vector<10x1xf32> to vector<10x10xf32>
    %118 = arith.mulf %113, %117 : vector<10x10xf32>
    %cst_41 = arith.constant dense<0.000000e+00> : vector<10x16xf32>
    %119 = tpu.matmul %118, %106, %cst_41 {dimension_numbers = #tpu.dot_dimension_numbers<[1], [0], [0], [1], [0, 0, 1, 1], [], []>} : vector<10x10xf32>, vector<10x16xf32>, vector<10x16xf32> -> vector<10x16xf32>
    %120 = vector.extract_strided_slice %65 {offsets = [0, 48], sizes = [10, 16], strides = [1, 1]} : vector<10x192xf32> to vector<10x16xf32>
    %cst_42 = arith.constant 2.500000e-01 : f32
    %121 = vector.broadcast %cst_42 : f32 to vector<10x16xf32>
    %122 = arith.mulf %120, %121 : vector<10x16xf32>
    %123 = vector.extract_strided_slice %65 {offsets = [0, 112], sizes = [10, 16], strides = [1, 1]} : vector<10x192xf32> to vector<10x16xf32>
    %124 = vector.extract_strided_slice %65 {offsets = [0, 176], sizes = [10, 16], strides = [1, 1]} : vector<10x192xf32> to vector<10x16xf32>
    %cst_43 = arith.constant dense<0.000000e+00> : vector<10x10xf32>
    %125 = tpu.matmul %122, %123, %cst_43 {dimension_numbers = #tpu.dot_dimension_numbers<[1], [1], [0], [0], [0, 0, 1, 0], [], []>} : vector<10x16xf32>, vector<10x16xf32>, vector<10x10xf32> -> vector<10x10xf32>
    %126 = arith.addf %125, %31 : vector<10x10xf32>
    %cst_44 = arith.constant dense<0xFF800000> : vector<10xf32>
    %127 = vector.multi_reduction <maximumf>, %126, %cst_44 [1] : vector<10x10xf32> to vector<10xf32>
    %128 = vector.shape_cast %127 : vector<10xf32> to vector<10x1xf32>
    %129 = vector.broadcast %128 : vector<10x1xf32> to vector<10x10xf32>
    %130 = arith.subf %126, %129 : vector<10x10xf32>
    %131 = math.exp %130 : vector<10x10xf32>
    %cst_45 = arith.constant dense<0.000000e+00> : vector<10xf32>
    %132 = vector.multi_reduction <add>, %131, %cst_45 [1] : vector<10x10xf32> to vector<10xf32>
    %133 = vector.shape_cast %132 : vector<10xf32> to vector<10x1xf32>
    %134 = tpu.reciprocal %133 {approx = true} : vector<10x1xf32> -> vector<10x1xf32>
    %135 = vector.broadcast %134 : vector<10x1xf32> to vector<10x10xf32>
    %136 = arith.mulf %131, %135 : vector<10x10xf32>
    %cst_46 = arith.constant dense<0.000000e+00> : vector<10x16xf32>
    %137 = tpu.matmul %136, %124, %cst_46 {dimension_numbers = #tpu.dot_dimension_numbers<[1], [0], [0], [1], [0, 0, 1, 1], [], []>} : vector<10x10xf32>, vector<10x16xf32>, vector<10x16xf32> -> vector<10x16xf32>
    %138 = tpu.concatenate %83, %101, %119, %137 in 1 : vector<10x16xf32>, vector<10x16xf32>, vector<10x16xf32>, vector<10x16xf32> -> vector<10x64xf32>
    %139 = arith.truncf %138 : vector<10x64xf32> to vector<10x64xbf16>
    %c0_47 = arith.constant 0 : index
    %c0_48 = arith.constant 0 : index
    %c0_49 = arith.constant 0 : index
    %140 = vector.load %arg9[%c0_47, %c0_48, %c0_49] : memref<1x64x64xbf16, #tpu.memory_space<vmem>>, vector<1x64x64xbf16>
    %141 = vector.shape_cast %140 : vector<1x64x64xbf16> to vector<64x64xbf16>
    %cst_50 = arith.constant dense<0.000000e+00> : vector<10x64xf32>
    %142 = tpu.matmul %139, %141, %cst_50 {dimension_numbers = #tpu.dot_dimension_numbers<[1], [0], [0], [1], [0, 0, 1, 1], [], []>} : vector<10x64xbf16>, vector<64x64xbf16>, vector<10x64xf32> -> vector<10x64xf32>
    %143 = arith.addf %3, %142 : vector<10x64xf32>
    %c0_51 = arith.constant 0 : index
    %c0_52 = arith.constant 0 : index
    %c0_53 = arith.constant 0 : index
    %144 = vector.load %arg10[%c0_51, %c0_52, %c0_53] : memref<1x1x64xf32, #tpu.memory_space<vmem>>, vector<1x1x64xf32>
    %145 = vector.shape_cast %144 : vector<1x1x64xf32> to vector<1x64xf32>
    %146 = vector.broadcast %145 : vector<1x64xf32> to vector<10x64xf32>
    %147 = arith.addf %143, %146 : vector<10x64xf32>
    %c0_54 = arith.constant 0 : index
    %c0_55 = arith.constant 0 : index
    %c0_56 = arith.constant 0 : index
    %148 = vector.load %arg11[%c0_54, %c0_55, %c0_56] : memref<1x1x64xf32, #tpu.memory_space<vmem>>, vector<1x1x64xf32>
    %149 = vector.shape_cast %148 : vector<1x1x64xf32> to vector<1x64xf32>
    %c0_57 = arith.constant 0 : index
    %c0_58 = arith.constant 0 : index
    %c0_59 = arith.constant 0 : index
    %150 = vector.load %arg12[%c0_57, %c0_58, %c0_59] : memref<1x1x64xf32, #tpu.memory_space<vmem>>, vector<1x1x64xf32>
    %151 = vector.shape_cast %150 : vector<1x1x64xf32> to vector<1x64xf32>
    %cst_60 = arith.constant dense<0.000000e+00> : vector<10xf32>
    %152 = vector.multi_reduction <add>, %147, %cst_60 [1] : vector<10x64xf32> to vector<10xf32>
    %153 = vector.shape_cast %152 : vector<10xf32> to vector<10x1xf32>
    %cst_61 = arith.constant 6.400000e+01 : f32
    %154 = vector.broadcast %cst_61 : f32 to vector<10x1xf32>
    %155 = arith.divf %153, %154 : vector<10x1xf32>
    %156 = vector.broadcast %155 : vector<10x1xf32> to vector<10x64xf32>
    %157 = arith.subf %147, %156 : vector<10x64xf32>
    %158 = arith.mulf %157, %157 : vector<10x64xf32>
    %cst_62 = arith.constant dense<0.000000e+00> : vector<10xf32>
    %159 = vector.multi_reduction <add>, %158, %cst_62 [1] : vector<10x64xf32> to vector<10xf32>
    %160 = vector.shape_cast %159 : vector<10xf32> to vector<10x1xf32>
    %cst_63 = arith.constant 6.400000e+01 : f32
    %161 = vector.broadcast %cst_63 : f32 to vector<10x1xf32>
    %162 = arith.divf %160, %161 : vector<10x1xf32>
    %163 = vector.broadcast %155 : vector<10x1xf32> to vector<10x64xf32>
    %164 = arith.subf %147, %163 : vector<10x64xf32>
    %cst_64 = arith.constant 9.99999974E-6 : f32
    %165 = vector.broadcast %cst_64 : f32 to vector<10x1xf32>
    %166 = arith.addf %162, %165 : vector<10x1xf32>
    %167 = math.rsqrt %166 : vector<10x1xf32>
    %168 = vector.broadcast %167 : vector<10x1xf32> to vector<10x64xf32>
    %169 = arith.mulf %164, %168 : vector<10x64xf32>
    %170 = vector.broadcast %149 : vector<1x64xf32> to vector<10x64xf32>
    %171 = arith.mulf %169, %170 : vector<10x64xf32>
    %172 = vector.broadcast %151 : vector<1x64xf32> to vector<10x64xf32>
    %173 = arith.addf %171, %172 : vector<10x64xf32>
    %174 = arith.truncf %173 : vector<10x64xf32> to vector<10x64xbf16>
    %c0_65 = arith.constant 0 : index
    %c0_66 = arith.constant 0 : index
    %c0_67 = arith.constant 0 : index
    %175 = vector.load %arg13[%c0_65, %c0_66, %c0_67] : memref<1x64x256xbf16, #tpu.memory_space<vmem>>, vector<1x64x256xbf16>
    %176 = vector.shape_cast %175 : vector<1x64x256xbf16> to vector<64x256xbf16>
    %cst_68 = arith.constant dense<0.000000e+00> : vector<10x256xf32>
    %177 = tpu.matmul %174, %176, %cst_68 {dimension_numbers = #tpu.dot_dimension_numbers<[1], [0], [0], [1], [0, 0, 1, 1], [], []>} : vector<10x64xbf16>, vector<64x256xbf16>, vector<10x256xf32> -> vector<10x256xf32>
    %c0_69 = arith.constant 0 : index
    %c0_70 = arith.constant 0 : index
    %c0_71 = arith.constant 0 : index
    %178 = vector.load %arg14[%c0_69, %c0_70, %c0_71] : memref<1x1x256xf32, #tpu.memory_space<vmem>>, vector<1x1x256xf32>
    %179 = vector.shape_cast %178 : vector<1x1x256xf32> to vector<1x256xf32>
    %180 = vector.broadcast %179 : vector<1x256xf32> to vector<10x256xf32>
    %181 = arith.addf %177, %180 : vector<10x256xf32>
    %cst_72 = arith.constant 1.702000e+00 : f32
    %182 = vector.broadcast %cst_72 : f32 to vector<10x256xf32>
    %183 = arith.mulf %182, %181 : vector<10x256xf32>
    %184 = arith.negf %183 : vector<10x256xf32>
    %185 = math.exp %184 : vector<10x256xf32>
    %cst_73 = arith.constant 1.000000e+00 : f32
    %186 = vector.broadcast %cst_73 : f32 to vector<10x256xf32>
    %187 = arith.addf %186, %185 : vector<10x256xf32>
    %188 = arith.divf %186, %187 : vector<10x256xf32>
    %189 = arith.mulf %181, %188 : vector<10x256xf32>
    %190 = arith.truncf %189 : vector<10x256xf32> to vector<10x256xbf16>
    %c0_74 = arith.constant 0 : index
    %c0_75 = arith.constant 0 : index
    %c0_76 = arith.constant 0 : index
    %191 = vector.load %arg15[%c0_74, %c0_75, %c0_76] : memref<1x256x64xbf16, #tpu.memory_space<vmem>>, vector<1x256x64xbf16>
    %192 = vector.shape_cast %191 : vector<1x256x64xbf16> to vector<256x64xbf16>
    %cst_77 = arith.constant dense<0.000000e+00> : vector<10x64xf32>
    %193 = tpu.matmul %190, %192, %cst_77 {dimension_numbers = #tpu.dot_dimension_numbers<[1], [0], [0], [1], [0, 0, 1, 1], [], []>} : vector<10x256xbf16>, vector<256x64xbf16>, vector<10x64xf32> -> vector<10x64xf32>
    %194 = arith.addf %147, %193 : vector<10x64xf32>
    %c0_78 = arith.constant 0 : index
    %c0_79 = arith.constant 0 : index
    %c0_80 = arith.constant 0 : index
    %195 = vector.load %arg16[%c0_78, %c0_79, %c0_80] : memref<1x1x64xf32, #tpu.memory_space<vmem>>, vector<1x1x64xf32>
    %196 = vector.shape_cast %195 : vector<1x1x64xf32> to vector<1x64xf32>
    %197 = vector.broadcast %196 : vector<1x64xf32> to vector<10x64xf32>
    %198 = arith.addf %194, %197 : vector<10x64xf32>
    %c0_81 = arith.constant 0 : index
    %c0_82 = arith.constant 0 : index
    %199 = vector.load %arg20[%c0_81, %c0_82] : memref<10x64xf32, #tpu.memory_space<vmem>>, vector<10x64xf32>
    tpu.vector_store %arg20[%c0_81, %c0_82], %198 {strides = array<i32>} : memref<10x64xf32, #tpu.memory_space<vmem>>, vector<10x64xf32>,
    %c0_i32_83 = arith.constant 0 : i32
    %200 = arith.cmpi eq, %arg0, %c0_i32_83 : i32
    %c3_i32 = arith.constant 3 : i32
    %201 = arith.cmpi eq, %arg0, %c3_i32 : i32
    %202 = arith.ori %200, %201 : i1
    %c6_i32 = arith.constant 6 : i32
    %203 = arith.cmpi eq, %arg0, %c6_i32 : i32
    %204 = arith.ori %202, %203 : i1
    %c9_i32 = arith.constant 9 : i32
    %205 = arith.cmpi eq, %arg0, %c9_i32 : i32
    %206 = arith.ori %204, %205 : i1
    %207 = arith.extui %206 : i1 to i32
    %c0_i32_84 = arith.constant 0 : i32
    %208 = arith.cmpi ne, %207, %c0_i32_84 : i32
    scf.if %208 {
      %c0_85 = arith.constant 0 : index
      %c0_86 = arith.constant 0 : index
      %c0_87 = arith.constant 0 : index
      %209 = vector.load %arg19[%c0_85, %c0_86, %c0_87] : memref<1x10x64xf32, #tpu.memory_space<vmem>>, vector<1x10x64xf32>
      %210 = vector.shape_cast %209 : vector<1x10x64xf32> to vector<10x64xf32>
      %211 = vector.shape_cast %198 : vector<10x64xf32> to vector<1x10x64xf32>
      tpu.vector_store %arg19[%c0_85, %c0_86, %c0_87], %211 {strides = array<i32>} : memref<1x10x64xf32, #tpu.memory_space<vmem>>, vector<1x10x64xf32>,
    } else {
    }
    return
  }
  func.func @transform_0(%arg0: i32, %arg1: memref<10xi32, #tpu.memory_space<smem>>) -> (i32, i32) {
    %c0_i32 = arith.constant 0 : i32
    %c0_i32_0 = arith.constant 0 : i32
    %c0_i32_1 = arith.constant 0 : i32
    return %c0_i32, %c0_i32_0 : i32, i32
  }
  func.func @transform_1(%arg0: i32, %arg1: memref<10xi32, #tpu.memory_space<smem>>) -> (i32, i32) {
    %c0_i32 = arith.constant 0 : i32
    %c0_i32_0 = arith.constant 0 : i32
    %c0_i32_1 = arith.constant 0 : i32
    return %c0_i32, %c0_i32_0 : i32, i32
  }
  func.func @transform_2(%arg0: i32, %arg1: memref<10xi32, #tpu.memory_space<smem>>) -> (i32, i32) {
    %c0_i32 = arith.constant 0 : i32
    %c0_i32_0 = arith.constant 0 : i32
    %c0_i32_1 = arith.constant 0 : i32
    return %c0_i32, %c0_i32_0 : i32, i32
  }
  func.func @transform_3(%arg0: i32, %arg1: memref<10xi32, #tpu.memory_space<smem>>) -> (i32, i32, i32) {
    %c0_i32 = arith.constant 0 : i32
    %c0_i32_0 = arith.constant 0 : i32
    %c0_i32_1 = arith.constant 0 : i32
    return %arg0, %c0_i32, %c0_i32_0 : i32, i32, i32
  }
  func.func @transform_4(%arg0: i32, %arg1: memref<10xi32, #tpu.memory_space<smem>>) -> (i32, i32, i32) {
    %c0_i32 = arith.constant 0 : i32
    %c0_i32_0 = arith.constant 0 : i32
    %c0_i32_1 = arith.constant 0 : i32
    return %arg0, %c0_i32, %c0_i32_0 : i32, i32, i32
  }
  func.func @transform_5(%arg0: i32, %arg1: memref<10xi32, #tpu.memory_space<smem>>) -> (i32, i32, i32) {
    %c0_i32 = arith.constant 0 : i32
    %c0_i32_0 = arith.constant 0 : i32
    %c0_i32_1 = arith.constant 0 : i32
    return %arg0, %c0_i32, %c0_i32_0 : i32, i32, i32
  }
  func.func @transform_6(%arg0: i32, %arg1: memref<10xi32, #tpu.memory_space<smem>>) -> (i32, i32, i32) {
    %c0_i32 = arith.constant 0 : i32
    %c0_i32_0 = arith.constant 0 : i32
    %c0_i32_1 = arith.constant 0 : i32
    return %arg0, %c0_i32, %c0_i32_0 : i32, i32, i32
  }
  func.func @transform_7(%arg0: i32, %arg1: memref<10xi32, #tpu.memory_space<smem>>) -> (i32, i32, i32) {
    %c0_i32 = arith.constant 0 : i32
    %c0_i32_0 = arith.constant 0 : i32
    %c0_i32_1 = arith.constant 0 : i32
    return %arg0, %c0_i32, %c0_i32_0 : i32, i32, i32
  }
  func.func @transform_8(%arg0: i32, %arg1: memref<10xi32, #tpu.memory_space<smem>>) -> (i32, i32, i32) {
    %c0_i32 = arith.constant 0 : i32
    %c0_i32_0 = arith.constant 0 : i32
    %c0_i32_1 = arith.constant 0 : i32
    return %arg0, %c0_i32, %c0_i32_0 : i32, i32, i32
  }
  func.func @transform_9(%arg0: i32, %arg1: memref<10xi32, #tpu.memory_space<smem>>) -> (i32, i32, i32) {
    %c0_i32 = arith.constant 0 : i32
    %c0_i32_0 = arith.constant 0 : i32
    %c0_i32_1 = arith.constant 0 : i32
    return %arg0, %c0_i32, %c0_i32_0 : i32, i32, i32
  }
  func.func @transform_10(%arg0: i32, %arg1: memref<10xi32, #tpu.memory_space<smem>>) -> (i32, i32, i32) {
    %c0_i32 = arith.constant 0 : i32
    %c0_i32_0 = arith.constant 0 : i32
    %c0_i32_1 = arith.constant 0 : i32
    return %arg0, %c0_i32, %c0_i32_0 : i32, i32, i32
  }
  func.func @transform_11(%arg0: i32, %arg1: memref<10xi32, #tpu.memory_space<smem>>) -> (i32, i32, i32) {
    %c0_i32 = arith.constant 0 : i32
    %c0_i32_0 = arith.constant 0 : i32
    %c0_i32_1 = arith.constant 0 : i32
    return %arg0, %c0_i32, %c0_i32_0 : i32, i32, i32
  }
  func.func @transform_12(%arg0: i32, %arg1: memref<10xi32, #tpu.memory_space<smem>>) -> (i32, i32, i32) {
    %c0_i32 = arith.constant 0 : i32
    %c0_i32_0 = arith.constant 0 : i32
    %c0_i32_1 = arith.constant 0 : i32
    return %arg0, %c0_i32, %c0_i32_0 : i32, i32, i32
  }
  func.func @transform_13(%arg0: i32, %arg1: memref<10xi32, #tpu.memory_space<smem>>) -> (i32, i32, i32) {
    %c0_i32 = arith.constant 0 : i32
    %c0_i32_0 = arith.constant 0 : i32
    %c0_i32_1 = arith.constant 0 : i32
    return %arg0, %c0_i32, %c0_i32_0 : i32, i32, i32
  }
  func.func @transform_14(%arg0: i32, %arg1: memref<10xi32, #tpu.memory_space<smem>>) -> (i32, i32, i32) {
    %c0_i32 = arith.constant 0 : i32
    %c0_i32_0 = arith.constant 0 : i32
    %c0_i32_1 = arith.constant 0 : i32
    return %arg0, %c0_i32, %c0_i32_0 : i32, i32, i32
  }
  func.func @transform_15(%arg0: i32, %arg1: memref<10xi32, #tpu.memory_space<smem>>) -> (i32, i32) {
    %c0_i32 = arith.constant 0 : i32
    %c0_i32_0 = arith.constant 0 : i32
    %c0_i32_1 = arith.constant 0 : i32
    return %c0_i32, %c0_i32_0 : i32, i32
  }
  func.func @transform_16(%arg0: i32, %arg1: memref<10xi32, #tpu.memory_space<smem>>) -> (i32, i32) {
    %c0_i32 = arith.constant 0 : i32
    %c0_i32_0 = arith.constant 0 : i32
    %c0_i32_1 = arith.constant 0 : i32
    return %c0_i32, %c0_i32_0 : i32, i32
  }
  func.func @transform_17(%arg0: i32, %arg1: memref<10xi32, #tpu.memory_space<smem>>) -> (i32, i32, i32) {
    %0 = arith.index_cast %arg0 : i32 to index
    %1 = memref.load %arg1[%0] : memref<10xi32, #tpu.memory_space<smem>>
    %c0_i32 = arith.constant 0 : i32
    %c0_i32_0 = arith.constant 0 : i32
    %c0_i32_1 = arith.constant 0 : i32
    return %1, %c0_i32, %c0_i32_0 : i32, i32, i32
  }
}

module attributes {stable_mosaic.version = 11 : i64} {
  func.func @_clip_tower_kernel(%arg0: i32, %arg1: memref<2xi32, #tpu.memory_space<smem>>, %arg2: memref<16x32xf32, #tpu.memory_space<vmem>>, %arg3: memref<1x32xf32, #tpu.memory_space<vmem>>, %arg4: memref<1x32xf32, #tpu.memory_space<vmem>>, %arg5: memref<1x1x32xf32, #tpu.memory_space<vmem>>, %arg6: memref<1x1x32xf32, #tpu.memory_space<vmem>>, %arg7: memref<1x32x96xbf16, #tpu.memory_space<vmem>>, %arg8: memref<1x1x96xf32, #tpu.memory_space<vmem>>, %arg9: memref<1x32x32xbf16, #tpu.memory_space<vmem>>, %arg10: memref<1x1x32xf32, #tpu.memory_space<vmem>>, %arg11: memref<1x1x32xf32, #tpu.memory_space<vmem>>, %arg12: memref<1x1x32xf32, #tpu.memory_space<vmem>>, %arg13: memref<1x32x128xbf16, #tpu.memory_space<vmem>>, %arg14: memref<1x1x128xf32, #tpu.memory_space<vmem>>, %arg15: memref<1x128x32xbf16, #tpu.memory_space<vmem>>, %arg16: memref<1x1x32xf32, #tpu.memory_space<vmem>>, %arg17: memref<1x32xf32, #tpu.memory_space<vmem>>, %arg18: memref<1x32xf32, #tpu.memory_space<vmem>>, %arg19: memref<1x16x32xf32, #tpu.memory_space<vmem>>, %arg20: memref<16x32xf32, #tpu.memory_space<vmem>>) attributes {dimension_semantics = [#tpu.dimension_semantics<arbitrary>], iteration_bounds = array<i64: 2>, scalar_prefetch = 1 : i64, scratch_operands = 1 : i64, tpu.core_type = #tpu.core_type<tc>, window_params = [{pipeline_mode = #tpu.pipeline_mode<synchronous>, transform_indices = @transform_0, window_bounds = array<i64: 16, 32>}, {pipeline_mode = #tpu.pipeline_mode<synchronous>, transform_indices = @transform_1, window_bounds = array<i64: 1, 32>}, {pipeline_mode = #tpu.pipeline_mode<synchronous>, transform_indices = @transform_2, window_bounds = array<i64: 1, 32>}, {transform_indices = @transform_3, window_bounds = array<i64: 1, 1, 32>}, {transform_indices = @transform_4, window_bounds = array<i64: 1, 1, 32>}, {transform_indices = @transform_5, window_bounds = array<i64: 1, 32, 96>}, {transform_indices = @transform_6, window_bounds = array<i64: 1, 1, 96>}, {transform_indices = @transform_7, window_bounds = array<i64: 1, 32, 32>}, {transform_indices = @transform_8, window_bounds = array<i64: 1, 1, 32>}, {transform_indices = @transform_9, window_bounds = array<i64: 1, 1, 32>}, {transform_indices = @transform_10, window_bounds = array<i64: 1, 1, 32>}, {transform_indices = @transform_11, window_bounds = array<i64: 1, 32, 128>}, {transform_indices = @transform_12, window_bounds = array<i64: 1, 1, 128>}, {transform_indices = @transform_13, window_bounds = array<i64: 1, 128, 32>}, {transform_indices = @transform_14, window_bounds = array<i64: 1, 1, 32>}, {pipeline_mode = #tpu.pipeline_mode<synchronous>, transform_indices = @transform_15, window_bounds = array<i64: 1, 32>}, {pipeline_mode = #tpu.pipeline_mode<synchronous>, transform_indices = @transform_16, window_bounds = array<i64: 1, 32>}, {transform_indices = @transform_17, window_bounds = array<i64: 1, 16, 32>}]} {
    %c0_i32 = arith.constant 0 : i32
    %0 = arith.cmpi eq, %arg0, %c0_i32 : i32
    %1 = arith.extui %0 : i1 to i32
    %c0_i32_0 = arith.constant 0 : i32
    %2 = arith.cmpi ne, %1, %c0_i32_0 : i32
    scf.if %2 {
      %c0_74 = arith.constant 0 : index
      %c0_75 = arith.constant 0 : index
      %169 = vector.load %arg2[%c0_74, %c0_75] : memref<16x32xf32, #tpu.memory_space<vmem>>, vector<16x32xf32>
      %c0_76 = arith.constant 0 : index
      %c0_77 = arith.constant 0 : index
      %170 = vector.load %arg20[%c0_76, %c0_77] : memref<16x32xf32, #tpu.memory_space<vmem>>, vector<16x32xf32>
      tpu.vector_store %arg20[%c0_76, %c0_77], %169 {strides = array<i32>} : memref<16x32xf32, #tpu.memory_space<vmem>>, vector<16x32xf32>,
    } else {
    }
    %c0 = arith.constant 0 : index
    %c0_1 = arith.constant 0 : index
    %3 = vector.load %arg20[%c0, %c0_1] : memref<16x32xf32, #tpu.memory_space<vmem>>, vector<16x32xf32>
    %4 = tpu.iota {dimensions = array<i32: 0>} : vector<16x16xi32>
    %5 = tpu.iota {dimensions = array<i32: 1>} : vector<16x16xi32>
    %c0_i32_2 = arith.constant 0 : i32
    %6 = vector.broadcast %c0_i32_2 : i32 to vector<16x16xi32>
    %7 = arith.cmpi sge, %4, %6 : vector<16x16xi32>
    %c8_i32 = arith.constant 8 : i32
    %8 = vector.broadcast %c8_i32 : i32 to vector<16x16xi32>
    %9 = arith.cmpi slt, %4, %8 : vector<16x16xi32>
    %10 = arith.andi %7, %9 : vector<16x16xi1>
    %c0_i32_3 = arith.constant 0 : i32
    %11 = vector.broadcast %c0_i32_3 : i32 to vector<16x16xi32>
    %12 = arith.cmpi sge, %5, %11 : vector<16x16xi32>
    %13 = arith.andi %10, %12 : vector<16x16xi1>
    %c8_i32_4 = arith.constant 8 : i32
    %14 = vector.broadcast %c8_i32_4 : i32 to vector<16x16xi32>
    %15 = arith.cmpi slt, %5, %14 : vector<16x16xi32>
    %16 = arith.andi %13, %15 : vector<16x16xi1>
    %c8_i32_5 = arith.constant 8 : i32
    %17 = vector.broadcast %c8_i32_5 : i32 to vector<16x16xi32>
    %18 = arith.cmpi sge, %4, %17 : vector<16x16xi32>
    %c16_i32 = arith.constant 16 : i32
    %19 = vector.broadcast %c16_i32 : i32 to vector<16x16xi32>
    %20 = arith.cmpi slt, %4, %19 : vector<16x16xi32>
    %21 = arith.andi %18, %20 : vector<16x16xi1>
    %c8_i32_6 = arith.constant 8 : i32
    %22 = vector.broadcast %c8_i32_6 : i32 to vector<16x16xi32>
    %23 = arith.cmpi sge, %5, %22 : vector<16x16xi32>
    %24 = arith.andi %21, %23 : vector<16x16xi1>
    %c16_i32_7 = arith.constant 16 : i32
    %25 = vector.broadcast %c16_i32_7 : i32 to vector<16x16xi32>
    %26 = arith.cmpi slt, %5, %25 : vector<16x16xi32>
    %27 = arith.andi %24, %26 : vector<16x16xi1>
    %28 = arith.ori %16, %27 : vector<16x16xi1>
    %29 = arith.cmpi sle, %5, %4 : vector<16x16xi32>
    %30 = arith.andi %28, %29 : vector<16x16xi1>
    %cst = arith.constant 0.000000e+00 : f32
    %cst_8 = arith.constant -1.000000e+30 : f32
    %31 = vector.broadcast %cst : f32 to vector<16x16xf32>
    %32 = vector.broadcast %cst_8 : f32 to vector<16x16xf32>
    %33 = arith.select %30, %31, %32 : vector<16x16xi1>, vector<16x16xf32>
    %c0_9 = arith.constant 0 : index
    %c0_10 = arith.constant 0 : index
    %c0_11 = arith.constant 0 : index
    %34 = vector.load %arg5[%c0_9, %c0_10, %c0_11] : memref<1x1x32xf32, #tpu.memory_space<vmem>>, vector<1x1x32xf32>
    %35 = vector.shape_cast %34 : vector<1x1x32xf32> to vector<1x32xf32>
    %c0_12 = arith.constant 0 : index
    %c0_13 = arith.constant 0 : index
    %c0_14 = arith.constant 0 : index
    %36 = vector.load %arg6[%c0_12, %c0_13, %c0_14] : memref<1x1x32xf32, #tpu.memory_space<vmem>>, vector<1x1x32xf32>
    %37 = vector.shape_cast %36 : vector<1x1x32xf32> to vector<1x32xf32>
    %cst_15 = arith.constant dense<0.000000e+00> : vector<16xf32>
    %38 = vector.multi_reduction <add>, %3, %cst_15 [1] : vector<16x32xf32> to vector<16xf32>
    %39 = vector.shape_cast %38 : vector<16xf32> to vector<16x1xf32>
    %cst_16 = arith.constant 3.200000e+01 : f32
    %40 = vector.broadcast %cst_16 : f32 to vector<16x1xf32>
    %41 = arith.divf %39, %40 : vector<16x1xf32>
    %42 = vector.broadcast %41 : vector<16x1xf32> to vector<16x32xf32>
    %43 = arith.subf %3, %42 : vector<16x32xf32>
    %44 = arith.mulf %43, %43 : vector<16x32xf32>
    %cst_17 = arith.constant dense<0.000000e+00> : vector<16xf32>
    %45 = vector.multi_reduction <add>, %44, %cst_17 [1] : vector<16x32xf32> to vector<16xf32>
    %46 = vector.shape_cast %45 : vector<16xf32> to vector<16x1xf32>
    %cst_18 = arith.constant 3.200000e+01 : f32
    %47 = vector.broadcast %cst_18 : f32 to vector<16x1xf32>
    %48 = arith.divf %46, %47 : vector<16x1xf32>
    %49 = vector.broadcast %41 : vector<16x1xf32> to vector<16x32xf32>
    %50 = arith.subf %3, %49 : vector<16x32xf32>
    %cst_19 = arith.constant 9.99999974E-6 : f32
    %51 = vector.broadcast %cst_19 : f32 to vector<16x1xf32>
    %52 = arith.addf %48, %51 : vector<16x1xf32>
    %53 = math.rsqrt %52 : vector<16x1xf32>
    %54 = vector.broadcast %53 : vector<16x1xf32> to vector<16x32xf32>
    %55 = arith.mulf %50, %54 : vector<16x32xf32>
    %56 = vector.broadcast %35 : vector<1x32xf32> to vector<16x32xf32>
    %57 = arith.mulf %55, %56 : vector<16x32xf32>
    %58 = vector.broadcast %37 : vector<1x32xf32> to vector<16x32xf32>
    %59 = arith.addf %57, %58 : vector<16x32xf32>
    %60 = arith.truncf %59 : vector<16x32xf32> to vector<16x32xbf16>
    %c0_20 = arith.constant 0 : index
    %c0_21 = arith.constant 0 : index
    %c0_22 = arith.constant 0 : index
    %61 = vector.load %arg7[%c0_20, %c0_21, %c0_22] : memref<1x32x96xbf16, #tpu.memory_space<vmem>>, vector<1x32x96xbf16>
    %62 = vector.shape_cast %61 : vector<1x32x96xbf16> to vector<32x96xbf16>
    %cst_23 = arith.constant dense<0.000000e+00> : vector<16x96xf32>
    %63 = tpu.matmul %60, %62, %cst_23 {dimension_numbers = #tpu.dot_dimension_numbers<[1], [0], [0], [1], [0, 0, 1, 1], [], []>} : vector<16x32xbf16>, vector<32x96xbf16>, vector<16x96xf32> -> vector<16x96xf32>
    %c0_24 = arith.constant 0 : index
    %c0_25 = arith.constant 0 : index
    %c0_26 = arith.constant 0 : index
    %64 = vector.load %arg8[%c0_24, %c0_25, %c0_26] : memref<1x1x96xf32, #tpu.memory_space<vmem>>, vector<1x1x96xf32>
    %65 = vector.shape_cast %64 : vector<1x1x96xf32> to vector<1x96xf32>
    %66 = vector.broadcast %65 : vector<1x96xf32> to vector<16x96xf32>
    %67 = arith.addf %63, %66 : vector<16x96xf32>
    %68 = vector.extract_strided_slice %67 {offsets = [0, 0], sizes = [16, 16], strides = [1, 1]} : vector<16x96xf32> to vector<16x16xf32>
    %cst_27 = arith.constant 2.500000e-01 : f32
    %69 = vector.broadcast %cst_27 : f32 to vector<16x16xf32>
    %70 = arith.mulf %68, %69 : vector<16x16xf32>
    %71 = vector.extract_strided_slice %67 {offsets = [0, 32], sizes = [16, 16], strides = [1, 1]} : vector<16x96xf32> to vector<16x16xf32>
    %72 = vector.extract_strided_slice %67 {offsets = [0, 64], sizes = [16, 16], strides = [1, 1]} : vector<16x96xf32> to vector<16x16xf32>
    %cst_28 = arith.constant dense<0.000000e+00> : vector<16x16xf32>
    %73 = tpu.matmul %70, %71, %cst_28 {dimension_numbers = #tpu.dot_dimension_numbers<[1], [1], [0], [0], [0, 0, 1, 0], [], []>} : vector<16x16xf32>, vector<16x16xf32>, vector<16x16xf32> -> vector<16x16xf32>
    %74 = arith.addf %73, %33 : vector<16x16xf32>
    %cst_29 = arith.constant dense<0xFF800000> : vector<16xf32>
    %75 = vector.multi_reduction <maximumf>, %74, %cst_29 [1] : vector<16x16xf32> to vector<16xf32>
    %76 = vector.shape_cast %75 : vector<16xf32> to vector<16x1xf32>
    %77 = vector.broadcast %76 : vector<16x1xf32> to vector<16x16xf32>
    %78 = arith.subf %74, %77 : vector<16x16xf32>
    %79 = math.exp %78 : vector<16x16xf32>
    %cst_30 = arith.constant dense<0.000000e+00> : vector<16xf32>
    %80 = vector.multi_reduction <add>, %79, %cst_30 [1] : vector<16x16xf32> to vector<16xf32>
    %81 = vector.shape_cast %80 : vector<16xf32> to vector<16x1xf32>
    %82 = tpu.reciprocal %81 {approx = true} : vector<16x1xf32> -> vector<16x1xf32>
    %83 = vector.broadcast %82 : vector<16x1xf32> to vector<16x16xf32>
    %84 = arith.mulf %79, %83 : vector<16x16xf32>
    %cst_31 = arith.constant dense<0.000000e+00> : vector<16x16xf32>
    %85 = tpu.matmul %84, %72, %cst_31 {dimension_numbers = #tpu.dot_dimension_numbers<[1], [0], [0], [1], [0, 0, 1, 1], [], []>} : vector<16x16xf32>, vector<16x16xf32>, vector<16x16xf32> -> vector<16x16xf32>
    %86 = vector.extract_strided_slice %67 {offsets = [0, 16], sizes = [16, 16], strides = [1, 1]} : vector<16x96xf32> to vector<16x16xf32>
    %cst_32 = arith.constant 2.500000e-01 : f32
    %87 = vector.broadcast %cst_32 : f32 to vector<16x16xf32>
    %88 = arith.mulf %86, %87 : vector<16x16xf32>
    %89 = vector.extract_strided_slice %67 {offsets = [0, 48], sizes = [16, 16], strides = [1, 1]} : vector<16x96xf32> to vector<16x16xf32>
    %90 = vector.extract_strided_slice %67 {offsets = [0, 80], sizes = [16, 16], strides = [1, 1]} : vector<16x96xf32> to vector<16x16xf32>
    %cst_33 = arith.constant dense<0.000000e+00> : vector<16x16xf32>
    %91 = tpu.matmul %88, %89, %cst_33 {dimension_numbers = #tpu.dot_dimension_numbers<[1], [1], [0], [0], [0, 0, 1, 0], [], []>} : vector<16x16xf32>, vector<16x16xf32>, vector<16x16xf32> -> vector<16x16xf32>
    %92 = arith.addf %91, %33 : vector<16x16xf32>
    %cst_34 = arith.constant dense<0xFF800000> : vector<16xf32>
    %93 = vector.multi_reduction <maximumf>, %92, %cst_34 [1] : vector<16x16xf32> to vector<16xf32>
    %94 = vector.shape_cast %93 : vector<16xf32> to vector<16x1xf32>
    %95 = vector.broadcast %94 : vector<16x1xf32> to vector<16x16xf32>
    %96 = arith.subf %92, %95 : vector<16x16xf32>
    %97 = math.exp %96 : vector<16x16xf32>
    %cst_35 = arith.constant dense<0.000000e+00> : vector<16xf32>
    %98 = vector.multi_reduction <add>, %97, %cst_35 [1] : vector<16x16xf32> to vector<16xf32>
    %99 = vector.shape_cast %98 : vector<16xf32> to vector<16x1xf32>
    %100 = tpu.reciprocal %99 {approx = true} : vector<16x1xf32> -> vector<16x1xf32>
    %101 = vector.broadcast %100 : vector<16x1xf32> to vector<16x16xf32>
    %102 = arith.mulf %97, %101 : vector<16x16xf32>
    %cst_36 = arith.constant dense<0.000000e+00> : vector<16x16xf32>
    %103 = tpu.matmul %102, %90, %cst_36 {dimension_numbers = #tpu.dot_dimension_numbers<[1], [0], [0], [1], [0, 0, 1, 1], [], []>} : vector<16x16xf32>, vector<16x16xf32>, vector<16x16xf32> -> vector<16x16xf32>
    %104 = tpu.concatenate %85, %103 in 1 : vector<16x16xf32>, vector<16x16xf32> -> vector<16x32xf32>
    %105 = arith.truncf %104 : vector<16x32xf32> to vector<16x32xbf16>
    %c0_37 = arith.constant 0 : index
    %c0_38 = arith.constant 0 : index
    %c0_39 = arith.constant 0 : index
    %106 = vector.load %arg9[%c0_37, %c0_38, %c0_39] : memref<1x32x32xbf16, #tpu.memory_space<vmem>>, vector<1x32x32xbf16>
    %107 = vector.shape_cast %106 : vector<1x32x32xbf16> to vector<32x32xbf16>
    %cst_40 = arith.constant dense<0.000000e+00> : vector<16x32xf32>
    %108 = tpu.matmul %105, %107, %cst_40 {dimension_numbers = #tpu.dot_dimension_numbers<[1], [0], [0], [1], [0, 0, 1, 1], [], []>} : vector<16x32xbf16>, vector<32x32xbf16>, vector<16x32xf32> -> vector<16x32xf32>
    %109 = arith.addf %3, %108 : vector<16x32xf32>
    %c0_41 = arith.constant 0 : index
    %c0_42 = arith.constant 0 : index
    %c0_43 = arith.constant 0 : index
    %110 = vector.load %arg10[%c0_41, %c0_42, %c0_43] : memref<1x1x32xf32, #tpu.memory_space<vmem>>, vector<1x1x32xf32>
    %111 = vector.shape_cast %110 : vector<1x1x32xf32> to vector<1x32xf32>
    %112 = vector.broadcast %111 : vector<1x32xf32> to vector<16x32xf32>
    %113 = arith.addf %109, %112 : vector<16x32xf32>
    %c0_44 = arith.constant 0 : index
    %c0_45 = arith.constant 0 : index
    %c0_46 = arith.constant 0 : index
    %114 = vector.load %arg11[%c0_44, %c0_45, %c0_46] : memref<1x1x32xf32, #tpu.memory_space<vmem>>, vector<1x1x32xf32>
    %115 = vector.shape_cast %114 : vector<1x1x32xf32> to vector<1x32xf32>
    %c0_47 = arith.constant 0 : index
    %c0_48 = arith.constant 0 : index
    %c0_49 = arith.constant 0 : index
    %116 = vector.load %arg12[%c0_47, %c0_48, %c0_49] : memref<1x1x32xf32, #tpu.memory_space<vmem>>, vector<1x1x32xf32>
    %117 = vector.shape_cast %116 : vector<1x1x32xf32> to vector<1x32xf32>
    %cst_50 = arith.constant dense<0.000000e+00> : vector<16xf32>
    %118 = vector.multi_reduction <add>, %113, %cst_50 [1] : vector<16x32xf32> to vector<16xf32>
    %119 = vector.shape_cast %118 : vector<16xf32> to vector<16x1xf32>
    %cst_51 = arith.constant 3.200000e+01 : f32
    %120 = vector.broadcast %cst_51 : f32 to vector<16x1xf32>
    %121 = arith.divf %119, %120 : vector<16x1xf32>
    %122 = vector.broadcast %121 : vector<16x1xf32> to vector<16x32xf32>
    %123 = arith.subf %113, %122 : vector<16x32xf32>
    %124 = arith.mulf %123, %123 : vector<16x32xf32>
    %cst_52 = arith.constant dense<0.000000e+00> : vector<16xf32>
    %125 = vector.multi_reduction <add>, %124, %cst_52 [1] : vector<16x32xf32> to vector<16xf32>
    %126 = vector.shape_cast %125 : vector<16xf32> to vector<16x1xf32>
    %cst_53 = arith.constant 3.200000e+01 : f32
    %127 = vector.broadcast %cst_53 : f32 to vector<16x1xf32>
    %128 = arith.divf %126, %127 : vector<16x1xf32>
    %129 = vector.broadcast %121 : vector<16x1xf32> to vector<16x32xf32>
    %130 = arith.subf %113, %129 : vector<16x32xf32>
    %cst_54 = arith.constant 9.99999974E-6 : f32
    %131 = vector.broadcast %cst_54 : f32 to vector<16x1xf32>
    %132 = arith.addf %128, %131 : vector<16x1xf32>
    %133 = math.rsqrt %132 : vector<16x1xf32>
    %134 = vector.broadcast %133 : vector<16x1xf32> to vector<16x32xf32>
    %135 = arith.mulf %130, %134 : vector<16x32xf32>
    %136 = vector.broadcast %115 : vector<1x32xf32> to vector<16x32xf32>
    %137 = arith.mulf %135, %136 : vector<16x32xf32>
    %138 = vector.broadcast %117 : vector<1x32xf32> to vector<16x32xf32>
    %139 = arith.addf %137, %138 : vector<16x32xf32>
    %140 = arith.truncf %139 : vector<16x32xf32> to vector<16x32xbf16>
    %c0_55 = arith.constant 0 : index
    %c0_56 = arith.constant 0 : index
    %c0_57 = arith.constant 0 : index
    %141 = vector.load %arg13[%c0_55, %c0_56, %c0_57] : memref<1x32x128xbf16, #tpu.memory_space<vmem>>, vector<1x32x128xbf16>
    %142 = vector.shape_cast %141 : vector<1x32x128xbf16> to vector<32x128xbf16>
    %cst_58 = arith.constant dense<0.000000e+00> : vector<16x128xf32>
    %143 = tpu.matmul %140, %142, %cst_58 {dimension_numbers = #tpu.dot_dimension_numbers<[1], [0], [0], [1], [0, 0, 1, 1], [], []>} : vector<16x32xbf16>, vector<32x128xbf16>, vector<16x128xf32> -> vector<16x128xf32>
    %c0_59 = arith.constant 0 : index
    %c0_60 = arith.constant 0 : index
    %c0_61 = arith.constant 0 : index
    %144 = vector.load %arg14[%c0_59, %c0_60, %c0_61] : memref<1x1x128xf32, #tpu.memory_space<vmem>>, vector<1x1x128xf32>
    %145 = vector.shape_cast %144 : vector<1x1x128xf32> to vector<1x128xf32>
    %146 = vector.broadcast %145 : vector<1x128xf32> to vector<16x128xf32>
    %147 = arith.addf %143, %146 : vector<16x128xf32>
    %cst_62 = arith.constant 1.702000e+00 : f32
    %148 = vector.broadcast %cst_62 : f32 to vector<16x128xf32>
    %149 = arith.mulf %148, %147 : vector<16x128xf32>
    %150 = arith.negf %149 : vector<16x128xf32>
    %151 = math.exp %150 : vector<16x128xf32>
    %cst_63 = arith.constant 1.000000e+00 : f32
    %152 = vector.broadcast %cst_63 : f32 to vector<16x128xf32>
    %153 = arith.addf %152, %151 : vector<16x128xf32>
    %154 = arith.divf %152, %153 : vector<16x128xf32>
    %155 = arith.mulf %147, %154 : vector<16x128xf32>
    %156 = arith.truncf %155 : vector<16x128xf32> to vector<16x128xbf16>
    %c0_64 = arith.constant 0 : index
    %c0_65 = arith.constant 0 : index
    %c0_66 = arith.constant 0 : index
    %157 = vector.load %arg15[%c0_64, %c0_65, %c0_66] : memref<1x128x32xbf16, #tpu.memory_space<vmem>>, vector<1x128x32xbf16>
    %158 = vector.shape_cast %157 : vector<1x128x32xbf16> to vector<128x32xbf16>
    %cst_67 = arith.constant dense<0.000000e+00> : vector<16x32xf32>
    %159 = tpu.matmul %156, %158, %cst_67 {dimension_numbers = #tpu.dot_dimension_numbers<[1], [0], [0], [1], [0, 0, 1, 1], [], []>} : vector<16x128xbf16>, vector<128x32xbf16>, vector<16x32xf32> -> vector<16x32xf32>
    %160 = arith.addf %113, %159 : vector<16x32xf32>
    %c0_68 = arith.constant 0 : index
    %c0_69 = arith.constant 0 : index
    %c0_70 = arith.constant 0 : index
    %161 = vector.load %arg16[%c0_68, %c0_69, %c0_70] : memref<1x1x32xf32, #tpu.memory_space<vmem>>, vector<1x1x32xf32>
    %162 = vector.shape_cast %161 : vector<1x1x32xf32> to vector<1x32xf32>
    %163 = vector.broadcast %162 : vector<1x32xf32> to vector<16x32xf32>
    %164 = arith.addf %160, %163 : vector<16x32xf32>
    %c0_71 = arith.constant 0 : index
    %c0_72 = arith.constant 0 : index
    %165 = vector.load %arg20[%c0_71, %c0_72] : memref<16x32xf32, #tpu.memory_space<vmem>>, vector<16x32xf32>
    tpu.vector_store %arg20[%c0_71, %c0_72], %164 {strides = array<i32>} : memref<16x32xf32, #tpu.memory_space<vmem>>, vector<16x32xf32>,
    %c1_i32 = arith.constant 1 : i32
    %166 = arith.cmpi eq, %arg0, %c1_i32 : i32
    %167 = arith.extui %166 : i1 to i32
    %c0_i32_73 = arith.constant 0 : i32
    %168 = arith.cmpi ne, %167, %c0_i32_73 : i32
    scf.if %168 {
      %c0_74 = arith.constant 0 : index
      %c0_75 = arith.constant 0 : index
      %169 = vector.load %arg17[%c0_74, %c0_75] : memref<1x32xf32, #tpu.memory_space<vmem>>, vector<1x32xf32>
      %c0_76 = arith.constant 0 : index
      %c0_77 = arith.constant 0 : index
      %170 = vector.load %arg18[%c0_76, %c0_77] : memref<1x32xf32, #tpu.memory_space<vmem>>, vector<1x32xf32>
      %cst_78 = arith.constant dense<0.000000e+00> : vector<16xf32>
      %171 = vector.multi_reduction <add>, %164, %cst_78 [1] : vector<16x32xf32> to vector<16xf32>
      %172 = vector.shape_cast %171 : vector<16xf32> to vector<16x1xf32>
      %cst_79 = arith.constant 3.200000e+01 : f32
      %173 = vector.broadcast %cst_79 : f32 to vector<16x1xf32>
      %174 = arith.divf %172, %173 : vector<16x1xf32>
      %175 = vector.broadcast %174 : vector<16x1xf32> to vector<16x32xf32>
      %176 = arith.subf %164, %175 : vector<16x32xf32>
      %177 = arith.mulf %176, %176 : vector<16x32xf32>
      %cst_80 = arith.constant dense<0.000000e+00> : vector<16xf32>
      %178 = vector.multi_reduction <add>, %177, %cst_80 [1] : vector<16x32xf32> to vector<16xf32>
      %179 = vector.shape_cast %178 : vector<16xf32> to vector<16x1xf32>
      %cst_81 = arith.constant 3.200000e+01 : f32
      %180 = vector.broadcast %cst_81 : f32 to vector<16x1xf32>
      %181 = arith.divf %179, %180 : vector<16x1xf32>
      %182 = vector.broadcast %174 : vector<16x1xf32> to vector<16x32xf32>
      %183 = arith.subf %164, %182 : vector<16x32xf32>
      %cst_82 = arith.constant 9.99999974E-6 : f32
      %184 = vector.broadcast %cst_82 : f32 to vector<16x1xf32>
      %185 = arith.addf %181, %184 : vector<16x1xf32>
      %186 = math.rsqrt %185 : vector<16x1xf32>
      %187 = vector.broadcast %186 : vector<16x1xf32> to vector<16x32xf32>
      %188 = arith.mulf %183, %187 : vector<16x32xf32>
      %189 = vector.broadcast %169 : vector<1x32xf32> to vector<16x32xf32>
      %190 = arith.mulf %188, %189 : vector<16x32xf32>
      %191 = vector.broadcast %170 : vector<1x32xf32> to vector<16x32xf32>
      %192 = arith.addf %190, %191 : vector<16x32xf32>
      %c0_83 = arith.constant 0 : index
      %c0_84 = arith.constant 0 : index
      %c0_85 = arith.constant 0 : index
      %193 = vector.load %arg19[%c0_83, %c0_84, %c0_85] : memref<1x16x32xf32, #tpu.memory_space<vmem>>, vector<1x16x32xf32>
      %194 = vector.shape_cast %193 : vector<1x16x32xf32> to vector<16x32xf32>
      %195 = vector.shape_cast %192 : vector<16x32xf32> to vector<1x16x32xf32>
      tpu.vector_store %arg19[%c0_83, %c0_84, %c0_85], %195 {strides = array<i32>} : memref<1x16x32xf32, #tpu.memory_space<vmem>>, vector<1x16x32xf32>,
    } else {
    }
    return
  }
  func.func @transform_0(%arg0: i32, %arg1: memref<2xi32, #tpu.memory_space<smem>>) -> (i32, i32) {
    %c0_i32 = arith.constant 0 : i32
    %c0_i32_0 = arith.constant 0 : i32
    %c0_i32_1 = arith.constant 0 : i32
    return %c0_i32, %c0_i32_0 : i32, i32
  }
  func.func @transform_1(%arg0: i32, %arg1: memref<2xi32, #tpu.memory_space<smem>>) -> (i32, i32) {
    %c0_i32 = arith.constant 0 : i32
    %c0_i32_0 = arith.constant 0 : i32
    %c0_i32_1 = arith.constant 0 : i32
    return %c0_i32, %c0_i32_0 : i32, i32
  }
  func.func @transform_2(%arg0: i32, %arg1: memref<2xi32, #tpu.memory_space<smem>>) -> (i32, i32) {
    %c0_i32 = arith.constant 0 : i32
    %c0_i32_0 = arith.constant 0 : i32
    %c0_i32_1 = arith.constant 0 : i32
    return %c0_i32, %c0_i32_0 : i32, i32
  }
  func.func @transform_3(%arg0: i32, %arg1: memref<2xi32, #tpu.memory_space<smem>>) -> (i32, i32, i32) {
    %c0_i32 = arith.constant 0 : i32
    %c0_i32_0 = arith.constant 0 : i32
    %c0_i32_1 = arith.constant 0 : i32
    return %arg0, %c0_i32, %c0_i32_0 : i32, i32, i32
  }
  func.func @transform_4(%arg0: i32, %arg1: memref<2xi32, #tpu.memory_space<smem>>) -> (i32, i32, i32) {
    %c0_i32 = arith.constant 0 : i32
    %c0_i32_0 = arith.constant 0 : i32
    %c0_i32_1 = arith.constant 0 : i32
    return %arg0, %c0_i32, %c0_i32_0 : i32, i32, i32
  }
  func.func @transform_5(%arg0: i32, %arg1: memref<2xi32, #tpu.memory_space<smem>>) -> (i32, i32, i32) {
    %c0_i32 = arith.constant 0 : i32
    %c0_i32_0 = arith.constant 0 : i32
    %c0_i32_1 = arith.constant 0 : i32
    return %arg0, %c0_i32, %c0_i32_0 : i32, i32, i32
  }
  func.func @transform_6(%arg0: i32, %arg1: memref<2xi32, #tpu.memory_space<smem>>) -> (i32, i32, i32) {
    %c0_i32 = arith.constant 0 : i32
    %c0_i32_0 = arith.constant 0 : i32
    %c0_i32_1 = arith.constant 0 : i32
    return %arg0, %c0_i32, %c0_i32_0 : i32, i32, i32
  }
  func.func @transform_7(%arg0: i32, %arg1: memref<2xi32, #tpu.memory_space<smem>>) -> (i32, i32, i32) {
    %c0_i32 = arith.constant 0 : i32
    %c0_i32_0 = arith.constant 0 : i32
    %c0_i32_1 = arith.constant 0 : i32
    return %arg0, %c0_i32, %c0_i32_0 : i32, i32, i32
  }
  func.func @transform_8(%arg0: i32, %arg1: memref<2xi32, #tpu.memory_space<smem>>) -> (i32, i32, i32) {
    %c0_i32 = arith.constant 0 : i32
    %c0_i32_0 = arith.constant 0 : i32
    %c0_i32_1 = arith.constant 0 : i32
    return %arg0, %c0_i32, %c0_i32_0 : i32, i32, i32
  }
  func.func @transform_9(%arg0: i32, %arg1: memref<2xi32, #tpu.memory_space<smem>>) -> (i32, i32, i32) {
    %c0_i32 = arith.constant 0 : i32
    %c0_i32_0 = arith.constant 0 : i32
    %c0_i32_1 = arith.constant 0 : i32
    return %arg0, %c0_i32, %c0_i32_0 : i32, i32, i32
  }
  func.func @transform_10(%arg0: i32, %arg1: memref<2xi32, #tpu.memory_space<smem>>) -> (i32, i32, i32) {
    %c0_i32 = arith.constant 0 : i32
    %c0_i32_0 = arith.constant 0 : i32
    %c0_i32_1 = arith.constant 0 : i32
    return %arg0, %c0_i32, %c0_i32_0 : i32, i32, i32
  }
  func.func @transform_11(%arg0: i32, %arg1: memref<2xi32, #tpu.memory_space<smem>>) -> (i32, i32, i32) {
    %c0_i32 = arith.constant 0 : i32
    %c0_i32_0 = arith.constant 0 : i32
    %c0_i32_1 = arith.constant 0 : i32
    return %arg0, %c0_i32, %c0_i32_0 : i32, i32, i32
  }
  func.func @transform_12(%arg0: i32, %arg1: memref<2xi32, #tpu.memory_space<smem>>) -> (i32, i32, i32) {
    %c0_i32 = arith.constant 0 : i32
    %c0_i32_0 = arith.constant 0 : i32
    %c0_i32_1 = arith.constant 0 : i32
    return %arg0, %c0_i32, %c0_i32_0 : i32, i32, i32
  }
  func.func @transform_13(%arg0: i32, %arg1: memref<2xi32, #tpu.memory_space<smem>>) -> (i32, i32, i32) {
    %c0_i32 = arith.constant 0 : i32
    %c0_i32_0 = arith.constant 0 : i32
    %c0_i32_1 = arith.constant 0 : i32
    return %arg0, %c0_i32, %c0_i32_0 : i32, i32, i32
  }
  func.func @transform_14(%arg0: i32, %arg1: memref<2xi32, #tpu.memory_space<smem>>) -> (i32, i32, i32) {
    %c0_i32 = arith.constant 0 : i32
    %c0_i32_0 = arith.constant 0 : i32
    %c0_i32_1 = arith.constant 0 : i32
    return %arg0, %c0_i32, %c0_i32_0 : i32, i32, i32
  }
  func.func @transform_15(%arg0: i32, %arg1: memref<2xi32, #tpu.memory_space<smem>>) -> (i32, i32) {
    %c0_i32 = arith.constant 0 : i32
    %c0_i32_0 = arith.constant 0 : i32
    %c0_i32_1 = arith.constant 0 : i32
    return %c0_i32, %c0_i32_0 : i32, i32
  }
  func.func @transform_16(%arg0: i32, %arg1: memref<2xi32, #tpu.memory_space<smem>>) -> (i32, i32) {
    %c0_i32 = arith.constant 0 : i32
    %c0_i32_0 = arith.constant 0 : i32
    %c0_i32_1 = arith.constant 0 : i32
    return %c0_i32, %c0_i32_0 : i32, i32
  }
  func.func @transform_17(%arg0: i32, %arg1: memref<2xi32, #tpu.memory_space<smem>>) -> (i32, i32, i32) {
    %0 = arith.index_cast %arg0 : i32 to index
    %1 = memref.load %arg1[%0] : memref<2xi32, #tpu.memory_space<smem>>
    %c0_i32 = arith.constant 0 : i32
    %c0_i32_0 = arith.constant 0 : i32
    %c0_i32_1 = arith.constant 0 : i32
    return %1, %c0_i32, %c0_i32_0 : i32, i32, i32
  }
}

module attributes {stable_mosaic.version = 11 : i64} {
  func.func @_mm_kernel(%arg0: memref<2x32xf32, #tpu.memory_space<vmem>>, %arg1: memref<32x48xf32, #tpu.memory_space<vmem>>, %arg2: memref<1x48xf32, #tpu.memory_space<vmem>>, %arg3: memref<2x48xf32, #tpu.memory_space<vmem>>) attributes {dimension_semantics = [], scalar_prefetch = 0 : i64, scratch_operands = 0 : i64, tpu.core_type = #tpu.core_type<tc>} {
    %c0 = arith.constant 0 : index
    %c0_0 = arith.constant 0 : index
    %0 = vector.load %arg0[%c0, %c0_0] : memref<2x32xf32, #tpu.memory_space<vmem>>, vector<2x32xf32>
    %c0_1 = arith.constant 0 : index
    %c0_2 = arith.constant 0 : index
    %1 = vector.load %arg1[%c0_1, %c0_2] : memref<32x48xf32, #tpu.memory_space<vmem>>, vector<32x48xf32>
    %cst = arith.constant dense<0.000000e+00> : vector<2x48xf32>
    %2 = tpu.matmul %0, %1, %cst {dimension_numbers = #tpu.dot_dimension_numbers<[1], [0], [0], [1], [0, 0, 1, 1], [], []>} : vector<2x32xf32>, vector<32x48xf32>, vector<2x48xf32> -> vector<2x48xf32>
    %c0_3 = arith.constant 0 : index
    %c0_4 = arith.constant 0 : index
    %3 = vector.load %arg2[%c0_3, %c0_4] : memref<1x48xf32, #tpu.memory_space<vmem>>, vector<1x48xf32>
    %4 = vector.broadcast %3 : vector<1x48xf32> to vector<2x48xf32>
    %5 = arith.addf %2, %4 : vector<2x48xf32>
    %c0_5 = arith.constant 0 : index
    %c0_6 = arith.constant 0 : index
    %6 = vector.load %arg3[%c0_5, %c0_6] : memref<2x48xf32, #tpu.memory_space<vmem>>, vector<2x48xf32>
    tpu.vector_store %arg3[%c0_5, %c0_6], %5 {strides = array<i32>} : memref<2x48xf32, #tpu.memory_space<vmem>>, vector<2x48xf32>,
    return
  }
}

module attributes {stable_mosaic.version = 11 : i64} {
  func.func @_decoder_kernel(%arg0: i32, %arg1: memref<1x10x64xf32, #tpu.memory_space<vmem>>, %arg2: memref<1x64x32xbf16, #tpu.memory_space<vmem>>, %arg3: memref<1x1x32xf32, #tpu.memory_space<vmem>>, %arg4: memref<2x48xf32, #tpu.memory_space<vmem>>, %arg5: memref<48x64xf32, #tpu.memory_space<vmem>>, %arg6: memref<1x64xf32, #tpu.memory_space<vmem>>, %arg7: memref<1x32x96xbf16, #tpu.memory_space<vmem>>, %arg8: memref<1x1x96xf32, #tpu.memory_space<vmem>>, %arg9: memref<1x32x32xbf16, #tpu.memory_space<vmem>>, %arg10: memref<1x1x32xf32, #tpu.memory_space<vmem>>, %arg11: memref<1x1x32xf32, #tpu.memory_space<vmem>>, %arg12: memref<1x1x32xf32, #tpu.memory_space<vmem>>, %arg13: memref<1x32x64xbf16, #tpu.memory_space<vmem>>, %arg14: memref<1x1x64xf32, #tpu.memory_space<vmem>>, %arg15: memref<1x64x32xbf16, #tpu.memory_space<vmem>>, %arg16: memref<1x1x32xf32, #tpu.memory_space<vmem>>, %arg17: memref<1x1x32xf32, #tpu.memory_space<vmem>>, %arg18: memref<1x1x32xf32, #tpu.memory_space<vmem>>, %arg19: memref<10x32xf32, #tpu.memory_space<vmem>>, %arg20: memref<10x32xf32, #tpu.memory_space<vmem>>) attributes {dimension_semantics = [#tpu.dimension_semantics<arbitrary>], iteration_bounds = array<i64: 3>, scalar_prefetch = 0 : i64, scratch_operands = 1 : i64, tpu.core_type = #tpu.core_type<tc>, window_params = [{transform_indices = @transform_0, window_bounds = array<i64: 1, 10, 64>}, {transform_indices = @transform_1, window_bounds = array<i64: 1, 64, 32>}, {transform_indices = @transform_2, window_bounds = array<i64: 1, 1, 32>}, {pipeline_mode = #tpu.pipeline_mode<synchronous>, transform_indices = @transform_3, window_bounds = array<i64: 2, 48>}, {pipeline_mode = #tpu.pipeline_mode<synchronous>, transform_indices = @transform_4, window_bounds = array<i64: 48, 64>}, {pipeline_mode = #tpu.pipeline_mode<synchronous>, transform_indices = @transform_5, window_bounds = array<i64: 1, 64>}, {transform_indices = @transform_6, window_bounds = array<i64: 1, 32, 96>}, {transform_indices = @transform_7, window_bounds = array<i64: 1, 1, 96>}, {transform_indices = @transform_8, window_bounds = array<i64: 1, 32, 32>}, {transform_indices = @transform_9, window_bounds = array<i64: 1, 1, 32>}, {transform_indices = @transform_10, window_bounds = array<i64: 1, 1, 32>}, {transform_indices = @transform_11, window_bounds = array<i64: 1, 1, 32>}, {transform_indices = @transform_12, window_bounds = array<i64: 1, 32, 64>}, {transform_indices = @transform_13, window_bounds = array<i64: 1, 1, 64>}, {transform_indices = @transform_14, window_bounds = array<i64: 1, 64, 32>}, {transform_indices = @transform_15, window_bounds = array<i64: 1, 1, 32>}, {transform_indices = @transform_16, window_bounds = array<i64: 1, 1, 32>}, {transform_indices = @transform_17, window_bounds = array<i64: 1, 1, 32>}, {pipeline_mode = #tpu.pipeline_mode<synchronous>, transform_indices = @transform_18, window_bounds = array<i64: 10, 32>}]} {
    %c0_i32 = arith.constant 0 : i32
    %0 = arith.cmpi eq, %arg0, %c0_i32 : i32
    %1 = arith.extui %0 : i1 to i32
    %c0_i32_0 = arith.constant 0 : i32
    %2 = arith.cmpi ne, %1, %c0_i32_0 : i32
    scf.if %2 {
      %cst_99 = arith.constant 0.000000e+00 : f32
      %213 = vector.broadcast %cst_99 : f32 to vector<10x32xf32>
      %c0_100 = arith.constant 0 : index
      %c0_101 = arith.constant 0 : index
      %214 = vector.load %arg20[%c0_100, %c0_101] : memref<10x32xf32, #tpu.memory_space<vmem>>, vector<10x32xf32>
      tpu.vector_store %arg20[%c0_100, %c0_101], %213 {strides = array<i32>} : memref<10x32xf32, #tpu.memory_space<vmem>>, vector<10x32xf32>,
    } else {
    }
    %c0 = arith.constant 0 : index
    %c0_1 = arith.constant 0 : index
    %c0_2 = arith.constant 0 : index
    %3 = vector.load %arg1[%c0, %c0_1, %c0_2] : memref<1x10x64xf32, #tpu.memory_space<vmem>>, vector<1x10x64xf32>
    %4 = vector.shape_cast %3 : vector<1x10x64xf32> to vector<10x64xf32>
    %5 = arith.truncf %4 : vector<10x64xf32> to vector<10x64xbf16>
    %c0_3 = arith.constant 0 : index
    %c0_4 = arith.constant 0 : index
    %c0_5 = arith.constant 0 : index
    %6 = vector.load %arg2[%c0_3, %c0_4, %c0_5] : memref<1x64x32xbf16, #tpu.memory_space<vmem>>, vector<1x64x32xbf16>
    %7 = vector.shape_cast %6 : vector<1x64x32xbf16> to vector<64x32xbf16>
    %cst = arith.constant dense<0.000000e+00> : vector<10x32xf32>
    %8 = tpu.matmul %5, %7, %cst {dimension_numbers = #tpu.dot_dimension_numbers<[1], [0], [0], [1], [0, 0, 1, 1], [], []>} : vector<10x64xbf16>, vector<64x32xbf16>, vector<10x32xf32> -> vector<10x32xf32>
    %c0_6 = arith.constant 0 : index
    %c0_7 = arith.constant 0 : index
    %c0_8 = arith.constant 0 : index
    %9 = vector.load %arg3[%c0_6, %c0_7, %c0_8] : memref<1x1x32xf32, #tpu.memory_space<vmem>>, vector<1x1x32xf32>
    %10 = vector.shape_cast %9 : vector<1x1x32xf32> to vector<1x32xf32>
    %11 = vector.broadcast %10 : vector<1x32xf32> to vector<10x32xf32>
    %12 = arith.addf %8, %11 : vector<10x32xf32>
    %c0_9 = arith.constant 0 : index
    %c0_10 = arith.constant 0 : index
    %13 = vector.load %arg20[%c0_9, %c0_10] : memref<10x32xf32, #tpu.memory_space<vmem>>, vector<10x32xf32>
    %14 = arith.addf %12, %13 : vector<10x32xf32>
    %c0_11 = arith.constant 0 : index
    %c0_12 = arith.constant 0 : index
    %15 = vector.load %arg20[%c0_11, %c0_12] : memref<10x32xf32, #tpu.memory_space<vmem>>, vector<10x32xf32>
    tpu.vector_store %arg20[%c0_11, %c0_12], %14 {strides = array<i32>} : memref<10x32xf32, #tpu.memory_space<vmem>>, vector<10x32xf32>,
    %c0_i32_13 = arith.constant 0 : i32
    %16 = arith.cmpi eq, %arg0, %c0_i32_13 : i32
    %17 = arith.extui %16 : i1 to i32
    %c0_i32_14 = arith.constant 0 : i32
    %18 = arith.cmpi ne, %17, %c0_i32_14 : i32
    scf.if %18 {
      %c0_99 = arith.constant 0 : index
      %c0_100 = arith.constant 0 : index
      %213 = vector.load %arg4[%c0_99, %c0_100] : memref<2x48xf32, #tpu.memory_space<vmem>>, vector<2x48xf32>
      %c0_101 = arith.constant 0 : index
      %c0_102 = arith.constant 0 : index
      %214 = vector.load %arg5[%c0_101, %c0_102] : memref<48x64xf32, #tpu.memory_space<vmem>>, vector<48x64xf32>
      %cst_103 = arith.constant dense<0.000000e+00> : vector<2x64xf32>
      %215 = tpu.matmul %213, %214, %cst_103 {dimension_numbers = #tpu.dot_dimension_numbers<[1], [0], [0], [1], [0, 0, 1, 1], [], []>} : vector<2x48xf32>, vector<48x64xf32>, vector<2x64xf32> -> vector<2x64xf32>
      %c0_104 = arith.constant 0 : index
      %c0_105 = arith.constant 0 : index
      %216 = vector.load %arg6[%c0_104, %c0_105] : memref<1x64xf32, #tpu.memory_space<vmem>>, vector<1x64xf32>
      %217 = vector.broadcast %216 : vector<1x64xf32> to vector<2x64xf32>
      %218 = arith.addf %215, %217 : vector<2x64xf32>
      %219 = vector.extract_strided_slice %218 {offsets = [0, 0], sizes = [2, 32], strides = [1, 1]} : vector<2x64xf32> to vector<2x32xf32>
      %220 = vector.extract_strided_slice %218 {offsets = [0, 32], sizes = [2, 32], strides = [1, 1]} : vector<2x64xf32> to vector<2x32xf32>
      %221 = tpu.iota {dimensions = array<i32: 0>} : vector<10x2xi32>
      %222 = tpu.iota {dimensions = array<i32: 1>} : vector<10x2xi32>
      %c5_i32_106 = arith.constant 5 : i32
      %223 = vector.broadcast %c5_i32_106 : i32 to vector<10x2xi32>
      %224 = arith.muli %222, %223 : vector<10x2xi32>
      %225 = arith.cmpi sge, %221, %224 : vector<10x2xi32>
      %c1_i32 = arith.constant 1 : i32
      %226 = vector.broadcast %c1_i32 : i32 to vector<10x2xi32>
      %227 = arith.addi %222, %226 : vector<10x2xi32>
      %c5_i32_107 = arith.constant 5 : i32
      %228 = vector.broadcast %c5_i32_107 : i32 to vector<10x2xi32>
      %229 = arith.muli %227, %228 : vector<10x2xi32>
      %230 = arith.cmpi slt, %221, %229 : vector<10x2xi32>
      %231 = arith.andi %225, %230 : vector<10x2xi1>
      %232 = arith.extui %231 : vector<10x2xi1> to vector<10x2xi32>
      %233 = arith.sitofp %232 : vector<10x2xi32> to vector<10x2xf32>
      %cst_108 = arith.constant dense<0.000000e+00> : vector<10x32xf32>
      %234 = tpu.matmul %233, %219, %cst_108 {dimension_numbers = #tpu.dot_dimension_numbers<[1], [0], [0], [1], [0, 0, 1, 1], [], []>} : vector<10x2xf32>, vector<2x32xf32>, vector<10x32xf32> -> vector<10x32xf32>
      %235 = arith.mulf %14, %234 : vector<10x32xf32>
      %cst_109 = arith.constant dense<0.000000e+00> : vector<10x32xf32>
      %236 = tpu.matmul %233, %220, %cst_109 {dimension_numbers = #tpu.dot_dimension_numbers<[1], [0], [0], [1], [0, 0, 1, 1], [], []>} : vector<10x2xf32>, vector<2x32xf32>, vector<10x32xf32> -> vector<10x32xf32>
      %237 = arith.addf %235, %236 : vector<10x32xf32>
      %c0_110 = arith.constant 0 : index
      %c0_111 = arith.constant 0 : index
      %238 = vector.load %arg20[%c0_110, %c0_111] : memref<10x32xf32, #tpu.memory_space<vmem>>, vector<10x32xf32>
      tpu.vector_store %arg20[%c0_110, %c0_111], %237 {strides = array<i32>} : memref<10x32xf32, #tpu.memory_space<vmem>>, vector<10x32xf32>,
    } else {
    }
    %c0_15 = arith.constant 0 : index
    %c0_16 = arith.constant 0 : index
    %19 = vector.load %arg20[%c0_15, %c0_16] : memref<10x32xf32, #tpu.memory_space<vmem>>, vector<10x32xf32>
    %20 = tpu.iota {dimensions = array<i32: 0>} : vector<10x10xi32>
    %21 = tpu.iota {dimensions = array<i32: 1>} : vector<10x10xi32>
    %c0_i32_17 = arith.constant 0 : i32
    %22 = vector.broadcast %c0_i32_17 : i32 to vector<10x10xi32>
    %23 = arith.cmpi sge, %20, %22 : vector<10x10xi32>
    %c5_i32 = arith.constant 5 : i32
    %24 = vector.broadcast %c5_i32 : i32 to vector<10x10xi32>
    %25 = arith.cmpi slt, %20, %24 : vector<10x10xi32>
    %26 = arith.andi %23, %25 : vector<10x10xi1>
    %c0_i32_18 = arith.constant 0 : i32
    %27 = vector.broadcast %c0_i32_18 : i32 to vector<10x10xi32>
    %28 = arith.cmpi sge, %21, %27 : vector<10x10xi32>
    %29 = arith.andi %26, %28 : vector<10x10xi1>
    %c5_i32_19 = arith.constant 5 : i32
    %30 = vector.broadcast %c5_i32_19 : i32 to vector<10x10xi32>
    %31 = arith.cmpi slt, %21, %30 : vector<10x10xi32>
    %32 = arith.andi %29, %31 : vector<10x10xi1>
    %c5_i32_20 = arith.constant 5 : i32
    %33 = vector.broadcast %c5_i32_20 : i32 to vector<10x10xi32>
    %34 = arith.cmpi sge, %20, %33 : vector<10x10xi32>
    %c10_i32 = arith.constant 10 : i32
    %35 = vector.broadcast %c10_i32 : i32 to vector<10x10xi32>
    %36 = arith.cmpi slt, %20, %35 : vector<10x10xi32>
    %37 = arith.andi %34, %36 : vector<10x10xi1>
    %c5_i32_21 = arith.constant 5 : i32
    %38 = vector.broadcast %c5_i32_21 : i32 to vector<10x10xi32>
    %39 = arith.cmpi sge, %21, %38 : vector<10x10xi32>
    %40 = arith.andi %37, %39 : vector<10x10xi1>
    %c10_i32_22 = arith.constant 10 : i32
    %41 = vector.broadcast %c10_i32_22 : i32 to vector<10x10xi32>
    %42 = arith.cmpi slt, %21, %41 : vector<10x10xi32>
    %43 = arith.andi %40, %42 : vector<10x10xi1>
    %44 = arith.ori %32, %43 : vector<10x10xi1>
    %cst_23 = arith.constant 0.000000e+00 : f32
    %cst_24 = arith.constant -1.000000e+30 : f32
    %45 = vector.broadcast %cst_23 : f32 to vector<10x10xf32>
    %46 = vector.broadcast %cst_24 : f32 to vector<10x10xf32>
    %47 = arith.select %44, %45, %46 : vector<10x10xi1>, vector<10x10xf32>
    %48 = arith.truncf %19 : vector<10x32xf32> to vector<10x32xbf16>
    %c0_25 = arith.constant 0 : index
    %c0_26 = arith.constant 0 : index
    %c0_27 = arith.constant 0 : index
    %49 = vector.load %arg7[%c0_25, %c0_26, %c0_27] : memref<1x32x96xbf16, #tpu.memory_space<vmem>>, vector<1x32x96xbf16>
    %50 = vector.shape_cast %49 : vector<1x32x96xbf16> to vector<32x96xbf16>
    %cst_28 = arith.constant dense<0.000000e+00> : vector<10x96xf32>
    %51 = tpu.matmul %48, %50, %cst_28 {dimension_numbers = #tpu.dot_dimension_numbers<[1], [0], [0], [1], [0, 0, 1, 1], [], []>} : vector<10x32xbf16>, vector<32x96xbf16>, vector<10x96xf32> -> vector<10x96xf32>
    %c0_29 = arith.constant 0 : index
    %c0_30 = arith.constant 0 : index
    %c0_31 = arith.constant 0 : index
    %52 = vector.load %arg8[%c0_29, %c0_30, %c0_31] : memref<1x1x96xf32, #tpu.memory_space<vmem>>, vector<1x1x96xf32>
    %53 = vector.shape_cast %52 : vector<1x1x96xf32> to vector<1x96xf32>
    %54 = vector.broadcast %53 : vector<1x96xf32> to vector<10x96xf32>
    %55 = arith.addf %51, %54 : vector<10x96xf32>
    %56 = vector.extract_strided_slice %55 {offsets = [0, 0], sizes = [10, 8], strides = [1, 1]} : vector<10x96xf32> to vector<10x8xf32>
    %cst_32 = arith.constant 0.353553385 : f32
    %57 = vector.broadcast %cst_32 : f32 to vector<10x8xf32>
    %58 = arith.mulf %56, %57 : vector<10x8xf32>
    %59 = vector.extract_strided_slice %55 {offsets = [0, 32], sizes = [10, 8], strides = [1, 1]} : vector<10x96xf32> to vector<10x8xf32>
    %60 = vector.extract_strided_slice %55 {offsets = [0, 64], sizes = [10, 8], strides = [1, 1]} : vector<10x96xf32> to vector<10x8xf32>
    %cst_33 = arith.constant dense<0.000000e+00> : vector<10x10xf32>
    %61 = tpu.matmul %58, %59, %cst_33 {dimension_numbers = #tpu.dot_dimension_numbers<[1], [1], [0], [0], [0, 0, 1, 0], [], []>} : vector<10x8xf32>, vector<10x8xf32>, vector<10x10xf32> -> vector<10x10xf32>
    %62 = arith.addf %61, %47 : vector<10x10xf32>
    %cst_34 = arith.constant dense<0xFF800000> : vector<10xf32>
    %63 = vector.multi_reduction <maximumf>, %62, %cst_34 [1] : vector<10x10xf32> to vector<10xf32>
    %64 = vector.shape_cast %63 : vector<10xf32> to vector<10x1xf32>
    %65 = vector.broadcast %64 : vector<10x1xf32> to vector<10x10xf32>
    %66 = arith.subf %62, %65 : vector<10x10xf32>
    %67 = math.exp %66 : vector<10x10xf32>
    %cst_35 = arith.constant dense<0.000000e+00> : vector<10xf32>
    %68 = vector.multi_reduction <add>, %67, %cst_35 [1] : vector<10x10xf32> to vector<10xf32>
    %69 = vector.shape_cast %68 : vector<10xf32> to vector<10x1xf32>
    %70 = tpu.reciprocal %69 {approx = true} : vector<10x1xf32> -> vector<10x1xf32>
    %71 = vector.broadcast %70 : vector<10x1xf32> to vector<10x10xf32>
    %72 = arith.mulf %67, %71 : vector<10x10xf32>
    %cst_36 = arith.constant dense<0.000000e+00> : vector<10x8xf32>
    %73 = tpu.matmul %72, %60, %cst_36 {dimension_numbers = #tpu.dot_dimension_numbers<[1], [0], [0], [1], [0, 0, 1, 1], [], []>} : vector<10x10xf32>, vector<10x8xf32>, vector<10x8xf32> -> vector<10x8xf32>
    %74 = vector.extract_strided_slice %55 {offsets = [0, 8], sizes = [10, 8], strides = [1, 1]} : vector<10x96xf32> to vector<10x8xf32>
    %cst_37 = arith.constant 0.353553385 : f32
    %75 = vector.broadcast %cst_37 : f32 to vector<10x8xf32>
    %76 = arith.mulf %74, %75 : vector<10x8xf32>
    %77 = vector.extract_strided_slice %55 {offsets = [0, 40], sizes = [10, 8], strides = [1, 1]} : vector<10x96xf32> to vector<10x8xf32>
    %78 = vector.extract_strided_slice %55 {offsets = [0, 72], sizes = [10, 8], strides = [1, 1]} : vector<10x96xf32> to vector<10x8xf32>
    %cst_38 = arith.constant dense<0.000000e+00> : vector<10x10xf32>
    %79 = tpu.matmul %76, %77, %cst_38 {dimension_numbers = #tpu.dot_dimension_numbers<[1], [1], [0], [0], [0, 0, 1, 0], [], []>} : vector<10x8xf32>, vector<10x8xf32>, vector<10x10xf32> -> vector<10x10xf32>
    %80 = arith.addf %79, %47 : vector<10x10xf32>
    %cst_39 = arith.constant dense<0xFF800000> : vector<10xf32>
    %81 = vector.multi_reduction <maximumf>, %80, %cst_39 [1] : vector<10x10xf32> to vector<10xf32>
    %82 = vector.shape_cast %81 : vector<10xf32> to vector<10x1xf32>
    %83 = vector.broadcast %82 : vector<10x1xf32> to vector<10x10xf32>
    %84 = arith.subf %80, %83 : vector<10x10xf32>
    %85 = math.exp %84 : vector<10x10xf32>
    %cst_40 = arith.constant dense<0.000000e+00> : vector<10xf32>
    %86 = vector.multi_reduction <add>, %85, %cst_40 [1] : vector<10x10xf32> to vector<10xf32>
    %87 = vector.shape_cast %86 : vector<10xf32> to vector<10x1xf32>
    %88 = tpu.reciprocal %87 {approx = true} : vector<10x1xf32> -> vector<10x1xf32>
    %89 = vector.broadcast %88 : vector<10x1xf32> to vector<10x10xf32>
    %90 = arith.mulf %85, %89 : vector<10x10xf32>
    %cst_41 = arith.constant dense<0.000000e+00> : vector<10x8xf32>
    %91 = tpu.matmul %90, %78, %cst_41 {dimension_numbers = #tpu.dot_dimension_numbers<[1], [0], [0], [1], [0, 0, 1, 1], [], []>} : vector<10x10xf32>, vector<10x8xf32>, vector<10x8xf32> -> vector<10x8xf32>
    %92 = vector.extract_strided_slice %55 {offsets = [0, 16], sizes = [10, 8], strides = [1, 1]} : vector<10x96xf32> to vector<10x8xf32>
    %cst_42 = arith.constant 0.353553385 : f32
    %93 = vector.broadcast %cst_42 : f32 to vector<10x8xf32>
    %94 = arith.mulf %92, %93 : vector<10x8xf32>
    %95 = vector.extract_strided_slice %55 {offsets = [0, 48], sizes = [10, 8], strides = [1, 1]} : vector<10x96xf32> to vector<10x8xf32>
    %96 = vector.extract_strided_slice %55 {offsets = [0, 80], sizes = [10, 8], strides = [1, 1]} : vector<10x96xf32> to vector<10x8xf32>
    %cst_43 = arith.constant dense<0.000000e+00> : vector<10x10xf32>
    %97 = tpu.matmul %94, %95, %cst_43 {dimension_numbers = #tpu.dot_dimension_numbers<[1], [1], [0], [0], [0, 0, 1, 0], [], []>} : vector<10x8xf32>, vector<10x8xf32>, vector<10x10xf32> -> vector<10x10xf32>
    %98 = arith.addf %97, %47 : vector<10x10xf32>
    %cst_44 = arith.constant dense<0xFF800000> : vector<10xf32>
    %99 = vector.multi_reduction <maximumf>, %98, %cst_44 [1] : vector<10x10xf32> to vector<10xf32>
    %100 = vector.shape_cast %99 : vector<10xf32> to vector<10x1xf32>
    %101 = vector.broadcast %100 : vector<10x1xf32> to vector<10x10xf32>
    %102 = arith.subf %98, %101 : vector<10x10xf32>
    %103 = math.exp %102 : vector<10x10xf32>
    %cst_45 = arith.constant dense<0.000000e+00> : vector<10xf32>
    %104 = vector.multi_reduction <add>, %103, %cst_45 [1] : vector<10x10xf32> to vector<10xf32>
    %105 = vector.shape_cast %104 : vector<10xf32> to vector<10x1xf32>
    %106 = tpu.reciprocal %105 {approx = true} : vector<10x1xf32> -> vector<10x1xf32>
    %107 = vector.broadcast %106 : vector<10x1xf32> to vector<10x10xf32>
    %108 = arith.mulf %103, %107 : vector<10x10xf32>
    %cst_46 = arith.constant dense<0.000000e+00> : vector<10x8xf32>
    %109 = tpu.matmul %108, %96, %cst_46 {dimension_numbers = #tpu.dot_dimension_numbers<[1], [0], [0], [1], [0, 0, 1, 1], [], []>} : vector<10x10xf32>, vector<10x8xf32>, vector<10x8xf32> -> vector<10x8xf32>
    %110 = vector.extract_strided_slice %55 {offsets = [0, 24], sizes = [10, 8], strides = [1, 1]} : vector<10x96xf32> to vector<10x8xf32>
    %cst_47 = arith.constant 0.353553385 : f32
    %111 = vector.broadcast %cst_47 : f32 to vector<10x8xf32>
    %112 = arith.mulf %110, %111 : vector<10x8xf32>
    %113 = vector.extract_strided_slice %55 {offsets = [0, 56], sizes = [10, 8], strides = [1, 1]} : vector<10x96xf32> to vector<10x8xf32>
    %114 = vector.extract_strided_slice %55 {offsets = [0, 88], sizes = [10, 8], strides = [1, 1]} : vector<10x96xf32> to vector<10x8xf32>
    %cst_48 = arith.constant dense<0.000000e+00> : vector<10x10xf32>
    %115 = tpu.matmul %112, %113, %cst_48 {dimension_numbers = #tpu.dot_dimension_numbers<[1], [1], [0], [0], [0, 0, 1, 0], [], []>} : vector<10x8xf32>, vector<10x8xf32>, vector<10x10xf32> -> vector<10x10xf32>
    %116 = arith.addf %115, %47 : vector<10x10xf32>
    %cst_49 = arith.constant dense<0xFF800000> : vector<10xf32>
    %117 = vector.multi_reduction <maximumf>, %116, %cst_49 [1] : vector<10x10xf32> to vector<10xf32>
    %118 = vector.shape_cast %117 : vector<10xf32> to vector<10x1xf32>
    %119 = vector.broadcast %118 : vector<10x1xf32> to vector<10x10xf32>
    %120 = arith.subf %116, %119 : vector<10x10xf32>
    %121 = math.exp %120 : vector<10x10xf32>
    %cst_50 = arith.constant dense<0.000000e+00> : vector<10xf32>
    %122 = vector.multi_reduction <add>, %121, %cst_50 [1] : vector<10x10xf32> to vector<10xf32>
    %123 = vector.shape_cast %122 : vector<10xf32> to vector<10x1xf32>
    %124 = tpu.reciprocal %123 {approx = true} : vector<10x1xf32> -> vector<10x1xf32>
    %125 = vector.broadcast %124 : vector<10x1xf32> to vector<10x10xf32>
    %126 = arith.mulf %121, %125 : vector<10x10xf32>
    %cst_51 = arith.constant dense<0.000000e+00> : vector<10x8xf32>
    %127 = tpu.matmul %126, %114, %cst_51 {dimension_numbers = #tpu.dot_dimension_numbers<[1], [0], [0], [1], [0, 0, 1, 1], [], []>} : vector<10x10xf32>, vector<10x8xf32>, vector<10x8xf32> -> vector<10x8xf32>
    %128 = tpu.concatenate %73, %91, %109, %127 in 1 : vector<10x8xf32>, vector<10x8xf32>, vector<10x8xf32>, vector<10x8xf32> -> vector<10x32xf32>
    %129 = arith.truncf %128 : vector<10x32xf32> to vector<10x32xbf16>
    %c0_52 = arith.constant 0 : index
    %c0_53 = arith.constant 0 : index
    %c0_54 = arith.constant 0 : index
    %130 = vector.load %arg9[%c0_52, %c0_53, %c0_54] : memref<1x32x32xbf16, #tpu.memory_space<vmem>>, vector<1x32x32xbf16>
    %131 = vector.shape_cast %130 : vector<1x32x32xbf16> to vector<32x32xbf16>
    %cst_55 = arith.constant dense<0.000000e+00> : vector<10x32xf32>
    %132 = tpu.matmul %129, %131, %cst_55 {dimension_numbers = #tpu.dot_dimension_numbers<[1], [0], [0], [1], [0, 0, 1, 1], [], []>} : vector<10x32xbf16>, vector<32x32xbf16>, vector<10x32xf32> -> vector<10x32xf32>
    %c0_56 = arith.constant 0 : index
    %c0_57 = arith.constant 0 : index
    %c0_58 = arith.constant 0 : index
    %133 = vector.load %arg10[%c0_56, %c0_57, %c0_58] : memref<1x1x32xf32, #tpu.memory_space<vmem>>, vector<1x1x32xf32>
    %134 = vector.shape_cast %133 : vector<1x1x32xf32> to vector<1x32xf32>
    %135 = vector.broadcast %134 : vector<1x32xf32> to vector<10x32xf32>
    %136 = arith.addf %132, %135 : vector<10x32xf32>
    %137 = arith.addf %19, %136 : vector<10x32xf32>
    %c0_59 = arith.constant 0 : index
    %c0_60 = arith.constant 0 : index
    %c0_61 = arith.constant 0 : index
    %138 = vector.load %arg11[%c0_59, %c0_60, %c0_61] : memref<1x1x32xf32, #tpu.memory_space<vmem>>, vector<1x1x32xf32>
    %139 = vector.shape_cast %138 : vector<1x1x32xf32> to vector<1x32xf32>
    %c0_62 = arith.constant 0 : index
    %c0_63 = arith.constant 0 : index
    %c0_64 = arith.constant 0 : index
    %140 = vector.load %arg12[%c0_62, %c0_63, %c0_64] : memref<1x1x32xf32, #tpu.memory_space<vmem>>, vector<1x1x32xf32>
    %141 = vector.shape_cast %140 : vector<1x1x32xf32> to vector<1x32xf32>
    %cst_65 = arith.constant dense<0.000000e+00> : vector<10xf32>
    %142 = vector.multi_reduction <add>, %137, %cst_65 [1] : vector<10x32xf32> to vector<10xf32>
    %143 = vector.shape_cast %142 : vector<10xf32> to vector<10x1xf32>
    %cst_66 = arith.constant 3.200000e+01 : f32
    %144 = vector.broadcast %cst_66 : f32 to vector<10x1xf32>
    %145 = arith.divf %143, %144 : vector<10x1xf32>
    %146 = vector.broadcast %145 : vector<10x1xf32> to vector<10x32xf32>
    %147 = arith.subf %137, %146 : vector<10x32xf32>
    %148 = arith.mulf %147, %147 : vector<10x32xf32>
    %cst_67 = arith.constant dense<0.000000e+00> : vector<10xf32>
    %149 = vector.multi_reduction <add>, %148, %cst_67 [1] : vector<10x32xf32> to vector<10xf32>
    %150 = vector.shape_cast %149 : vector<10xf32> to vector<10x1xf32>
    %cst_68 = arith.constant 3.200000e+01 : f32
    %151 = vector.broadcast %cst_68 : f32 to vector<10x1xf32>
    %152 = arith.divf %150, %151 : vector<10x1xf32>
    %153 = vector.broadcast %145 : vector<10x1xf32> to vector<10x32xf32>
    %154 = arith.subf %137, %153 : vector<10x32xf32>
    %cst_69 = arith.constant 9.99999974E-6 : f32
    %155 = vector.broadcast %cst_69 : f32 to vector<10x1xf32>
    %156 = arith.addf %152, %155 : vector<10x1xf32>
    %157 = math.rsqrt %156 : vector<10x1xf32>
    %158 = vector.broadcast %157 : vector<10x1xf32> to vector<10x32xf32>
    %159 = arith.mulf %154, %158 : vector<10x32xf32>
    %160 = vector.broadcast %139 : vector<1x32xf32> to vector<10x32xf32>
    %161 = arith.mulf %159, %160 : vector<10x32xf32>
    %162 = vector.broadcast %141 : vector<1x32xf32> to vector<10x32xf32>
    %163 = arith.addf %161, %162 : vector<10x32xf32>
    %164 = arith.truncf %163 : vector<10x32xf32> to vector<10x32xbf16>
    %c0_70 = arith.constant 0 : index
    %c0_71 = arith.constant 0 : index
    %c0_72 = arith.constant 0 : index
    %165 = vector.load %arg13[%c0_70, %c0_71, %c0_72] : memref<1x32x64xbf16, #tpu.memory_space<vmem>>, vector<1x32x64xbf16>
    %166 = vector.shape_cast %165 : vector<1x32x64xbf16> to vector<32x64xbf16>
    %cst_73 = arith.constant dense<0.000000e+00> : vector<10x64xf32>
    %167 = tpu.matmul %164, %166, %cst_73 {dimension_numbers = #tpu.dot_dimension_numbers<[1], [0], [0], [1], [0, 0, 1, 1], [], []>} : vector<10x32xbf16>, vector<32x64xbf16>, vector<10x64xf32> -> vector<10x64xf32>
    %c0_74 = arith.constant 0 : index
    %c0_75 = arith.constant 0 : index
    %c0_76 = arith.constant 0 : index
    %168 = vector.load %arg14[%c0_74, %c0_75, %c0_76] : memref<1x1x64xf32, #tpu.memory_space<vmem>>, vector<1x1x64xf32>
    %169 = vector.shape_cast %168 : vector<1x1x64xf32> to vector<1x64xf32>
    %170 = vector.broadcast %169 : vector<1x64xf32> to vector<10x64xf32>
    %171 = arith.addf %167, %170 : vector<10x64xf32>
    %cst_77 = arith.constant 0.000000e+00 : f32
    %172 = vector.broadcast %cst_77 : f32 to vector<10x64xf32>
    %173 = arith.maximumf %171, %172 : vector<10x64xf32>
    %174 = arith.truncf %173 : vector<10x64xf32> to vector<10x64xbf16>
    %c0_78 = arith.constant 0 : index
    %c0_79 = arith.constant 0 : index
    %c0_80 = arith.constant 0 : index
    %175 = vector.load %arg15[%c0_78, %c0_79, %c0_80] : memref<1x64x32xbf16, #tpu.memory_space<vmem>>, vector<1x64x32xbf16>
    %176 = vector.shape_cast %175 : vector<1x64x32xbf16> to vector<64x32xbf16>
    %cst_81 = arith.constant dense<0.000000e+00> : vector<10x32xf32>
    %177 = tpu.matmul %174, %176, %cst_81 {dimension_numbers = #tpu.dot_dimension_numbers<[1], [0], [0], [1], [0, 0, 1, 1], [], []>} : vector<10x64xbf16>, vector<64x32xbf16>, vector<10x32xf32> -> vector<10x32xf32>
    %178 = arith.addf %163, %177 : vector<10x32xf32>
    %c0_82 = arith.constant 0 : index
    %c0_83 = arith.constant 0 : index
    %c0_84 = arith.constant 0 : index
    %179 = vector.load %arg16[%c0_82, %c0_83, %c0_84] : memref<1x1x32xf32, #tpu.memory_space<vmem>>, vector<1x1x32xf32>
    %180 = vector.shape_cast %179 : vector<1x1x32xf32> to vector<1x32xf32>
    %181 = vector.broadcast %180 : vector<1x32xf32> to vector<10x32xf32>
    %182 = arith.addf %178, %181 : vector<10x32xf32>
    %c0_85 = arith.constant 0 : index
    %c0_86 = arith.constant 0 : index
    %c0_87 = arith.constant 0 : index
    %183 = vector.load %arg17[%c0_85, %c0_86, %c0_87] : memref<1x1x32xf32, #tpu.memory_space<vmem>>, vector<1x1x32xf32>
    %184 = vector.shape_cast %183 : vector<1x1x32xf32> to vector<1x32xf32>
    %c0_88 = arith.constant 0 : index
    %c0_89 = arith.constant 0 : index
    %c0_90 = arith.constant 0 : index
    %185 = vector.load %arg18[%c0_88, %c0_89, %c0_90] : memref<1x1x32xf32, #tpu.memory_space<vmem>>, vector<1x1x32xf32>
    %186 = vector.shape_cast %185 : vector<1x1x32xf32> to vector<1x32xf32>
    %cst_91 = arith.constant dense<0.000000e+00> : vector<10xf32>
    %187 = vector.multi_reduction <add>, %182, %cst_91 [1] : vector<10x32xf32> to vector<10xf32>
    %188 = vector.shape_cast %187 : vector<10xf32> to vector<10x1xf32>
    %cst_92 = arith.constant 3.200000e+01 : f32
    %189 = vector.broadcast %cst_92 : f32 to vector<10x1xf32>
    %190 = arith.divf %188, %189 : vector<10x1xf32>
    %191 = vector.broadcast %190 : vector<10x1xf32> to vector<10x32xf32>
    %192 = arith.subf %182, %191 : vector<10x32xf32>
    %193 = arith.mulf %192, %192 : vector<10x32xf32>
    %cst_93 = arith.constant dense<0.000000e+00> : vector<10xf32>
    %194 = vector.multi_reduction <add>, %193, %cst_93 [1] : vector<10x32xf32> to vector<10xf32>
    %195 = vector.shape_cast %194 : vector<10xf32> to vector<10x1xf32>
    %cst_94 = arith.constant 3.200000e+01 : f32
    %196 = vector.broadcast %cst_94 : f32 to vector<10x1xf32>
    %197 = arith.divf %195, %196 : vector<10x1xf32>
    %198 = vector.broadcast %190 : vector<10x1xf32> to vector<10x32xf32>
    %199 = arith.subf %182, %198 : vector<10x32xf32>
    %cst_95 = arith.constant 9.99999974E-6 : f32
    %200 = vector.broadcast %cst_95 : f32 to vector<10x1xf32>
    %201 = arith.addf %197, %200 : vector<10x1xf32>
    %202 = math.rsqrt %201 : vector<10x1xf32>
    %203 = vector.broadcast %202 : vector<10x1xf32> to vector<10x32xf32>
    %204 = arith.mulf %199, %203 : vector<10x32xf32>
    %205 = vector.broadcast %184 : vector<1x32xf32> to vector<10x32xf32>
    %206 = arith.mulf %204, %205 : vector<10x32xf32>
    %207 = vector.broadcast %186 : vector<1x32xf32> to vector<10x32xf32>
    %208 = arith.addf %206, %207 : vector<10x32xf32>
    %c0_96 = arith.constant 0 : index
    %c0_97 = arith.constant 0 : index
    %209 = vector.load %arg20[%c0_96, %c0_97] : memref<10x32xf32, #tpu.memory_space<vmem>>, vector<10x32xf32>
    tpu.vector_store %arg20[%c0_96, %c0_97], %208 {strides = array<i32>} : memref<10x32xf32, #tpu.memory_space<vmem>>, vector<10x32xf32>,
    %c2_i32 = arith.constant 2 : i32
    %210 = arith.cmpi eq, %arg0, %c2_i32 : i32
    %211 = arith.extui %210 : i1 to i32
    %c0_i32_98 = arith.constant 0 : i32
    %212 = arith.cmpi ne, %211, %c0_i32_98 : i32
    scf.if %212 {
      %c0_99 = arith.constant 0 : index
      %c0_100 = arith.constant 0 : index
      %213 = vector.load %arg19[%c0_99, %c0_100] : memref<10x32xf32, #tpu.memory_space<vmem>>, vector<10x32xf32>
      tpu.vector_store %arg19[%c0_99, %c0_100], %208 {strides = array<i32>} : memref<10x32xf32, #tpu.memory_space<vmem>>, vector<10x32xf32>,
    } else {
    }
    return
  }
  func.func @transform_0(%arg0: i32) -> (i32, i32, i32) {
    %c0_i32 = arith.constant 0 : i32
    %c0_i32_0 = arith.constant 0 : i32
    %c0_i32_1 = arith.constant 0 : i32
    return %arg0, %c0_i32, %c0_i32_0 : i32, i32, i32
  }
  func.func @transform_1(%arg0: i32) -> (i32, i32, i32) {
    %c0_i32 = arith.constant 0 : i32
    %c0_i32_0 = arith.constant 0 : i32
    %c0_i32_1 = arith.constant 0 : i32
    return %arg0, %c0_i32, %c0_i32_0 : i32, i32, i32
  }
  func.func @transform_2(%arg0: i32) -> (i32, i32, i32) {
    %c0_i32 = arith.constant 0 : i32
    %c0_i32_0 = arith.constant 0 : i32
    %c0_i32_1 = arith.constant 0 : i32
    return %arg0, %c0_i32, %c0_i32_0 : i32, i32, i32
  }
  func.func @transform_3(%arg0: i32) -> (i32, i32) {
    %c0_i32 = arith.constant 0 : i32
    %c0_i32_0 = arith.constant 0 : i32
    %c0_i32_1 = arith.constant 0 : i32
    return %c0_i32, %c0_i32_0 : i32, i32
  }
  func.func @transform_4(%arg0: i32) -> (i32, i32) {
    %c0_i32 = arith.constant 0 : i32
    %c0_i32_0 = arith.constant 0 : i32
    %c0_i32_1 = arith.constant 0 : i32
    return %c0_i32, %c0_i32_0 : i32, i32
  }
  func.func @transform_5(%arg0: i32) -> (i32, i32) {
    %c0_i32 = arith.constant 0 : i32
    %c0_i32_0 = arith.constant 0 : i32
    %c0_i32_1 = arith.constant 0 : i32
    return %c0_i32, %c0_i32_0 : i32, i32
  }
  func.func @transform_6(%arg0: i32) -> (i32, i32, i32) {
    %c0_i32 = arith.constant 0 : i32
    %c0_i32_0 = arith.constant 0 : i32
    %c0_i32_1 = arith.constant 0 : i32
    return %arg0, %c0_i32, %c0_i32_0 : i32, i32, i32
  }
  func.func @transform_7(%arg0: i32) -> (i32, i32, i32) {
    %c0_i32 = arith.constant 0 : i32
    %c0_i32_0 = arith.constant 0 : i32
    %c0_i32_1 = arith.constant 0 : i32
    return %arg0, %c0_i32, %c0_i32_0 : i32, i32, i32
  }
  func.func @transform_8(%arg0: i32) -> (i32, i32, i32) {
    %c0_i32 = arith.constant 0 : i32
    %c0_i32_0 = arith.constant 0 : i32
    %c0_i32_1 = arith.constant 0 : i32
    return %arg0, %c0_i32, %c0_i32_0 : i32, i32, i32
  }
  func.func @transform_9(%arg0: i32) -> (i32, i32, i32) {
    %c0_i32 = arith.constant 0 : i32
    %c0_i32_0 = arith.constant 0 : i32
    %c0_i32_1 = arith.constant 0 : i32
    return %arg0, %c0_i32, %c0_i32_0 : i32, i32, i32
  }
  func.func @transform_10(%arg0: i32) -> (i32, i32, i32) {
    %c0_i32 = arith.constant 0 : i32
    %c0_i32_0 = arith.constant 0 : i32
    %c0_i32_1 = arith.constant 0 : i32
    return %arg0, %c0_i32, %c0_i32_0 : i32, i32, i32
  }
  func.func @transform_11(%arg0: i32) -> (i32, i32, i32) {
    %c0_i32 = arith.constant 0 : i32
    %c0_i32_0 = arith.constant 0 : i32
    %c0_i32_1 = arith.constant 0 : i32
    return %arg0, %c0_i32, %c0_i32_0 : i32, i32, i32
  }
  func.func @transform_12(%arg0: i32) -> (i32, i32, i32) {
    %c0_i32 = arith.constant 0 : i32
    %c0_i32_0 = arith.constant 0 : i32
    %c0_i32_1 = arith.constant 0 : i32
    return %arg0, %c0_i32, %c0_i32_0 : i32, i32, i32
  }
  func.func @transform_13(%arg0: i32) -> (i32, i32, i32) {
    %c0_i32 = arith.constant 0 : i32
    %c0_i32_0 = arith.constant 0 : i32
    %c0_i32_1 = arith.constant 0 : i32
    return %arg0, %c0_i32, %c0_i32_0 : i32, i32, i32
  }
  func.func @transform_14(%arg0: i32) -> (i32, i32, i32) {
    %c0_i32 = arith.constant 0 : i32
    %c0_i32_0 = arith.constant 0 : i32
    %c0_i32_1 = arith.constant 0 : i32
    return %arg0, %c0_i32, %c0_i32_0 : i32, i32, i32
  }
  func.func @transform_15(%arg0: i32) -> (i32, i32, i32) {
    %c0_i32 = arith.constant 0 : i32
    %c0_i32_0 = arith.constant 0 : i32
    %c0_i32_1 = arith.constant 0 : i32
    return %arg0, %c0_i32, %c0_i32_0 : i32, i32, i32
  }
  func.func @transform_16(%arg0: i32) -> (i32, i32, i32) {
    %c0_i32 = arith.constant 0 : i32
    %c0_i32_0 = arith.constant 0 : i32
    %c0_i32_1 = arith.constant 0 : i32
    return %arg0, %c0_i32, %c0_i32_0 : i32, i32, i32
  }
  func.func @transform_17(%arg0: i32) -> (i32, i32, i32) {
    %c0_i32 = arith.constant 0 : i32
    %c0_i32_0 = arith.constant 0 : i32
    %c0_i32_1 = arith.constant 0 : i32
    return %arg0, %c0_i32, %c0_i32_0 : i32, i32, i32
  }
  func.func @transform_18(%arg0: i32) -> (i32, i32) {
    %c0_i32 = arith.constant 0 : i32
    %c0_i32_0 = arith.constant 0 : i32
    %c0_i32_1 = arith.constant 0 : i32
    return %c0_i32, %c0_i32_0 : i32, i32
  }
}

module attributes {stable_mosaic.version = 11 : i64} {
  func.func @_mm2_kernel(%arg0: memref<8x288xf32, #tpu.memory_space<vmem>>, %arg1: memref<288x32xf32, #tpu.memory_space<vmem>>, %arg2: memref<1x32xf32, #tpu.memory_space<vmem>>, %arg3: memref<32x256xf32, #tpu.memory_space<vmem>>, %arg4: memref<1x256xf32, #tpu.memory_space<vmem>>, %arg5: memref<8x256xf32, #tpu.memory_space<vmem>>) attributes {dimension_semantics = [], scalar_prefetch = 0 : i64, scratch_operands = 0 : i64, tpu.core_type = #tpu.core_type<tc>} {
    %c0 = arith.constant 0 : index
    %c0_0 = arith.constant 0 : index
    %0 = vector.load %arg0[%c0, %c0_0] : memref<8x288xf32, #tpu.memory_space<vmem>>, vector<8x288xf32>
    %c0_1 = arith.constant 0 : index
    %c0_2 = arith.constant 0 : index
    %1 = vector.load %arg1[%c0_1, %c0_2] : memref<288x32xf32, #tpu.memory_space<vmem>>, vector<288x32xf32>
    %cst = arith.constant dense<0.000000e+00> : vector<8x32xf32>
    %2 = tpu.matmul %0, %1, %cst {dimension_numbers = #tpu.dot_dimension_numbers<[1], [0], [0], [1], [0, 0, 1, 1], [], []>} : vector<8x288xf32>, vector<288x32xf32>, vector<8x32xf32> -> vector<8x32xf32>
    %c0_3 = arith.constant 0 : index
    %c0_4 = arith.constant 0 : index
    %3 = vector.load %arg2[%c0_3, %c0_4] : memref<1x32xf32, #tpu.memory_space<vmem>>, vector<1x32xf32>
    %4 = vector.broadcast %3 : vector<1x32xf32> to vector<8x32xf32>
    %5 = arith.addf %2, %4 : vector<8x32xf32>
    %cst_5 = arith.constant 0.000000e+00 : f32
    %6 = vector.broadcast %cst_5 : f32 to vector<8x32xf32>
    %7 = arith.maximumf %5, %6 : vector<8x32xf32>
    %c0_6 = arith.constant 0 : index
    %c0_7 = arith.constant 0 : index
    %8 = vector.load %arg3[%c0_6, %c0_7] : memref<32x256xf32, #tpu.memory_space<vmem>>, vector<32x256xf32>
    %cst_8 = arith.constant dense<0.000000e+00> : vector<8x256xf32>
    %9 = tpu.matmul %7, %8, %cst_8 {dimension_numbers = #tpu.dot_dimension_numbers<[1], [0], [0], [1], [0, 0, 1, 1], [], []>} : vector<8x32xf32>, vector<32x256xf32>, vector<8x256xf32> -> vector<8x256xf32>
    %c0_9 = arith.constant 0 : index
    %c0_10 = arith.constant 0 : index
    %10 = vector.load %arg4[%c0_9, %c0_10] : memref<1x256xf32, #tpu.memory_space<vmem>>, vector<1x256xf32>
    %11 = vector.broadcast %10 : vector<1x256xf32> to vector<8x256xf32>
    %12 = arith.addf %9, %11 : vector<8x256xf32>
    %cst_11 = arith.constant 0.000000e+00 : f32
    %13 = vector.broadcast %cst_11 : f32 to vector<8x256xf32>
    %14 = arith.maximumf %12, %13 : vector<8x256xf32>
    %c0_12 = arith.constant 0 : index
    %c0_13 = arith.constant 0 : index
    %15 = vector.load %arg5[%c0_12, %c0_13] : memref<8x256xf32, #tpu.memory_space<vmem>>, vector<8x256xf32>
    tpu.vector_store %arg5[%c0_12, %c0_13], %14 {strides = array<i32>} : memref<8x256xf32, #tpu.memory_space<vmem>>, vector<8x256xf32>,
    return
  }
}

module attributes {stable_mosaic.version = 11 : i64} {
  func.func @_mm_kernel(%arg0: memref<128x16xf32, #tpu.memory_space<vmem>>, %arg1: memref<16x16xf32, #tpu.memory_space<vmem>>, %arg2: memref<1x16xf32, #tpu.memory_space<vmem>>, %arg3: memref<128x16xf32, #tpu.memory_space<vmem>>) attributes {dimension_semantics = [], scalar_prefetch = 0 : i64, scratch_operands = 0 : i64, tpu.core_type = #tpu.core_type<tc>} {
    %c0 = arith.constant 0 : index
    %c0_0 = arith.constant 0 : index
    %0 = vector.load %arg0[%c0, %c0_0] : memref<128x16xf32, #tpu.memory_space<vmem>>, vector<128x16xf32>
    %c0_1 = arith.constant 0 : index
    %c0_2 = arith.constant 0 : index
    %1 = vector.load %arg1[%c0_1, %c0_2] : memref<16x16xf32, #tpu.memory_space<vmem>>, vector<16x16xf32>
    %cst = arith.constant dense<0.000000e+00> : vector<128x16xf32>
    %2 = tpu.matmul %0, %1, %cst {dimension_numbers = #tpu.dot_dimension_numbers<[1], [0], [0], [1], [0, 0, 1, 1], [], []>} : vector<128x16xf32>, vector<16x16xf32>, vector<128x16xf32> -> vector<128x16xf32>
    %c0_3 = arith.constant 0 : index
    %c0_4 = arith.constant 0 : index
    %3 = vector.load %arg2[%c0_3, %c0_4] : memref<1x16xf32, #tpu.memory_space<vmem>>, vector<1x16xf32>
    %4 = vector.broadcast %3 : vector<1x16xf32> to vector<128x16xf32>
    %5 = arith.addf %2, %4 : vector<128x16xf32>
    %c0_5 = arith.constant 0 : index
    %c0_6 = arith.constant 0 : index
    %6 = vector.load %arg3[%c0_5, %c0_6] : memref<128x16xf32, #tpu.memory_space<vmem>>, vector<128x16xf32>
    tpu.vector_store %arg3[%c0_5, %c0_6], %5 {strides = array<i32>} : memref<128x16xf32, #tpu.memory_space<vmem>>, vector<128x16xf32>,
    return
  }
}

module attributes {stable_mosaic.version = 11 : i64} {
  func.func @_resize_kernel(%arg0: memref<2x32x32xf32, #tpu.memory_space<vmem>>, %arg1: memref<16x32xf32, #tpu.memory_space<vmem>>, %arg2: memref<32x16xf32, #tpu.memory_space<vmem>>, %arg3: memref<2x16x16xf32, #tpu.memory_space<vmem>>) attributes {dimension_semantics = [], scalar_prefetch = 0 : i64, scratch_operands = 0 : i64, tpu.core_type = #tpu.core_type<tc>} {
    %c0 = arith.constant 0 : index
    %c0_0 = arith.constant 0 : index
    %0 = vector.load %arg1[%c0, %c0_0] : memref<16x32xf32, #tpu.memory_space<vmem>>, vector<16x32xf32>
    %c0_1 = arith.constant 0 : index
    %c0_2 = arith.constant 0 : index
    %c0_3 = arith.constant 0 : index
    %1 = vector.load %arg0[%c0_1, %c0_2, %c0_3] : memref<2x32x32xf32, #tpu.memory_space<vmem>>, vector<1x32x32xf32>
    %2 = vector.shape_cast %1 : vector<1x32x32xf32> to vector<32x32xf32>
    %cst = arith.constant dense<0.000000e+00> : vector<16x32xf32>
    %3 = tpu.matmul %0, %2, %cst {dimension_numbers = #tpu.dot_dimension_numbers<[1], [0], [0], [1], [0, 0, 1, 1], [], []>} : vector<16x32xf32>, vector<32x32xf32>, vector<16x32xf32> -> vector<16x32xf32>
    %c0_4 = arith.constant 0 : index
    %c0_5 = arith.constant 0 : index
    %4 = vector.load %arg2[%c0_4, %c0_5] : memref<32x16xf32, #tpu.memory_space<vmem>>, vector<32x16xf32>
    %cst_6 = arith.constant dense<0.000000e+00> : vector<16x16xf32>
    %5 = tpu.matmul %3, %4, %cst_6 {dimension_numbers = #tpu.dot_dimension_numbers<[1], [0], [0], [1], [0, 0, 1, 1], [], []>} : vector<16x32xf32>, vector<32x16xf32>, vector<16x16xf32> -> vector<16x16xf32>
    %6 = arith.negf %5 : vector<16x16xf32>
    %7 = math.exp %6 : vector<16x16xf32>
    %cst_7 = arith.constant 1.000000e+00 : f32
    %8 = vector.broadcast %cst_7 : f32 to vector<16x16xf32>
    %9 = arith.addf %8, %7 : vector<16x16xf32>
    %10 = arith.divf %8, %9 : vector<16x16xf32>
    %c0_8 = arith.constant 0 : index
    %c0_9 = arith.constant 0 : index
    %c0_10 = arith.constant 0 : index
    %11 = vector.load %arg3[%c0_8, %c0_9, %c0_10] : memref<2x16x16xf32, #tpu.memory_space<vmem>>, vector<1x16x16xf32>
    %12 = vector.shape_cast %11 : vector<1x16x16xf32> to vector<16x16xf32>
    %13 = vector.shape_cast %10 : vector<16x16xf32> to vector<1x16x16xf32>
    tpu.vector_store %arg3[%c0_8, %c0_9, %c0_10], %13 {strides = array<i32>} : memref<2x16x16xf32, #tpu.memory_space<vmem>>, vector<1x16x16xf32>,
    %c0_11 = arith.constant 0 : index
    %c0_12 = arith.constant 0 : index
    %14 = vector.load %arg1[%c0_11, %c0_12] : memref<16x32xf32, #tpu.memory_space<vmem>>, vector<16x32xf32>
    %c1 = arith.constant 1 : index
    %c0_13 = arith.constant 0 : index
    %c0_14 = arith.constant 0 : index
    %15 = vector.load %arg0[%c1, %c0_13, %c0_14] : memref<2x32x32xf32, #tpu.memory_space<vmem>>, vector<1x32x32xf32>
    %16 = vector.shape_cast %15 : vector<1x32x32xf32> to vector<32x32xf32>
    %cst_15 = arith.constant dense<0.000000e+00> : vector<16x32xf32>
    %17 = tpu.matmul %14, %16, %cst_15 {dimension_numbers = #tpu.dot_dimension_numbers<[1], [0], [0], [1], [0, 0, 1, 1], [], []>} : vector<16x32xf32>, vector<32x32xf32>, vector<16x32xf32> -> vector<16x32xf32>
    %c0_16 = arith.constant 0 : index
    %c0_17 = arith.constant 0 : index
    %18 = vector.load %arg2[%c0_16, %c0_17] : memref<32x16xf32, #tpu.memory_space<vmem>>, vector<32x16xf32>
    %cst_18 = arith.constant dense<0.000000e+00> : vector<16x16xf32>
    %19 = tpu.matmul %17, %18, %cst_18 {dimension_numbers = #tpu.dot_dimension_numbers<[1], [0], [0], [1], [0, 0, 1, 1], [], []>} : vector<16x32xf32>, vector<32x16xf32>, vector<16x16xf32> -> vector<16x16xf32>
    %20 = arith.negf %19 : vector<16x16xf32>
    %21 = math.exp %20 : vector<16x16xf32>
    %cst_19 = arith.constant 1.000000e+00 : f32
    %22 = vector.broadcast %cst_19 : f32 to vector<16x16xf32>
    %23 = arith.addf %22, %21 : vector<16x16xf32>
    %24 = arith.divf %22, %23 : vector<16x16xf32>
    %c1_20 = arith.constant 1 : index
    %c0_21 = arith.constant 0 : index
    %c0_22 = arith.constant 0 : index
    %25 = vector.load %arg3[%c1_20, %c0_21, %c0_22] : memref<2x16x16xf32, #tpu.memory_space<vmem>>, vector<1x16x16xf32>
    %26 = vector.shape_cast %25 : vector<1x16x16xf32> to vector<16x16xf32>
    %27 = vector.shape_cast %24 : vector<16x16xf32> to vector<1x16x16xf32>
    tpu.vector_store %arg3[%c1_20, %c0_21, %c0_22], %27 {strides = array<i32>} : memref<2x16x16xf32, #tpu.memory_space<vmem>>, vector<1x16x16xf32>,
    return
  }
}

</mosaic_0001>

<bundles_post_ra>
// kernel: mul.59
= control target key start
LH: loop header
LB: loop body
LE: loop exit
PB: predicated region body
PF: predicated region fallthrough
CT: control target
= control target key end

     0   :  { %s40_s0 = inlined_call_operand.vmem [shape: f32[3,256], index: 0, kind: input, shape index: {}]   ;;  %s41_s1 = inlined_call_operand.vmem [shape: f32[768], index: 1, kind: output, shape index: {}]  }
   0x1   :  { %v16_v0 = vld [vmem:[%s40_s0 + $0x4] sm:$0xf]  ;;  %v8_v1 = vld [vmem:[%s40_s0] sm:$0xf] }
   0x2   :  { %7 = vst [vmem:[#allocation0 + $0x8] sm:$0xf] %v16_v0  ;;  %9 = vst [vmem:[#allocation0] sm:$0xf] %v8_v1 }
   0x9   :  { %v10_v2 = vld [vmem:[#allocation0] sm:$0x7]   ;;  %v13_v3 = vld [vmem:[#allocation0 + $0x8] sm:$0x7]  }
   0xa   :  { %11 = vst [vmem:[%s41_s1] ss:$2 sm:$0x7] %v10_v2   ;;  %17 = vst [vmem:[%s41_s1 + $0x1] ss:$2 sm:$0x7] %v13_v3  }

// kernel: clipseg_forward.9
= control target key start
LH: loop header
LB: loop body
LE: loop exit
PB: predicated region body
PF: predicated region fallthrough
CT: control target
= control target key end

     0   :  { %vm20_vm0 = vcmask 130048   ;;  %vm217_vm1 = vcmask 261120   ;;  %s926_s0 = inlined_call_operand.vmem [shape: f32[3,16,16], index: 0, kind: input, shape index: {}]   ;;  %s927_s1 = inlined_call_operand.vmem [shape: f32[32,16], index: 1, kind: input, shape index: {}]   ;;  %s928_s2 = inlined_call_operand.vmem [shape: f32[16,32], index: 2, kind: input, shape index: {}]   ;;  %s929_s3 = inlined_call_operand.vmem [shape: f32[3,32,32], index: 3, kind: output, shape index: {}]  }
   0x1   :  { %v18_v0 = vld [vmem:[%s926_s0] sm:$0xff]  ;;  %v19_v1 = vld [vmem:[%s926_s0 + $0x8] sm:$0xff]  ;;  %v650_v4 = vld [vmem:[%s926_s0 + $0x10] sm:$0xff] }
   0x2   :  { %v14_v2 = vld [vmem:[%s927_s1] sm:$0xff]  ;;  %v774_v3 = vpack.c.bf16 %v19_v1, %v18_v0  ;;  %v651_v5 = vld [vmem:[%s926_s0 + $0x18] sm:$0xff]  ;;  %v665_v8 = vld [vmem:[%s926_s0 + $0x28] sm:$0xff] }
   0x3   :  { %718 = vmatprep.mubr.msk.f32.mxu0 %vm20_vm0, %v14_v2  ;;  %v782_v6 = vpack.c.bf16 %v651_v5, %v650_v4  ;;  %v664_v7 = vld [vmem:[%s926_s0 + $0x20] sm:$0xff]  ;;  %v119_v10 = vld [vmem:[%s928_s2 + $0x8] sm:$0xff]  ;;  %v16_v13 = vld [vmem:[%s927_s1 + $0x10] sm:$0xff] }
   0x4   :  { %775 = vmatprep.subr.bf16.mxu0 %v774_v3  ;;  %v118_v9 = vld [vmem:[%s928_s2] sm:$0xff]  ;;  %v15_v11 = vld [vmem:[%s927_s1 + $0x8] sm:$0xff]  ;;  %v790_v14 = vpack.c.bf16 %v665_v8, %v664_v7  ;;  %v17_v15 = vld [vmem:[%s927_s1 + $0x18] sm:$0xff] }
   0x5   :  { %777 = vmatpush3.bf16.msra.mxu0 %v774_v3  ;;  %v778_v12 = vpack.c.bf16 %v119_v10, %v118_v9 }
   0x6   :  { %783 = vmatprep.subr.bf16.mxu0 %v782_v6 }
   0x7   :  { %779 = vmatprep.subr.bf16.mxu1 %v778_v12 }
   0x8   :  { %719 = vmatmul.mubr.msk.f32.vlgmr.msra.gmra.mrb[0].mxu0 %vm20_vm0, %v15_v11  ;;  %781 = vmatpush3.bf16.msra.mxu1 %v778_v12 }
   0x9   :  { %785 = vmatpush3.bf16.msra.mxu0 %v782_v6  ;;  %721 = vmatprep.mubr.msk.f32.mxu0 %vm20_vm0, %v16_v13 }
   0xa   :  { %791 = vmatprep.subr.bf16.mxu0 %v790_v14  ;;  %787 = vmatprep.subr.bf16.mxu1 %v778_v12 }
   0xc   :  { %722 = vmatmul.mubr.msk.f32.gmra.mrb[2].mxu0 %vm20_vm0, %v17_v15 }
   0xd   :  { %738 = vmatprep.mubr.msk.f32.mxu0 %vm20_vm0, %v14_v2 }
  0x10   :  { %739 = vmatmul.mubr.msk.f32.vlgmr.msra.gmra.mrb[4].mxu0 %vm20_vm0, %v15_v11 }
  0x11   :  { %793 = vmatpush3.bf16.msra.mxu0 %v790_v14  ;;  %741 = vmatprep.mubr.msk.f32.mxu0 %vm20_vm0, %v16_v13 }
  0x14   :  { %742 = vmatmul.mubr.msk.f32.gmra.mrb[6].mxu0 %vm20_vm0, %v17_v15 }
  0x15   :  { %758 = vmatprep.mubr.msk.f32.mxu0 %vm20_vm0, %v14_v2 }
  0x18   :  { %759 = vmatmul.mubr.msk.f32.vlgmr.msra.gmra.mrb[8].mxu0 %vm20_vm0, %v15_v11 }
  0x19   :  { %761 = vmatprep.mubr.msk.f32.mxu0 %vm20_vm0, %v16_v13 }
  0x1c   :  { %762 = vmatmul.mubr.msk.f32.gmra.mrb[10].mxu0 %vm20_vm0, %v17_v15 }
  0xdb   :  { %v720_v16 = vpop.f32.mrb[0].mxu0 }
  0xdc   :  { %v99_v17 = vpop.f32.mrb[1].mxu0 }
  0xdd   :  { %728 = vmatprep.mubr.msk.f32.mxu1 %vm20_vm0, %v99_v17 }
  0xde   :  { %729 = vmatmul.mubr.msk.f32.vlgmr.msra.gmra.mrb[0].mxu1 %vm20_vm0, %v720_v16 }
  0xdf   :  { %v723_v18 = vpop.f32.mrb[2].mxu0  ;;  %789 = vmatpush3.bf16.msra.mxu1 %v778_v12 }
  0xe0   :  { %v109_v19 = vpop.f32.mrb[3].mxu0  ;;  %795 = vmatprep.subr.bf16.mxu1 %v778_v12 }
  0xe1   :  { %731 = vmatprep.mubr.msk.f32.mxu1 %vm20_vm0, %v109_v19 }
  0xe2   :  { %732 = vmatmul.mubr.msk.f32.gmra.mrb[2].mxu1 %vm20_vm0, %v723_v18 }
  0xe3   :  { %v740_v20 = vpop.f32.mrb[4].mxu0 }
  0xe4   :  { %v307_v21 = vpop.f32.mrb[5].mxu0 }
  0xe5   :  { %748 = vmatprep.mubr.msk.f32.mxu1 %vm20_vm0, %v307_v21 }
  0xe6   :  { %749 = vmatmul.mubr.msk.f32.vlgmr.msra.gmra.mrb[4].mxu1 %vm20_vm0, %v740_v20 }
  0xe7   :  { %v743_v22 = vpop.f32.mrb[6].mxu0  ;;  %797 = vmatpush3.bf16.msra.mxu1 %v778_v12 }
  0xe8   :  { %v317_v23 = vpop.f32.mrb[7].mxu0 }
  0xe9   :  { %751 = vmatprep.mubr.msk.f32.mxu1 %vm20_vm0, %v317_v23 }
  0xea   :  { %752 = vmatmul.mubr.msk.f32.gmra.mrb[6].mxu1 %vm20_vm0, %v743_v22 }
  0xeb   :  { %v760_v24 = vpop.f32.mrb[8].mxu0 }
  0xec   :  { %v515_v25 = vpop.f32.mrb[9].mxu0 }
  0xed   :  { %768 = vmatprep.mubr.msk.f32.mxu1 %vm20_vm0, %v515_v25 }
  0xee   :  { %769 = vmatmul.mubr.msk.f32.vlgmr.msra.gmra.mrb[8].mxu1 %vm20_vm0, %v760_v24 }
  0xef   :  { %v763_v26 = vpop.f32.mrb[10].mxu0 }
  0xf0   :  { %v525_v27 = vpop.f32.mrb[11].mxu0 }
  0xf1   :  { %771 = vmatprep.mubr.msk.f32.mxu1 %vm20_vm0, %v525_v27 }
  0xf2   :  { %772 = vmatmul.mubr.msk.f32.gmra.mrb[10].mxu1 %vm20_vm0, %v763_v26 }
 0x1b1   :  { %v730_v28 = vpop.f32.mrb[0].mxu1 }
 0x1b2   :  { %219 = vst.msk [vmem:[%s929_s3 + $0x8] sm:$0xff] %vm217_vm1, %v730_v28  ;;  %v198_v29 = vpop.f32.mrb[1].mxu1 }
 0x1b3   :  { %218 = vst.msk [vmem:[%s929_s3] sm:$0xff] %vm217_vm1, %v198_v29 }
 0x1b5   :  { %v733_v30 = vpop.f32.mrb[2].mxu1 }
 0x1b6   :  { %221 = vst.msk [vmem:[%s929_s3 + $0x18] sm:$0xff] %vm217_vm1, %v733_v30  ;;  %v208_v31 = vpop.f32.mrb[3].mxu1 }
 0x1b7   :  { %220 = vst.msk [vmem:[%s929_s3 + $0x10] sm:$0xff] %vm217_vm1, %v208_v31 }
 0x1b9   :  { %v750_v32 = vpop.f32.mrb[4].mxu1 }
 0x1ba   :  { %661 = vst.msk [vmem:[%s929_s3 + $0x28] sm:$0xff] %vm217_vm1, %v750_v32  ;;  %v406_v33 = vpop.f32.mrb[5].mxu1 }
 0x1bb   :  { %660 = vst.msk [vmem:[%s929_s3 + $0x20] sm:$0xff] %vm217_vm1, %v406_v33 }
 0x1bd   :  { %v753_v34 = vpop.f32.mrb[6].mxu1 }
 0x1be   :  { %663 = vst.msk [vmem:[%s929_s3 + $0x38] sm:$0xff] %vm217_vm1, %v753_v34  ;;  %v416_v35 = vpop.f32.mrb[7].mxu1 }
 0x1bf   :  { %662 = vst.msk [vmem:[%s929_s3 + $0x30] sm:$0xff] %vm217_vm1, %v416_v35 }
 0x1c1   :  { %v770_v36 = vpop.f32.mrb[8].mxu1 }
 0x1c2   :  { %675 = vst.msk [vmem:[%s929_s3 + $0x48] sm:$0xff] %vm217_vm1, %v770_v36  ;;  %v614_v37 = vpop.f32.mrb[9].mxu1 }
 0x1c3   :  { %674 = vst.msk [vmem:[%s929_s3 + $0x40] sm:$0xff] %vm217_vm1, %v614_v37 }
 0x1c5   :  { %v773_v38 = vpop.f32.mrb[10].mxu1 }
 0x1c6   :  { %677 = vst.msk [vmem:[%s929_s3 + $0x58] sm:$0xff] %vm217_vm1, %v773_v38  ;;  %v624_v39 = vpop.f32.mrb[11].mxu1 }
 0x1c7   :  { %676 = vst.msk [vmem:[%s929_s3 + $0x50] sm:$0xff] %vm217_vm1, %v624_v39 }

// kernel: clipseg_forward.12
= control target key start
LH: loop header
LB: loop body
LE: loop exit
PB: predicated region body
PF: predicated region fallthrough
CT: control target
= control target key end

     0   :  { %vm333_vm0 = vcmask 523264   ;;  %s873_s1 = inlined_call_operand.vmem [shape: f32[768,64], index: 1, kind: input, shape index: {}]   ;;  %s874_s0 = inlined_call_operand.vmem [shape: f32[8,768], index: 0, kind: input, shape index: {}]   ;;  %s875_s2 = inlined_call_operand.vmem [shape: f32[1,64], index: 2, kind: input, shape index: {}]   ;;  %s876_s3 = inlined_call_operand.vmem [shape: f32[8,64], index: 3, kind: output, shape index: {}]  }
   0x1   :  { %v36_v0 = vld [vmem:[%s873_s1 + $0x80] sm:$0xff]  ;;  %v37_v1 = vld [vmem:[%s873_s1 + $0x88] sm:$0xff]  ;;  %v38_v11 = vld [vmem:[%s873_s1 + $0x90] sm:$0xff] }
   0x2   :  { %v20_v2 = vld [vmem:[%s873_s1] sm:$0xff]  ;;  %v445_v3 = vpack.c.bf16 %v37_v1, %v36_v0  ;;  %v21_v4 = vld [vmem:[%s873_s1 + $0x8] sm:$0xff]  ;;  %v39_v13 = vld [vmem:[%s873_s1 + $0x98] sm:$0xff] }
   0x3   :  { %v68_v5 = vld [vmem:[%s873_s1 + $0x180] sm:$0xff]  ;;  %v69_v6 = vld [vmem:[%s873_s1 + $0x188] sm:$0xff]  ;;  %v447_v7 = vpack.c.bf16 %v21_v4, %v20_v2  ;;  %v22_v14 = vld [vmem:[%s873_s1 + $0x10] sm:$0xff]  ;;  %v449_v16 = vpack.c.bf16 %v39_v13, %v38_v11 }
   0x4   :  { %v477_v8 = vpack.c.bf16 %v69_v6, %v68_v5  ;;  %v52_v9 = vld [vmem:[%s873_s1 + $0x100] sm:$0xff]  ;;  %v53_v10 = vld [vmem:[%s873_s1 + $0x108] sm:$0xff]  ;;  %446 = vmatprep.subr.bf16.mxu0 %v445_v3  ;;  %v23_v15 = vld [vmem:[%s873_s1 + $0x18] sm:$0xff] }
   0x5   :  { %v479_v12 = vpack.c.bf16 %v53_v10, %v52_v9  ;;  %448 = vmatpush3.bf16.msra.mxu0 %v447_v7  ;;  %v451_v17 = vpack.c.bf16 %v23_v15, %v22_v14  ;;  %v70_v18 = vld [vmem:[%s873_s1 + $0x190] sm:$0xff]  ;;  %v71_v19 = vld [vmem:[%s873_s1 + $0x198] sm:$0xff]  ;;  %v40_v23 = vld [vmem:[%s873_s1 + $0xa0] sm:$0xff] }
   0x6   :  { %478 = vmatprep.subr.bf16.mxu1 %v477_v8  ;;  %v54_v20 = vld [vmem:[%s873_s1 + $0x110] sm:$0xff]  ;;  %v481_v21 = vpack.c.bf16 %v71_v19, %v70_v18  ;;  %v55_v22 = vld [vmem:[%s873_s1 + $0x118] sm:$0xff]  ;;  %v41_v24 = vld [vmem:[%s873_s1 + $0xa8] sm:$0xff]  ;;  %450 = vmatprep.subr.bf16.mxu0 %v449_v16 }
   0x7   :  { %480 = vmatpush3.bf16.msra.mxu1 %v479_v12  ;;  %v483_v25 = vpack.c.bf16 %v55_v22, %v54_v20  ;;  %v453_v26 = vpack.c.bf16 %v41_v24, %v40_v23  ;;  %v24_v27 = vld [vmem:[%s873_s1 + $0x20] sm:$0xff]  ;;  %v25_v28 = vld [vmem:[%s873_s1 + $0x28] sm:$0xff]  ;;  %v42_v35 = vld [vmem:[%s873_s1 + $0xb0] sm:$0xff] }
   0x8   :  { %v72_v29 = vld [vmem:[%s873_s1 + $0x1a0] sm:$0xff]  ;;  %482 = vmatprep.subr.bf16.mxu1 %v481_v21  ;;  %v73_v30 = vld [vmem:[%s873_s1 + $0x1a8] sm:$0xff]  ;;  %v455_v33 = vpack.c.bf16 %v25_v28, %v24_v27  ;;  %v43_v36 = vld [vmem:[%s873_s1 + $0xb8] sm:$0xff] }
   0x9   :  { %v56_v31 = vld [vmem:[%s873_s1 + $0x120] sm:$0xff]  ;;  %v57_v32 = vld [vmem:[%s873_s1 + $0x128] sm:$0xff]  ;;  %452 = vmatpush3.bf16.msra.mxu0 %v451_v17  ;;  %v485_v34 = vpack.c.bf16 %v73_v30, %v72_v29  ;;  %v26_v37 = vld [vmem:[%s873_s1 + $0x30] sm:$0xff]  ;;  %v457_v39 = vpack.c.bf16 %v43_v36, %v42_v35 }
   0xa   :  { %454 = vmatprep.subr.bf16.mxu0 %v453_v26  ;;  %v487_v38 = vpack.c.bf16 %v57_v32, %v56_v31  ;;  %v27_v40 = vld [vmem:[%s873_s1 + $0x38] sm:$0xff]  ;;  %v74_v41 = vld [vmem:[%s873_s1 + $0x1b0] sm:$0xff]  ;;  %v44_v46 = vld [vmem:[%s873_s1 + $0xc0] sm:$0xff] }
   0xb   :  { %484 = vmatpush3.bf16.msra.mxu1 %v483_v25  ;;  %v75_v42 = vld [vmem:[%s873_s1 + $0x1b8] sm:$0xff]  ;;  %v58_v44 = vld [vmem:[%s873_s1 + $0x130] sm:$0xff]  ;;  %v45_v47 = vld [vmem:[%s873_s1 + $0xc8] sm:$0xff]  ;;  %v459_v48 = vpack.c.bf16 %v27_v40, %v26_v37 }
   0xc   :  { %486 = vmatprep.subr.bf16.mxu1 %v485_v34  ;;  %v489_v43 = vpack.c.bf16 %v75_v42, %v74_v41  ;;  %v59_v45 = vld [vmem:[%s873_s1 + $0x138] sm:$0xff]  ;;  %v76_v49 = vld [vmem:[%s873_s1 + $0x1c0] sm:$0xff]  ;;  %v77_v50 = vld [vmem:[%s873_s1 + $0x1c8] sm:$0xff]  ;;  %v461_v52 = vpack.c.bf16 %v45_v47, %v44_v46 }
   0xd   :  { %456 = vmatpush3.bf16.msra.mxu0 %v455_v33  ;;  %v491_v51 = vpack.c.bf16 %v59_v45, %v58_v44  ;;  %v28_v53 = vld [vmem:[%s873_s1 + $0x40] sm:$0xff]  ;;  %v29_v54 = vld [vmem:[%s873_s1 + $0x48] sm:$0xff]  ;;  %v493_v56 = vpack.c.bf16 %v77_v50, %v76_v49  ;;  %v46_v58 = vld [vmem:[%s873_s1 + $0xd0] sm:$0xff] }
   0xe   :  { %458 = vmatprep.subr.bf16.mxu0 %v457_v39  ;;  %v60_v55 = vld [vmem:[%s873_s1 + $0x140] sm:$0xff]  ;;  %v61_v57 = vld [vmem:[%s873_s1 + $0x148] sm:$0xff]  ;;  %v47_v59 = vld [vmem:[%s873_s1 + $0xd8] sm:$0xff]  ;;  %v463_v62 = vpack.c.bf16 %v29_v54, %v28_v53 }
   0xf   :  { %488 = vmatpush3.bf16.msra.mxu1 %v487_v38  ;;  %v78_v60 = vld [vmem:[%s873_s1 + $0x1d0] sm:$0xff]  ;;  %v79_v61 = vld [vmem:[%s873_s1 + $0x1d8] sm:$0xff]  ;;  %v495_v63 = vpack.c.bf16 %v61_v57, %v60_v55  ;;  %v465_v0 = vpack.c.bf16 %v47_v59, %v46_v58  ;;  %v48_v6 = vld [vmem:[%s873_s1 + $0xe0] sm:$0xff] }
  0x10   :  { %490 = vmatprep.subr.bf16.mxu1 %v489_v43  ;;  %v30_v1 = vld [vmem:[%s873_s1 + $0x50] sm:$0xff]  ;;  %v31_v2 = vld [vmem:[%s873_s1 + $0x58] sm:$0xff]  ;;  %v497_v4 = vpack.c.bf16 %v79_v61, %v78_v60  ;;  %v49_v7 = vld [vmem:[%s873_s1 + $0xe8] sm:$0xff] }
  0x11   :  { %460 = vmatpush3.bf16.msra.mxu0 %v459_v48  ;;  %v62_v3 = vld [vmem:[%s873_s1 + $0x150] sm:$0xff]  ;;  %v63_v5 = vld [vmem:[%s873_s1 + $0x158] sm:$0xff]  ;;  %v80_v8 = vld [vmem:[%s873_s1 + $0x1e0] sm:$0xff]  ;;  %v467_v10 = vpack.c.bf16 %v31_v2, %v30_v1  ;;  %v469_v14 = vpack.c.bf16 %v49_v7, %v48_v6 }
  0x12   :  { %462 = vmatprep.subr.bf16.mxu0 %v461_v52  ;;  %v81_v9 = vld [vmem:[%s873_s1 + $0x1e8] sm:$0xff]  ;;  %v32_v11 = vld [vmem:[%s873_s1 + $0x60] sm:$0xff]  ;;  %v499_v13 = vpack.c.bf16 %v63_v5, %v62_v3  ;;  %v50_v19 = vld [vmem:[%s873_s1 + $0xf0] sm:$0xff] }
  0x13   :  { %492 = vmatpush3.bf16.msra.mxu1 %v491_v51  ;;  %v15_v12 = vld [vmem:[%s874_s0 + $0x8] sm:$0xff]  ;;  %v64_v16 = vld [vmem:[%s873_s1 + $0x160] sm:$0xff]  ;;  %v501_v18 = vpack.c.bf16 %v81_v9, %v80_v8  ;;  %v51_v20 = vld [vmem:[%s873_s1 + $0xf8] sm:$0xff] }
  0x14   :  { %494 = vmatprep.subr.bf16.mxu1 %v493_v56  ;;  %v33_v15 = vld [vmem:[%s873_s1 + $0x68] sm:$0xff]  ;;  %187 = vmatprep.mubr.f32.mxu0 %v15_v12  ;;  %v17_v21 = vld [vmem:[%s874_s0 + $0x18] sm:$0xff]  ;;  %v82_v22 = vld [vmem:[%s873_s1 + $0x1f0] sm:$0xff]  ;;  %v473_v26 = vpack.c.bf16 %v51_v20, %v50_v19 }
  0x15   :  { %464 = vmatpush3.bf16.msra.mxu0 %v463_v62  ;;  %v65_v17 = vld [vmem:[%s873_s1 + $0x168] sm:$0xff]  ;;  %v83_v23 = vld [vmem:[%s873_s1 + $0x1f8] sm:$0xff]  ;;  %257 = vmatprep.mubr.f32.mxu1 %v17_v21  ;;  %v471_v24 = vpack.c.bf16 %v33_v15, %v32_v11  ;;  %v34_v27 = vld [vmem:[%s873_s1 + $0x70] sm:$0xff] }
  0x16   :  { %466 = vmatprep.subr.bf16.mxu0 %v465_v0  ;;  %v503_v25 = vpack.c.bf16 %v65_v17, %v64_v16  ;;  %v35_v28 = vld [vmem:[%s873_s1 + $0x78] sm:$0xff]  ;;  %v66_v29 = vld [vmem:[%s873_s1 + $0x170] sm:$0xff]  ;;  %v505_v30 = vpack.c.bf16 %v83_v23, %v82_v22  ;;  %v100_v32 = vld [vmem:[%s873_s1 + $0x280] sm:$0xff] }
  0x17   :  { %496 = vmatpush3.bf16.msra.mxu1 %v495_v63  ;;  %v67_v31 = vld [vmem:[%s873_s1 + $0x178] sm:$0xff]  ;;  %v101_v33 = vld [vmem:[%s873_s1 + $0x288] sm:$0xff]  ;;  %v475_v34 = vpack.c.bf16 %v35_v28, %v34_v27  ;;  %v84_v37 = vld [vmem:[%s873_s1 + $0x200] sm:$0xff] }
  0x18   :  { %498 = vmatprep.subr.bf16.mxu1 %v497_v4  ;;  %v507_v35 = vpack.c.bf16 %v67_v31, %v66_v29  ;;  %v509_v36 = vpack.c.bf16 %v101_v33, %v100_v32  ;;  %v85_v38 = vld [vmem:[%s873_s1 + $0x208] sm:$0xff]  ;;  %v102_v39 = vld [vmem:[%s873_s1 + $0x290] sm:$0xff]  ;;  %v103_v40 = vld [vmem:[%s873_s1 + $0x298] sm:$0xff] }
  0x19   :  { %468 = vmatpush3.bf16.msra.mxu0 %v467_v10  ;;  %v14_v41 = vld [vmem:[%s874_s0] sm:$0xff]  ;;  %v511_v42 = vpack.c.bf16 %v85_v38, %v84_v37  ;;  %v16_v43 = vld [vmem:[%s874_s0 + $0x10] sm:$0xff]  ;;  %v513_v44 = vpack.c.bf16 %v103_v40, %v102_v39  ;;  %v87_v46 = vld [vmem:[%s873_s1 + $0x218] sm:$0xff] }
  0x1a   :  { %470 = vmatprep.subr.bf16.mxu0 %v469_v14  ;;  %v86_v45 = vld [vmem:[%s873_s1 + $0x210] sm:$0xff]  ;;  %v104_v47 = vld [vmem:[%s873_s1 + $0x2a0] sm:$0xff]  ;;  %v105_v48 = vld [vmem:[%s873_s1 + $0x2a8] sm:$0xff] }
  0x1b   :  { %500 = vmatpush3.bf16.msra.mxu1 %v499_v13  ;;  %v19_v49 = vld [vmem:[%s874_s0 + $0x28] sm:$0xff]  ;;  %v515_v50 = vpack.c.bf16 %v87_v46, %v86_v45  ;;  %v517_v51 = vpack.c.bf16 %v105_v48, %v104_v47  ;;  %v88_v52 = vld [vmem:[%s873_s1 + $0x220] sm:$0xff]  ;;  %v106_v54 = vld [vmem:[%s873_s1 + $0x2b0] sm:$0xff] }
  0x1c   :  { %502 = vmatprep.subr.bf16.mxu1 %v501_v18  ;;  %v89_v53 = vld [vmem:[%s873_s1 + $0x228] sm:$0xff]  ;;  %v107_v55 = vld [vmem:[%s873_s1 + $0x2b8] sm:$0xff]  ;;  %v90_v58 = vld [vmem:[%s873_s1 + $0x230] sm:$0xff] }
  0x1d   :  { %472 = vmatpush3.bf16.msra.mxu0 %v471_v24  ;;  %v519_v56 = vpack.c.bf16 %v89_v53, %v88_v52  ;;  %v521_v57 = vpack.c.bf16 %v107_v55, %v106_v54  ;;  %v91_v59 = vld [vmem:[%s873_s1 + $0x238] sm:$0xff]  ;;  %v108_v60 = vld [vmem:[%s873_s1 + $0x2c0] sm:$0xff]  ;;  %v109_v61 = vld [vmem:[%s873_s1 + $0x2c8] sm:$0xff] }
  0x1e   :  { %474 = vmatprep.subr.bf16.mxu0 %v473_v26  ;;  %v523_v62 = vpack.c.bf16 %v91_v59, %v90_v58  ;;  %v525_v63 = vpack.c.bf16 %v109_v61, %v108_v60  ;;  %v92_v0 = vld [vmem:[%s873_s1 + $0x240] sm:$0xff]  ;;  %v93_v1 = vld [vmem:[%s873_s1 + $0x248] sm:$0xff]  ;;  %v110_v2 = vld [vmem:[%s873_s1 + $0x2d0] sm:$0xff] }
  0x1f   :  { %504 = vmatpush3.bf16.msra.mxu1 %v503_v25  ;;  %v111_v3 = vld [vmem:[%s873_s1 + $0x2d8] sm:$0xff]  ;;  %v527_v4 = vpack.c.bf16 %v93_v1, %v92_v0  ;;  %v94_v6 = vld [vmem:[%s873_s1 + $0x250] sm:$0xff]  ;;  %v112_v8 = vld [vmem:[%s873_s1 + $0x2e0] sm:$0xff] }
  0x20   :  { %506 = vmatprep.subr.bf16.mxu1 %v505_v30  ;;  %v529_v5 = vpack.c.bf16 %v111_v3, %v110_v2  ;;  %v95_v7 = vld [vmem:[%s873_s1 + $0x258] sm:$0xff]  ;;  %v113_v9 = vld [vmem:[%s873_s1 + $0x2e8] sm:$0xff]  ;;  %v96_v12 = vld [vmem:[%s873_s1 + $0x260] sm:$0xff] }
  0x21   :  { %476 = vmatpush3.bf16.msra.mxu0 %v475_v34  ;;  %v531_v10 = vpack.c.bf16 %v95_v7, %v94_v6  ;;  %v533_v11 = vpack.c.bf16 %v113_v9, %v112_v8  ;;  %v97_v13 = vld [vmem:[%s873_s1 + $0x268] sm:$0xff]  ;;  %v114_v14 = vld [vmem:[%s873_s1 + $0x2f0] sm:$0xff]  ;;  %v115_v15 = vld [vmem:[%s873_s1 + $0x2f8] sm:$0xff] }
  0x22   :  { %510 = vmatprep.subr.bf16.mxu0 %v509_v36  ;;  %v535_v16 = vpack.c.bf16 %v97_v13, %v96_v12  ;;  %v537_v17 = vpack.c.bf16 %v115_v15, %v114_v14  ;;  %v98_v18 = vld [vmem:[%s873_s1 + $0x270] sm:$0xff]  ;;  %v99_v19 = vld [vmem:[%s873_s1 + $0x278] sm:$0xff]  ;;  %v18_v21 = vld [vmem:[%s874_s0 + $0x20] sm:$0xff] }
  0x23   :  { %508 = vmatpush3.bf16.msra.mxu1 %v507_v35  ;;  %v539_v20 = vpack.c.bf16 %v99_v19, %v98_v18  ;;  %v339_v23 = vld [vmem:[%s875_s2] ss:$0 sm:$0xff] }
  0x24   :  { %188 = vmatmul.mubr.f32.vlgmr.msra.gmra.mrb[0].mxu0 %v14_v41 }
  0x25   :  { %512 = vmatpush3.bf16.msra.mxu0 %v511_v42  ;;  %327 = vmatprep.mubr.f32.mxu0 %v19_v49 }
  0x26   :  { %258 = vmatmul.mubr.f32.vlgmr.msra.gmra.mrb[0].mxu1 %v16_v43  ;;  %514 = vmatprep.subr.bf16.mxu0 %v513_v44 }
  0x29   :  { %516 = vmatpush3.bf16.msra.mxu0 %v515_v50 }
  0x2a   :  { %518 = vmatprep.subr.bf16.mxu0 %v517_v51 }
  0x2d   :  { %520 = vmatpush3.bf16.msra.mxu0 %v519_v56 }
  0x2e   :  { %522 = vmatprep.subr.bf16.mxu0 %v521_v57 }
  0x31   :  { %524 = vmatpush3.bf16.msra.mxu0 %v523_v62 }
  0x32   :  { %526 = vmatprep.subr.bf16.mxu0 %v525_v63 }
  0x35   :  { %528 = vmatpush3.bf16.msra.mxu0 %v527_v4 }
  0x36   :  { %530 = vmatprep.subr.bf16.mxu0 %v529_v5 }
  0x39   :  { %532 = vmatpush3.bf16.msra.mxu0 %v531_v10 }
  0x3a   :  { %534 = vmatprep.subr.bf16.mxu0 %v533_v11 }
  0x3d   :  { %536 = vmatpush3.bf16.msra.mxu0 %v535_v16 }
  0x3e   :  { %538 = vmatprep.subr.bf16.mxu0 %v537_v17 }
  0x41   :  { %540 = vmatpush3.bf16.msra.mxu0 %v539_v20 }
  0x44   :  { %328 = vmatmul.mubr.f32.vlgmr.msra.gmra.mrb[2].mxu0 %v18_v21 }
  0xf7   :  { %v372_v22 = vpop.f32.mrb[0].mxu0 }
  0xf8   :  { %v373_v24 = vpop.f32.mrb[1].mxu0 }
  0xf9   :  { %v407_v25 = vpop.f32.mrb[0].mxu1  ;;  %v374_v26 = vadd.f32 %v373_v24, %v372_v22 }
  0xfa   :  { %v408_v27 = vpop.f32.mrb[1].mxu1 }
  0xfb   :  { %v409_v28 = vadd.f32 %v408_v27, %v407_v25  ;;  %v190_v29 = vadd.f32 %v374_v26, %v339_v23 }
  0xfd   :  { %v260_v30 = vadd.f32 %v409_v28, %v190_v29 }
 0x117   :  { %v442_v31 = vpop.f32.mrb[2].mxu0 }
 0x118   :  { %v443_v32 = vpop.f32.mrb[3].mxu0 }
 0x119   :  { %v444_v33 = vadd.f32 %v443_v32, %v442_v31 }
 0x11b   :  { %v330_v34 = vadd.f32 %v444_v33, %v260_v30 }
 0x11d   :  { %334 = vst.msk [vmem:[%s876_s3] sm:$0xff] %vm333_vm0, %v330_v34 }

// kernel: clipseg_forward.13
= control target key start
LH: loop header
LB: loop body
LE: loop exit
PB: predicated region body
PF: predicated region fallthrough
CT: control target
= control target key end

     0   :  { %s3414_s0 = inlined_call_operand.vmem [shape: s32[10], index: 0, kind: input, shape index: {}]   ;;  %s3415_s1 = inlined_call_operand.vmem [shape: f32[10,64], index: 1, kind: input, shape index: {}]   ;;  %s3416_s2 = inlined_call_operand.vmem [shape: f32[1,64], index: 2, kind: input, shape index: {}]   ;;  %s3417_s3 = inlined_call_operand.vmem [shape: f32[1,64], index: 3, kind: input, shape index: {}]   ;;  %s3418_s4 = inlined_call_operand.vmem [shape: f32[10,1,64], index: 4, kind: input, shape index: {}]   ;;  %s3419_s5 = inlined_call_operand.vmem [shape: f32[10,1,64], index: 5, kind: input, shape index: {}]   ;;  %s3420_s6 = inlined_call_operand.vmem [shape: bf16[10,64,192], index: 6, kind: input, shape index: {}]   ;;  %s3421_s7 = inlined_call_operand.vmem [shape: f32[10,1,192], index: 7, kind: input, shape index: {}]   ;;  %s3422_s8 = inlined_call_operand.vmem [shape: bf16[10,64,64], index: 8, kind: input, shape index: {}]   ;;  %s3423_s9 = inlined_call_operand.vmem [shape: f32[10,1,64], index: 9, kind: input, shape index: {}]   ;;  %s3424_s10 = inlined_call_operand.vmem [shape: f32[10,1,64], index: 10, kind: input, shape index: {}]   ;;  %s3425_s11 = inlined_call_operand.vmem [shape: f32[10,1,64], index: 11, kind: input, shape index: {}]   ;;  %s3426_s12 = inlined_call_operand.vmem [shape: bf16[10,64,256], index: 12, kind: input, shape index: {}]   ;;  %s3427_s13 = inlined_call_operand.vmem [shape: f32[10,1,256], index: 13, kind: input, shape index: {}]   ;;  %s3428_s14 = inlined_call_operand.vmem [shape: bf16[10,256,64], index: 14, kind: input, shape index: {}]   ;;  %s3429_s15 = inlined_call_operand.vmem [shape: f32[10,1,64], index: 15, kind: input, shape index: {}]   ;;  %s3430_s16 = inlined_call_operand.vmem [shape: f32[1,64], index: 16, kind: input, shape index: {}]   ;;  %s3431_s17 = inlined_call_operand.vmem [shape: f32[1,64], index: 17, kind: input, shape index: {}]   ;;  %s3432_s18 = inlined_call_operand.vmem [shape: f32[4,10,64], index: 18, kind: output, shape index: {}]  }
   0x1   :  { %3437 = sst [smem:[#allocation8_spill]] %s3414_s0 }
   0x2   :  { %3438 = sst [smem:[#allocation9_spill]] %s3415_s1  ;;  %s3445_s29 = sld [smem:[#allocation8_spill]] }
   0x3   :  { %3439 = sst [smem:[#allocation10_spill]] %s3416_s2 }
   0x4   :  { %3440 = sst [smem:[#allocation11_spill]] %s3417_s3 }
   0x5   :  { %3441 = sst [smem:[#allocation12_spill]] %s3418_s4 }
   0x6   :  { %3442 = sst [smem:[#allocation13_spill]] %s3419_s5 }
   0x7   :  { %3443 = sst [smem:[#allocation14_spill]] %s3420_s6 }
   0x8   :  { %3444 = sst [smem:[#allocation15_spill]] %s3421_s7  ;;  %s23_s3 = sshll.u32 %s3445_s29, 4  ;;  %s24_s3 = int_to_ptr.vmem [resolvable:$true] %s23_s3 }
   0x9   :  { %s2915_s30 = scalar_lea.vmem %s24_s3, 16  ;;  %p2920_p1 = scmp.lt.s32.totalorder %s24_s3, %s24_s3 }
   0xa   :  { %p2916_p0 = scmp.ne.s32.totalorder %s24_s3, %s2915_s30  ;;  %p2921_p2 = scmp.lt.s32.totalorder %s2915_s30, %s2915_s30 }
   0xc   :  { %p2922_p3 = por %p2921_p2, %p2920_p1 }
   0xe   :  { %p2923_p4 = pnand %p2922_p3, %p2916_p0 }
  0x10   :  { %2926 = shalt.err (!%p2923_p4)  }
  0x11   :  { %s2937_s0 = smov [#allocation4]  }
  0x12   :  { %26 = dma.vmem_to_smem %s24_s3, 16, %s2937_s0, [#allocation3] }
  0x13   :  { %2931 = dma.done.wait [#allocation3], 16 }
  0x14   :  { %2932 = vsyncadd [#allocation3], 4294967280 }
  0x15   :  { %28 = sfence }
  0x16   :  { %s3048_s16 = smov 0  }
  0x17 LB: > { %3446 = sst [smem:[#allocation6_spill]] %s2935_s16  ;;  %s3054_s17 = sadd.s32 4294967295, %s2935_s16   ;;  %s2935_s16 = sphi %s3048_s16, %s34_s16  }
  0x18   : > { %p2465_p5 = scmp.ge.s32.totalorder %s2935_s16, 1  ;;  %p592_p6 = scmp.lt.s32.totalorder %s2935_s16, 11 }
  0x1a   : > { %p593_p7 = pnand %p2465_p5, %p592_p6 }
  0x1c   : > { %596 = sbr.rel (%p593_p7) target bundleno = 4056 (0xfd8), region = 88 }
  0x23   : > { %p686_p8 = scmp.lt.s32.totalorder %s3054_s17, 9  ;;  %p740_p9 = scmp.eq.s32.totalorder %s3054_s17, 0 }
  0x24   : > { %s732_s19 = sld [smem:[#allocation4 + %s3054_s17]]  ;;  %p2478_p11 = scmp.ne.s32.totalorder %s3054_s17, 0 }
  0x25   : > { %s3061_s3 = scalar_select %p686_p8, %s3054_s17, 9 }
  0x26   : > { %s3449_s6 = sld [smem:[#allocation14_spill]]  ;;  %s3450_s7 = sld [smem:[#allocation15_spill]]  ;;  %vm748_vm0 = vcmask (!%p2478_p11), 523264   ;;  %vm752_vm1 = vcmask (!%p2478_p11), 517120  }
  0x27   : > { %s2560_s24 = sshll.u32 %s3061_s3, 6  ;;  %s2468_s25 = sshll.u32 %s3061_s3, 1 }
  0x28   : > { %s2561_s16 = sshll.u32 %s3061_s3, 5  ;;  %s714_s29 = scalar_lea.vmem %s3425_s11, %s3061_s3 }
  0x29   : > { %s3092_s2 = scalar_lea.vmem %s3422_s8, %s2561_s16  ;;  %s3110_s21 = scalar_lea.vmem %s3427_s13, %s2468_s25 }
  0x2a   : > { %s2563_s4 = sshll.u32 %s3061_s3, 7  ;;  %p733_p10 = scmp.lt.s32.totalorder %s732_s19, 3 }
  0x2b   : > { %s3116_s5 = scalar_lea.vmem %s3428_s14, %s2563_s4  ;;  %743 = sbr.rel (%p2478_p11) target bundleno = 372 (0x174), region = 92 }
  0x2c   : > { %s3077_s28 = scalar_lea.vmem %s3449_s6, %s2560_s24  ;;  %s3082_s0 = scalar_lea.vmem %s3450_s7, %s2468_s25 }
  0x2d   : > { %3451 = sst [smem:[#allocation7_spill]] %s3082_s0  ;;  %s3105_s0 = scalar_lea.vmem %s3426_s12, %s2560_s24 }
  0x2e   : > { %s731_s6 = scalar_lea.vmem %s3429_s15, %s3061_s3  ;;  %s3479_s19 = smov (!%p733_p10, %s732_s19), 3 }
  0x2f   : > { %s2564_s7 = sshll.u32 %s3479_s19, 4  ;;  %s3452_s20 = sld [smem:[#allocation9_spill]] (!%p2478_p11) }
  0x30   : > { %s3125_s30 = scalar_lea.vmem %s3432_s18, %s2564_s7  ;;  %s3453_s22 = sld [smem:[#allocation10_spill]] (!%p2478_p11) }
  0x31   : > { %s3454_s24 = sld [smem:[#allocation11_spill]] (!%p2478_p11) }
  0x35   : > { %v744_v0 = vld [vmem:[%s3452_s20] sm:$0xff]  ;;  %v745_v1 = vld [vmem:[%s3452_s20 + $0x8] sm:$0x3] }
  0x36   : > { %v749_v2 = vsel %vm748_vm0, %v744_v0, 0.0  ;;  %v753_v3 = vsel %vm752_vm1, %v745_v1, 0.0  ;;  %v2479_v21 = vld [vmem:[%s3453_s22] ss:$0 sm:$0xff] }
  0x37   : > { %750 = vadd.xlane.f32.xlu0 %v749_v2  ;;  %v2480_v23 = vld [vmem:[%s3454_s24] ss:$0 sm:$0xff] }
  0x3b   : > { %754 = vadd.xlane.f32.xlu0 %v753_v3 }
  0xc4   : > { %v751_v4 = vpop.xlane.xlu0 %750 }
  0xc5   : > { %v757_v5 = vmul.f32 0.015625, %v751_v4 }
  0xc7   : > { %v759_v6 = vsub.f32 %v744_v0, %v757_v5 }
  0xc8   : > { %v755_v7 = vpop.xlane.xlu0 %754 }
  0xc9   : > { %v758_v8 = vmul.f32 0.015625, %v755_v7  ;;  %v761_v9 = vmul.f32 %v759_v6, %v759_v6 }
  0xcb   : > { %v760_v10 = vsub.f32 %v745_v1, %v758_v8  ;;  %v763_v11 = vsel %vm748_vm0, %v761_v9, 0.0 }
  0xcc   : > { %764 = vadd.xlane.f32.xlu1 %v763_v11 }
  0xcd   : > { %v762_v12 = vmul.f32 %v760_v10, %v760_v10 }
  0xcf   : > { %v766_v13 = vsel %vm752_vm1, %v762_v12, 0.0 }
  0xd0   : > { %767 = vadd.xlane.f32.xlu1 %v766_v13 }
 0x159   : > { %v765_v14 = vpop.xlane.xlu1 %764 }
 0x15a   : > { %v769_v15 = vmul.f32 0.015625, %v765_v14 }
 0x15c   : > { %v771_v16 = vadd.f32 1e-05, %v769_v15 }
 0x15d   : > { %v768_v17 = vpop.xlane.xlu1 %767 }
 0x15e   : > { %2761 = vrsqrt.f32 %v771_v16  ;;  %v770_v18 = vmul.f32 0.015625, %v768_v17 }
 0x160   : > { %v772_v19 = vadd.f32 1e-05, %v770_v18 }
 0x162   : > { %2763 = vrsqrt.f32 %v772_v19 }
 0x168   : > { %v2762_v20 = vpop.eup %2761 }
 0x169   : > { %v775_v22 = vmul.f32 %v2762_v20, %v759_v6 }
 0x16b   : > { %v783_v24 = vmul.f32 %v2479_v21, %v775_v22 }
 0x16c   : > { %v2764_v25 = vpop.eup %2763 }
 0x16d   : > { %v791_v26 = vadd.f32 %v2480_v23, %v783_v24  ;;  %v776_v27 = vmul.f32 %v2764_v25, %v760_v10 }
 0x16f   : > { %793 = vst.msk [vmem:[#allocation2] sm:$0xff] %vm748_vm0, %v791_v26  ;;  %v784_v28 = vmul.f32 %v2479_v21, %v776_v27 }
 0x171   : > { %v792_v29 = vadd.f32 %v2480_v23, %v784_v28 }
 0x173   : > { %794 = vst.msk [vmem:[#allocation2 + $0x8] sm:$0x3] %vm752_vm1, %v792_v29 }
 0x174 PF: > { %vm3436_vm2 = vcmask 523264   ;;  %vm3435_vm3 = vcmask 517120   ;;  %v2815_v44 = vld [vmem:[%s3077_s28 + $0x4] ss:$8 sps:$4 sm:$0xff]   ;;  %v2817_v45 = vld [vmem:[%s3077_s28] ss:$8 sps:$4 sm:$0xff]   ;;  %v797_v6 = vlaneseq  ;;  %s3465_s16 = scalar_lea.vmem %s3423_s9, %s3061_s3 }
 0x175   : > { %941 = vmatprep.subr.bf16.mxu0 %v2815_v44  ;;  %v2818_v46 = vld [vmem:[%s3077_s28 + $0x14] ss:$8 sps:$4 sm:$0xff]   ;;  %v2820_v47 = vld [vmem:[%s3077_s28 + $0x10] ss:$8 sps:$4 sm:$0xff]   ;;  %v2821_v48 = vld [vmem:[%s3077_s28 + $0x24] ss:$8 sps:$4 sm:$0xff]  }
 0x176   : > { %v3146_v30 = vld [vmem:[#allocation2] sm:$0xff]  ;;  %942 = vmatpush1.bf16.msra.mxu0 %v2817_v45  ;;  %v2824_v50 = vld [vmem:[%s3077_s28 + $0x34] ss:$8 sps:$4 sm:$0xff]   ;;  %v2826_v51 = vld [vmem:[%s3077_s28 + $0x30] ss:$8 sps:$4 sm:$0xff]   ;;  %v2938_v52 = vmov 0  }
 0x177   : > { %v833_v32 = vsel %vm3436_vm2, %v3146_v30, 0.0  ;;  %943 = vmatprep.subr.bf16.mxu0 %v2818_v46  ;;  %v2823_v49 = vld [vmem:[%s3077_s28 + $0x20] ss:$8 sps:$4 sm:$0xff]   ;;  %973 = vmatprep.mubr.bf16.mxu0 %v2938_v52  ;;  %s3455_s27 = sld [smem:[#allocation7_spill]]  ;;  %s3456_s28 = sld [smem:[#allocation12_spill]]  ;;  %v3178_v7 = vshrl.u32 %v797_v6, 7 }
 0x178   : > { %834 = vadd.xlane.f32.xlu0 %v833_v32  ;;  %s3458_s26 = sld [smem:[#allocation13_spill]]  ;;  %vm992_vm4 = vcmask 130048   ;;  %s2939_s23 = smov 64   ;;  %vm1108_vm5 = vcmask 1041408   ;;  %vm2943_vm7 = vmmov 1  }
 0x179   : > { %v890_v8 = vsub.s32 0, %v3178_v7  ;;  %v894_v10 = vsub.s32 1, %v3178_v7  ;;  %s2940_s7 = smov 112   ;;  %s2941_s24 = smov 32   ;;  %vm3208_vm6 = vmpackc.low %vm992_vm4, %vm992_vm4  ;;  %vm814_vm10 = vcmp.ge.s32.totalorder %v3178_v7, 5  ;;  %vm804_vm11 = vcmp.lt.s32.totalorder %v3178_v7, 5 }
 0x17a   : > { %v3148_v31 = vld [vmem:[#allocation2 + $0x8] sm:$0x3]  ;;  %944 = vmatpush1.bf16.msra.mxu0 %v2820_v47  ;;  %vm3212_vm8 = vmpackc.low %vm1108_vm5, %vm2943_vm7  ;;  %s2945_s25 = smov 48   ;;  %s2946_s1 = smov 16  }
 0x17b   : > { %v837_v33 = vsel %vm3435_vm3, %v3148_v31, 0.0  ;;  %945 = vmatprep.subr.bf16.mxu0 %v2821_v48  ;;  %p2278_p12 = scmp.eq.s32.totalorder %s3054_s17, 3  ;;  %p2280_p0 = scmp.eq.s32.totalorder %s3054_s17, 6 }
 0x17c   : > { %838 = vadd.xlane.f32.xlu0 %v837_v33  ;;  %v2830_v33 = vld [vmem:[%s3092_s2 + $0x18] sm:$0xff]   ;;  %p2282_p2 = scmp.eq.s32.totalorder %s3054_s17, 9 }
 0x17d   : > { %s3457_s4 = scalar_lea.vmem %s3456_s28, %s3061_s3  ;;  %v886_v9 = vld [vmem:[%s3455_s27] sm:$0x3]  ;;  %s2942_s27 = smov 96  }
 0x17e   : > { %946 = vmatpush1.bf16.msra.mxu0 %v2823_v49  ;;  %v2481_v61 = vld [vmem:[%s3457_s4] ss:$0 sm:$0xff]  ;;  %s3459_s22 = scalar_lea.vmem %s3458_s26, %s3061_s3  ;;  %v891_v11 = vrot.slane %v886_v9, %v890_v8  ;;  %v895_v13 = vrot.slane %v886_v9, %v894_v10  ;;  %s2947_s28 = smov 80  }
 0x17f   : > { %947 = vmatprep.subr.bf16.mxu0 %v2824_v50  ;;  %v2482_v1 = vld [vmem:[%s3459_s22] ss:$0 sm:$0xff]  ;;  %p2279_p13 = por %p2278_p12, %p740_p9 }
 0x181   : > { %p2281_p1 = por %p2280_p0, %p2279_p13 }
 0x182   : > { %948 = vmatpush1.bf16.msra.mxu0 %v2826_v51 }
 0x183   : > { %p3392_p3 = por %p2282_p2, %p2281_p1 }
 0x205   : > { %v835_v34 = vpop.xlane.xlu0 %834 }
 0x206   : > { %v841_v35 = vmul.f32 0.015625, %v835_v34  ;;  %v801_v34 = vand.u32 127, %v797_v6 }
 0x208   : > { %v843_v36 = vsub.f32 %v3146_v30, %v841_v35  ;;  %vm820_vm9 = vcmp.ge.s32.totalorder %v801_v34, 5  ;;  %v799_v35 = vadd.s32 8, %v3178_v7  ;;  %vm811_vm12 = vcmp.lt.s32.totalorder %v801_v34, 5 }
 0x209   : > { %v839_v37 = vpop.xlane.xlu0 %838  ;;  %vm823_vm13 = vcmp.lt.s32.totalorder %v801_v34, 10  ;;  %vm821_vm14 = vmand %vm814_vm10, %vm820_vm9  ;;  %vm1082_vm10 = vcmask 74752  }
 0x20a   : > { %v842_v38 = vmul.f32 0.015625, %v839_v37  ;;  %v845_v39 = vmul.f32 %v843_v36, %v843_v36  ;;  %vm817_vm15 = vcmp.lt.s32.totalorder %v799_v35, 10  ;;  %vm812_vm0 = vmand %vm804_vm11, %vm811_vm12 }
 0x20b   : > { %vm824_vm1 = vmand %vm821_vm14, %vm823_vm13 }
 0x20c   : > { %v844_v40 = vsub.f32 %v3148_v31, %v842_v38  ;;  %v847_v41 = vsel %vm3436_vm2, %v845_v39, 0.0  ;;  %vm822_vm5 = vmand %vm817_vm15, %vm820_vm9  ;;  %vm3467_vm9 = vcmask 517120  }
 0x20d   : > { %848 = vadd.xlane.f32.xlu1 %v847_v41  ;;  %vm826_vm7 = vmor %vm812_vm0, %vm824_vm1  ;;  %vm3475_vm0 = vcmask (%p3392_p3), 523264   ;;  %vm3476_vm1 = vcmask (%p3392_p3), 517120  }
 0x20e   : > { %v846_v42 = vmul.f32 %v844_v40, %v844_v40  ;;  %vm3469_vm12 = vmmov %vm3467_vm9 }
 0x20f   : > { %vm3474_vm15 = vmmov %vm3467_vm9 }
 0x210   : > { %v850_v43 = vsel %vm3435_vm3, %v846_v42, 0.0  ;;  %vm825_vm3 = vmand %vm822_vm5, %vm823_vm13 }
 0x211   : > { %851 = vadd.xlane.f32.xlu1 %v850_v43 }
 0x29a   : > { %v849_v53 = vpop.xlane.xlu1 %848 }
 0x29b   : > { %v853_v54 = vmul.f32 0.015625, %v849_v53 }
 0x29d   : > { %v855_v55 = vadd.f32 1e-05, %v853_v54 }
 0x29e   : > { %v852_v56 = vpop.xlane.xlu1 %851 }
 0x29f   : > { %2859 = vrsqrt.f32 %v855_v55  ;;  %v854_v57 = vmul.f32 0.015625, %v852_v56 }
 0x2a1   : > { %v856_v58 = vadd.f32 1e-05, %v854_v57 }
 0x2a3   : > { %2861 = vrsqrt.f32 %v856_v58 }
 0x2a9   : > { %v2860_v59 = vpop.eup %2859 }
 0x2aa   : > { %v859_v60 = vmul.f32 %v2860_v59, %v843_v36  ;;  %v2944_v36 = vmov -1e+30  }
 0x2ab   : > { %v3229_v37 = vsel %vm826_vm7, 0.0, %v2944_v36  ;;  %v3231_v39 = vsel %vm825_vm3, 0.0, %v2944_v36  ;;  %vm2949_vm3 = vmmov 0  }
 0x2ac   : > { %v867_v0 = vmul.f32 %v2481_v61, %v859_v60 }
 0x2ad   : > { %v2862_v62 = vpop.eup %2861 }
 0x2ae   : > { %v860_v63 = vmul.f32 %v2862_v62, %v844_v40  ;;  %v875_v3 = vadd.f32 %v2482_v1, %v867_v0 }
 0x2b0   : > { %v868_v2 = vmul.f32 %v2481_v61, %v860_v63 }
 0x2b2   : > { %v876_v4 = vadd.f32 %v2482_v1, %v868_v2 }
 0x2b4   : > { %v877_v5 = vpack.c.bf16 %v876_v4, %v875_v3 }
 0x2b6   : > { %2491 = vmatmul.mubr.msk.bf16.vlgmr.msra.gmra.mrb[0].mxu0 %vm3436_vm2, %v877_v5  ;;  %vm1078_vm2 = vcmask 80896  }
 0x389   : > { %v975_v12 = vpop.f32.mrb[0].mxu0 }
 0x38a   : > { %v976_v14 = vadd.f32 %v975_v12, %v891_v11  ;;  %v977_v15 = vpop.f32.mrb[1].mxu0 }
 0x38b   : > { %v979_v16 = vpop.f32.mrb[2].mxu0  ;;  %v978_v20 = vadd.f32 %v977_v15, %v895_v13 }
 0x38c   : > { %v980_v17 = vadd.f32 %v979_v16, %v891_v11  ;;  %v981_v18 = vpop.f32.mrb[3].mxu0  ;;  %v3187_v19 = vmul.f32 0.25, %v976_v14 }
 0x38d   : > { %v982_v21 = vadd.f32 %v981_v18, %v895_v13 }
 0x38e   : > { %2628 = vmatprep.mubr.msk.f32.mxu1 %vm992_vm4, %v3187_v19  ;;  %v3191_v22 = vpack.i.bf16 %v980_v17, %v976_v14  ;;  %v3200_v25 = vmul.f32 0.25, %v980_v17 }
 0x38f   : > { %v2698_v23 = vpack.c.bf16 %v982_v21, %v978_v20  ;;  %v3193_v24 = vpack.i.bf16 %v982_v21, %v978_v20 }
 0x390   : > { %2766 = vrot.lane.b32.xlu0 %v3191_v22, %s2939_s23 }
 0x394   : > { %1187 = vrot.lane.b32.xlu0 %v3187_v19, %s2940_s7 }
 0x398   : > { %2776 = vrot.lane.b32.xlu0 %v3191_v22, %s2941_s24 }
 0x39c   : > { %1189 = vrot.lane.b32.xlu0 %v3200_v25, %s2940_s7 }
 0x3a0   : > { %1391 = vrot.lane.b32.xlu0 %v3200_v25, %s2942_s27 }
 0x402   : > { %v2767_v26 = vpop.permute.xlu0 %2766 }
 0x403   : > { %v2769_v27 = vunpack.i.h.bf16 %v2767_v26  ;;  %v2768_v28 = vunpack.i.l.bf16 %v2767_v26 }
 0x405   : > { %v2692_v32 = vpack.c.bf16 %v2769_v27, %v2768_v28 }
 0x406   : > { %v1188_v58 = vpop.permute.xlu0 %1187 }
 0x407   : > { %2694 = vmatprep.subr.msk.bf16.mxu1 %vm3208_vm6, %v2692_v32 }
 0x408   : > { %2697 = vmatpush3.bf16.xpose.msk.msra.mxu1 %vm3208_vm6, %v2692_v32 }
 0x409   : > { %2700 = vmatprep.subr.msk.bf16.mxu1 %vm3212_vm8, %v2698_v23 }
 0x40a   : > { %v2777_v63 = vpop.permute.xlu0 %2776 }
 0x40b   : > { %v2779_v2 = vunpack.i.h.bf16 %v2777_v63  ;;  %v2778_v3 = vunpack.i.l.bf16 %v2777_v63 }
 0x40d   : > { %v2716_v6 = vpack.c.bf16 %v2779_v2, %v2778_v3 }
 0x40e   : > { %v1190_v9 = vpop.permute.xlu0 %1189 }
 0x40f   : > { %2629 = vmatmul.mubr.msk.f32.vlgmr.msra.gmra.mrb[0].mxu1 %vm992_vm4, %v3200_v25 }
 0x410   : > { %2703 = vmatpush3.bf16.msk.msra.mxu1 %vm3212_vm8, %v2698_v23 }
 0x412   : > { %v1392_v12 = vpop.permute.xlu0 %1391 }
 0x4e2   : > { %v2630_v38 = vpop.f32.mrb[0].mxu1 }
 0x4e3   : > { %v1069_v40 = vpop.f32.mrb[1].mxu1  ;;  %v1075_v42 = vadd.f32 %v2630_v38, %v3231_v39 }
 0x4e4   : > { %v1070_v41 = vadd.f32 %v1069_v40, %v3229_v37 }
 0x4e5   : > { %v1083_v44 = vsel %vm1082_vm10, %v1075_v42, -inf }
 0x4e6   : > { %v1079_v43 = vsel %vm1078_vm2, %v1070_v41, -inf }
 0x4e7   : > { %1080 = vmax.xlane.f32.xlu1 %v1079_v43 }
 0x4eb   : > { %1084 = vmax.xlane.f32.xlu1 %v1083_v44 }
 0x574   : > { %v1081_v45 = vpop.xlane.xlu1 %1080 }
 0x575   : > { %v1086_v46 = vsub.f32 %v1070_v41, %v1081_v45 }
 0x577   : > { %v1088_v49 = vmul.f32 1.442695, %v1086_v46 }
 0x578   : > { %v1085_v47 = vpop.xlane.xlu1 %1084 }
 0x579   : > { %v1087_v48 = vsub.f32 %v1075_v42, %v1085_v47 }
 0x57b   : > { %v1090_v50 = vmul.f32 1.442695, %v1087_v48 }
 0x57d   : > { %2863 = vpow2.f32 %v1090_v50 }
 0x57e   : > { %2865 = vpow2.f32 %v1088_v49 }
 0x587   : > { %v2864_v51 = vpop.eup %2863 }
 0x588   : > { %v1095_v53 = vsel %vm1082_vm10, %v2864_v51, 0.0  ;;  %v2866_v54 = vpop.eup %2865 }
 0x589   : > { %1096 = vadd.xlane.f32.xlu1 %v1095_v53  ;;  %v1092_v55 = vsel %vm1078_vm2, %v2866_v54, 0.0 }
 0x58d   : > { %1093 = vadd.xlane.f32.xlu1 %v1092_v55 }
 0x59e   : > { %2771 = vrot.lane.b32.xlu1 %v3191_v22, %s2945_s25 }
 0x5a2   : > { %1389 = vrot.lane.b32.xlu1 %v3187_v19, %s2942_s27 }
 0x616   : > { %v1097_v56 = vpop.xlane.xlu1 %1096 }
 0x617   : > { %2867 = vrcp.f32 %v1097_v56 }
 0x61a   : > { %v1094_v57 = vpop.xlane.xlu1 %1093 }
 0x61b   : > { %2869 = vrcp.f32 %v1094_v57 }
 0x61e   : > { %v2772_v59 = vpop.permute.xlu1 %2771 }
 0x61f   : > { %v2774_v60 = vunpack.i.h.bf16 %v2772_v59  ;;  %v2773_v61 = vunpack.i.l.bf16 %v2772_v59 }
 0x621   : > { %v2704_v62 = vpack.c.bf16 %v2774_v60, %v2773_v61  ;;  %v2868_v0 = vpop.eup %2867 }
 0x622   : > { %v1101_v5 = vmul.f32 %v2868_v0, %v2864_v51  ;;  %v1390_v11 = vpop.permute.xlu1 %1389 }
 0x623   : > { %2706 = vmatprep.subr.msk.bf16.mxu1 %vm3208_vm6, %v2704_v62 }
 0x625   : > { %v2870_v1 = vpop.eup %2869 }
 0x626   : > { %v1100_v4 = vmul.f32 %v2870_v1, %v2866_v54 }
 0x628   : > { %2635 = vmatprep.mubr.msk.f32.mxu1 %vm1078_vm2, %v1100_v4 }
 0x629   : > { %2636 = vmatmul.mubr.msk.f32.vlgmr.msra.gmra.mrb[2].mxu1 %vm1078_vm2, %v1101_v5 }
 0x62a   : > { %2709 = vmatpush3.bf16.xpose.msk.msra.mxu1 %vm3208_vm6, %v2704_v62  ;;  %2642 = vmatprep.mubr.msk.f32.mxu1 %vm992_vm4, %v1188_v58 }
 0x62b   : > { %2718 = vmatprep.subr.msk.bf16.mxu1 %vm3208_vm6, %v2716_v6 }
 0x631   : > { %2643 = vmatmul.mubr.msk.f32.vlgmr.msra.gmra.mrb[4].mxu1 %vm992_vm4, %v1190_v9 }
 0x632   : > { %2721 = vmatpush3.bf16.xpose.msk.msra.mxu1 %vm3208_vm6, %v2716_v6  ;;  %2656 = vmatprep.mubr.msk.f32.mxu1 %vm992_vm4, %v1390_v11 }
 0x639   : > { %2657 = vmatmul.mubr.msk.f32.vlgmr.msra.gmra.mrb[6].mxu1 %vm992_vm4, %v1392_v12 }
 0x6fc   : > { %v3257_v13 = vpop.f32.mrb[2].mxu1 }
 0x6fd   : > { %v3259_v14 = vpop.f32.mrb[3].mxu1 }
 0x704   : > { %v2644_v15 = vpop.f32.mrb[4].mxu1 }
 0x705   : > { %v1275_v16 = vadd.f32 %v2644_v15, %v3231_v39  ;;  %v1269_v17 = vpop.f32.mrb[5].mxu1 }
 0x706   : > { %v1270_v18 = vadd.f32 %v1269_v17, %v3229_v37 }
 0x707   : > { %v1281_v20 = vsel %vm1082_vm10, %v1275_v16, -inf }
 0x708   : > { %1282 = vmax.xlane.f32.xlu0 %v1281_v20  ;;  %v1278_v21 = vsel %vm1078_vm2, %v1270_v18, -inf }
 0x709   : > { %1279 = vmax.xlane.f32.xlu1 %v1278_v21 }
 0x70c   : > { %v2658_v23 = vpop.f32.mrb[6].mxu1 }
 0x70d   : > { %v1471_v26 = vpop.f32.mrb[7].mxu1  ;;  %v1477_v28 = vadd.f32 %v2658_v23, %v3231_v39 }
 0x70e   : > { %v1472_v27 = vadd.f32 %v1471_v26, %v3229_v37 }
 0x70f   : > { %v1483_v34 = vsel %vm1082_vm10, %v1477_v28, -inf }
 0x710   : > { %v1480_v32 = vsel %vm1078_vm2, %v1472_v27, -inf }
 0x711   : > { %1481 = vmax.xlane.f32.xlu0 %v1480_v32 }
 0x715   : > { %1484 = vmax.xlane.f32.xlu0 %v1483_v34 }
 0x71a   : > { %2781 = vrot.lane.b32.xlu1 %v3193_v24, %s2940_s7 }
 0x795   : > { %v1283_v35 = vpop.xlane.xlu0 %1282 }
 0x796   : > { %v1285_v36 = vsub.f32 %v1275_v16, %v1283_v35  ;;  %v1280_v38 = vpop.xlane.xlu1 %1279 }
 0x797   : > { %v1284_v40 = vsub.f32 %v1270_v18, %v1280_v38 }
 0x798   : > { %v1288_v41 = vmul.f32 1.442695, %v1285_v36 }
 0x799   : > { %v1286_v42 = vmul.f32 1.442695, %v1284_v40 }
 0x79a   : > { %2871 = vpow2.f32 %v1288_v41  ;;  %v2782_v43 = vpop.permute.xlu1 %2781 }
 0x79b   : > { %2873 = vpow2.f32 %v1286_v42  ;;  %v2784_v44 = vunpack.i.h.bf16 %v2782_v43  ;;  %v2783_v45 = vunpack.i.l.bf16 %v2782_v43 }
 0x79d   : > { %v2710_v46 = vpack.c.bf16 %v2784_v44, %v2783_v45 }
 0x79e   : > { %v1482_v47 = vpop.xlane.xlu0 %1481 }
 0x79f   : > { %2712 = vmatprep.subr.msk.bf16.mxu0 %vm3212_vm8, %v2710_v46  ;;  %v1486_v58 = vsub.f32 %v1472_v27, %v1482_v47 }
 0x7a0   : > { %2715 = vmatpush3.bf16.msk.msra.mxu0 %vm3212_vm8, %v2710_v46 }
 0x7a1   : > { %v1488_v59 = vmul.f32 1.442695, %v1486_v58 }
 0x7a2   : > { %v1485_v48 = vpop.xlane.xlu0 %1484 }
 0x7a3   : > { %v1487_v49 = vsub.f32 %v1477_v28, %v1485_v48 }
 0x7a4   : > { %v2872_v50 = vpop.eup %2871 }
 0x7a5   : > { %v2874_v51 = vpop.eup %2873  ;;  %v1490_v53 = vmul.f32 1.442695, %v1487_v49  ;;  %v1293_v54 = vsel %vm1082_vm10, %v2872_v50, 0.0 }
 0x7a6   : > { %1294 = vadd.xlane.f32.xlu0 %v1293_v54  ;;  %v1290_v55 = vsel %vm1078_vm2, %v2874_v51, 0.0 }
 0x7a7   : > { %2875 = vpow2.f32 %v1490_v53  ;;  %1291 = vadd.xlane.f32.xlu1 %v1290_v55 }
 0x7a8   : > { %2877 = vpow2.f32 %v1488_v59 }
 0x7b1   : > { %v2876_v56 = vpop.eup %2875 }
 0x7b2   : > { %v1495_v57 = vsel %vm1082_vm10, %v2876_v56, 0.0  ;;  %v2878_v60 = vpop.eup %2877 }
 0x7b3   : > { %1496 = vadd.xlane.f32.xlu0 %v1495_v57  ;;  %v1492_v61 = vsel %vm1078_vm2, %v2878_v60, 0.0 }
 0x7b8   : > { %2791 = vrot.lane.b32.xlu1 %v3191_v22, %s2946_s1 }
 0x7bc   : > { %1590 = vrot.lane.b32.xlu1 %v3187_v19, %s2947_s28 }
 0x7c9   : > { %2786 = vrot.lane.b32.xlu0 %v3193_v24, %s2942_s27 }
 0x7e0   : > { %1493 = vadd.xlane.f32.xlu1 %v1492_v61  ;;  %v2827_v61 = vld [vmem:[%s3092_s2] sm:$0xff]  }
 0x7f1   : > { %1592 = vrot.lane.b32.xlu1 %v3200_v25, %s2947_s28 }
 0x833   : > { %v1295_v62 = vpop.xlane.xlu0 %1294 }
 0x834   : > { %2879 = vrcp.f32 %v1295_v62  ;;  %v1292_v22 = vpop.xlane.xlu1 %1291  ;;  %v2948_v62 = vmov 0.0  }
 0x835   : > { %2881 = vrcp.f32 %v1292_v22  ;;  %v2828_v22 = vld [vmem:[%s3092_s2 + $0x8] sm:$0xff]  }
 0x838   : > { %v2792_v3 = vpop.permute.xlu1 %2791 }
 0x839   : > { %v2794_v5 = vunpack.i.h.bf16 %v2792_v3  ;;  %v2793_v6 = vunpack.i.l.bf16 %v2792_v3 }
 0x83b   : > { %v2728_v12 = vpack.c.bf16 %v2794_v5, %v2793_v6 }
 0x83c   : > { %v1591_v15 = vpop.permute.xlu1 %1590 }
 0x83e   : > { %v2880_v63 = vpop.eup %2879 }
 0x83f   : > { %v2882_v0 = vpop.eup %2881  ;;  %v1299_v2 = vmul.f32 %v2880_v63, %v2872_v50  ;;  %v2829_v63 = vld [vmem:[%s3092_s2 + $0x10] sm:$0xff]  }
 0x840   : > { %v1497_v19 = vpop.xlane.xlu0 %1496  ;;  %v1298_v1 = vmul.f32 %v2882_v0, %v2874_v51 }
 0x841   : > { %2883 = vrcp.f32 %v1497_v19 }
 0x842   : > { %2649 = vmatprep.mubr.msk.f32.mxu0 %vm1078_vm2, %v1298_v1 }
 0x843   : > { %2650 = vmatmul.mubr.msk.f32.vlgmr.msra.gmra.mrb[4].mxu0 %vm1078_vm2, %v1299_v2 }
 0x844   : > { %v2787_v4 = vpop.permute.xlu0 %2786 }
 0x845   : > { %v2789_v9 = vunpack.i.h.bf16 %v2787_v4  ;;  %v2788_v11 = vunpack.i.l.bf16 %v2787_v4 }
 0x847   : > { %v2722_v25 = vpack.c.bf16 %v2789_v9, %v2788_v11 }
 0x849   : > { %2724 = vmatprep.subr.msk.bf16.mxu0 %vm3212_vm8, %v2722_v25 }
 0x84a   : > { %2727 = vmatpush3.bf16.msk.msra.mxu0 %vm3212_vm8, %v2722_v25 }
 0x84b   : > { %2730 = vmatprep.subr.msk.bf16.mxu0 %vm3208_vm6, %v2728_v12  ;;  %v2884_v17 = vpop.eup %2883 }
 0x84c   : > { %v1501_v21 = vmul.f32 %v2884_v17, %v2876_v56 }
 0x86d   : > { %v1494_v16 = vpop.xlane.xlu1 %1493 }
 0x86e   : > { %2885 = vrcp.f32 %v1494_v16 }
 0x871   : > { %v1593_v23 = vpop.permute.xlu1 %1592 }
 0x878   : > { %v2886_v18 = vpop.eup %2885 }
 0x879   : > { %v1500_v20 = vmul.f32 %v2886_v18, %v2878_v60 }
 0x87b   : > { %2663 = vmatprep.mubr.msk.f32.mxu0 %vm1078_vm2, %v1500_v20 }
 0x87c   : > { %2664 = vmatmul.mubr.msk.f32.vlgmr.msra.gmra.mrb[6].mxu0 %vm1078_vm2, %v1501_v21 }
 0x87d   : > { %2733 = vmatpush3.bf16.xpose.msk.msra.mxu0 %vm3208_vm6, %v2728_v12  ;;  %2670 = vmatprep.mubr.msk.f32.mxu0 %vm992_vm4, %v1591_v15  ;;  %vm1820_vm6 = vcmask 392192  }
 0x87e   : > { %2680 = vmatprep.subr.bf16.mxu0 %v2948_v62 }
 0x884   : > { %2671 = vmatmul.mubr.msk.f32.vlgmr.msra.gmra.mrb[8].mxu0 %vm992_vm4, %v1593_v23 }
 0x885   : > { %2681 = vmatpush3.bf16.msra.mxu0 %v2827_v61  ;;  %2688 = vmatprep.mubr.msk.bf16.mxu0 %vm2949_vm3, %v2948_v62 }
 0x886   : > { %2682 = vmatprep.subr.bf16.mxu0 %v2948_v62 }
 0x889   : > { %2683 = vmatpush3.bf16.msra.mxu0 %v2828_v22 }
 0x88a   : > { %2684 = vmatprep.subr.bf16.mxu0 %v2948_v62 }
 0x88d   : > { %2685 = vmatpush3.bf16.msra.mxu0 %v2829_v63 }
 0x88e   : > { %2686 = vmatprep.subr.bf16.mxu0 %v2948_v62 }
 0x891   : > { %2687 = vmatpush3.bf16.msra.mxu0 %v2830_v33  ;;  %v2527_v33 = vld [vmem:[%s714_s29] ss:$0 sm:$0xff] }
 0x916   : > { %v2651_v26 = vpop.f32.mrb[4].mxu0 }
 0x917   : > { %v1380_v27 = vpop.f32.mrb[5].mxu0 }
 0x918   : > { %v2800_v28 = vpack.i.bf16 %v2651_v26, %v1380_v27 }
 0x94f   : > { %v2665_v32 = vpop.f32.mrb[6].mxu0 }
 0x950   : > { %v1581_v34 = vpop.f32.mrb[7].mxu0 }
 0x951   : > { %v2805_v35 = vpack.i.bf16 %v2665_v32, %v1581_v34 }
 0x957   : > { %v2672_v36 = vpop.f32.mrb[8].mxu0 }
 0x958   : > { %v1678_v38 = vadd.f32 %v2672_v36, %v3231_v39  ;;  %v1672_v40 = vpop.f32.mrb[9].mxu0 }
 0x959   : > { %v1673_v41 = vadd.f32 %v1672_v40, %v3229_v37 }
 0x95a   : > { %v1684_v29 = vsel %vm1082_vm10, %v1678_v38, -inf }
 0x95b   : > { %1685 = vmax.xlane.f32.xlu1 %v1684_v29  ;;  %v1681_v42 = vsel %vm1078_vm2, %v1673_v41, -inf }
 0x95c   : > { %1682 = vmax.xlane.f32.xlu0 %v1681_v42 }
 0x96c   : > { %2801 = vrot.lane.b32.xlu1 %v2800_v28, %s2946_s1 }
 0x970   : > { %2806 = vrot.lane.b32.xlu1 %v2805_v35, %s2941_s24 }
 0x9e8   : > { %v1686_v43 = vpop.xlane.xlu1 %1685 }
 0x9e9   : > { %v1688_v44 = vsub.f32 %v1678_v38, %v1686_v43  ;;  %v1683_v45 = vpop.xlane.xlu0 %1682 }
 0x9ea   : > { %v1687_v46 = vsub.f32 %v1673_v41, %v1683_v45 }
 0x9eb   : > { %v1691_v47 = vmul.f32 1.442695, %v1688_v44 }
 0x9ec   : > { %v1689_v48 = vmul.f32 1.442695, %v1687_v46  ;;  %v2802_v2 = vpop.permute.xlu1 %2801 }
 0x9ed   : > { %2887 = vpow2.f32 %v1691_v47  ;;  %v2804_v4 = vunpack.i.h.bf16 %v2802_v2  ;;  %v2803_v5 = vunpack.i.l.bf16 %v2802_v2  ;;  %v2833_v47 = vld [vmem:[%s3105_s0 + $0x4] ss:$8 sps:$4 sm:$0xff]  }
 0x9ee   : > { %2889 = vpow2.f32 %v1689_v48  ;;  %v2831_v48 = vld [vmem:[%s3105_s0] ss:$8 sps:$4 sm:$0xff]   ;;  %2019 = vmatprep.subr.bf16.mxu0 %v2833_v47 }
 0x9ef   : > { %v1816_v25 = vsel %vm992_vm4, %v3257_v13, %v2804_v4  ;;  %v1815_v12 = vsel %vm992_vm4, %v3259_v14, %v2803_v5  ;;  %v2525_v13 = vld [vmem:[%s3465_s16] ss:$0 sm:$0xff]  ;;  %v2845_v5 = vld [vmem:[%s3116_s5 + $0x48] sm:$0xff]  }
 0x9f0   : > { %v2807_v3 = vpop.permute.xlu1 %2806  ;;  %v2844_v4 = vld [vmem:[%s3116_s5] sm:$0xff]  }
 0x9f1   : > { %v2809_v6 = vunpack.i.h.bf16 %v2807_v3  ;;  %v2808_v9 = vunpack.i.l.bf16 %v2807_v3  ;;  %v2843_v3 = vld [vmem:[%s3116_s5 + $0x40] sm:$0xff]  }
 0x9f7   : > { %v2888_v39 = vpop.eup %2887 }
 0x9f8   : > { %v1696_v37 = vsel %vm1082_vm10, %v2888_v39, 0.0  ;;  %v2890_v49 = vpop.eup %2889 }
 0x9f9   : > { %1697 = vadd.xlane.f32.xlu0 %v1696_v37  ;;  %v1693_v50 = vsel %vm1078_vm2, %v2890_v49, 0.0  ;;  %v2834_v37 = vld [vmem:[%s3105_s0 + $0x10] ss:$8 sps:$4 sm:$0xff]  }
 0x9fd   : > { %1694 = vadd.xlane.f32.xlu0 %v1693_v50  ;;  %v2837_v50 = vld [vmem:[%s3105_s0 + $0x20] ss:$8 sps:$4 sm:$0xff]  }
 0xa13   : > { %2796 = vrot.lane.b32.xlu0 %v3193_v24, %s2947_s28 }
 0xa86   : > { %v1698_v51 = vpop.xlane.xlu0 %1697 }
 0xa87   : > { %2891 = vrcp.f32 %v1698_v51  ;;  %v2840_v51 = vld [vmem:[%s3105_s0 + $0x30] ss:$8 sps:$4 sm:$0xff]  }
 0xa8a   : > { %v1695_v53 = vpop.xlane.xlu0 %1694 }
 0xa8b   : > { %2893 = vrcp.f32 %v1695_v53  ;;  %v2842_v53 = vld [vmem:[%s3105_s0 + $0x34] ss:$8 sps:$4 sm:$0xff]  }
 0xa8e   : > { %v2797_v54 = vpop.permute.xlu0 %2796 }
 0xa8f   : > { %v2799_v55 = vunpack.i.h.bf16 %v2797_v54  ;;  %v2798_v56 = vunpack.i.l.bf16 %v2797_v54 }
 0xa91   : > { %v2734_v57 = vpack.c.bf16 %v2799_v55, %v2798_v56  ;;  %v2892_v58 = vpop.eup %2891 }
 0xa92   : > { %v1702_v60 = vmul.f32 %v2892_v58, %v2888_v39  ;;  %v2836_v39 = vld [vmem:[%s3105_s0 + $0x14] ss:$8 sps:$4 sm:$0xff]  }
 0xa93   : > { %2736 = vmatprep.subr.msk.bf16.mxu1 %vm3212_vm8, %v2734_v57 }
 0xa94   : > { %2739 = vmatpush3.bf16.msk.msra.mxu1 %vm3212_vm8, %v2734_v57  ;;  %vm3464_vm8 = vcmask 523264  }
 0xa95   : > { %v2894_v59 = vpop.eup %2893  ;;  %vm3466_vm4 = vmmov %vm3464_vm8  ;;  %2602 = vmatprep.subr.bf16.mxu1 %v2843_v3 }
 0xa96   : > { %v1701_v24 = vmul.f32 %v2894_v59, %v2890_v49  ;;  %vm3468_vm11 = vmmov %vm3466_vm4  ;;  %v2839_v49 = vld [vmem:[%s3105_s0 + $0x24] ss:$8 sps:$4 sm:$0xff]   ;;  %s3470_s0 = scalar_lea.vmem %s3424_s10, %s3061_s3 }
 0xa97   : > { %v2526_v61 = vld [vmem:[%s3470_s0] ss:$0 sm:$0xff]  ;;  %vm3471_vm13 = vmmov %vm3466_vm4 }
 0xa98   : > { %2677 = vmatprep.mubr.msk.f32.mxu1 %vm1078_vm2, %v1701_v24  ;;  %vm3473_vm14 = vmmov %vm3466_vm4 }
 0xa99   : > { %2678 = vmatmul.mubr.msk.f32.vlgmr.msra.gmra.mrb[8].mxu1 %vm1078_vm2, %v1702_v60  ;;  %vm1817_vm2 = vcmask 261120  }
 0xa9a   : > { %v1818_v17 = vsel %vm1817_vm2, %v1815_v12, %v2808_v9  ;;  %v1819_v18 = vsel %vm1817_vm2, %v1816_v25, %v2809_v6  ;;  %2603 = vmatpush3.bf16.msra.mxu1 %v2844_v4  ;;  %v2846_v6 = vld [vmem:[%s3116_s5 + $0x8] sm:$0xff]   ;;  %v2847_v9 = vld [vmem:[%s3116_s5 + $0x50] sm:$0xff]   ;;  %v2849_v25 = vld [vmem:[%s3116_s5 + $0x58] sm:$0xff]  }
 0xa9b   : > { %2604 = vmatprep.subr.bf16.mxu1 %v2845_v5  ;;  %v2850_v12 = vld [vmem:[%s3116_s5 + $0x18] sm:$0xff]  }
 0xa9e   : > { %2605 = vmatpush3.bf16.msra.mxu1 %v2846_v6 }
 0xa9f   : > { %2606 = vmatprep.subr.bf16.mxu1 %v2847_v9 }
 0xb6c   : > { %v2679_v0 = vpop.f32.mrb[8].mxu1 }
 0xb6d   : > { %v1782_v19 = vpop.f32.mrb[9].mxu1 }
 0xb6e   : > { %v2810_v1 = vpack.i.bf16 %v2679_v0, %v1782_v19 }
 0xb70   : > { %2811 = vrot.lane.b32.xlu1 %v2810_v1, %s2945_s25 }
 0xbe2   : > { %v2812_v11 = vpop.permute.xlu1 %2811 }
 0xbe3   : > { %v2814_v15 = vunpack.i.h.bf16 %v2812_v11  ;;  %v2813_v16 = vunpack.i.l.bf16 %v2812_v11  ;;  %v2848_v11 = vld [vmem:[%s3116_s5 + $0x10] sm:$0xff]  }
 0xbe4   : > { %2607 = vmatpush3.bf16.msra.mxu1 %v2848_v11 }
 0xbe5   : > { %v1822_v20 = vsel %vm1820_vm6, %v1819_v18, %v2814_v15  ;;  %v1821_v21 = vsel %vm1820_vm6, %v1818_v17, %v2813_v16  ;;  %2608 = vmatprep.subr.bf16.mxu1 %v2849_v25  ;;  %v2851_v15 = vld [vmem:[%s3116_s5 + $0x60] sm:$0xff]   ;;  %v2853_v17 = vld [vmem:[%s3116_s5 + $0x68] sm:$0xff]  }
 0xbe6   : > { %v1823_v23 = vpack.c.bf16 %v1822_v20, %v1821_v21  ;;  %v2852_v16 = vld [vmem:[%s3116_s5 + $0x20] sm:$0xff]   ;;  %v2854_v18 = vld [vmem:[%s3116_s5 + $0x28] sm:$0xff]   ;;  %v2855_v20 = vld [vmem:[%s3116_s5 + $0x70] sm:$0xff]  }
 0xbe7   : > { %v2856_v21 = vld [vmem:[%s3116_s5 + $0x30] sm:$0xff]  }
 0xbe8   : > { %2689 = vmatmul.mubr.msk.bf16.vlgmr.msra.gmra.mrb[12].mxu0 %vm3464_vm8, %v1823_v23  ;;  %2609 = vmatpush3.bf16.msra.mxu1 %v2850_v12  ;;  %v2857_v23 = vld [vmem:[%s3116_s5 + $0x78] sm:$0xff]  }
 0xbe9   : > { %2051 = vmatprep.mubr.bf16.mxu0 %v2938_v52  ;;  %2020 = vmatpush1.bf16.msra.mxu0 %v2831_v48 }
 0xbea   : > { %2021 = vmatprep.subr.bf16.mxu0 %v2836_v39  ;;  %2610 = vmatprep.subr.bf16.mxu1 %v2851_v15 }
 0xbec   : > { %2611 = vmatpush3.bf16.msra.mxu1 %v2852_v16 }
 0xbed   : > { %2022 = vmatpush1.bf16.msra.mxu0 %v2834_v37  ;;  %2612 = vmatprep.subr.bf16.mxu1 %v2853_v17 }
 0xbee   : > { %2023 = vmatprep.subr.bf16.mxu0 %v2839_v49 }
 0xbf0   : > { %2613 = vmatpush3.bf16.msra.mxu1 %v2854_v18 }
 0xbf1   : > { %2024 = vmatpush1.bf16.msra.mxu0 %v2837_v50  ;;  %2614 = vmatprep.subr.bf16.mxu1 %v2855_v20 }
 0xbf2   : > { %2025 = vmatprep.subr.bf16.mxu0 %v2842_v53 }
 0xbf4   : > { %2615 = vmatpush3.bf16.msra.mxu1 %v2856_v21 }
 0xbf5   : > { %2026 = vmatpush1.bf16.msra.mxu0 %v2840_v51  ;;  %2616 = vmatprep.subr.bf16.mxu1 %v2857_v23 }
 0xcbb   : > { %v1893_v26 = vpop.f32.mrb[12].mxu0 }
 0xcbc   : > { %v1900_v27 = vadd.f32 %v1893_v26, %v3146_v30  ;;  %v2690_v14 = vpop.f32.mrb[13].mxu0  ;;  %v2858_v26 = vld [vmem:[%s3116_s5 + $0x38] sm:$0xff]  }
 0xcbd   : > { %v1896_v28 = vpop.f32.mrb[14].mxu0  ;;  %2617 = vmatpush3.bf16.msra.mxu1 %v2858_v26 }
 0xcbe   : > { %v3334_v32 = vadd.f32 %v2525_v13, %v1900_v27  ;;  %v1901_v34 = vadd.f32 %v1896_v28, %v3148_v31  ;;  %v2691_v35 = vpop.f32.mrb[15].mxu0 }
 0xcc0   : > { %v3337_v36 = vadd.f32 %v2525_v13, %v1901_v34  ;;  %v1913_v52 = vsel %vm3466_vm4, %v3334_v32, 0.0  ;;  %v1964_v13 = vld [vmem:[%s3110_s21] sm:$0x3] }
 0xcc1   : > { %1914 = vadd.xlane.f32.xlu0 %v1913_v52  ;;  %v1969_v27 = vrot.slane %v1964_v13, %v890_v8  ;;  %v1973_v14 = vrot.slane %v1964_v13, %v894_v10 }
 0xcc2   : > { %v1916_v38 = vsel %vm3467_vm9, %v3337_v36, 0.0 }
 0xcc3   : > { %1917 = vadd.xlane.f32.xlu1 %v1916_v38 }
 0xd4e   : > { %v1915_v30 = vpop.xlane.xlu0 %1914 }
 0xd4f   : > { %v1919_v40 = vmul.f32 0.015625, %v1915_v30 }
 0xd50   : > { %v1918_v41 = vpop.xlane.xlu1 %1917 }
 0xd51   : > { %v1921_v31 = vsub.f32 %v3334_v32, %v1919_v40  ;;  %v1920_v29 = vmul.f32 0.015625, %v1918_v41 }
 0xd53   : > { %v1922_v42 = vsub.f32 %v3337_v36, %v1920_v29  ;;  %v1923_v43 = vmul.f32 %v1921_v31, %v1921_v31 }
 0xd55   : > { %v1925_v44 = vsel %vm3468_vm11, %v1923_v43, 0.0  ;;  %v1924_v45 = vmul.f32 %v1922_v42, %v1922_v42 }
 0xd56   : > { %1926 = vadd.xlane.f32.xlu0 %v1925_v44 }
 0xd57   : > { %v1928_v46 = vsel %vm3469_vm12, %v1924_v45, 0.0 }
 0xd5a   : > { %1929 = vadd.xlane.f32.xlu0 %v1928_v46 }
 0xde3   : > { %v1927_v54 = vpop.xlane.xlu0 %1926 }
 0xde4   : > { %v1931_v55 = vmul.f32 0.015625, %v1927_v54 }
 0xde6   : > { %v1933_v56 = vadd.f32 1e-05, %v1931_v55 }
 0xde7   : > { %v1930_v57 = vpop.xlane.xlu0 %1929 }
 0xde8   : > { %2895 = vrsqrt.f32 %v1933_v56  ;;  %v1932_v58 = vmul.f32 0.015625, %v1930_v57 }
 0xdea   : > { %v1934_v59 = vadd.f32 1e-05, %v1932_v58 }
 0xdec   : > { %2897 = vrsqrt.f32 %v1934_v59 }
 0xdf2   : > { %v2896_v24 = vpop.eup %2895 }
 0xdf3   : > { %v1937_v60 = vmul.f32 %v2896_v24, %v1921_v31 }
 0xdf5   : > { %v1945_v22 = vmul.f32 %v2526_v61, %v1937_v60 }
 0xdf6   : > { %v2898_v62 = vpop.eup %2897 }
 0xdf7   : > { %v1938_v63 = vmul.f32 %v2898_v62, %v1922_v42  ;;  %v1953_v19 = vadd.f32 %v2527_v33, %v1945_v22 }
 0xdf9   : > { %v1946_v0 = vmul.f32 %v2526_v61, %v1938_v63 }
 0xdfb   : > { %v1954_v1 = vadd.f32 %v2527_v33, %v1946_v0  ;;  %v2557_v33 = vld [vmem:[%s731_s6] ss:$0 sm:$0xff] }
 0xdfd   : > { %v1955_v2 = vpack.c.bf16 %v1954_v1, %v1953_v19 }
 0xdff   : > { %2536 = vmatmul.mubr.msk.bf16.vlgmr.msra.gmra.mrb[16].mxu0 %vm3471_vm13, %v1955_v2 }
 0xed2   : > { %v2053_v28 = vpop.f32.mrb[16].mxu0 }
 0xed3   : > { %v2054_v34 = vadd.f32 %v2053_v28, %v1969_v27  ;;  %v2055_v35 = vpop.f32.mrb[17].mxu0 }
 0xed4   : > { %v2056_v52 = vadd.f32 %v2055_v35, %v1973_v14  ;;  %v2057_v38 = vpop.f32.mrb[18].mxu0 }
 0xed5   : > { %v2537_v30 = vmul.f32 -1.702, %v2054_v34  ;;  %v2058_v40 = vadd.f32 %v2057_v38, %v1969_v27  ;;  %v2059_v41 = vpop.f32.mrb[19].mxu0 }
 0xed6   : > { %v2538_v31 = vmul.f32 -1.702, %v2056_v52  ;;  %v2060_v29 = vadd.f32 %v2059_v41, %v1973_v14 }
 0xed7   : > { %v2070_v42 = vmul.f32 1.442695, %v2537_v30  ;;  %v2539_v43 = vmul.f32 -1.702, %v2058_v40 }
 0xed8   : > { %v2072_v44 = vmul.f32 1.442695, %v2538_v31  ;;  %v2540_v45 = vmul.f32 -1.702, %v2060_v29 }
 0xed9   : > { %2899 = vpow2.f32 %v2070_v42  ;;  %v2074_v46 = vmul.f32 1.442695, %v2539_v43 }
 0xeda   : > { %2901 = vpow2.f32 %v2072_v44  ;;  %v2076_v8 = vmul.f32 1.442695, %v2540_v45 }
 0xedb   : > { %2903 = vpow2.f32 %v2074_v46 }
 0xedc   : > { %2905 = vpow2.f32 %v2076_v8 }
 0xee3   : > { %v2900_v7 = vpop.eup %2899 }
 0xee4   : > { %v2902_v10 = vpop.eup %2901  ;;  %v2078_v47 = vadd.f32 1.0, %v2900_v7 }
 0xee5   : > { %v2904_v48 = vpop.eup %2903  ;;  %v2079_v39 = vadd.f32 1.0, %v2902_v10 }
 0xee6   : > { %v2906_v37 = vpop.eup %2905  ;;  %2907 = vrcp.f32 %v2078_v47  ;;  %v2080_v49 = vadd.f32 1.0, %v2904_v48 }
 0xee7   : > { %2909 = vrcp.f32 %v2079_v39  ;;  %v2081_v50 = vadd.f32 1.0, %v2906_v37 }
 0xee8   : > { %2911 = vrcp.f32 %v2080_v49 }
 0xee9   : > { %2913 = vrcp.f32 %v2081_v50 }
 0xef0   : > { %v2908_v51 = vpop.eup %2907 }
 0xef1   : > { %v2910_v53 = vpop.eup %2909  ;;  %v2090_v56 = vmul.f32 %v2908_v51, %v2054_v34 }
 0xef2   : > { %v2912_v54 = vpop.eup %2911  ;;  %v2091_v58 = vmul.f32 %v2910_v53, %v2056_v52 }
 0xef3   : > { %v2914_v55 = vpop.eup %2913  ;;  %v2092_v57 = vmul.f32 %v2912_v54, %v2058_v40 }
 0xef4   : > { %v2093_v59 = vmul.f32 %v2914_v55, %v2060_v29 }
 0xef5   : > { %v2094_v24 = vpack.c.bf16 %v2092_v57, %v2090_v56 }
 0xef6   : > { %v2095_v60 = vpack.c.bf16 %v2093_v59, %v2091_v58 }
 0xef8   : > { %2256 = vmatprep.mubr.bf16.mxu1 %v2095_v60 }
 0xef9   : > { %2257 = vmatmul.mubr.bf16.vlgmr.msra.gmra.mrb[12].mxu1 %v2094_v24 }
 0xfcc   : > { %v2618_v61 = vpop.f32.mrb[12].mxu1 }
 0xfcd   : > { %v2619_v62 = vpop.f32.mrb[13].mxu1 }
 0xfce   : > { %v2620_v22 = vadd.f32 %v2619_v62, %v2618_v61  ;;  %v2621_v63 = vpop.f32.mrb[14].mxu1 }
 0xfcf   : > { %v2622_v0 = vpop.f32.mrb[15].mxu1 }
 0xfd0   : > { %v2265_v19 = vadd.f32 %v2620_v22, %v3334_v32  ;;  %v2623_v1 = vadd.f32 %v2622_v0, %v2621_v63  ;;  %2286 = sbr.rel (!%p3392_p3) target bundleno = 4056 (0xfd8), region = 96 }
 0xfd2   : > { %v2274_v2 = vadd.f32 %v2557_v33, %v2265_v19  ;;  %v2266_v3 = vadd.f32 %v2623_v1, %v3337_v36 }
 0xfd4   : > { %2276 = vst.msk [vmem:[#allocation2] sm:$0xff] %vm3473_vm14, %v2274_v2  ;;  %v2275_v4 = vadd.f32 %v2557_v33, %v2266_v3 }
 0xfd5   : > { %2287 = vst.msk [vmem:[%s3125_s30] sm:$0xff] (%p3392_p3), %vm3475_vm0, %v2274_v2 }
 0xfd6   : > { %2277 = vst.msk [vmem:[#allocation2 + $0x8] sm:$0x3] %vm3474_vm15, %v2275_v4 }
 0xfd7   : > { %2288 = vst.msk [vmem:[%s3125_s30 + $0x8] sm:$0x3] %vm3476_vm1, %v2275_v4 }
 0xfd8 PF: > { %s3477_s17 = sld [smem:[#allocation6_spill]] }
 0xfde   : > { %s34_s16 = sadd.s32 1, %s3477_s17  }
 0xfdf   : > { %p31_p4 = scmp.ge.s32.totalorder %s34_s16, 12  }
 0xfe1   :  { %33 = sbr.rel (!%p31_p4) target bundleno = 23 (0x17), region = 159 }

// kernel: clipseg_forward.11
= control target key start
LH: loop header
LB: loop body
LE: loop exit
PB: predicated region body
PF: predicated region fallthrough
CT: control target
= control target key end

     0   :  { %v133_v0 = vmov 0.0|0.0   ;;  %vm134_vm0 = vmmov 0   ;;  %v135_v4 = vmov 0.0   ;;  %vm26_vm1 = vcmask 261120   ;;  %s177_s1 = inlined_call_operand.vmem [shape: f32[32,48], index: 1, kind: input, shape index: {}]   ;;  %s178_s0 = inlined_call_operand.vmem [shape: f32[2,32], index: 0, kind: input, shape index: {}]   ;;  %s179_s2 = inlined_call_operand.vmem [shape: f32[1,48], index: 2, kind: input, shape index: {}]   ;;  %s180_s3 = inlined_call_operand.vmem [shape: f32[2,48], index: 3, kind: output, shape index: {}]  }
   0x1   :  { %124 = vmatprep.subr.bf16.mxu0 %v133_v0  ;;  %v15_v1 = vld [vmem:[%s177_s1] sm:$0xff]  ;;  %v16_v2 = vld [vmem:[%s177_s1 + $0x8] sm:$0xff]  ;;  %v17_v3 = vld [vmem:[%s177_s1 + $0x10] sm:$0xff]  ;;  %121 = vmatprep.mubr.msk.f32.mxu0 %vm134_vm0, %v135_v4  ;;  %vm100_vm2 = vcmask 386048  }
   0x2   :  { %v125_v5 = vpack.c.bf16 %v16_v2, %v15_v1  ;;  %v18_v6 = vld [vmem:[%s177_s1 + $0x18] sm:$0xff]  ;;  %v14_v8 = vld [vmem:[%s178_s0] sm:$0x3] }
   0x3   :  { %v128_v7 = vpack.c.bf16 %v18_v6, %v17_v3  ;;  %v106_v9 = vld [vmem:[%s179_s2] ss:$0 sm:$0xff] }
   0x4   :  { %126 = vmatpush3.bf16.msra.mxu0 %v125_v5 }
   0x5   :  { %127 = vmatprep.subr.bf16.mxu0 %v133_v0 }
   0x8   :  { %129 = vmatpush3.bf16.msra.mxu0 %v128_v7 }
   0xb   :  { %122 = vmatmul.mubr.msk.f32.vlgmr.msra.gmra.mrb[0].mxu0 %vm26_vm1, %v14_v8 }
  0xde   :  { %v96_v10 = vpop.f32.mrb[0].mxu0 }
  0xdf   :  { %v97_v11 = vadd.f32 %v106_v9, %v96_v10  ;;  %v123_v12 = vpop.f32.mrb[1].mxu0 }
  0xe1   :  { %101 = vst.msk [vmem:[%s180_s3] sm:$0x3] %vm100_vm2, %v97_v11 }

// kernel: clipseg_forward.10
= control target key start
LH: loop header
LB: loop body
LE: loop exit
PB: predicated region body
PF: predicated region fallthrough
CT: control target
= control target key end

     0   :  { %s2504_s0 = inlined_call_operand.vmem [shape: s32[2], index: 0, kind: input, shape index: {}]   ;;  %s2505_s1 = inlined_call_operand.vmem [shape: f32[16,32], index: 1, kind: input, shape index: {}]   ;;  %s2506_s2 = inlined_call_operand.vmem [shape: f32[1,32], index: 2, kind: input, shape index: {}]   ;;  %s2507_s3 = inlined_call_operand.vmem [shape: f32[1,32], index: 3, kind: input, shape index: {}]   ;;  %s2508_s4 = inlined_call_operand.vmem [shape: f32[2,1,32], index: 4, kind: input, shape index: {}]   ;;  %s2509_s5 = inlined_call_operand.vmem [shape: f32[2,1,32], index: 5, kind: input, shape index: {}]   ;;  %s2510_s6 = inlined_call_operand.vmem [shape: bf16[2,32,96], index: 6, kind: input, shape index: {}]   ;;  %s2511_s7 = inlined_call_operand.vmem [shape: f32[2,1,96], index: 7, kind: input, shape index: {}]   ;;  %s2512_s8 = inlined_call_operand.vmem [shape: bf16[2,32,32], index: 8, kind: input, shape index: {}]   ;;  %s2513_s9 = inlined_call_operand.vmem [shape: f32[2,1,32], index: 9, kind: input, shape index: {}]   ;;  %s2514_s10 = inlined_call_operand.vmem [shape: f32[2,1,32], index: 10, kind: input, shape index: {}]   ;;  %s2515_s11 = inlined_call_operand.vmem [shape: f32[2,1,32], index: 11, kind: input, shape index: {}]   ;;  %s2516_s12 = inlined_call_operand.vmem [shape: bf16[2,32,128], index: 12, kind: input, shape index: {}]   ;;  %s2517_s13 = inlined_call_operand.vmem [shape: f32[2,1,128], index: 13, kind: input, shape index: {}]   ;;  %s2518_s14 = inlined_call_operand.vmem [shape: bf16[2,128,32], index: 14, kind: input, shape index: {}]   ;;  %s2519_s15 = inlined_call_operand.vmem [shape: f32[2,1,32], index: 15, kind: input, shape index: {}]   ;;  %s2520_s16 = inlined_call_operand.vmem [shape: f32[1,32], index: 16, kind: input, shape index: {}]   ;;  %s2521_s17 = inlined_call_operand.vmem [shape: f32[1,32], index: 17, kind: input, shape index: {}]   ;;  %s2522_s18 = inlined_call_operand.vmem [shape: f32[1,16,32], index: 18, kind: output, shape index: {}]  }
   0x1   :  { %2527 = sst [smem:[#allocation9_spill]] %s2504_s0 }
   0x2   :  { %2528 = sst [smem:[#allocation10_spill]] %s2505_s1  ;;  %s2533_s27 = sld [smem:[#allocation9_spill]] }
   0x3   :  { %2529 = sst [smem:[#allocation11_spill]] %s2510_s6 }
   0x4   :  { %2530 = sst [smem:[#allocation12_spill]] %s2512_s8 }
   0x5   :  { %2531 = sst [smem:[#allocation13_spill]] %s2520_s16 }
   0x6   :  { %2532 = sst [smem:[#allocation14_spill]] %s2521_s17 }
   0x8   :  { %s23_s28 = sshll.u32 %s2533_s27, 4  ;;  %s24_s28 = int_to_ptr.vmem [resolvable:$true] %s23_s28 }
   0x9   :  { %s2128_s29 = scalar_lea.vmem %s24_s28, 16  ;;  %p2133_p1 = scmp.lt.s32.totalorder %s24_s28, %s24_s28 }
   0xa   :  { %p2129_p0 = scmp.ne.s32.totalorder %s24_s28, %s2128_s29  ;;  %p2134_p2 = scmp.lt.s32.totalorder %s2128_s29, %s2128_s29 }
   0xc   :  { %p2135_p3 = por %p2134_p2, %p2133_p1 }
   0xe   :  { %p2136_p4 = pnand %p2135_p3, %p2129_p0 }
  0x10   :  { %2139 = shalt.err (!%p2136_p4)  }
  0x11   :  { %s2150_s0 = smov [#allocation4]  }
  0x12   :  { %26 = dma.vmem_to_smem %s24_s28, 16, %s2150_s0, [#allocation3] }
  0x13   :  { %2144 = dma.done.wait [#allocation3], 16 }
  0x14   :  { %2145 = vsyncadd [#allocation3], 4294967280 }
  0x15   :  { %28 = sfence }
  0x16   :  { %s2258_s30 = smov 0  }
  0x17 LB: > { %2534 = sst [smem:[#allocation6_spill]] %s2148_s30  ;;  %s2264_s1 = sadd.s32 4294967295, %s2148_s30   ;;  %s2148_s30 = sphi %s2258_s30, %s34_s30  }
  0x18   : > { %2535 = sst [smem:[#allocation7_spill]] %s2264_s1  ;;  %p1848_p5 = scmp.ge.s32.totalorder %s2148_s30, 1 }
  0x19   : > { %p590_p6 = scmp.lt.s32.totalorder %s2148_s30, 3 }
  0x1b   : > { %p591_p7 = pnand %p1848_p5, %p590_p6 }
  0x1d   : > { %594 = sbr.rel (%p591_p7) target bundleno = 3459 (0xd83), region = 88 }
  0x24   : > { %p682_p8 = scmp.lt.s32.totalorder %s2264_s1, 1  ;;  %s726_s20 = sld [smem:[#allocation4 + %s2264_s1]] }
  0x25   : > { %s2536_s6 = sld [smem:[#allocation11_spill]]  ;;  %s2537_s8 = sld [smem:[#allocation12_spill]] }
  0x26   : > { %s2270_s19 = scalar_select %p682_p8, %s2264_s1, 1 }
  0x27   : > { %s2539_s16 = sld [smem:[#allocation7_spill]] }
  0x28   : > { %s1904_s25 = sshll.u32 %s2270_s19, 4  ;;  %s706_s2 = scalar_lea.vmem %s2514_s10, %s2270_s19 }
  0x29   : > { %s709_s28 = scalar_lea.vmem %s2515_s11, %s2270_s19  ;;  %s725_s26 = scalar_lea.vmem %s2519_s15, %s2270_s19 }
  0x2a   : > { %p727_p9 = scmp.lt.s32.totalorder %s726_s20, 0 }
  0x2b   : > { %s2289_s30 = scalar_lea.vmem %s2536_s6, %s1904_s25  ;;  %s2294_s1 = scalar_lea.vmem %s2537_s8, %s1904_s25 }
  0x2c   : > { %2538 = sst [smem:[#allocation8_spill]] %s2294_s1  ;;  %s2311_s6 = scalar_lea.vmem %s2516_s12, %s1904_s25 }
  0x2d   : > { %s1907_s1 = sshll.u32 %s2270_s19, 6  ;;  %s2554_s20 = smov (!%p727_p9, %s726_s20), 0 }
  0x2e   : > { %s2321_s23 = scalar_lea.vmem %s2518_s14, %s1907_s1  ;;  %s1908_s27 = sshll.u32 %s2554_s20, 4 }
  0x2f   : > { %s2330_s0 = scalar_lea.vmem %s2522_s18, %s1908_s27  ;;  %p1859_p10 = scmp.ne.s32.totalorder %s2539_s16, 0 }
  0x30   : > { %s2540_s21 = sld [smem:[#allocation10_spill]] (!%p1859_p10)  ;;  %vm740_vm0 = vcmask (!%p1859_p10), 261120  }
  0x31   : > { %737 = sbr.rel (%p1859_p10) target bundleno = 56 (0x38), region = 92 }
  0x36   : > { %v738_v0 = vld [vmem:[%s2540_s21] sm:$0xff] (!%p1859_p10)  ;;  %v739_v1 = vld [vmem:[%s2540_s21 + $0x8] sm:$0xff] (!%p1859_p10) }
  0x37   : > { %741 = vst.msk [vmem:[#allocation2] sm:$0xff] (!%p1859_p10), %vm740_vm0, %v738_v0  ;;  %742 = vst.msk [vmem:[#allocation2 + $0x8] sm:$0xff] (!%p1859_p10), %vm740_vm0, %v739_v1 }
  0x38 PF: > { %vm784_vm1 = vcmask 261120   ;;  %v2078_v16 = vld [vmem:[%s2289_s30] sm:$0xff]   ;;  %v2151_v17 = vmov 0.0   ;;  %v2079_v18 = vld [vmem:[%s2289_s30 + $0x8] sm:$0xff]   ;;  %vm2152_vm2 = vmmov 0   ;;  %s2541_s20 = scalar_lea.vmem %s2508_s4, %s2270_s19  ;;  %s2542_s27 = scalar_lea.vmem %s2509_s5, %s2270_s19  ;;  %vm904_vm3 = vcmask 130048  }
  0x39   : > { %1943 = vmatprep.subr.bf16.mxu1 %v2151_v17  ;;  %1979 = vmatprep.subr.bf16.mxu0 %v2151_v17  ;;  %v1860_v27 = vld [vmem:[%s2541_s20] ss:$0 sm:$0xff]  ;;  %s2543_s16 = scalar_lea.vmem %s2511_s7, %s2270_s19  ;;  %s2153_s17 = smov 96   ;;  %vm2383_vm4 = vmpackc.low %vm904_vm3, %vm904_vm3  ;;  %v745_v51 = vlaneseq  ;;  %v2156_v55 = vmov -1e+30  }
  0x3a   : > { %1944 = vmatpush3.bf16.msra.mxu1 %v2078_v16  ;;  %1947 = vmatprep.mubr.msk.bf16.mxu1 %vm2152_vm2, %v2151_v17  ;;  %v1861_v31 = vld [vmem:[%s2542_s27] ss:$0 sm:$0xff]  ;;  %s2154_s1 = smov 80   ;;  %s2155_s22 = smov 112  }
  0x3b   : > { %1945 = vmatprep.subr.bf16.mxu1 %v2151_v17  ;;  %1983 = vmatprep.mubr.msk.bf16.mxu0 %vm2152_vm2, %v2151_v17  ;;  %v1862_v36 = vld [vmem:[%s2543_s16] ss:$0 sm:$0xff]  ;;  %v746_v52 = vshrl.u32 %v745_v51, 7  ;;  %v749_v53 = vand.u32 127, %v745_v51  ;;  %s2157_s8 = smov 64   ;;  %s2158_s30 = smov 48  }
  0x3c   : > { %s2546_s20 = sld [smem:[#allocation8_spill]]  ;;  %s2159_s3 = smov 16  }
  0x3d   : > { %v747_v54 = vadd.s32 8, %v746_v52  ;;  %vm768_vm5 = vcmp.ge.s32.totalorder %v749_v53, 8  ;;  %vm771_vm6 = vcmp.lt.s32.totalorder %v749_v53, 16  ;;  %vm759_vm7 = vcmp.lt.s32.totalorder %v749_v53, 8  ;;  %s2547_s29 = scalar_lea.vmem %s2513_s9, %s2270_s19 }
  0x3e   : > { %v2339_v2 = vld [vmem:[#allocation2] sm:$0xff]  ;;  %v2341_v3 = vld [vmem:[#allocation2 + $0x8] sm:$0xff]  ;;  %1946 = vmatpush3.bf16.msra.mxu1 %v2079_v18  ;;  %vm776_vm8 = vcmp.le.s32.totalorder %v749_v53, %v746_v52  ;;  %vm773_vm9 = vmand %vm768_vm5, %vm771_vm6 }
  0x3f   : > { %v785_v4 = vsel %vm784_vm1, %v2339_v2, 0.0  ;;  %v788_v5 = vsel %vm784_vm1, %v2341_v3, 0.0  ;;  %vm777_vm10 = vcmp.le.s32.totalorder %v749_v53, %v747_v54  ;;  %vm778_vm11 = vmand %vm759_vm7, %vm776_vm8 }
  0x40   : > { %786 = vadd.xlane.f32.xlu0 %v785_v4  ;;  %vm779_vm12 = vmand %vm773_vm9, %vm777_vm10  ;;  %v780_v56 = vsel %vm778_vm11, 0.0, %v2156_v55 }
  0x41   : > { %v781_v58 = vsel %vm779_vm12, 0.0, %v2156_v55 }
  0x44   : > { %789 = vadd.xlane.f32.xlu0 %v788_v5 }
  0xcd   : > { %v787_v6 = vpop.xlane.xlu0 %786 }
  0xce   : > { %v792_v7 = vmul.f32 0.03125, %v787_v6 }
  0xd0   : > { %v794_v8 = vsub.f32 %v2339_v2, %v792_v7 }
  0xd1   : > { %v790_v9 = vpop.xlane.xlu0 %789 }
  0xd2   : > { %v793_v10 = vmul.f32 0.03125, %v790_v9  ;;  %v796_v11 = vmul.f32 %v794_v8, %v794_v8 }
  0xd4   : > { %v795_v12 = vsub.f32 %v2341_v3, %v793_v10  ;;  %v798_v13 = vsel %vm784_vm1, %v796_v11, 0.0 }
  0xd5   : > { %799 = vadd.xlane.f32.xlu1 %v798_v13 }
  0xd6   : > { %v797_v14 = vmul.f32 %v795_v12, %v795_v12 }
  0xd8   : > { %v801_v15 = vsel %vm784_vm1, %v797_v14, 0.0 }
  0xd9   : > { %802 = vadd.xlane.f32.xlu1 %v801_v15 }
 0x162   : > { %v800_v19 = vpop.xlane.xlu1 %799 }
 0x163   : > { %v804_v20 = vmul.f32 0.03125, %v800_v19 }
 0x165   : > { %v806_v21 = vadd.f32 1e-05, %v804_v20 }
 0x166   : > { %v803_v22 = vpop.xlane.xlu1 %802 }
 0x167   : > { %2092 = vrsqrt.f32 %v806_v21  ;;  %v805_v23 = vmul.f32 0.03125, %v803_v22 }
 0x169   : > { %v807_v24 = vadd.f32 1e-05, %v805_v23 }
 0x16b   : > { %2094 = vrsqrt.f32 %v807_v24 }
 0x171   : > { %v2093_v25 = vpop.eup %2092 }
 0x172   : > { %v810_v26 = vmul.f32 %v2093_v25, %v794_v8 }
 0x174   : > { %v818_v30 = vmul.f32 %v1860_v27, %v810_v26 }
 0x175   : > { %v2095_v28 = vpop.eup %2094 }
 0x176   : > { %v811_v29 = vmul.f32 %v2095_v28, %v795_v12  ;;  %v826_v33 = vadd.f32 %v1861_v31, %v818_v30 }
 0x178   : > { %v819_v32 = vmul.f32 %v1860_v27, %v811_v29 }
 0x17a   : > { %v827_v34 = vadd.f32 %v1861_v31, %v819_v32 }
 0x17c   : > { %v828_v35 = vpack.c.bf16 %v827_v34, %v826_v33 }
 0x17e   : > { %1948 = vmatmul.mubr.msk.bf16.vlgmr.msra.gmra.mrb[0].mxu1 %vm784_vm1, %v828_v35 }
 0x251   : > { %v889_v37 = vpop.f32.mrb[0].mxu1 }
 0x252   : > { %v890_v38 = vadd.f32 %v1862_v36, %v889_v37  ;;  %v1949_v39 = vpop.f32.mrb[1].mxu1 }
 0x253   : > { %v892_v40 = vpop.f32.mrb[2].mxu1 }
 0x254   : > { %v893_v41 = vadd.f32 %v1862_v36, %v892_v40  ;;  %v1950_v42 = vpop.f32.mrb[3].mxu1  ;;  %v896_v43 = vmul.f32 0.25, %v890_v38 }
 0x256   : > { %1955 = vmatprep.mubr.msk.f32.mxu1 %vm904_vm3, %v896_v43  ;;  %v2377_v44 = vpack.i.bf16 %v893_v41, %v890_v38  ;;  %v897_v45 = vmul.f32 0.25, %v893_v41 }
 0x258   : > { %2054 = vrot.lane.b32.xlu0 %v2377_v44, %s2153_s17 }
 0x25c   : > { %2064 = vrot.lane.b32.xlu0 %v2377_v44, %s2154_s1  ;;  %s2548_s1 = scalar_lea.vmem %s2517_s13, %s2270_s19 }
 0x260   : > { %1099 = vrot.lane.b32.xlu0 %v896_v43, %s2155_s22 }
 0x264   : > { %1101 = vrot.lane.b32.xlu0 %v897_v45, %s2155_s22 }
 0x2ca   : > { %v2055_v46 = vpop.permute.xlu0 %2054 }
 0x2cb   : > { %v2057_v47 = vunpack.i.h.bf16 %v2055_v46  ;;  %v2056_v48 = vunpack.i.l.bf16 %v2055_v46 }
 0x2cd   : > { %v2015_v50 = vpack.c.bf16 %v2057_v47, %v2056_v48 }
 0x2ce   : > { %v2065_v14 = vpop.permute.xlu0 %2064 }
 0x2cf   : > { %2017 = vmatprep.subr.msk.bf16.mxu1 %vm2383_vm4, %v2015_v50  ;;  %v2067_v16 = vunpack.i.h.bf16 %v2065_v14  ;;  %v2066_v18 = vunpack.i.l.bf16 %v2065_v14 }
 0x2d0   : > { %2020 = vmatpush3.bf16.xpose.msk.msra.mxu1 %vm2383_vm4, %v2015_v50 }
 0x2d1   : > { %v2025_v22 = vpack.c.bf16 %v2067_v16, %v2066_v18 }
 0x2d2   : > { %v1100_v27 = vpop.permute.xlu0 %1099 }
 0x2d6   : > { %v1102_v28 = vpop.permute.xlu0 %1101 }
 0x2d7   : > { %1956 = vmatmul.mubr.msk.f32.vlgmr.msra.gmra.mrb[4].mxu1 %vm904_vm3, %v897_v45 }
 0x3aa   : > { %v1957_v57 = vpop.f32.mrb[4].mxu1 }
 0x3ab   : > { %v981_v59 = vpop.f32.mrb[5].mxu1  ;;  %v987_v61 = vadd.f32 %v1957_v57, %v781_v58  ;;  %v2080_v57 = vld [vmem:[%s2546_s20] sm:$0xff]  }
 0x3ac   : > { %v982_v60 = vadd.f32 %v981_v59, %v780_v56  ;;  %1980 = vmatpush3.bf16.msra.mxu0 %v2080_v57 }
 0x3ad   : > { %v993_v63 = vsel %vm904_vm3, %v987_v61, -inf  ;;  %1981 = vmatprep.subr.bf16.mxu0 %v2151_v17 }
 0x3ae   : > { %v990_v62 = vsel %vm904_vm3, %v982_v60, -inf }
 0x3af   : > { %991 = vmax.xlane.f32.xlu1 %v990_v62 }
 0x3b3   : > { %994 = vmax.xlane.f32.xlu1 %v993_v63 }
 0x43c   : > { %v992_v0 = vpop.xlane.xlu1 %991 }
 0x43d   : > { %v996_v1 = vsub.f32 %v982_v60, %v992_v0 }
 0x43f   : > { %v998_v6 = vmul.f32 1.442695, %v996_v1 }
 0x440   : > { %v995_v4 = vpop.xlane.xlu1 %994 }
 0x441   : > { %v997_v5 = vsub.f32 %v987_v61, %v995_v4 }
 0x443   : > { %v1000_v7 = vmul.f32 1.442695, %v997_v5 }
 0x445   : > { %2096 = vpow2.f32 %v1000_v7  ;;  %v1881_v7 = vld [vmem:[%s2547_s29] ss:$0 sm:$0xff] }
 0x446   : > { %2098 = vpow2.f32 %v998_v6 }
 0x44f   : > { %v2097_v8 = vpop.eup %2096 }
 0x450   : > { %v1005_v9 = vsel %vm904_vm3, %v2097_v8, 0.0  ;;  %v2099_v10 = vpop.eup %2098 }
 0x451   : > { %1006 = vadd.xlane.f32.xlu1 %v1005_v9  ;;  %v1002_v11 = vsel %vm904_vm3, %v2099_v10, 0.0 }
 0x455   : > { %1003 = vadd.xlane.f32.xlu1 %v1002_v11 }
 0x466   : > { %2059 = vrot.lane.b32.xlu1 %v2377_v44, %s2157_s8  ;;  %s2549_s8 = sld [smem:[#allocation7_spill]] }
 0x46c   : > { %p1899_p11 = scmp.ne.s32.totalorder %s2549_s8, 1 }
 0x46d   : > { %s2551_s24 = sld [smem:[#allocation14_spill]] (!%p1899_p11) }
 0x4de   : > { %v1007_v12 = vpop.xlane.xlu1 %1006 }
 0x4df   : > { %2100 = vrcp.f32 %v1007_v12 }
 0x4e2   : > { %v1004_v13 = vpop.xlane.xlu1 %1003 }
 0x4e3   : > { %2102 = vrcp.f32 %v1004_v13 }
 0x4e6   : > { %v2060_v15 = vpop.permute.xlu1 %2059 }
 0x4e7   : > { %v2062_v19 = vunpack.i.h.bf16 %v2060_v15  ;;  %v2061_v20 = vunpack.i.l.bf16 %v2060_v15 }
 0x4e9   : > { %v2021_v21 = vpack.c.bf16 %v2062_v19, %v2061_v20  ;;  %v2101_v23 = vpop.eup %2100 }
 0x4ea   : > { %v1011_v26 = vmul.f32 %v2101_v23, %v2097_v8 }
 0x4eb   : > { %2022 = vmatprep.subr.bf16.mxu1 %v2021_v21 }
 0x4ec   : > { %2024 = vmatpush3.bf16.msra.mxu1 %v2021_v21 }
 0x4ed   : > { %v2103_v24 = vpop.eup %2102  ;;  %2027 = vmatprep.subr.msk.bf16.mxu1 %vm2383_vm4, %v2025_v22 }
 0x4ee   : > { %v1010_v25 = vmul.f32 %v2103_v24, %v2099_v10 }
 0x4f0   : > { %1962 = vmatprep.mubr.msk.f32.mxu1 %vm904_vm3, %v1010_v25 }
 0x4f1   : > { %1963 = vmatmul.mubr.msk.f32.vlgmr.msra.gmra.mrb[6].mxu1 %vm904_vm3, %v1011_v26  ;;  %v2082_v26 = vld [vmem:[%s2311_s6] sm:$0xff]  }
 0x4f2   : > { %1969 = vmatprep.mubr.msk.f32.mxu1 %vm904_vm3, %v1100_v27  ;;  %v2083_v27 = vld [vmem:[%s2311_s6 + $0x8] sm:$0xff]  }
 0x4f5   : > { %2030 = vmatpush3.bf16.xpose.msk.msra.mxu1 %vm2383_vm4, %v2025_v22 }
 0x4fc   : > { %1970 = vmatmul.mubr.msk.f32.vlgmr.msra.gmra.mrb[8].mxu1 %vm904_vm3, %v1102_v28 }
 0x5c4   : > { %v1964_v29 = vpop.f32.mrb[6].mxu1 }
 0x5c5   : > { %v1090_v30 = vpop.f32.mrb[7].mxu1 }
 0x5cf   : > { %v1971_v31 = vpop.f32.mrb[8].mxu1 }
 0x5d0   : > { %v1187_v32 = vadd.f32 %v1971_v31, %v781_v58  ;;  %v1181_v33 = vpop.f32.mrb[9].mxu1  ;;  %v2081_v58 = vld [vmem:[%s2546_s20 + $0x8] sm:$0xff]  }
 0x5d1   : > { %v1182_v34 = vadd.f32 %v1181_v33, %v780_v56  ;;  %1982 = vmatpush3.bf16.msra.mxu0 %v2081_v58 }
 0x5d2   : > { %v1193_v35 = vsel %vm904_vm3, %v1187_v32, -inf  ;;  %1995 = vmatprep.subr.bf16.mxu0 %v2151_v17 }
 0x5d3   : > { %1194 = vmax.xlane.f32.xlu0 %v1193_v35  ;;  %v1190_v36 = vsel %vm904_vm3, %v1182_v34, -inf  ;;  %v1882_v35 = vld [vmem:[%s706_s2] ss:$0 sm:$0xff] }
 0x5d4   : > { %1191 = vmax.xlane.f32.xlu1 %v1190_v36 }
 0x5e5   : > { %2069 = vrot.lane.b32.xlu1 %v2377_v44, %s2158_s30  ;;  %s2550_s30 = sld [smem:[#allocation13_spill]] (!%p1899_p11) }
 0x660   : > { %v1195_v37 = vpop.xlane.xlu0 %1194 }
 0x661   : > { %v1197_v38 = vsub.f32 %v1187_v32, %v1195_v37  ;;  %v1192_v39 = vpop.xlane.xlu1 %1191 }
 0x662   : > { %v1196_v40 = vsub.f32 %v1182_v34, %v1192_v39 }
 0x663   : > { %v1200_v41 = vmul.f32 1.442695, %v1197_v38 }
 0x664   : > { %v1198_v42 = vmul.f32 1.442695, %v1196_v40  ;;  %v1883_v40 = vld [vmem:[%s709_s28] ss:$0 sm:$0xff] }
 0x665   : > { %v2070_v43 = vpop.permute.xlu1 %2069 }
 0x666   : > { %2104 = vpow2.f32 %v1198_v42  ;;  %v2072_v45 = vunpack.i.h.bf16 %v2070_v43  ;;  %v2071_v46 = vunpack.i.l.bf16 %v2070_v43 }
 0x667   : > { %2106 = vpow2.f32 %v1200_v41 }
 0x668   : > { %v2031_v47 = vpack.c.bf16 %v2072_v45, %v2071_v46  ;;  %v2084_v46 = vld [vmem:[%s2321_s23] sm:$0xff]  }
 0x66a   : > { %2032 = vmatprep.subr.bf16.mxu1 %v2031_v47 }
 0x66b   : > { %2034 = vmatpush3.bf16.msra.mxu1 %v2031_v47  ;;  %v2085_v47 = vld [vmem:[%s2321_s23 + $0x8] sm:$0xff]  }
 0x66c   : > { %1987 = vmatprep.subr.bf16.mxu1 %v2151_v17 }
 0x670   : > { %v2105_v48 = vpop.eup %2104 }
 0x671   : > { %v1202_v49 = vsel %vm904_vm3, %v2105_v48, 0.0  ;;  %v2107_v44 = vpop.eup %2106 }
 0x672   : > { %1203 = vadd.xlane.f32.xlu0 %v1202_v49  ;;  %v1205_v50 = vsel %vm904_vm3, %v2107_v44, 0.0  ;;  %v2087_v49 = vld [vmem:[%s2321_s23 + $0x18] sm:$0xff]  }
 0x676   : > { %1206 = vadd.xlane.f32.xlu0 %v1205_v50  ;;  %v2089_v50 = vld [vmem:[%s2321_s23 + $0x28] sm:$0xff]  }
 0x6ff   : > { %v1204_v51 = vpop.xlane.xlu0 %1203 }
 0x700   : > { %2108 = vrcp.f32 %v1204_v51  ;;  %v2090_v51 = vld [vmem:[%s2321_s23 + $0x30] sm:$0xff]  }
 0x703   : > { %v1207_v52 = vpop.xlane.xlu0 %1206 }
 0x704   : > { %2110 = vrcp.f32 %v1207_v52  ;;  %v2091_v52 = vld [vmem:[%s2321_s23 + $0x38] sm:$0xff]  }
 0x70a   : > { %v2109_v53 = vpop.eup %2108 }
 0x70b   : > { %v1210_v54 = vmul.f32 %v2109_v53, %v2105_v48  ;;  %v2086_v48 = vld [vmem:[%s2321_s23 + $0x10] sm:$0xff]   ;;  %v1884_v53 = vld [vmem:[%s2548_s1] ss:$0 sm:$0xff] }
 0x70d   : > { %1976 = vmatprep.mubr.msk.f32.mxu1 %vm904_vm3, %v1210_v54 }
 0x70e   : > { %v2111_v55 = vpop.eup %2110 }
 0x70f   : > { %v1211_v56 = vmul.f32 %v2111_v55, %v2107_v44  ;;  %v2088_v44 = vld [vmem:[%s2321_s23 + $0x20] sm:$0xff]  }
 0x711   : > { %1977 = vmatmul.mubr.msk.f32.vlgmr.msra.gmra.mrb[10].mxu1 %vm904_vm3, %v1211_v56 }
 0x712   : > { %1991 = vmatprep.mubr.msk.bf16.mxu1 %vm2152_vm2, %v2151_v17  ;;  %1988 = vmatpush3.bf16.msra.mxu1 %v2082_v26 }
 0x713   : > { %1989 = vmatprep.subr.bf16.mxu1 %v2151_v17 }
 0x716   : > { %1990 = vmatpush3.bf16.msra.mxu1 %v2083_v27 }
 0x7e4   : > { %v1978_v59 = vpop.f32.mrb[10].mxu1 }
 0x7e5   : > { %v1290_v60 = vpop.f32.mrb[11].mxu1 }
 0x7e6   : > { %v2073_v61 = vpack.i.bf16 %v1978_v59, %v1290_v60 }
 0x7e8   : > { %2074 = vrot.lane.b32.xlu0 %v2073_v61, %s2159_s3 }
 0x85a   : > { %v2075_v62 = vpop.permute.xlu0 %2074 }
 0x85b   : > { %v2077_v63 = vunpack.i.h.bf16 %v2075_v62  ;;  %v2076_v0 = vunpack.i.l.bf16 %v2075_v62 }
 0x85d   : > { %v1308_v1 = vsel %vm904_vm3, %v1964_v29, %v2077_v63  ;;  %v1307_v4 = vsel %vm904_vm3, %v1090_v30, %v2076_v0 }
 0x85e   : > { %v1309_v5 = vpack.c.bf16 %v1308_v1, %v1307_v4 }
 0x860   : > { %1984 = vmatmul.mubr.msk.bf16.vlgmr.msra.gmra.mrb[0].mxu0 %vm784_vm1, %v1309_v5 }
 0x861   : > { %2011 = vmatprep.mubr.msk.bf16.mxu0 %vm2152_vm2, %v2151_v17  ;;  %1996 = vmatpush3.bf16.msra.mxu0 %v2084_v46 }
 0x862   : > { %1997 = vmatprep.subr.bf16.mxu0 %v2151_v17 }
 0x865   : > { %1998 = vmatpush3.bf16.msra.mxu0 %v2085_v47 }
 0x866   : > { %1999 = vmatprep.subr.bf16.mxu0 %v2151_v17 }
 0x869   : > { %2000 = vmatpush3.bf16.msra.mxu0 %v2086_v48 }
 0x86a   : > { %2001 = vmatprep.subr.bf16.mxu0 %v2151_v17 }
 0x86d   : > { %2002 = vmatpush3.bf16.msra.mxu0 %v2087_v49 }
 0x86e   : > { %2003 = vmatprep.subr.bf16.mxu0 %v2151_v17 }
 0x871   : > { %2004 = vmatpush3.bf16.msra.mxu0 %v2088_v44 }
 0x872   : > { %2005 = vmatprep.subr.bf16.mxu0 %v2151_v17 }
 0x875   : > { %2006 = vmatpush3.bf16.msra.mxu0 %v2089_v50 }
 0x876   : > { %2007 = vmatprep.subr.bf16.mxu0 %v2151_v17 }
 0x879   : > { %2008 = vmatpush3.bf16.msra.mxu0 %v2090_v51 }
 0x87a   : > { %2009 = vmatprep.subr.bf16.mxu0 %v2151_v17 }
 0x87d   : > { %2010 = vmatpush3.bf16.msra.mxu0 %v2091_v52 }
 0x933   : > { %v1363_v6 = vpop.f32.mrb[0].mxu0 }
 0x934   : > { %v1370_v8 = vadd.f32 %v1363_v6, %v2339_v2  ;;  %v1985_v9 = vpop.f32.mrb[1].mxu0 }
 0x935   : > { %v1366_v10 = vpop.f32.mrb[2].mxu0 }
 0x936   : > { %v2430_v11 = vadd.f32 %v1881_v7, %v1370_v8  ;;  %v1371_v12 = vadd.f32 %v1366_v10, %v2341_v3  ;;  %v1986_v13 = vpop.f32.mrb[3].mxu0 }
 0x938   : > { %v2433_v14 = vadd.f32 %v1881_v7, %v1371_v12  ;;  %v1383_v15 = vsel %vm784_vm1, %v2430_v11, 0.0  ;;  %v1898_v12 = vld [vmem:[%s725_s26] ss:$0 sm:$0xff] }
 0x939   : > { %1384 = vadd.xlane.f32.xlu1 %v1383_v15 }
 0x93a   : > { %v1386_v16 = vsel %vm784_vm1, %v2433_v14, 0.0 }
 0x93b   : > { %1387 = vadd.xlane.f32.xlu0 %v1386_v16 }
 0x9c6   : > { %v1385_v2 = vpop.xlane.xlu1 %1384 }
 0x9c7   : > { %v1389_v18 = vmul.f32 0.03125, %v1385_v2 }
 0x9c8   : > { %v1388_v19 = vpop.xlane.xlu0 %1387 }
 0x9c9   : > { %v1391_v20 = vsub.f32 %v2430_v11, %v1389_v18  ;;  %v1390_v21 = vmul.f32 0.03125, %v1388_v19 }
 0x9cb   : > { %v1392_v3 = vsub.f32 %v2433_v14, %v1390_v21  ;;  %v1393_v22 = vmul.f32 %v1391_v20, %v1391_v20 }
 0x9cd   : > { %v1395_v23 = vsel %vm784_vm1, %v1393_v22, 0.0  ;;  %v1394_v24 = vmul.f32 %v1392_v3, %v1392_v3 }
 0x9ce   : > { %1396 = vadd.xlane.f32.xlu1 %v1395_v23 }
 0x9cf   : > { %v1398_v25 = vsel %vm784_vm1, %v1394_v24, 0.0 }
 0x9d0   : > { %1399 = vadd.xlane.f32.xlu0 %v1398_v25 }
 0xa5b   : > { %v1397_v28 = vpop.xlane.xlu1 %1396 }
 0xa5c   : > { %v1401_v29 = vmul.f32 0.03125, %v1397_v28 }
 0xa5d   : > { %v1400_v30 = vpop.xlane.xlu0 %1399 }
 0xa5e   : > { %v1403_v31 = vadd.f32 1e-05, %v1401_v29  ;;  %v1402_v32 = vmul.f32 0.03125, %v1400_v30 }
 0xa60   : > { %2112 = vrsqrt.f32 %v1403_v31  ;;  %v1404_v33 = vadd.f32 1e-05, %v1402_v32 }
 0xa62   : > { %2114 = vrsqrt.f32 %v1404_v33 }
 0xa6a   : > { %v2113_v34 = vpop.eup %2112 }
 0xa6b   : > { %v1407_v36 = vmul.f32 %v2113_v34, %v1391_v20 }
 0xa6c   : > { %v2115_v37 = vpop.eup %2114 }
 0xa6d   : > { %v1415_v38 = vmul.f32 %v1882_v35, %v1407_v36  ;;  %v1408_v39 = vmul.f32 %v2115_v37, %v1392_v3  ;;  %v1900_v37 = vld [vmem:[%s2550_s30] ss:$0 sm:$0xff] (!%p1899_p11) }
 0xa6f   : > { %v1416_v41 = vmul.f32 %v1882_v35, %v1408_v39  ;;  %v1423_v42 = vadd.f32 %v1883_v40, %v1415_v38  ;;  %v1901_v39 = vld [vmem:[%s2551_s24] ss:$0 sm:$0xff] (!%p1899_p11) }
 0xa71   : > { %v1424_v43 = vadd.f32 %v1883_v40, %v1416_v41 }
 0xa73   : > { %v1425_v45 = vpack.c.bf16 %v1424_v43, %v1423_v42 }
 0xa75   : > { %1992 = vmatmul.mubr.msk.bf16.vlgmr.msra.gmra.mrb[12].mxu1 %vm784_vm1, %v1425_v45 }
 0xb48   : > { %v1486_v54 = vpop.f32.mrb[12].mxu1 }
 0xb49   : > { %v1487_v55 = vadd.f32 %v1884_v53, %v1486_v54  ;;  %v1993_v56 = vpop.f32.mrb[13].mxu1 }
 0xb4a   : > { %v1489_v57 = vpop.f32.mrb[14].mxu1 }
 0xb4b   : > { %v1888_v58 = vmul.f32 -1.702, %v1487_v55  ;;  %v1490_v59 = vadd.f32 %v1884_v53, %v1489_v57  ;;  %v1994_v60 = vpop.f32.mrb[15].mxu1 }
 0xb4d   : > { %v1497_v61 = vmul.f32 1.442695, %v1888_v58  ;;  %v1889_v62 = vmul.f32 -1.702, %v1490_v59 }
 0xb4f   : > { %2116 = vpow2.f32 %v1497_v61  ;;  %v1499_v63 = vmul.f32 1.442695, %v1889_v62 }
 0xb51   : > { %2118 = vpow2.f32 %v1499_v63 }
 0xb59   : > { %v2117_v17 = vpop.eup %2116 }
 0xb5a   : > { %v1501_v0 = vadd.f32 1.0, %v2117_v17 }
 0xb5b   : > { %v2119_v1 = vpop.eup %2118 }
 0xb5c   : > { %2120 = vrcp.f32 %v1501_v0  ;;  %v1502_v4 = vadd.f32 1.0, %v2119_v1 }
 0xb5e   : > { %2122 = vrcp.f32 %v1502_v4 }
 0xb66   : > { %v2121_v5 = vpop.eup %2120 }
 0xb67   : > { %v1507_v7 = vmul.f32 %v2121_v5, %v1487_v55 }
 0xb68   : > { %v2123_v6 = vpop.eup %2122 }
 0xb69   : > { %v1508_v8 = vmul.f32 %v2123_v6, %v1490_v59 }
 0xb6b   : > { %v1509_v9 = vpack.c.bf16 %v1508_v8, %v1507_v7 }
 0xb6d   : > { %2012 = vmatmul.mubr.bf16.vlgmr.msra.gmra.mrb[4].mxu0 %v1509_v9 }
 0xc40   : > { %v1608_v10 = vpop.f32.mrb[4].mxu0 }
 0xc41   : > { %v1615_v13 = vadd.f32 %v1608_v10, %v2430_v11  ;;  %v2013_v15 = vpop.f32.mrb[5].mxu0  ;;  %1631 = sbr.rel (%p1899_p11) target bundleno = 3459 (0xd83), region = 96 }
 0xc42   : > { %v1611_v16 = vpop.f32.mrb[6].mxu0 }
 0xc43   : > { %v1624_v2 = vadd.f32 %v1898_v12, %v1615_v13  ;;  %v1616_v18 = vadd.f32 %v1611_v16, %v2433_v14  ;;  %v2014_v19 = vpop.f32.mrb[7].mxu0 }
 0xc45   : > { %1626 = vst.msk [vmem:[#allocation2] sm:$0xff] %vm784_vm1, %v1624_v2  ;;  %v1625_v20 = vadd.f32 %v1898_v12, %v1616_v18  ;;  %v1634_v21 = vsel (!%p1899_p11), %vm784_vm1, %v1624_v2, 0.0 }
 0xc46   : > { %1635 = vadd.xlane.f32.xlu0 (!%p1899_p11), %v1634_v21 }
 0xc47   : > { %1627 = vst.msk [vmem:[#allocation2 + $0x8] sm:$0xff] %vm784_vm1, %v1625_v20  ;;  %v1637_v3 = vsel (!%p1899_p11), %vm784_vm1, %v1625_v20, 0.0 }
 0xc4a   : > { %1638 = vadd.xlane.f32.xlu0 %v1637_v3 }
 0xcd3   : > { %v1636_v11 = vpop.xlane.xlu0 %1635 }
 0xcd4   : > { %v1640_v22 = vmul.f32 0.03125, %v1636_v11 }
 0xcd6   : > { %v1642_v23 = vsub.f32 %v1624_v2, %v1640_v22 }
 0xcd7   : > { %v1639_v24 = vpop.xlane.xlu0 %1638 }
 0xcd8   : > { %v1641_v14 = vmul.f32 0.03125, %v1639_v24  ;;  %v1644_v25 = vmul.f32 %v1642_v23, %v1642_v23 }
 0xcda   : > { %v1643_v26 = vsub.f32 %v1625_v20, %v1641_v14  ;;  %v1646_v27 = vsel %vm784_vm1, %v1644_v25, 0.0 }
 0xcdb   : > { %1647 = vadd.xlane.f32.xlu1 %v1646_v27 }
 0xcdc   : > { %v1645_v28 = vmul.f32 %v1643_v26, %v1643_v26 }
 0xcde   : > { %v1649_v29 = vsel %vm784_vm1, %v1645_v28, 0.0 }
 0xcdf   : > { %1650 = vadd.xlane.f32.xlu1 %v1649_v29 }
 0xd68   : > { %v1648_v30 = vpop.xlane.xlu1 %1647 }
 0xd69   : > { %v1652_v31 = vmul.f32 0.03125, %v1648_v30 }
 0xd6b   : > { %v1654_v32 = vadd.f32 1e-05, %v1652_v31 }
 0xd6c   : > { %v1651_v33 = vpop.xlane.xlu1 %1650 }
 0xd6d   : > { %2124 = vrsqrt.f32 %v1654_v32  ;;  %v1653_v34 = vmul.f32 0.03125, %v1651_v33 }
 0xd6f   : > { %v1655_v35 = vadd.f32 1e-05, %v1653_v34 }
 0xd71   : > { %2126 = vrsqrt.f32 %v1655_v35 }
 0xd77   : > { %v2125_v36 = vpop.eup %2124 }
 0xd78   : > { %v1658_v38 = vmul.f32 %v2125_v36, %v1642_v23 }
 0xd7a   : > { %v1666_v40 = vmul.f32 %v1900_v37, %v1658_v38 }
 0xd7b   : > { %v2127_v41 = vpop.eup %2126 }
 0xd7c   : > { %v1674_v42 = vadd.f32 %v1901_v39, %v1666_v40  ;;  %v1659_v43 = vmul.f32 %v2127_v41, %v1643_v26 }
 0xd7e   : > { %1676 = vst.msk [vmem:[%s2330_s0] sm:$0xff] %vm784_vm1, %v1674_v42  ;;  %v1667_v45 = vmul.f32 %v1900_v37, %v1659_v43 }
 0xd80   : > { %v1675_v46 = vadd.f32 %v1901_v39, %v1667_v45 }
 0xd82   : > { %1677 = vst.msk [vmem:[%s2330_s0 + $0x8] sm:$0xff] %vm784_vm1, %v1675_v46 }
 0xd83 PF: > { %s2552_s27 = sld [smem:[#allocation6_spill]] }
 0xd89   : > { %s34_s30 = sadd.s32 1, %s2552_s27  }
 0xd8a   : > { %p31_p12 = scmp.ge.s32.totalorder %s34_s30, 4  }
 0xd8c   :  { %33 = sbr.rel (!%p31_p12) target bundleno = 23 (0x17), region = 159 }

// kernel: clipseg_forward.14
= control target key start
LH: loop header
LB: loop body
LE: loop exit
PB: predicated region body
PF: predicated region fallthrough
CT: control target
= control target key end

     0   :  { %s3219_s27 = smov 0   ;;  %s3582_s0 = inlined_call_operand.vmem [shape: f32[3,10,64], index: 0, kind: input, shape index: {}]   ;;  %s3583_s1 = inlined_call_operand.vmem [shape: bf16[3,64,32], index: 1, kind: input, shape index: {}]   ;;  %s3584_s2 = inlined_call_operand.vmem [shape: f32[3,1,32], index: 2, kind: input, shape index: {}]   ;;  %s3585_s3 = inlined_call_operand.vmem [shape: f32[2,48], index: 3, kind: input, shape index: {}]   ;;  %s3586_s4 = inlined_call_operand.vmem [shape: f32[48,64], index: 4, kind: input, shape index: {}]   ;;  %s3587_s5 = inlined_call_operand.vmem [shape: f32[1,64], index: 5, kind: input, shape index: {}]   ;;  %s3588_s6 = inlined_call_operand.vmem [shape: bf16[3,32,96], index: 6, kind: input, shape index: {}]   ;;  %s3589_s7 = inlined_call_operand.vmem [shape: f32[3,1,96], index: 7, kind: input, shape index: {}]   ;;  %s3590_s8 = inlined_call_operand.vmem [shape: bf16[3,32,32], index: 8, kind: input, shape index: {}]   ;;  %s3591_s9 = inlined_call_operand.vmem [shape: f32[3,1,32], index: 9, kind: input, shape index: {}]   ;;  %s3592_s10 = inlined_call_operand.vmem [shape: f32[3,1,32], index: 10, kind: input, shape index: {}]   ;;  %s3593_s11 = inlined_call_operand.vmem [shape: f32[3,1,32], index: 11, kind: input, shape index: {}]   ;;  %s3594_s12 = inlined_call_operand.vmem [shape: bf16[3,32,64], index: 12, kind: input, shape index: {}]   ;;  %s3595_s13 = inlined_call_operand.vmem [shape: f32[3,1,64], index: 13, kind: input, shape index: {}]   ;;  %s3596_s14 = inlined_call_operand.vmem [shape: bf16[3,64,32], index: 14, kind: input, shape index: {}]   ;;  %s3597_s15 = inlined_call_operand.vmem [shape: f32[3,1,32], index: 15, kind: input, shape index: {}]   ;;  %s3598_s16 = inlined_call_operand.vmem [shape: f32[3,1,32], index: 16, kind: input, shape index: {}]   ;;  %s3599_s17 = inlined_call_operand.vmem [shape: f32[3,1,32], index: 17, kind: input, shape index: {}]   ;;  %s3600_s18 = inlined_call_operand.vmem [shape: f32[10,32], index: 18, kind: output, shape index: {}]  }
   0x1   :  { %3612 = sst [smem:[#allocation6_spill]] %s3582_s0 }
   0x2   :  { %3613 = sst [smem:[#allocation7_spill]] %s3583_s1 }
   0x3   :  { %3614 = sst [smem:[#allocation8_spill]] %s3584_s2 }
   0x4   :  { %3615 = sst [smem:[#allocation9_spill]] %s3585_s3 }
   0x5   :  { %3616 = sst [smem:[#allocation10_spill]] %s3586_s4 }
   0x6   :  { %3617 = sst [smem:[#allocation11_spill]] %s3587_s5 }
   0x7   :  { %3618 = sst [smem:[#allocation12_spill]] %s3588_s6 }
   0x8   :  { %3619 = sst [smem:[#allocation13_spill]] %s3590_s8 }
   0x9   :  { %3620 = sst [smem:[#allocation14_spill]] %s3594_s12 }
   0xa   :  { %3621 = sst [smem:[#allocation15_spill]] %s3599_s17 }
   0xb   :  { %3622 = sst [smem:[#allocation16_spill]] %s3600_s18 }
   0xc LB: > { %3623 = sst [smem:[#allocation3_spill]] %s3099_s27  ;;  %s3225_s28 = sadd.s32 4294967295, %s3099_s27   ;;  %s3099_s27 = sphi %s3219_s27, %s28_s27  }
   0xd   : > { %3624 = sst [smem:[#allocation4_spill]] %s3225_s28  ;;  %p2613_p0 = scmp.ge.s32.totalorder %s3099_s27, 1 }
   0xe   : > { %p629_p1 = scmp.lt.s32.totalorder %s3099_s27, 4 }
  0x10   : > { %p630_p2 = pnand %p2613_p0, %p629_p1 }
  0x12   : > { %633 = sbr.rel (%p630_p2) target bundleno = 3926 (0xf56), region = 92 }
  0x19   : > { %p730_p3 = scmp.lt.s32.totalorder %s3225_s28, 2  ;;  %s3625_s20 = sld [smem:[#allocation6_spill]] }
  0x1a   : > { %s3627_s23 = sld [smem:[#allocation7_spill]]  ;;  %s3629_s6 = sld [smem:[#allocation12_spill]] }
  0x1b   : > { %s3231_s29 = scalar_select %p730_p3, %s3225_s28, 2 }
  0x1c   : > { %s3630_s8 = sld [smem:[#allocation13_spill]]  ;;  %s3631_s12 = sld [smem:[#allocation14_spill]] }
  0x1d   : > { %s2697_s30 = sshll.u32 %s3231_s29, 4  ;;  %s2698_s0 = sshll.u32 %s3231_s29, 5 }
  0x1e   : > { %s772_s19 = scalar_lea.vmem %s3595_s13, %s3231_s29  ;;  %s3287_s2 = scalar_lea.vmem %s3596_s14, %s2698_s0 }
  0x1f   : > { %s3238_s21 = scalar_lea.vmem %s3625_s20, %s2697_s30  ;;  %s780_s26 = scalar_lea.vmem %s3597_s15, %s3231_s29 }
  0x20   : > { %3626 = sst [smem:[#allocation5_spill]] %s3238_s21  ;;  %s3243_s24 = scalar_lea.vmem %s3627_s23, %s2698_s0 }
  0x21   : > { %s3252_s4 = scalar_lea.vmem %s3629_s6, %s2697_s30  ;;  %s783_s18 = scalar_lea.vmem %s3598_s16, %s3231_s29 }
  0x22   : > { %s3261_s21 = scalar_lea.vmem %s3630_s8, %s2697_s30  ;;  %s3278_s28 = scalar_lea.vmem %s3631_s12, %s2697_s30 }
  0x23   : > { %s3632_s17 = sld [smem:[#allocation15_spill]]  ;;  %s3633_s12 = sld [smem:[#allocation4_spill]] }
  0x29   : > { %s786_s23 = scalar_lea.vmem %s3632_s17, %s3231_s29  ;;  %p2626_p4 = scmp.ne.s32.totalorder %s3633_s12, 0 }
  0x2a   : > { %vm792_vm0 = vcmask (!%p2626_p4), 261120   ;;  %vm794_vm1 = vcmask (!%p2626_p4), 254976   ;;  %v3101_v0 = vmov (!%p2626_p4), 0.0  }
  0x2b   : > { %791 = sbr.rel (%p2626_p4) target bundleno = 50 (0x32), region = 96  ;;  %793 = vst.msk [vmem:[#allocation2] sm:$0xff] (!%p2626_p4), %vm792_vm0, %v3101_v0 }
  0x2c   : > { %795 = vst.msk [vmem:[#allocation2 + $0x8] sm:$0x3] (!%p2626_p4), %vm794_vm1, %v3101_v0 }
  0x32 PF: > { %s3634_s8 = sld [smem:[#allocation5_spill]]  ;;  %v2984_v1 = vld [vmem:[%s3243_s24] sm:$0xff]   ;;  %v3102_v2 = vmov 0.0   ;;  %v2985_v3 = vld [vmem:[%s3243_s24 + $0x8] sm:$0xff]   ;;  %vm3610_vm2 = vmmov 0   ;;  %v2986_v4 = vld [vmem:[%s3243_s24 + $0x10] sm:$0xff]   ;;  %v982_v32 = vlaneseq (!%p2626_p4) }
  0x33   : > { %2767 = vmatprep.subr.bf16.mxu0 %v3102_v2  ;;  %2775 = vmatprep.mubr.msk.bf16.mxu0 %vm3610_vm2, %v3102_v2  ;;  %v2987_v5 = vld [vmem:[%s3243_s24 + $0x18] sm:$0xff]   ;;  %vm3607_vm3 = vcmask 523264   ;;  %s3635_s1 = sld [smem:[#allocation8_spill]]  ;;  %v883_v11 = vld [vmem:[#allocation2] sm:$0xff]  ;;  %vm3609_vm4 = vcmask 261120   ;;  %vm3608_vm5 = vcmask 254976  }
  0x34   : > { %2768 = vmatpush3.bf16.msra.mxu0 %v2984_v1  ;;  %v884_v15 = vld [vmem:[#allocation2 + $0x8] sm:$0x3]  ;;  %s3638_s27 = sld [smem:[#allocation10_spill]] (!%p2626_p4)  ;;  %v3104_v23 = vmov (!%p2626_p4), 0.0|0.0   ;;  %vm3105_vm6 = vmmov (!%p2626_p4), 0   ;;  %v3106_v26 = vmov (!%p2626_p4), 0.0  }
  0x35   : > { %2769 = vmatprep.subr.bf16.mxu0 %v3102_v2  ;;  %vm908_vm7 = vcmask (!%p2626_p4), 392192   ;;  %v983_v33 = vshrl.u32 (!%p2626_p4), %v982_v32, 7  ;;  %v986_v34 = vand.u32 (!%p2626_p4), 127, %v982_v32  ;;  %vm1000_vm11 = vcmask (!%p2626_p4), 15360   ;;  %s3641_s30 = sld [smem:[#allocation11_spill]] (!%p2626_p4)  ;;  %s3107_s17 = smov (!%p2626_p4), 96  }
  0x36   : > { %vm1007_vm15 = vcmask (!%p2626_p4), 1041408  }
  0x37   : > { %v987_v35 = vmul.u32 (!%p2626_p4), 5, %v986_v34  ;;  %v990_v36 = vadd.s32 (!%p2626_p4), 1, %v986_v34  ;;  %v984_v37 = vadd.s32 (!%p2626_p4), 8, %v983_v33 }
  0x38   : > { %2770 = vmatpush3.bf16.msra.mxu0 %v2985_v3  ;;  %v796_v6 = vld [vmem:[%s3634_s8] sm:$0xff]  ;;  %v797_v7 = vld [vmem:[%s3634_s8 + $0x8] sm:$0x3] }
  0x39   : > { %2771 = vmatprep.subr.bf16.mxu0 %v3102_v2  ;;  %v798_v8 = vpack.c.bf16 %v797_v7, %v796_v6  ;;  %s3636_s20 = scalar_lea.vmem %s3635_s1, %s3231_s29  ;;  %vm988_vm8 = vcmp.ge.s32.totalorder (!%p2626_p4), %v983_v33, %v987_v35  ;;  %v991_v38 = vmul.u32 (!%p2626_p4), 5, %v990_v36  ;;  %vm989_vm9 = vcmp.ge.s32.totalorder (!%p2626_p4), %v984_v37, %v987_v35 }
  0x3a   : > { %v2627_v9 = vld [vmem:[%s3636_s20] ss:$0 sm:$0xff]  ;;  %s3639_s3 = smov (!%p2626_p4), %s3638_s27 }
  0x3b   : > { %v895_v20 = vld [vmem:[%s3638_s27] sm:$0xff] (!%p2626_p4)  ;;  %v896_v21 = vld [vmem:[%s3639_s3 + $0x8] sm:$0xff] (!%p2626_p4)  ;;  %v897_v22 = vld [vmem:[%s3639_s3 + $0x10] sm:$0xff] (!%p2626_p4)  ;;  %s3640_s27 = sld [smem:[#allocation9_spill]] (!%p2626_p4)  ;;  %vm992_vm10 = vcmp.lt.s32.totalorder (!%p2626_p4), %v983_v33, %v991_v38  ;;  %vm993_vm12 = vcmp.lt.s32.totalorder (!%p2626_p4), %v984_v37, %v991_v38 }
  0x3c   : > { %2772 = vmatpush3.bf16.msra.mxu0 %v2986_v4  ;;  %v2897_v24 = vpack.c.bf16 (!%p2626_p4), %v896_v21, %v895_v20  ;;  %v898_v25 = vld [vmem:[%s3639_s3 + $0x18] sm:$0xff] (!%p2626_p4)  ;;  %v899_v28 = vld [vmem:[%s3639_s3 + $0x20] sm:$0xff] (!%p2626_p4)  ;;  %v900_v29 = vld [vmem:[%s3639_s3 + $0x28] sm:$0xff] (!%p2626_p4) }
  0x3d   : > { %2773 = vmatprep.subr.bf16.mxu0 %v3102_v2  ;;  %v2900_v27 = vpack.c.bf16 (!%p2626_p4), %v898_v25, %v897_v22  ;;  %v2903_v30 = vpack.c.bf16 (!%p2626_p4), %v900_v29, %v899_v28  ;;  %vm994_vm13 = vmand (!%p2626_p4), %vm988_vm8, %vm992_vm10  ;;  %v2634_v40 = vld [vmem:[%s3641_s30] ss:$0 sm:$0xff] (!%p2626_p4) }
  0x3e   : > { %v2636_v39 = vsel (!%p2626_p4), %vm994_vm13, 1.0, %v3106_v26  ;;  %vm995_vm14 = vmand (!%p2626_p4), %vm989_vm9, %vm993_vm12 }
  0x3f   : > { %2796 = vmatprep.mubr.msk.f32.mxu1 (!%p2626_p4), %vm1000_vm11, %v2636_v39  ;;  %v2637_v44 = vsel (!%p2626_p4), %vm995_vm14, 1.0, %v3106_v26 }
  0x40   : > { %2774 = vmatpush3.bf16.msra.mxu0 %v2987_v5 }
  0x41   : > { %2896 = vmatprep.subr.bf16.mxu0 (!%p2626_p4), %v3104_v23  ;;  %v894_v31 = vld [vmem:[%s3640_s27] sm:$0x3] (!%p2626_p4) }
  0x43   : > { %2776 = vmatmul.mubr.msk.bf16.vlgmr.msra.gmra.mrb[0].mxu0 %vm3607_vm3, %v798_v8 }
  0x44   : > { %2791 = vmatprep.mubr.msk.f32.mxu0 (!%p2626_p4), %vm3105_vm6, %v3106_v26  ;;  %2898 = vmatpush3.bf16.msra.mxu0 (!%p2626_p4), %v2897_v24 }
  0x45   : > { %2899 = vmatprep.subr.bf16.mxu0 (!%p2626_p4), %v3104_v23 }
  0x48   : > { %2901 = vmatpush3.bf16.msra.mxu0 (!%p2626_p4), %v2900_v27 }
  0x49   : > { %2902 = vmatprep.subr.bf16.mxu0 (!%p2626_p4), %v3104_v23 }
  0x4c   : > { %2904 = vmatpush3.bf16.msra.mxu0 (!%p2626_p4), %v2903_v30 }
 0x116   : > { %v876_v10 = vpop.f32.mrb[0].mxu0 }
 0x117   : > { %v877_v12 = vadd.f32 %v2627_v9, %v876_v10  ;;  %v2777_v13 = vpop.f32.mrb[1].mxu0  ;;  %893 = sbr.rel (%p2626_p4) target bundleno = 826 (0x33a), region = 100  ;;  %2792 = vmatmul.mubr.msk.f32.vlgmr.msra.gmra.mrb[0].mxu0 (!%p2626_p4), %vm908_vm7, %v894_v31 }
 0x118   : > { %v879_v14 = vpop.f32.mrb[2].mxu0 }
 0x119   : > { %v3322_v16 = vadd.f32 %v883_v11, %v877_v12  ;;  %v880_v17 = vadd.f32 %v2627_v9, %v879_v14  ;;  %v2778_v18 = vpop.f32.mrb[3].mxu0 }
 0x11b   : > { %888 = vst.msk [vmem:[#allocation2] sm:$0xff] %vm3609_vm4, %v3322_v16  ;;  %v886_v19 = vadd.f32 %v884_v15, %v880_v17 }
 0x11d   : > { %890 = vst.msk [vmem:[#allocation2 + $0x8] sm:$0x3] %vm3608_vm5, %v886_v19 }
 0x1ea   : > { %v978_v41 = vpop.f32.mrb[0].mxu0 }
 0x1eb   : > { %v979_v42 = vadd.f32 %v2634_v40, %v978_v41  ;;  %v2793_v43 = vpop.f32.mrb[1].mxu0 }
 0x1ed   : > { %2794 = vmatprep.subr.msk.mxu1 %vm1007_vm15, %v979_v42  ;;  %1088 = vrot.lane.b32.xlu0 %v979_v42, %s3107_s17 }
 0x1ee   : > { %2795 = vmatpush3.msk.msra.mxu1 %vm1007_vm15, %v979_v42 }
 0x1ef   : > { %2797 = vmatmul.mubr.msk.f32.vlgmr.msra.gmra.mrb[0].mxu1 %vm1000_vm11, %v2637_v44 }
 0x1f0   : > { %2801 = vmatprep.mubr.msk.f32.mxu1 %vm1000_vm11, %v2636_v39 }
 0x25f   : > { %v1089_v45 = vpop.permute.xlu0 %1088 }
 0x260   : > { %2799 = vmatprep.subr.msk.mxu1 %vm1007_vm15, %v1089_v45 }
 0x261   : > { %2800 = vmatpush3.msk.msra.mxu1 %vm1007_vm15, %v1089_v45 }
 0x262   : > { %2802 = vmatmul.mubr.msk.f32.vlgmr.msra.gmra.mrb[2].mxu1 %vm1000_vm11, %v2637_v44 }
 0x2c2   : > { %v2798_v46 = vpop.f32.mrb[0].mxu1 }
 0x2c3   : > { %v1077_v47 = vpop.f32.mrb[1].mxu1  ;;  %v1087_v48 = vmul.f32 %v2798_v46, %v886_v19 }
 0x2c4   : > { %v1086_v49 = vmul.f32 %v1077_v47, %v3322_v16 }
 0x335   : > { %v2803_v50 = vpop.f32.mrb[2].mxu1 }
 0x336   : > { %v1168_v51 = vadd.f32 %v2803_v50, %v1087_v48  ;;  %v1158_v52 = vpop.f32.mrb[3].mxu1 }
 0x337   : > { %v1167_v53 = vadd.f32 %v1158_v52, %v1086_v49 }
 0x338   : > { %1170 = vst.msk [vmem:[#allocation2 + $0x8] sm:$0x3] %vm3608_vm5, %v1168_v51 }
 0x339   : > { %1169 = vst.msk [vmem:[#allocation2] sm:$0xff] %vm3609_vm4, %v1167_v53 }
 0x33a PF: > { %2804 = vmatprep.subr.bf16.mxu1 %v3102_v2  ;;  %v3043_v54 = vld [vmem:[%s3252_s4] sm:$0xff]   ;;  %2808 = vmatprep.mubr.msk.bf16.mxu1 %vm3610_vm2, %v3102_v2  ;;  %v3044_v55 = vld [vmem:[%s3252_s4 + $0x8] sm:$0xff]   ;;  %s3642_s0 = scalar_lea.vmem %s3589_s7, %s3231_s29  ;;  %vm1282_vm0 = vcmask 64512   ;;  %s3108_s4 = smov 120   ;;  %v1173_v23 = vlaneseq  ;;  %v3113_v27 = vmov -1e+30  }
 0x33b   : > { %2805 = vmatpush3.bf16.msra.mxu1 %v3043_v54  ;;  %v2644_v59 = vld [vmem:[%s3642_s0] ss:$0 sm:$0xff]  ;;  %s3109_s1 = smov 96   ;;  %s3110_s20 = smov 80   ;;  %vm3396_vm1 = vmpackc.low %vm1282_vm0, %vm1282_vm0  ;;  %vm1368_vm2 = vcmask 80896  }
 0x33c   : > { %2806 = vmatprep.subr.bf16.mxu1 %v3102_v2  ;;  %s3111_s24 = smov 88   ;;  %s3112_s22 = smov 112   ;;  %v1174_v24 = vshrl.u32 %v1173_v23, 7  ;;  %v1177_v25 = vand.u32 127, %v1173_v23 }
 0x33d   : > { %s3114_s25 = smov 56   ;;  %s3115_s27 = smov 64  }
 0x33e   : > { %v1175_v26 = vadd.s32 8, %v1174_v24  ;;  %vm1196_vm6 = vcmp.ge.s32.totalorder %v1177_v25, 5  ;;  %vm1190_vm7 = vcmp.ge.s32.totalorder %v1174_v24, 5  ;;  %vm1180_vm9 = vcmp.lt.s32.totalorder %v1174_v24, 5  ;;  %s3117_s5 = smov 48   ;;  %s3118_s6 = smov 72  }
 0x33f   : > { %2807 = vmatpush3.bf16.msra.mxu1 %v3044_v55  ;;  %vm1187_vm10 = vcmp.lt.s32.totalorder %v1177_v25, 5  ;;  %vm1199_vm11 = vcmp.lt.s32.totalorder %v1177_v25, 10  ;;  %vm1197_vm12 = vmand %vm1190_vm7, %vm1196_vm6  ;;  %s3119_s30 = smov 104   ;;  %vm3647_vm7 = vmmov 0   ;;  %s3120_s17 = smov 8  }
 0x340   : > { %v3365_v56 = vld [vmem:[#allocation2] sm:$0xff]  ;;  %v3367_v57 = vld [vmem:[#allocation2 + $0x8] sm:$0x3]  ;;  %vm1193_vm8 = vcmp.lt.s32.totalorder %v1175_v26, 10  ;;  %vm1188_vm14 = vmand %vm1180_vm9, %vm1187_vm10  ;;  %s3121_s8 = smov 16   ;;  %s3122_s12 = smov 40  }
 0x341   : > { %v1206_v58 = vpack.c.bf16 %v3367_v57, %v3365_v56  ;;  %vm1198_vm13 = vmand %vm1193_vm8, %vm1196_vm6  ;;  %s3123_s0 = smov 24   ;;  %vm3651_vm8 = vcmask 254976  }
 0x342   : > { %vm1200_vm15 = vmand %vm1197_vm12, %vm1199_vm11  ;;  %vm3657_vm12 = vcmask 523264  }
 0x343   : > { %2809 = vmatmul.mubr.msk.bf16.vlgmr.msra.gmra.mrb[0].mxu1 %vm3609_vm4, %v1206_v58  ;;  %vm1201_vm3 = vmand %vm1198_vm13, %vm1199_vm11  ;;  %vm1372_vm4 = vcmask 74752  }
 0x344   : > { %vm1202_vm5 = vmor %vm1188_vm14, %vm1200_vm15  ;;  %v3417_v28 = vsel %vm1201_vm3, 0.0, %v3113_v27  ;;  %vm1403_vm3 = vcmask 1041408  }
 0x345   : > { %v3419_v29 = vsel %vm1202_vm5, 0.0, %v3113_v27  ;;  %vm3116_vm5 = vmmov 1   ;;  %vm3653_vm10 = vmmov %vm3651_vm8 }
 0x346   : > { %vm3440_vm6 = vmpackc.low %vm1403_vm3, %vm3116_vm5 }
 0x347   : > { %vm3659_vm14 = vmmov %vm3651_vm8 }
 0x348   : > { %vm3661_vm3 = vmmov %vm3651_vm8 }
 0x416   : > { %v1267_v60 = vpop.f32.mrb[0].mxu1 }
 0x417   : > { %v1268_v61 = vadd.f32 %v2644_v59, %v1267_v60  ;;  %v2810_v62 = vpop.f32.mrb[1].mxu1 }
 0x418   : > { %v1270_v63 = vpop.f32.mrb[2].mxu1 }
 0x419   : > { %v1271_v0 = vadd.f32 %v2644_v59, %v1270_v63  ;;  %v2811_v1 = vpop.f32.mrb[3].mxu1  ;;  %v3378_v3 = vmul.f32 0.35355338, %v1268_v61 }
 0x41b   : > { %1481 = vrot.lane.b32.xlu1 %v3378_v3, %s3108_s4  ;;  %2816 = vmatprep.mubr.msk.f32.mxu1 %vm1282_vm0, %v3378_v3  ;;  %v3383_v4 = vpack.i.bf16 %v1271_v0, %v1268_v61  ;;  %v3389_v5 = vmul.f32 0.35355338, %v1271_v0 }
 0x41d   : > { %2989 = vrot.lane.b32.xlu0 %v3383_v4, %s3109_s1  ;;  %s3649_s1 = scalar_lea.vmem %s3591_s9, %s3231_s29 }
 0x41f   : > { %2999 = vrot.lane.b32.xlu1 %v3383_v4, %s3110_s20 }
 0x421   : > { %2994 = vrot.lane.b32.xlu0 %v3383_v4, %s3111_s24  ;;  %s3654_s24 = scalar_lea.vmem %s3592_s10, %s3231_s29 }
 0x423   : > { %1682 = vrot.lane.b32.xlu1 %v3378_v3, %s3112_s22 }
 0x425   : > { %1483 = vrot.lane.b32.xlu0 %v3389_v5, %s3108_s4 }
 0x429   : > { %1684 = vrot.lane.b32.xlu0 %v3389_v5, %s3112_s22 }
 0x48d   : > { %v1482_v6 = vpop.permute.xlu1 %1481 }
 0x48e   : > { %2830 = vmatprep.mubr.msk.f32.mxu0 %vm1282_vm0, %v1482_v6 }
 0x48f   : > { %v2990_v7 = vpop.permute.xlu0 %2989 }
 0x490   : > { %v2992_v8 = vunpack.i.h.bf16 %v2990_v7  ;;  %v2991_v9 = vunpack.i.l.bf16 %v2990_v7 }
 0x491   : > { %v3000_v10 = vpop.permute.xlu1 %2999 }
 0x492   : > { %v2905_v12 = vpack.c.bf16 %v2992_v8, %v2991_v9  ;;  %v3002_v14 = vunpack.i.h.bf16 %v3000_v10  ;;  %v3001_v15 = vunpack.i.l.bf16 %v3000_v10 }
 0x493   : > { %v2995_v13 = vpop.permute.xlu0 %2994 }
 0x494   : > { %v2997_v16 = vunpack.i.h.bf16 %v2995_v13  ;;  %v2996_v17 = vunpack.i.l.bf16 %v2995_v13  ;;  %2907 = vmatprep.subr.msk.bf16.mxu1 %vm3396_vm1, %v2905_v12  ;;  %v2929_v19 = vpack.c.bf16 %v3002_v14, %v3001_v15 }
 0x495   : > { %2910 = vmatpush3.bf16.xpose.msk.msra.mxu1 %vm3396_vm1, %v2905_v12  ;;  %v1683_v21 = vpop.permute.xlu1 %1682 }
 0x496   : > { %v2917_v18 = vpack.c.bf16 %v2997_v16, %v2996_v17 }
 0x497   : > { %v1484_v20 = vpop.permute.xlu0 %1483 }
 0x498   : > { %2919 = vmatprep.subr.msk.bf16.mxu0 %vm3396_vm1, %v2917_v18 }
 0x499   : > { %2922 = vmatpush3.bf16.xpose.msk.msra.mxu0 %vm3396_vm1, %v2917_v18 }
 0x49a   : > { %2931 = vmatprep.subr.msk.bf16.mxu0 %vm3396_vm1, %v2929_v19 }
 0x49b   : > { %v1685_v22 = vpop.permute.xlu0 %1684 }
 0x49c   : > { %2817 = vmatmul.mubr.msk.f32.vlgmr.msra.gmra.mrb[4].mxu1 %vm1282_vm0, %v3389_v5 }
 0x4a0   : > { %2831 = vmatmul.mubr.msk.f32.vlgmr.msra.gmra.mrb[0].mxu0 %vm1282_vm0, %v1484_v20 }
 0x4a1   : > { %2934 = vmatpush3.bf16.xpose.msk.msra.mxu0 %vm3396_vm1, %v2929_v19  ;;  %2844 = vmatprep.mubr.msk.f32.mxu0 %vm1282_vm0, %v1683_v21 }
 0x4a8   : > { %2845 = vmatmul.mubr.msk.f32.vlgmr.msra.gmra.mrb[2].mxu0 %vm1282_vm0, %v1685_v22 }
 0x56f   : > { %v2818_v30 = vpop.f32.mrb[4].mxu1 }
 0x570   : > { %v1365_v31 = vadd.f32 %v2818_v30, %v3417_v28  ;;  %v1359_v32 = vpop.f32.mrb[5].mxu1 }
 0x571   : > { %v1360_v33 = vadd.f32 %v1359_v32, %v3419_v29 }
 0x572   : > { %v1373_v34 = vsel %vm1372_vm4, %v1365_v31, -inf }
 0x573   : > { %v2832_v35 = vpop.f32.mrb[0].mxu0  ;;  %1374 = vmax.xlane.f32.xlu0 %v1373_v34  ;;  %v1369_v36 = vsel %vm1368_vm2, %v1360_v33, -inf }
 0x574   : > { %v1569_v37 = vadd.f32 %v2832_v35, %v3417_v28  ;;  %v1563_v38 = vpop.f32.mrb[1].mxu0  ;;  %1370 = vmax.xlane.f32.xlu1 %v1369_v36 }
 0x575   : > { %v1564_v39 = vadd.f32 %v1563_v38, %v3419_v29 }
 0x576   : > { %v1575_v40 = vsel %vm1372_vm4, %v1569_v37, -inf }
 0x577   : > { %v1572_v41 = vsel %vm1368_vm2, %v1564_v39, -inf }
 0x578   : > { %1573 = vmax.xlane.f32.xlu0 %v1572_v41  ;;  %1576 = vmax.xlane.f32.xlu1 %v1575_v40 }
 0x57b   : > { %v2846_v42 = vpop.f32.mrb[2].mxu0 }
 0x57c   : > { %v3430_v43 = vadd.f32 %v2846_v42, %v3417_v28  ;;  %v1764_v44 = vpop.f32.mrb[3].mxu0 }
 0x57d   : > { %v1765_v45 = vadd.f32 %v1764_v44, %v3419_v29 }
 0x57e   : > { %v1776_v46 = vsel %vm1372_vm4, %v3430_v43, -inf }
 0x57f   : > { %1777 = vmax.xlane.f32.xlu1 %v1776_v46  ;;  %v1773_v47 = vsel %vm1368_vm2, %v1765_v45, -inf }
 0x580   : > { %1774 = vmax.xlane.f32.xlu0 %v1773_v47 }
 0x590   : > { %3009 = vrot.lane.b32.xlu1 %v3383_v4, %s3114_s25 }
 0x596   : > { %3004 = vrot.lane.b32.xlu0 %v3383_v4, %s3115_s27  ;;  %s3655_s27 = scalar_lea.vmem %s3593_s11, %s3231_s29 }
 0x600   : > { %v1375_v48 = vpop.xlane.xlu0 %1374 }
 0x601   : > { %v1377_v49 = vsub.f32 %v1365_v31, %v1375_v48  ;;  %v1371_v50 = vpop.xlane.xlu1 %1370 }
 0x602   : > { %v1376_v51 = vsub.f32 %v1360_v33, %v1371_v50 }
 0x603   : > { %v1380_v52 = vmul.f32 1.442695, %v1377_v49 }
 0x604   : > { %v1378_v53 = vmul.f32 1.442695, %v1376_v51 }
 0x605   : > { %3053 = vpow2.f32 %v1380_v52  ;;  %v1574_v54 = vpop.xlane.xlu0 %1573  ;;  %v1577_v55 = vpop.xlane.xlu1 %1576 }
 0x606   : > { %3055 = vpow2.f32 %v1378_v53  ;;  %v1578_v58 = vsub.f32 %v1564_v39, %v1574_v54  ;;  %v1579_v59 = vsub.f32 %v1569_v37, %v1577_v55 }
 0x608   : > { %v1580_v60 = vmul.f32 1.442695, %v1578_v58  ;;  %v1582_v61 = vmul.f32 1.442695, %v1579_v59 }
 0x60a   : > { %3057 = vpow2.f32 %v1580_v60 }
 0x60b   : > { %3059 = vpow2.f32 %v1582_v61 }
 0x60c   : > { %v1778_v62 = vpop.xlane.xlu1 %1777 }
 0x60d   : > { %v1775_v63 = vpop.xlane.xlu0 %1774  ;;  %v1780_v26 = vsub.f32 %v3430_v43, %v1778_v62 }
 0x60e   : > { %v1779_v0 = vsub.f32 %v1765_v45, %v1775_v63 }
 0x60f   : > { %v3054_v1 = vpop.eup %3053  ;;  %v1783_v27 = vmul.f32 1.442695, %v1780_v26 }
 0x610   : > { %v3056_v6 = vpop.eup %3055  ;;  %v1781_v7 = vmul.f32 1.442695, %v1779_v0  ;;  %v3010_v8 = vpop.permute.xlu1 %3009  ;;  %v1385_v9 = vsel %vm1372_vm4, %v3054_v1, 0.0 }
 0x611   : > { %v3012_v10 = vunpack.i.h.bf16 %v3010_v8  ;;  %v3005_v12 = vpop.permute.xlu0 %3004  ;;  %1386 = vadd.xlane.f32.xlu1 %v1385_v9  ;;  %v1382_v13 = vsel %vm1368_vm2, %v3056_v6, 0.0  ;;  %v3011_v14 = vunpack.i.l.bf16 %v3010_v8 }
 0x612   : > { %3061 = vpow2.f32 %v1781_v7  ;;  %v3007_v15 = vunpack.i.h.bf16 %v3005_v12  ;;  %v3006_v16 = vunpack.i.l.bf16 %v3005_v12  ;;  %1383 = vadd.xlane.f32.xlu0 %v1382_v13 }
 0x613   : > { %v2923_v22 = vpack.c.bf16 %v3012_v10, %v3011_v14  ;;  %3063 = vpow2.f32 %v1783_v27 }
 0x614   : > { %v3058_v18 = vpop.eup %3057  ;;  %v2911_v19 = vpack.c.bf16 %v3007_v15, %v3006_v16 }
 0x615   : > { %v3060_v20 = vpop.eup %3059  ;;  %v1584_v21 = vsel %vm1368_vm2, %v3058_v18, 0.0 }
 0x616   : > { %2913 = vmatprep.subr.msk.bf16.mxu1 %vm3440_vm6, %v2911_v19  ;;  %1585 = vadd.xlane.f32.xlu0 %v1584_v21  ;;  %v1587_v23 = vsel %vm1372_vm4, %v3060_v20, 0.0 }
 0x617   : > { %1588 = vadd.xlane.f32.xlu1 %v1587_v23  ;;  %2916 = vmatpush3.bf16.msk.msra.mxu1 %vm3440_vm6, %v2911_v19 }
 0x618   : > { %2925 = vmatprep.subr.msk.bf16.mxu1 %vm3440_vm6, %v2923_v22 }
 0x61c   : > { %v3062_v24 = vpop.eup %3061 }
 0x61d   : > { %v1785_v25 = vsel %vm1368_vm2, %v3062_v24, 0.0  ;;  %v3064_v30 = vpop.eup %3063 }
 0x61e   : > { %1786 = vadd.xlane.f32.xlu0 %v1785_v25  ;;  %v1788_v31 = vsel %vm1372_vm4, %v3064_v30, 0.0 }
 0x628   : > { %3014 = vrot.lane.b32.xlu1 %v3383_v4, %s3117_s5 }
 0x634   : > { %3019 = vrot.lane.b32.xlu0 %v3383_v4, %s3118_s6 }
 0x638   : > { %1885 = vrot.lane.b32.xlu0 %v3389_v5, %s3119_s30 }
 0x64c   : > { %1789 = vadd.xlane.f32.xlu1 %v1788_v31 }
 0x65d   : > { %1883 = vrot.lane.b32.xlu1 %v3378_v3, %s3119_s30 }
 0x69e   : > { %v1387_v32 = vpop.xlane.xlu1 %1386 }
 0x69f   : > { %3065 = vrcp.f32 %v1387_v32  ;;  %v1384_v33 = vpop.xlane.xlu0 %1383 }
 0x6a0   : > { %3067 = vrcp.f32 %v1384_v33 }
 0x6a3   : > { %v1586_v34 = vpop.xlane.xlu0 %1585 }
 0x6a4   : > { %3069 = vrcp.f32 %v1586_v34  ;;  %v1589_v35 = vpop.xlane.xlu1 %1588  ;;  %v3045_v34 = vld [vmem:[%s3261_s21] sm:$0xff]  }
 0x6a5   : > { %3071 = vrcp.f32 %v1589_v35  ;;  %v3046_v35 = vld [vmem:[%s3261_s21 + $0x8] sm:$0xff]  }
 0x6a8   : > { %v3015_v36 = vpop.permute.xlu1 %3014 }
 0x6a9   : > { %v3066_v37 = vpop.eup %3065  ;;  %v3017_v5 = vunpack.i.h.bf16 %v3015_v36  ;;  %v3016_v39 = vunpack.i.l.bf16 %v3015_v36 }
 0x6aa   : > { %v3068_v38 = vpop.eup %3067  ;;  %v1391_v42 = vmul.f32 %v3066_v37, %v3054_v1 }
 0x6ab   : > { %v1787_v40 = vpop.xlane.xlu0 %1786  ;;  %v1390_v41 = vmul.f32 %v3068_v38, %v3056_v6  ;;  %v2935_v43 = vpack.c.bf16 %v3017_v5, %v3016_v39 }
 0x6ac   : > { %3073 = vrcp.f32 %v1787_v40 }
 0x6ad   : > { %2823 = vmatprep.mubr.msk.f32.mxu1 %vm1368_vm2, %v1390_v41 }
 0x6ae   : > { %v3070_v3 = vpop.eup %3069  ;;  %2824 = vmatmul.mubr.msk.f32.vlgmr.msra.gmra.mrb[6].mxu1 %vm1368_vm2, %v1391_v42 }
 0x6af   : > { %v3072_v44 = vpop.eup %3071  ;;  %2928 = vmatpush3.bf16.msk.msra.mxu1 %vm3440_vm6, %v2923_v22  ;;  %v3020_v45 = vpop.permute.xlu0 %3019  ;;  %v1592_v46 = vmul.f32 %v3070_v3, %v3058_v18 }
 0x6b0   : > { %v1593_v47 = vmul.f32 %v3072_v44, %v3060_v20  ;;  %v3022_v48 = vunpack.i.h.bf16 %v3020_v45  ;;  %v3021_v49 = vunpack.i.l.bf16 %v3020_v45  ;;  %2937 = vmatprep.subr.msk.bf16.mxu1 %vm3440_vm6, %v2935_v43 }
 0x6b1   : > { %2837 = vmatprep.mubr.msk.f32.mxu1 %vm1368_vm2, %v1592_v46 }
 0x6b2   : > { %v2941_v50 = vpack.c.bf16 %v3022_v48, %v3021_v49  ;;  %2838 = vmatmul.mubr.msk.f32.vlgmr.msra.gmra.mrb[8].mxu1 %vm1368_vm2, %v1593_v47 }
 0x6b3   : > { %2940 = vmatpush3.bf16.msk.msra.mxu1 %vm3440_vm6, %v2935_v43  ;;  %v1886_v59 = vpop.permute.xlu0 %1885 }
 0x6b4   : > { %2943 = vmatprep.subr.msk.bf16.mxu1 %vm3396_vm1, %v2941_v50 }
 0x6b6   : > { %v3074_v51 = vpop.eup %3073 }
 0x6b7   : > { %v1793_v52 = vmul.f32 %v3074_v51, %v3062_v24 }
 0x6b9   : > { %2851 = vmatprep.mubr.msk.f32.mxu1 %vm1368_vm2, %v1793_v52  ;;  %v2676_v52 = vld [vmem:[%s3649_s1] ss:$0 sm:$0xff] }
 0x6d9   : > { %v1790_v53 = vpop.xlane.xlu1 %1789 }
 0x6da   : > { %3075 = vrcp.f32 %v1790_v53 }
 0x6dd   : > { %v1884_v58 = vpop.permute.xlu1 %1883 }
 0x6e4   : > { %v3076_v54 = vpop.eup %3075 }
 0x6e5   : > { %v1794_v55 = vmul.f32 %v3076_v54, %v3064_v30 }
 0x6e7   : > { %2852 = vmatmul.mubr.msk.f32.vlgmr.msra.gmra.mrb[10].mxu1 %vm1368_vm2, %v1794_v55 }
 0x6e8   : > { %2946 = vmatpush3.bf16.xpose.msk.msra.mxu1 %vm3396_vm1, %v2941_v50  ;;  %2858 = vmatprep.mubr.msk.f32.mxu1 %vm1282_vm0, %v1884_v58  ;;  %vm3648_vm1 = vcmask 261120  }
 0x6e9   : > { %2876 = vmatprep.subr.bf16.mxu1 %v3102_v2 }
 0x6ef   : > { %2859 = vmatmul.mubr.msk.f32.vlgmr.msra.gmra.mrb[12].mxu1 %vm1282_vm0, %v1886_v59 }
 0x6f0   : > { %2880 = vmatprep.mubr.msk.bf16.mxu1 %vm3647_vm7, %v3102_v2 }
 0x781   : > { %v3480_v60 = vpop.f32.mrb[6].mxu1 }
 0x782   : > { %v3482_v61 = vpop.f32.mrb[7].mxu1 }
 0x785   : > { %v2839_v62 = vpop.f32.mrb[8].mxu1 }
 0x786   : > { %v1673_v63 = vpop.f32.mrb[9].mxu1 }
 0x787   : > { %v3028_v0 = vpack.i.bf16 %v2839_v62, %v1673_v63 }
 0x7ba   : > { %v2853_v1 = vpop.f32.mrb[10].mxu1 }
 0x7bb   : > { %v1874_v11 = vpop.f32.mrb[11].mxu1 }
 0x7bc   : > { %v3033_v6 = vpack.i.bf16 %v2853_v1, %v1874_v11 }
 0x7c2   : > { %v2860_v7 = vpop.f32.mrb[12].mxu1 }
 0x7c3   : > { %v1971_v8 = vadd.f32 %v2860_v7, %v3417_v28  ;;  %v1965_v9 = vpop.f32.mrb[13].mxu1 }
 0x7c4   : > { %v1966_v10 = vadd.f32 %v1965_v9, %v3419_v29 }
 0x7c5   : > { %v1977_v12 = vsel %vm1372_vm4, %v1971_v8, -inf }
 0x7c6   : > { %1978 = vmax.xlane.f32.xlu0 %v1977_v12  ;;  %v1974_v13 = vsel %vm1368_vm2, %v1966_v10, -inf }
 0x7c7   : > { %1975 = vmax.xlane.f32.xlu1 %v1974_v13  ;;  %v3047_v13 = vld [vmem:[%s3278_s28] sm:$0xff]  }
 0x7c8   : > { %2877 = vmatpush3.bf16.msra.mxu1 %v3047_v13  ;;  %v2693_v13 = vld [vmem:[%s786_s23] ss:$0 sm:$0xff] }
 0x7c9   : > { %2878 = vmatprep.subr.bf16.mxu1 %v3102_v2 }
 0x853   : > { %v1979_v14 = vpop.xlane.xlu0 %1978 }
 0x854   : > { %v1981_v15 = vsub.f32 %v1971_v8, %v1979_v14  ;;  %v1976_v16 = vpop.xlane.xlu1 %1975  ;;  %v3048_v14 = vld [vmem:[%s3278_s28 + $0x8] sm:$0xff]  }
 0x855   : > { %v1980_v18 = vsub.f32 %v1966_v10, %v1976_v16  ;;  %2879 = vmatpush3.bf16.msra.mxu1 %v3048_v14  ;;  %v3050_v16 = vld [vmem:[%s3287_s2 + $0x8] sm:$0xff]  }
 0x856   : > { %v1984_v19 = vmul.f32 1.442695, %v1981_v15  ;;  %v3049_v15 = vld [vmem:[%s3287_s2] sm:$0xff]  }
 0x857   : > { %v1982_v20 = vmul.f32 1.442695, %v1980_v18 }
 0x858   : > { %3077 = vpow2.f32 %v1984_v19 }
 0x859   : > { %3079 = vpow2.f32 %v1982_v20 }
 0x862   : > { %v3078_v21 = vpop.eup %3077 }
 0x863   : > { %v3080_v22 = vpop.eup %3079  ;;  %v1989_v28 = vsel %vm1372_vm4, %v3078_v21, 0.0  ;;  %vm2113_vm4 = vcmask 195584  }
 0x864   : > { %1990 = vadd.xlane.f32.xlu1 %v1989_v28  ;;  %v1986_v29 = vsel %vm1368_vm2, %v3080_v22, 0.0 }
 0x865   : > { %1987 = vadd.xlane.f32.xlu0 %v1986_v29 }
 0x875   : > { %3029 = vrot.lane.b32.xlu1 %v3028_v0, %s3120_s17 }
 0x879   : > { %3034 = vrot.lane.b32.xlu1 %v3033_v6, %s3121_s8 }
 0x87b   : > { %3024 = vrot.lane.b32.xlu0 %v3383_v4, %s3122_s12 }
 0x8f1   : > { %v1991_v23 = vpop.xlane.xlu1 %1990 }
 0x8f2   : > { %3081 = vrcp.f32 %v1991_v23  ;;  %v1988_v24 = vpop.xlane.xlu0 %1987  ;;  %v2680_v23 = vld [vmem:[%s3654_s24] ss:$0 sm:$0xff] }
 0x8f3   : > { %3083 = vrcp.f32 %v1988_v24 }
 0x8f5   : > { %v3030_v38 = vpop.permute.xlu1 %3029 }
 0x8f6   : > { %v3025_v25 = vpop.permute.xlu0 %3024  ;;  %v3032_v39 = vunpack.i.h.bf16 %v3030_v38  ;;  %v3031_v40 = vunpack.i.l.bf16 %v3030_v38 }
 0x8f7   : > { %v3027_v26 = vunpack.i.h.bf16 %v3025_v25  ;;  %v3026_v27 = vunpack.i.l.bf16 %v3025_v25 }
 0x8f8   : > { %v2109_v43 = vsel %vm1282_vm0, %v3480_v60, %v3032_v39  ;;  %v2108_v44 = vsel %vm1282_vm0, %v3482_v61, %v3031_v40  ;;  %vm3650_vm0 = vmmov %vm3648_vm1 }
 0x8f9   : > { %v2947_v30 = vpack.c.bf16 %v3027_v26, %v3026_v27  ;;  %v3035_v5 = vpop.permute.xlu1 %3034  ;;  %vm3652_vm9 = vmmov %vm3650_vm0 }
 0x8fa   : > { %v3037_v41 = vunpack.i.h.bf16 %v3035_v5  ;;  %v3036_v42 = vunpack.i.l.bf16 %v3035_v5  ;;  %vm3656_vm11 = vmmov %vm3650_vm0 }
 0x8fb   : > { %2949 = vmatprep.subr.msk.bf16.mxu0 %vm3440_vm6, %v2947_v30  ;;  %vm3658_vm13 = vmmov %vm3650_vm0 }
 0x8fc   : > { %v3082_v31 = vpop.eup %3081  ;;  %2952 = vmatpush3.bf16.msk.msra.mxu0 %vm3440_vm6, %v2947_v30  ;;  %v2681_v30 = vld [vmem:[%s3655_s27] ss:$0 sm:$0xff]  ;;  %vm3660_vm15 = vmmov %vm3650_vm0 }
 0x8fd   : > { %v3084_v32 = vpop.eup %3083  ;;  %2868 = vmatprep.subr.bf16.mxu0 %v3102_v2  ;;  %v1995_v33 = vmul.f32 %v3082_v31, %v3078_v21  ;;  %vm3663_vm5 = vmmov %vm3650_vm0 }
 0x8fe   : > { %v1994_v4 = vmul.f32 %v3084_v32, %v3080_v22  ;;  %vm3664_vm6 = vmmov %vm3661_vm3 }
 0x900   : > { %2865 = vmatprep.mubr.msk.f32.mxu0 %vm1368_vm2, %v1994_v4 }
 0x901   : > { %2866 = vmatmul.mubr.msk.f32.vlgmr.msra.gmra.mrb[4].mxu0 %vm1368_vm2, %v1995_v33  ;;  %vm2110_vm2 = vcmask 130048  }
 0x902   : > { %2872 = vmatprep.mubr.msk.bf16.mxu0 %vm3647_vm7, %v3102_v2  ;;  %2869 = vmatpush3.bf16.msra.mxu0 %v3045_v34  ;;  %v2111_v47 = vsel %vm2110_vm2, %v2108_v44, %v3036_v42  ;;  %v2112_v48 = vsel %vm2110_vm2, %v2109_v43, %v3037_v41  ;;  %v3051_v34 = vld [vmem:[%s3287_s2 + $0x10] sm:$0xff]  }
 0x903   : > { %2870 = vmatprep.subr.bf16.mxu0 %v3102_v2 }
 0x906   : > { %2871 = vmatpush3.bf16.msra.mxu0 %v3046_v35  ;;  %v3052_v35 = vld [vmem:[%s3287_s2 + $0x18] sm:$0xff]  }
 0x907   : > { %2884 = vmatprep.subr.bf16.mxu0 %v3102_v2 }
 0x9d4   : > { %v2867_v17 = vpop.f32.mrb[4].mxu0 }
 0x9d5   : > { %v2075_v36 = vpop.f32.mrb[5].mxu0 }
 0x9d6   : > { %v3038_v37 = vpack.i.bf16 %v2867_v17, %v2075_v36  ;;  %v2682_v17 = vld [vmem:[%s772_s19] ss:$0 sm:$0xff] }
 0x9d8   : > { %3039 = vrot.lane.b32.xlu0 %v3038_v37, %s3123_s0  ;;  %s3665_s0 = sld [smem:[#allocation4_spill]] }
 0x9de   : > { %p2694_p5 = scmp.ne.s32.totalorder %s3665_s0, 2 }
 0x9df   : > { %s3667_s4 = sld [smem:[#allocation16_spill]] (!%p2694_p5)  ;;  %vm3668_vm2 = vcmask (!%p2694_p5), 254976  }
 0xa4a   : > { %v3040_v3 = vpop.permute.xlu0 %3039 }
 0xa4b   : > { %v3042_v45 = vunpack.i.h.bf16 %v3040_v3  ;;  %v3041_v46 = vunpack.i.l.bf16 %v3040_v3 }
 0xa4d   : > { %v2114_v49 = vsel %vm2113_vm4, %v2111_v47, %v3041_v46  ;;  %v2115_v50 = vsel %vm2113_vm4, %v2112_v48, %v3042_v45 }
 0xa4e   : > { %v2116_v51 = vpack.c.bf16 %v2115_v50, %v2114_v49 }
 0xa50   : > { %2873 = vmatmul.mubr.msk.bf16.vlgmr.msra.gmra.mrb[8].mxu0 %vm3648_vm1, %v2116_v51 }
 0xa51   : > { %2892 = vmatprep.mubr.msk.bf16.mxu0 %vm3647_vm7, %v3102_v2  ;;  %2885 = vmatpush3.bf16.msra.mxu0 %v3049_v15  ;;  %vm3666_vm7 = vcmask (!%p2694_p5), 261120  }
 0xa52   : > { %2886 = vmatprep.subr.bf16.mxu0 %v3102_v2 }
 0xa55   : > { %2887 = vmatpush3.bf16.msra.mxu0 %v3050_v16 }
 0xa56   : > { %2888 = vmatprep.subr.bf16.mxu0 %v3102_v2 }
 0xa59   : > { %2889 = vmatpush3.bf16.msra.mxu0 %v3051_v34 }
 0xa5a   : > { %2890 = vmatprep.subr.bf16.mxu0 %v3102_v2  ;;  %v2691_v2 = vld [vmem:[%s780_s26] ss:$0 sm:$0xff] }
 0xa5d   : > { %2891 = vmatpush3.bf16.msra.mxu0 %v3052_v35 }
 0xb23   : > { %v2177_v53 = vpop.f32.mrb[8].mxu0 }
 0xb24   : > { %v2178_v54 = vadd.f32 %v2676_v52, %v2177_v53  ;;  %v2874_v55 = vpop.f32.mrb[9].mxu0 }
 0xb25   : > { %v2180_v58 = vpop.f32.mrb[10].mxu0 }
 0xb26   : > { %v2181_v59 = vadd.f32 %v2676_v52, %v2180_v58  ;;  %v2875_v60 = vpop.f32.mrb[11].mxu0  ;;  %v2184_v61 = vadd.f32 %v2178_v54, %v3365_v56 }
 0xb28   : > { %v2188_v62 = vsel %vm3650_vm0, %v2184_v61, 0.0  ;;  %v2185_v63 = vadd.f32 %v2181_v59, %v3367_v57 }
 0xb29   : > { %2189 = vadd.xlane.f32.xlu1 %v2188_v62 }
 0xb2a   : > { %v2191_v0 = vsel %vm3651_vm8, %v2185_v63, 0.0 }
 0xb2b   : > { %2192 = vadd.xlane.f32.xlu0 %v2191_v0 }
 0xbb6   : > { %v2190_v1 = vpop.xlane.xlu1 %2189 }
 0xbb7   : > { %v2195_v11 = vmul.f32 0.03125, %v2190_v1 }
 0xbb8   : > { %v2193_v6 = vpop.xlane.xlu0 %2192 }
 0xbb9   : > { %v2197_v7 = vsub.f32 %v2184_v61, %v2195_v11  ;;  %v2196_v8 = vmul.f32 0.03125, %v2193_v6 }
 0xbbb   : > { %v2198_v9 = vsub.f32 %v2185_v63, %v2196_v8  ;;  %v2199_v10 = vmul.f32 %v2197_v7, %v2197_v7 }
 0xbbd   : > { %v2201_v56 = vsel %vm3652_vm9, %v2199_v10, 0.0  ;;  %v2200_v12 = vmul.f32 %v2198_v9, %v2198_v9 }
 0xbbe   : > { %2202 = vadd.xlane.f32.xlu0 %v2201_v56  ;;  %v2692_v56 = vld [vmem:[%s783_s18] ss:$0 sm:$0xff] }
 0xbbf   : > { %v2204_v57 = vsel %vm3653_vm10, %v2200_v12, 0.0 }
 0xbc0   : > { %2205 = vadd.xlane.f32.xlu1 %v2204_v57 }
 0xc4b   : > { %v2203_v18 = vpop.xlane.xlu0 %2202 }
 0xc4c   : > { %v2207_v19 = vmul.f32 0.03125, %v2203_v18 }
 0xc4d   : > { %v2206_v20 = vpop.xlane.xlu1 %2205 }
 0xc4e   : > { %v2209_v21 = vadd.f32 1e-05, %v2207_v19  ;;  %v2208_v22 = vmul.f32 0.03125, %v2206_v20 }
 0xc50   : > { %3085 = vrsqrt.f32 %v2209_v21  ;;  %v2210_v28 = vadd.f32 1e-05, %v2208_v22 }
 0xc52   : > { %3087 = vrsqrt.f32 %v2210_v28 }
 0xc5a   : > { %v3086_v29 = vpop.eup %3085 }
 0xc5b   : > { %v2213_v24 = vmul.f32 %v3086_v29, %v2197_v7 }
 0xc5c   : > { %v3088_v25 = vpop.eup %3087 }
 0xc5d   : > { %v2214_v26 = vmul.f32 %v3088_v25, %v2198_v9  ;;  %v2221_v27 = vmul.f32 %v2680_v23, %v2213_v24 }
 0xc5f   : > { %v2222_v31 = vmul.f32 %v2680_v23, %v2214_v26  ;;  %v2229_v32 = vadd.f32 %v2681_v30, %v2221_v27 }
 0xc61   : > { %v2230_v4 = vadd.f32 %v2681_v30, %v2222_v31 }
 0xc63   : > { %v2231_v33 = vpack.c.bf16 %v2230_v4, %v2229_v32 }
 0xc65   : > { %2881 = vmatmul.mubr.msk.bf16.vlgmr.msra.gmra.mrb[16].mxu1 %vm3656_vm11, %v2231_v33 }
 0xd38   : > { %v2292_v36 = vpop.f32.mrb[16].mxu1 }
 0xd39   : > { %v2293_v37 = vadd.f32 %v2682_v17, %v2292_v36  ;;  %v2882_v38 = vpop.f32.mrb[17].mxu1 }
 0xd3a   : > { %v2295_v5 = vpop.f32.mrb[18].mxu1 }
 0xd3b   : > { %v2296_v39 = vadd.f32 %v2682_v17, %v2295_v5  ;;  %v2883_v40 = vpop.f32.mrb[19].mxu1  ;;  %v2299_v41 = vmax.f32 %v2293_v37, 0.0 }
 0xd3d   : > { %v2300_v42 = vmax.f32 %v2296_v39, 0.0 }
 0xd3f   : > { %v2301_v3 = vpack.c.bf16 %v2300_v42, %v2299_v41 }
 0xd41   : > { %2893 = vmatmul.mubr.msk.bf16.vlgmr.msra.gmra.mrb[12].mxu0 %vm3657_vm12, %v2301_v3 }
 0xe14   : > { %v2371_v43 = vpop.f32.mrb[12].mxu0 }
 0xe15   : > { %v2378_v44 = vadd.f32 %v2371_v43, %v2229_v32  ;;  %v2894_v45 = vpop.f32.mrb[13].mxu0 }
 0xe16   : > { %v2374_v46 = vpop.f32.mrb[14].mxu0 }
 0xe17   : > { %v2379_v47 = vadd.f32 %v2374_v46, %v2230_v4  ;;  %v2895_v48 = vpop.f32.mrb[15].mxu0  ;;  %v2387_v49 = vadd.f32 %v2691_v2, %v2378_v44 }
 0xe19   : > { %v2391_v50 = vsel %vm3658_vm13, %v2387_v49, 0.0  ;;  %v2388_v51 = vadd.f32 %v2691_v2, %v2379_v47 }
 0xe1a   : > { %2392 = vadd.xlane.f32.xlu0 %v2391_v50 }
 0xe1b   : > { %v2394_v52 = vsel %vm3659_vm14, %v2388_v51, 0.0 }
 0xe1c   : > { %2395 = vadd.xlane.f32.xlu1 %v2394_v52 }
 0xea7   : > { %v2393_v53 = vpop.xlane.xlu0 %2392 }
 0xea8   : > { %v2397_v54 = vmul.f32 0.03125, %v2393_v53 }
 0xea9   : > { %v2396_v55 = vpop.xlane.xlu1 %2395 }
 0xeaa   : > { %v2399_v58 = vsub.f32 %v2387_v49, %v2397_v54  ;;  %v2398_v59 = vmul.f32 0.03125, %v2396_v55 }
 0xeac   : > { %v2400_v60 = vsub.f32 %v2388_v51, %v2398_v59  ;;  %v2401_v61 = vmul.f32 %v2399_v58, %v2399_v58 }
 0xeae   : > { %v2403_v62 = vsel %vm3660_vm15, %v2401_v61, 0.0  ;;  %v2402_v63 = vmul.f32 %v2400_v60, %v2400_v60 }
 0xeaf   : > { %2404 = vadd.xlane.f32.xlu0 %v2403_v62 }
 0xeb0   : > { %v2406_v0 = vsel %vm3661_vm3, %v2402_v63, 0.0 }
 0xeb1   : > { %2407 = vadd.xlane.f32.xlu1 %v2406_v0 }
 0xf3c   : > { %v2405_v1 = vpop.xlane.xlu0 %2404 }
 0xf3d   : > { %v2409_v11 = vmul.f32 0.03125, %v2405_v1 }
 0xf3e   : > { %v2408_v6 = vpop.xlane.xlu1 %2407 }
 0xf3f   : > { %v2411_v7 = vadd.f32 1e-05, %v2409_v11  ;;  %v2410_v8 = vmul.f32 0.03125, %v2408_v6 }
 0xf41   : > { %3089 = vrsqrt.f32 %v2411_v7  ;;  %v2412_v9 = vadd.f32 1e-05, %v2410_v8 }
 0xf43   : > { %3091 = vrsqrt.f32 %v2412_v9 }
 0xf4b   : > { %v3090_v10 = vpop.eup %3089 }
 0xf4c   : > { %v2415_v12 = vmul.f32 %v3090_v10, %v2399_v58 }
 0xf4d   : > { %v3092_v57 = vpop.eup %3091 }
 0xf4e   : > { %v2423_v14 = vmul.f32 %v2692_v56, %v2415_v12  ;;  %v2416_v15 = vmul.f32 %v3092_v57, %v2400_v60  ;;  %2438 = sbr.rel (%p2694_p5) target bundleno = 3926 (0xf56), region = 104 }
 0xf50   : > { %v2431_v16 = vadd.f32 %v2693_v13, %v2423_v14  ;;  %v2424_v18 = vmul.f32 %v2692_v56, %v2416_v15 }
 0xf52   : > { %2433 = vst.msk [vmem:[#allocation2] sm:$0xff] %vm3663_vm5, %v2431_v16  ;;  %v2432_v19 = vadd.f32 %v2693_v13, %v2424_v18 }
 0xf53   : > { %2439 = vst.msk [vmem:[%s3667_s4] sm:$0xff] (!%p2694_p5), %vm3666_vm7, %v2431_v16 }
 0xf54   : > { %2434 = vst.msk [vmem:[#allocation2 + $0x8] sm:$0x3] %vm3664_vm6, %v2432_v19 }
 0xf55   : > { %2440 = vst.msk [vmem:[%s3667_s4 + $0x8] sm:$0x3] %vm3668_vm2, %v2432_v19 }
 0xf56 PF: > { %s3669_s1 = sld [smem:[#allocation3_spill]] }
 0xf5c   : > { %s28_s27 = sadd.s32 1, %s3669_s1  }
 0xf5d   : > { %p25_p6 = scmp.ge.s32.totalorder %s28_s27, 5  }
 0xf5f   :  { %27 = sbr.rel (!%p25_p6) target bundleno = 12 (0xc), region = 172 }

// kernel: clipseg_forward.15
= control target key start
LH: loop header
LB: loop body
LE: loop exit
PB: predicated region body
PF: predicated region fallthrough
CT: control target
= control target key end

     0   :  { %v416_v3 = vmov 0.0|0.0   ;;  %vm417_vm0 = vmmov 0   ;;  %v418_v4 = vmov 0.0   ;;  %vm66_vm1 = vcmask 261120   ;;  %s606_s1 = inlined_call_operand.vmem [shape: f32[288,32], index: 1, kind: input, shape index: {}]   ;;  %s607_s0 = inlined_call_operand.vmem [shape: f32[8,288], index: 0, kind: input, shape index: {}]   ;;  %s608_s3 = inlined_call_operand.vmem [shape: f32[32,256], index: 3, kind: input, shape index: {}]   ;;  %s609_s2 = inlined_call_operand.vmem [shape: f32[1,32], index: 2, kind: input, shape index: {}]   ;;  %s610_s4 = inlined_call_operand.vmem [shape: f32[1,256], index: 4, kind: input, shape index: {}]   ;;  %s611_s5 = inlined_call_operand.vmem [shape: f32[8,256], index: 5, kind: output, shape index: {}]  }
   0x1   :  { %v39_v0 = vld [vmem:[%s606_s1 + $0x80] sm:$0xff]  ;;  %v40_v1 = vld [vmem:[%s606_s1 + $0x88] sm:$0xff]  ;;  %399 = vmatprep.subr.bf16.mxu1 %v416_v3  ;;  %364 = vmatprep.mubr.msk.f32.mxu1 %vm417_vm0, %v418_v4  ;;  %v41_v7 = vld [vmem:[%s606_s1 + $0x90] sm:$0xff] }
   0x2   :  { %v23_v2 = vld [vmem:[%s606_s1] sm:$0xff]  ;;  %v367_v5 = vpack.c.bf16 %v40_v1, %v39_v0  ;;  %v24_v6 = vld [vmem:[%s606_s1 + $0x8] sm:$0xff]  ;;  %v42_v8 = vld [vmem:[%s606_s1 + $0x98] sm:$0xff] }
   0x3   :  { %v369_v9 = vpack.c.bf16 %v24_v6, %v23_v2  ;;  %v371_v10 = vpack.c.bf16 %v42_v8, %v41_v7  ;;  %v25_v11 = vld [vmem:[%s606_s1 + $0x10] sm:$0xff]  ;;  %v26_v12 = vld [vmem:[%s606_s1 + $0x18] sm:$0xff]  ;;  %v43_v13 = vld [vmem:[%s606_s1 + $0xa0] sm:$0xff] }
   0x4   :  { %368 = vmatprep.subr.bf16.mxu0 %v367_v5  ;;  %v44_v14 = vld [vmem:[%s606_s1 + $0xa8] sm:$0xff]  ;;  %v373_v15 = vpack.c.bf16 %v26_v12, %v25_v11  ;;  %v27_v17 = vld [vmem:[%s606_s1 + $0x20] sm:$0xff]  ;;  %v45_v19 = vld [vmem:[%s606_s1 + $0xb0] sm:$0xff] }
   0x5   :  { %370 = vmatpush3.bf16.msra.mxu0 %v369_v9  ;;  %v375_v16 = vpack.c.bf16 %v44_v14, %v43_v13  ;;  %v28_v18 = vld [vmem:[%s606_s1 + $0x28] sm:$0xff]  ;;  %v46_v20 = vld [vmem:[%s606_s1 + $0xb8] sm:$0xff]  ;;  %v29_v23 = vld [vmem:[%s606_s1 + $0x30] sm:$0xff] }
   0x6   :  { %372 = vmatprep.subr.bf16.mxu0 %v371_v10  ;;  %v377_v21 = vpack.c.bf16 %v28_v18, %v27_v17  ;;  %v379_v22 = vpack.c.bf16 %v46_v20, %v45_v19  ;;  %v30_v24 = vld [vmem:[%s606_s1 + $0x38] sm:$0xff]  ;;  %v47_v25 = vld [vmem:[%s606_s1 + $0xc0] sm:$0xff]  ;;  %v48_v26 = vld [vmem:[%s606_s1 + $0xc8] sm:$0xff] }
   0x7   :  { %v55_v27 = vld [vmem:[%s606_s1 + $0x100] sm:$0xff]  ;;  %v56_v28 = vld [vmem:[%s606_s1 + $0x108] sm:$0xff]  ;;  %v381_v30 = vpack.c.bf16 %v30_v24, %v29_v23  ;;  %v57_v32 = vld [vmem:[%s606_s1 + $0x110] sm:$0xff]  ;;  %v383_v34 = vpack.c.bf16 %v48_v26, %v47_v25 }
   0x8   :  { %v21_v29 = vld [vmem:[%s607_s0 + $0x8] sm:$0xff]  ;;  %v400_v31 = vpack.c.bf16 %v56_v28, %v55_v27  ;;  %v58_v33 = vld [vmem:[%s606_s1 + $0x118] sm:$0xff]  ;;  %v31_v35 = vld [vmem:[%s606_s1 + $0x40] sm:$0xff] }
   0x9   :  { %374 = vmatpush3.bf16.msra.mxu0 %v373_v15  ;;  %134 = vmatprep.mubr.f32.mxu0 %v21_v29  ;;  %v32_v36 = vld [vmem:[%s606_s1 + $0x48] sm:$0xff]  ;;  %v49_v37 = vld [vmem:[%s606_s1 + $0xd0] sm:$0xff]  ;;  %v50_v38 = vld [vmem:[%s606_s1 + $0xd8] sm:$0xff]  ;;  %v403_v39 = vpack.c.bf16 %v58_v33, %v57_v32 }
   0xa   :  { %376 = vmatprep.subr.bf16.mxu0 %v375_v16  ;;  %401 = vmatpush3.bf16.msra.mxu1 %v400_v31  ;;  %v385_v40 = vpack.c.bf16 %v32_v36, %v31_v35  ;;  %v387_v41 = vpack.c.bf16 %v50_v38, %v49_v37  ;;  %v33_v42 = vld [vmem:[%s606_s1 + $0x50] sm:$0xff]  ;;  %v34_v43 = vld [vmem:[%s606_s1 + $0x58] sm:$0xff]  ;;  %v51_v44 = vld [vmem:[%s606_s1 + $0xe0] sm:$0xff]  ;;  %v221_v16 = vlaneseq }
   0xb   :  { %402 = vmatprep.subr.bf16.mxu1 %v416_v3  ;;  %v52_v45 = vld [vmem:[%s606_s1 + $0xe8] sm:$0xff]  ;;  %v22_v46 = vld [vmem:[%s607_s0 + $0x10] sm:$0xff]  ;;  %v389_v47 = vpack.c.bf16 %v34_v43, %v33_v42  ;;  %v35_v49 = vld [vmem:[%s606_s1 + $0x60] sm:$0xff] }
   0xc   :  { %v391_v48 = vpack.c.bf16 %v52_v45, %v51_v44  ;;  %v36_v50 = vld [vmem:[%s606_s1 + $0x68] sm:$0xff]  ;;  %v53_v51 = vld [vmem:[%s606_s1 + $0xf0] sm:$0xff]  ;;  %v54_v52 = vld [vmem:[%s606_s1 + $0xf8] sm:$0xff]  ;;  %v222_v17 = vshrl.u32 %v221_v16, 7 }
   0xd   :  { %378 = vmatpush3.bf16.msra.mxu0 %v377_v21  ;;  %v393_v53 = vpack.c.bf16 %v36_v50, %v35_v49  ;;  %v395_v54 = vpack.c.bf16 %v54_v52, %v53_v51  ;;  %v37_v55 = vld [vmem:[%s606_s1 + $0x70] sm:$0xff]  ;;  %v38_v56 = vld [vmem:[%s606_s1 + $0x78] sm:$0xff]  ;;  %v20_v58 = vld [vmem:[%s607_s0] sm:$0xff] }
   0xe   :  { %380 = vmatprep.subr.bf16.mxu0 %v379_v22  ;;  %404 = vmatpush3.bf16.msra.mxu1 %v403_v39  ;;  %v397_v57 = vpack.c.bf16 %v38_v56, %v37_v55  ;;  %v212_v59 = vld [vmem:[%s608_s3 + $0x8] sm:$0xff]  ;;  %v214_v60 = vld [vmem:[%s608_s3 + $0x18] sm:$0xff]  ;;  %v211_v62 = vld [vmem:[%s608_s3] sm:$0xff]  ;;  %v223_v18 = vsub.s32 0, %v222_v17  ;;  %v227_v20 = vsub.s32 1, %v222_v17 }
   0xf   :  { %v405_v61 = vpack.c.bf16 %v214_v60, %v212_v59  ;;  %v213_v63 = vld [vmem:[%s608_s3 + $0x10] sm:$0xff]  ;;  %v216_v1 = vld [vmem:[%s608_s3 + $0x28] sm:$0xff]  ;;  %v218_v2 = vld [vmem:[%s608_s3 + $0x38] sm:$0xff] }
  0x10   :  { %v407_v0 = vpack.c.bf16 %v213_v63, %v211_v62  ;;  %v409_v3 = vpack.c.bf16 %v218_v2, %v216_v1  ;;  %v217_v5 = vld [vmem:[%s608_s3 + $0x30] sm:$0xff]  ;;  %v313_v11 = vld [vmem:[%s609_s2] ss:$0 sm:$0xff] }
  0x11   :  { %382 = vmatpush3.bf16.msra.mxu0 %v381_v30  ;;  %365 = vmatmul.mubr.msk.f32.vlgmr.msra.gmra.mrb[0].mxu1 %vm66_vm1, %v22_v46  ;;  %v219_v19 = vld [vmem:[%s610_s4] sm:$0x3] }
  0x12   :  { %384 = vmatprep.subr.bf16.mxu0 %v383_v34  ;;  %298 = vmatprep.mubr.f32.mxu1 %v418_v4  ;;  %v215_v4 = vld [vmem:[%s608_s3 + $0x20] sm:$0xff]  ;;  %v224_v21 = vrot.slane %v219_v19, %v223_v18  ;;  %v228_v22 = vrot.slane %v219_v19, %v227_v20 }
  0x13   :  { %406 = vmatprep.subr.bf16.mxu1 %v405_v61  ;;  %v411_v6 = vpack.c.bf16 %v217_v5, %v215_v4 }
  0x14   :  { %408 = vmatpush1.bf16.msra.mxu1 %v407_v0 }
  0x15   :  { %386 = vmatpush3.bf16.msra.mxu0 %v385_v40  ;;  %410 = vmatprep.subr.bf16.mxu1 %v409_v3 }
  0x16   :  { %388 = vmatprep.subr.bf16.mxu0 %v387_v41 }
  0x18   :  { %412 = vmatpush1.bf16.msra.mxu1 %v411_v6 }
  0x19   :  { %390 = vmatpush3.bf16.msra.mxu0 %v389_v47 }
  0x1a   :  { %392 = vmatprep.subr.bf16.mxu0 %v391_v48 }
  0x1d   :  { %394 = vmatpush3.bf16.msra.mxu0 %v393_v53 }
  0x1e   :  { %396 = vmatprep.subr.bf16.mxu0 %v395_v54 }
  0x21   :  { %398 = vmatpush3.bf16.msra.mxu0 %v397_v57 }
  0x24   :  { %135 = vmatmul.mubr.f32.vlgmr.msra.gmra.mrb[0].mxu0 %v20_v58 }
  0xe4   :  { %v206_v7 = vpop.f32.mrb[0].mxu1 }
  0xe5   :  { %v366_v8 = vpop.f32.mrb[1].mxu1 }
  0xf7   :  { %v348_v9 = vpop.f32.mrb[0].mxu0 }
  0xf8   :  { %v349_v10 = vpop.f32.mrb[1].mxu0 }
  0xf9   :  { %v350_v12 = vadd.f32 %v349_v10, %v348_v9 }
  0xfb   :  { %v137_v13 = vadd.f32 %v350_v12, %v313_v11 }
  0xfd   :  { %v207_v14 = vadd.f32 %v206_v7, %v137_v13 }
  0xff   :  { %v210_v15 = vmax.f32 %v207_v14, 0.0 }
 0x101   :  { %315 = vmatmul.mubr.msk.f32.vlgmr.msra.gmra.mrb[2].mxu1 %vm66_vm1, %v210_v15 }
 0x1d4   :  { %v300_v23 = vpop.f32.mrb[2].mxu1 }
 0x1d5   :  { %v301_v24 = vadd.f32 %v300_v23, %v224_v21  ;;  %v302_v25 = vpop.f32.mrb[3].mxu1 }
 0x1d6   :  { %v303_v26 = vadd.f32 %v302_v25, %v228_v22 }
 0x1d7   :  { %v305_v27 = vmax.f32 %v301_v24, 0.0 }
 0x1d8   :  { %v306_v28 = vmax.f32 %v303_v26, 0.0 }
 0x1d9   :  { %307 = vst [vmem:[%s611_s5] sm:$0xff] %v305_v27 }
 0x1da   :  { %308 = vst [vmem:[%s611_s5 + $0x8] sm:$0xff] %v306_v28 }

// kernel: clipseg_forward.16
= control target key start
LH: loop header
LB: loop body
LE: loop exit
PB: predicated region body
PF: predicated region fallthrough
CT: control target
= control target key end

     0   :  { %vm39_vm0 = vcmask 130048   ;;  %s479_s1 = inlined_call_operand.vmem [shape: f32[16,16], index: 1, kind: input, shape index: {}]   ;;  %s480_s0 = inlined_call_operand.vmem [shape: f32[128,16], index: 0, kind: input, shape index: {}]   ;;  %s481_s2 = inlined_call_operand.vmem [shape: f32[1,16], index: 2, kind: input, shape index: {}]   ;;  %s482_s3 = inlined_call_operand.vmem [shape: f32[128,16], index: 3, kind: output, shape index: {}]  }
   0x1   :  { %v30_v0 = vld [vmem:[%s479_s1] sm:$0xff]  ;;  %v31_v1 = vld [vmem:[%s479_s1 + $0x8] sm:$0xff]  ;;  %v16_v7 = vld [vmem:[%s480_s0 + $0x10] sm:$0xff] }
   0x2   :  { %v14_v2 = vld [vmem:[%s480_s0] sm:$0xff]  ;;  %v316_v3 = vpack.c.bf16 %v31_v1, %v30_v0  ;;  %v15_v5 = vld [vmem:[%s480_s0 + $0x8] sm:$0xff]  ;;  %v24_v8 = vld [vmem:[%s480_s0 + $0x50] sm:$0xff] }
   0x3   :  { %292 = vmatprep.mubr.msk.f32.mxu0 %vm39_vm0, %v14_v2  ;;  %v22_v4 = vld [vmem:[%s480_s0 + $0x40] sm:$0xff]  ;;  %v23_v6 = vld [vmem:[%s480_s0 + $0x48] sm:$0xff]  ;;  %v17_v9 = vld [vmem:[%s480_s0 + $0x18] sm:$0xff] }
   0x4   :  { %304 = vmatprep.mubr.msk.f32.mxu1 %vm39_vm0, %v22_v4  ;;  %317 = vmatprep.subr.bf16.mxu0 %v316_v3  ;;  %v25_v10 = vld [vmem:[%s480_s0 + $0x58] sm:$0xff]  ;;  %v18_v11 = vld [vmem:[%s480_s0 + $0x20] sm:$0xff]  ;;  %v19_v13 = vld [vmem:[%s480_s0 + $0x28] sm:$0xff] }
   0x5   :  { %320 = vmatprep.subr.bf16.mxu1 %v316_v3  ;;  %319 = vmatpush3.bf16.msra.mxu0 %v316_v3  ;;  %v26_v12 = vld [vmem:[%s480_s0 + $0x60] sm:$0xff]  ;;  %v27_v14 = vld [vmem:[%s480_s0 + $0x68] sm:$0xff]  ;;  %v20_v15 = vld [vmem:[%s480_s0 + $0x30] sm:$0xff] }
   0x6   :  { %321 = vmatpush3.bf16.msra.mxu1 %v316_v3  ;;  %v28_v16 = vld [vmem:[%s480_s0 + $0x70] sm:$0xff]  ;;  %v21_v17 = vld [vmem:[%s480_s0 + $0x38] sm:$0xff]  ;;  %v253_v19 = vld [vmem:[%s481_s2] ss:$0 sm:$0xff] }
   0x7   :  { %v29_v18 = vld [vmem:[%s480_s0 + $0x78] sm:$0xff] }
   0x8   :  { %293 = vmatmul.mubr.msk.f32.vlgmr.msra.gmra.mrb[0].mxu0 %vm39_vm0, %v15_v5 }
   0x9   :  { %305 = vmatmul.mubr.msk.f32.vlgmr.msra.gmra.mrb[0].mxu1 %vm39_vm0, %v23_v6  ;;  %295 = vmatprep.mubr.msk.f32.mxu0 %vm39_vm0, %v16_v7 }
   0xa   :  { %307 = vmatprep.mubr.msk.f32.mxu1 %vm39_vm0, %v24_v8 }
   0xc   :  { %296 = vmatmul.mubr.msk.f32.gmra.mrb[2].mxu0 %vm39_vm0, %v17_v9 }
   0xd   :  { %308 = vmatmul.mubr.msk.f32.gmra.mrb[2].mxu1 %vm39_vm0, %v25_v10  ;;  %298 = vmatprep.mubr.msk.f32.mxu0 %vm39_vm0, %v18_v11 }
   0xe   :  { %310 = vmatprep.mubr.msk.f32.mxu1 %vm39_vm0, %v26_v12 }
  0x10   :  { %299 = vmatmul.mubr.msk.f32.gmra.mrb[4].mxu0 %vm39_vm0, %v19_v13 }
  0x11   :  { %311 = vmatmul.mubr.msk.f32.gmra.mrb[4].mxu1 %vm39_vm0, %v27_v14  ;;  %301 = vmatprep.mubr.msk.f32.mxu0 %vm39_vm0, %v20_v15 }
  0x12   :  { %313 = vmatprep.mubr.msk.f32.mxu1 %vm39_vm0, %v28_v16 }
  0x14   :  { %302 = vmatmul.mubr.msk.f32.gmra.mrb[6].mxu0 %vm39_vm0, %v21_v17 }
  0x15   :  { %314 = vmatmul.mubr.msk.f32.gmra.mrb[6].mxu1 %vm39_vm0, %v29_v18 }
  0xdb   :  { %v294_v20 = vpop.f32.mrb[0].mxu0 }
  0xdc   :  { %v306_v21 = vpop.f32.mrb[0].mxu1  ;;  %v160_v22 = vadd.f32 %v294_v20, %v253_v19  ;;  %v154_v24 = vpop.f32.mrb[1].mxu0 }
  0xdd   :  { %v200_v23 = vadd.f32 %v306_v21, %v253_v19  ;;  %v194_v25 = vpop.f32.mrb[1].mxu1  ;;  %v155_v26 = vadd.f32 %v253_v19, %v154_v24 }
  0xde   :  { %v195_v27 = vadd.f32 %v253_v19, %v194_v25  ;;  %234 = vst.msk [vmem:[%s482_s3 + $0x8] sm:$0xff] %vm39_vm0, %v160_v22 }
  0xdf   :  { %242 = vst.msk [vmem:[%s482_s3 + $0x48] sm:$0xff] %vm39_vm0, %v200_v23  ;;  %233 = vst.msk [vmem:[%s482_s3] sm:$0xff] %vm39_vm0, %v155_v26  ;;  %v297_v28 = vpop.f32.mrb[2].mxu0 }
  0xe0   :  { %241 = vst.msk [vmem:[%s482_s3 + $0x40] sm:$0xff] %vm39_vm0, %v195_v27  ;;  %v309_v29 = vpop.f32.mrb[2].mxu1  ;;  %v170_v30 = vadd.f32 %v297_v28, %v253_v19  ;;  %v164_v32 = vpop.f32.mrb[3].mxu0 }
  0xe1   :  { %v210_v31 = vadd.f32 %v309_v29, %v253_v19  ;;  %v204_v33 = vpop.f32.mrb[3].mxu1  ;;  %v165_v34 = vadd.f32 %v253_v19, %v164_v32 }
  0xe2   :  { %v205_v35 = vadd.f32 %v253_v19, %v204_v33  ;;  %236 = vst.msk [vmem:[%s482_s3 + $0x18] sm:$0xff] %vm39_vm0, %v170_v30 }
  0xe3   :  { %244 = vst.msk [vmem:[%s482_s3 + $0x58] sm:$0xff] %vm39_vm0, %v210_v31  ;;  %235 = vst.msk [vmem:[%s482_s3 + $0x10] sm:$0xff] %vm39_vm0, %v165_v34  ;;  %v300_v36 = vpop.f32.mrb[4].mxu0 }
  0xe4   :  { %243 = vst.msk [vmem:[%s482_s3 + $0x50] sm:$0xff] %vm39_vm0, %v205_v35  ;;  %v312_v37 = vpop.f32.mrb[4].mxu1  ;;  %v180_v38 = vadd.f32 %v300_v36, %v253_v19  ;;  %v174_v40 = vpop.f32.mrb[5].mxu0 }
  0xe5   :  { %v220_v39 = vadd.f32 %v312_v37, %v253_v19  ;;  %v214_v41 = vpop.f32.mrb[5].mxu1  ;;  %v175_v42 = vadd.f32 %v253_v19, %v174_v40 }
  0xe6   :  { %v215_v43 = vadd.f32 %v253_v19, %v214_v41  ;;  %238 = vst.msk [vmem:[%s482_s3 + $0x28] sm:$0xff] %vm39_vm0, %v180_v38 }
  0xe7   :  { %246 = vst.msk [vmem:[%s482_s3 + $0x68] sm:$0xff] %vm39_vm0, %v220_v39  ;;  %237 = vst.msk [vmem:[%s482_s3 + $0x20] sm:$0xff] %vm39_vm0, %v175_v42  ;;  %v303_v44 = vpop.f32.mrb[6].mxu0 }
  0xe8   :  { %245 = vst.msk [vmem:[%s482_s3 + $0x60] sm:$0xff] %vm39_vm0, %v215_v43  ;;  %v315_v45 = vpop.f32.mrb[6].mxu1  ;;  %v190_v46 = vadd.f32 %v303_v44, %v253_v19  ;;  %v184_v48 = vpop.f32.mrb[7].mxu0 }
  0xe9   :  { %v230_v47 = vadd.f32 %v315_v45, %v253_v19  ;;  %v224_v49 = vpop.f32.mrb[7].mxu1  ;;  %v185_v50 = vadd.f32 %v253_v19, %v184_v48 }
  0xea   :  { %v225_v51 = vadd.f32 %v253_v19, %v224_v49  ;;  %240 = vst.msk [vmem:[%s482_s3 + $0x38] sm:$0xff] %vm39_vm0, %v190_v46 }
  0xeb   :  { %248 = vst.msk [vmem:[%s482_s3 + $0x78] sm:$0xff] %vm39_vm0, %v230_v47  ;;  %239 = vst.msk [vmem:[%s482_s3 + $0x30] sm:$0xff] %vm39_vm0, %v185_v50 }
  0xec   :  { %247 = vst.msk [vmem:[%s482_s3 + $0x70] sm:$0xff] %vm39_vm0, %v225_v51 }

// kernel: clipseg_forward.17
= control target key start
LH: loop header
LB: loop body
LE: loop exit
PB: predicated region body
PF: predicated region fallthrough
CT: control target
= control target key end

     0   :  { %vm21_vm0 = vcmask 261120   ;;  %s651_s0 = inlined_call_operand.vmem [shape: f32[2,32,32], index: 0, kind: input, shape index: {}]   ;;  %s652_s1 = inlined_call_operand.vmem [shape: f32[16,32], index: 1, kind: input, shape index: {}]   ;;  %s653_s2 = inlined_call_operand.vmem [shape: f32[32,16], index: 2, kind: input, shape index: {}]   ;;  %s654_s3 = inlined_call_operand.hbm [shape: f32[2,16,16], index: 3, kind: output, shape index: {}]  }
   0x1   :  { %v17_v0 = vld [vmem:[%s651_s0] sm:$0xff]  ;;  %v18_v1 = vld [vmem:[%s651_s0 + $0x8] sm:$0xff]  ;;  %v19_v2 = vld [vmem:[%s651_s0 + $0x10] sm:$0xff] }
   0x2   :  { %v491_v3 = vpack.c.bf16 %v18_v1, %v17_v0  ;;  %v20_v4 = vld [vmem:[%s651_s0 + $0x18] sm:$0xff]  ;;  %v15_v5 = vld [vmem:[%s652_s1] sm:$0xff]  ;;  %v414_v8 = vld [vmem:[%s651_s0 + $0x28] sm:$0xff] }
   0x3   :  { %v495_v6 = vpack.c.bf16 %v20_v4, %v19_v2  ;;  %455 = vmatprep.mubr.msk.f32.mxu0 %vm21_vm0, %v15_v5  ;;  %v413_v7 = vld [vmem:[%s651_s0 + $0x20] sm:$0xff]  ;;  %v104_v10 = vld [vmem:[%s653_s2 + $0x8] sm:$0xff]  ;;  %v105_v12 = vld [vmem:[%s653_s2 + $0x10] sm:$0xff] }
   0x4   :  { %492 = vmatprep.subr.bf16.mxu0 %v491_v3  ;;  %v103_v9 = vld [vmem:[%s653_s2] sm:$0xff]  ;;  %v106_v13 = vld [vmem:[%s653_s2 + $0x18] sm:$0xff] }
   0x5   :  { %494 = vmatpush3.bf16.msra.mxu0 %v491_v3  ;;  %v499_v11 = vpack.c.bf16 %v104_v10, %v103_v9 }
   0x6   :  { %8 = vsyncpa [#allocation3], 0  ;;  %496 = vmatprep.subr.bf16.mxu0 %v495_v6  ;;  %v507_v14 = vpack.c.bf16 %v414_v8, %v413_v7  ;;  %v503_v15 = vpack.c.bf16 %v106_v13, %v105_v12  ;;  %v415_v16 = vld [vmem:[%s651_s0 + $0x30] sm:$0xff]  ;;  %v416_v17 = vld [vmem:[%s651_s0 + $0x38] sm:$0xff]  ;;  %vm200_vm1 = vcmask 130048   ;;  %s566_s0 = smov [#allocation2]  }
   0x7   :  { %500 = vmatprep.subr.bf16.mxu1 %v499_v11  ;;  %v16_v18 = vld [vmem:[%s652_s1 + $0x8] sm:$0xff]  ;;  %v511_v19 = vpack.c.bf16 %v416_v17, %v415_v16  ;;  %s396_s1 = sshll.u32 %s566_s0, 4  ;;  %s397_s1 = int_to_ptr.vmem [resolvable:$true] %s396_s1 }
   0x8   :  { %502 = vmatpush3.bf16.msra.mxu1 %v499_v11  ;;  %s542_s2 = scalar_lea.vmem %s397_s1, 512  ;;  %p547_p1 = scmp.lt.s32.totalorder %s397_s1, %s397_s1 }
   0x9   :  { %498 = vmatpush3.bf16.msra.mxu0 %v495_v6  ;;  %504 = vmatprep.subr.bf16.mxu1 %v503_v15  ;;  %p543_p0 = scmp.ne.s32.totalorder %s397_s1, %s542_s2  ;;  %p548_p2 = scmp.lt.s32.totalorder %s542_s2, %s542_s2 }
   0xa   :  { %508 = vmatprep.subr.bf16.mxu0 %v507_v14 }
   0xb   :  { %p549_p3 = por %p548_p2, %p547_p1 }
   0xc   :  { %456 = vmatmul.mubr.msk.f32.vlgmr.msra.gmra.mrb[0].mxu0 %vm21_vm0, %v16_v18  ;;  %506 = vmatpush3.bf16.msra.mxu1 %v503_v15 }
   0xd   :  { %510 = vmatpush3.bf16.msra.mxu0 %v507_v14  ;;  %477 = vmatprep.mubr.msk.f32.mxu0 %vm21_vm0, %v15_v5  ;;  %p550_p4 = pnand %p549_p3, %p543_p0 }
   0xe   :  { %512 = vmatprep.subr.bf16.mxu0 %v511_v19  ;;  %516 = vmatprep.subr.bf16.mxu1 %v499_v11 }
  0x11   :  { %514 = vmatpush3.bf16.msra.mxu0 %v511_v19 }
  0x14   :  { %478 = vmatmul.mubr.msk.f32.vlgmr.msra.gmra.mrb[2].mxu0 %vm21_vm0, %v16_v18 }
  0xdf   :  { %v457_v20 = vpop.f32.mrb[0].mxu0 }
  0xe0   :  { %v94_v21 = vpop.f32.mrb[1].mxu0 }
  0xe1   :  { %466 = vmatprep.mubr.msk.f32.mxu1 %vm21_vm0, %v94_v21 }
  0xe2   :  { %467 = vmatmul.mubr.msk.f32.vlgmr.msra.gmra.mrb[0].mxu1 %vm21_vm0, %v457_v20 }
  0xe3   :  { %518 = vmatpush3.bf16.msra.mxu1 %v499_v11 }
  0xe4   :  { %520 = vmatprep.subr.bf16.mxu1 %v503_v15 }
  0xe7   :  { %v479_v22 = vpop.f32.mrb[2].mxu0  ;;  %522 = vmatpush3.bf16.msra.mxu1 %v503_v15 }
  0xe8   :  { %v282_v23 = vpop.f32.mrb[3].mxu0 }
  0xe9   :  { %488 = vmatprep.mubr.msk.f32.mxu1 %vm21_vm0, %v282_v23 }
  0xea   :  { %489 = vmatmul.mubr.msk.f32.vlgmr.msra.gmra.mrb[2].mxu1 %vm21_vm0, %v479_v22 }
 0x1b5   :  { %v468_v24 = vpop.f32.mrb[0].mxu1 }
 0x1b6   :  { %v412_v25 = vmul.f32 -1.442695, %v468_v24  ;;  %v179_v26 = vpop.f32.mrb[1].mxu1 }
 0x1b7   :  { %v411_v27 = vmul.f32 -1.442695, %v179_v26 }
 0x1b8   :  { %526 = vpow2.f32 %v412_v25 }
 0x1b9   :  { %528 = vpow2.f32 %v411_v27 }
 0x1bd   :  { %v490_v28 = vpop.f32.mrb[2].mxu1 }
 0x1be   :  { %v422_v29 = vmul.f32 -1.442695, %v490_v28  ;;  %v367_v30 = vpop.f32.mrb[3].mxu1 }
 0x1bf   :  { %v421_v31 = vmul.f32 -1.442695, %v367_v30 }
 0x1c0   :  { %530 = vpow2.f32 %v422_v29 }
 0x1c1   :  { %532 = vpow2.f32 %v421_v31 }
 0x1c2   :  { %v527_v32 = vpop.eup %526 }
 0x1c3   :  { %v529_v33 = vpop.eup %528  ;;  %v195_v34 = vadd.f32 1.0, %v527_v32 }
 0x1c4   :  { %v194_v35 = vadd.f32 1.0, %v529_v33 }
 0x1c5   :  { %534 = vrcp.f32 %v195_v34 }
 0x1c6   :  { %536 = vrcp.f32 %v194_v35 }
 0x1ca   :  { %v531_v36 = vpop.eup %530 }
 0x1cb   :  { %v533_v37 = vpop.eup %532  ;;  %v383_v38 = vadd.f32 1.0, %v531_v36 }
 0x1cc   :  { %v382_v39 = vadd.f32 1.0, %v533_v37 }
 0x1cd   :  { %538 = vrcp.f32 %v383_v38 }
 0x1ce   :  { %540 = vrcp.f32 %v382_v39 }
 0x1cf   :  { %v535_v40 = vpop.eup %534 }
 0x1d0   :  { %v537_v41 = vpop.eup %536  ;;  %202 = vst.msk [vmem:[#allocation2 + $0x8] sm:$0xff] %vm200_vm1, %v535_v40 }
 0x1d1   :  { %201 = vst.msk [vmem:[#allocation2] sm:$0xff] %vm200_vm1, %v537_v41 }
 0x1d7   :  { %v539_v42 = vpop.eup %538 }
 0x1d8   :  { %v541_v43 = vpop.eup %540  ;;  %390 = vst.msk [vmem:[#allocation2 + $0x18] sm:$0xff] %vm200_vm1, %v539_v42 }
 0x1d9   :  { %389 = vst.msk [vmem:[#allocation2 + $0x10] sm:$0xff] %vm200_vm1, %v541_v43 }
 0x1da   :  { %553 = shalt.err (!%p550_p4)
}
 0x1db   :  { %s554_s15 = scalar_lea.hbm %s654_s3, 512 }
 0x1dc   :  { %p555_p5 = scmp.ne.s32.totalorder %s654_s3, %s554_s15  ;;  %p558_p6 = scmp.lt.u32.totalorder %s554_s15, %s654_s3 }
 0x1de   :  { %p560_p7 = pnand %p558_p6, %p555_p5 }
 0x1e0   :  { %563 = shalt.err (!%p560_p7)
}
 0x1e1   :  { %s567_s20 = smov 128   ;;  %s568_s21 = smov 8  }
 0x1e2   :  { %402 = dma.vmem_to_hbm [thread:$0]  %s397_s1, 512, %s654_s3, [#allocation3], %s567_s20, %s567_s20, %s568_s21  }
 0x1e3   :  { %564 = dma.done.wait [#allocation3], 512  }
 0x1e4   :  { %565 = vsyncadd [#allocation3], 4294966784 }
 0x1e5   :  { %406 = vsyncpa [#allocation3], 1 }

</bundles_post_ra>
